<compile_context>
chip_gen: v7x
topology: tpu7x:2x2x1
jax: 0.10.0
libtpu: 0.0.40
codegen_flags: <defaults>
</compile_context>

<pallas_src>
import functools

import jax
import jax.numpy as jnp
from jax.experimental import pallas as pl
from jax.experimental.pallas import tpu as pltpu


def ann_mlp_kernel(x_ref, w1_ref, b1_ref, w2_ref, b2_ref, w3_ref, b3_ref, o_ref,
                   *, precision):
    # fc1 + ReLU: f32 accumulate on the MXU, f32 epilogue (safe on v5e: no bf16 VPU path).
    h1 = jnp.dot(x_ref[...], w1_ref[...],
                 preferred_element_type=jnp.float32, precision=precision)
    h1 = jnp.maximum(h1 + b1_ref[...], 0.0)
    # fc2 + ReLU
    h2 = jnp.dot(h1.astype(w2_ref.dtype), w2_ref[...],
                 preferred_element_type=jnp.float32, precision=precision)
    h2 = jnp.maximum(h2 + b2_ref[...], 0.0)
    # fc3
    h3 = jnp.dot(h2.astype(w3_ref.dtype), w3_ref[...],
                 preferred_element_type=jnp.float32, precision=precision)
    o_ref[...] = (h3 + b3_ref[...]).astype(o_ref.dtype)


def _round_up(n, m):
    return ((n + m - 1) // m) * m


def _cdiv(a, b):
    return -(-a // b)


def init_params(key, hidden_dim, width, height):
    """nn.Linear-style init, U(-1/sqrt(fan_in), 1/sqrt(fan_in)).
    Weights stored transposed as (in_features, out_features); biases as (1, out)."""
    dims = [
        ("w1", "b1", height, hidden_dim),
        ("w2", "b2", hidden_dim, width * hidden_dim),
        ("w3", "b3", width * hidden_dim, height),
    ]
    params = {}
    for wname, bname, fan_in, fan_out in dims:
        key, kw, kb = jax.random.split(key, 3)
        bound = 1.0 / jnp.sqrt(jnp.float32(fan_in))
        params[wname] = jax.random.uniform(
            kw, (fan_in, fan_out), jnp.float32, minval=-bound, maxval=bound)
        params[bname] = jax.random.uniform(
            kb, (1, fan_out), jnp.float32, minval=-bound, maxval=bound)
    return params


def fold_params(params, fold=8):
    """One-time weight prep for the lane-dense fold: replace each (in, out) weight with the
    block-diagonal kron(I_fold, W) (shape (fold*in, fold*out)) and tile each bias to
    (1, fold*out).  Folding `fold` consecutive x rows into one 128-lane row and multiplying
    by the block-diagonal weight is mathematically identical to the per-row Linear."""
    eye = jnp.eye(fold, dtype=params["w1"].dtype)
    folded = {"fold": fold}
    for wname, bname in (("w1", "b1"), ("w2", "b2"), ("w3", "b3")):
        folded[wname] = jnp.kron(eye, params[wname])
        folded[bname] = jnp.tile(params[bname], (1, fold))
    return folded


def ann_model_forward(x, fparams, *, tile_m=4096, compute_dtype=None,
                      min_split_rows=1024):
    """x: (batch, height).  fparams: output of fold_params().
    compute_dtype=jnp.bfloat16 casts x + weights at this boundary (v6e/v7x fast path)
    while keeping f32 accumulation and an f32 output."""
    fold = int(fparams["fold"])
    w1, b1 = fparams["w1"], fparams["b1"]
    w2, b2 = fparams["w2"], fparams["b2"]
    w3, b3 = fparams["w3"], fparams["b3"]

    batch, height = x.shape
    assert w1.shape[0] == fold * height, "fold_params / x feature-dim mismatch"
    height_out = w3.shape[1] // fold
    out_dtype = x.dtype

    compute_dtype = jnp.dtype(x.dtype if compute_dtype is None else compute_dtype)
    precision = (jax.lax.Precision.HIGHEST if compute_dtype == jnp.float32
                 else jax.lax.Precision.DEFAULT)

    # --- Tiling: pick the step count first, then an aligned tile, so padding waste is
    # bounded per step instead of by a whole tile.
    row_align = fold * 8                       # folded rows must land on 8 sublanes
    g = _cdiv(batch, tile_m)
    if g == 1 and batch >= 2 * min_split_rows:
        g = 2                                  # v7x: give both TensorCores a step
    elif g > 1 and g % 2:
        g += 1                                 # v7x: balanced even step count
    tm = _round_up(_cdiv(batch, g), row_align)
    padded = g * tm
    if padded != batch:
        x = jnp.pad(x, ((0, padded - batch), (0, 0)))

    # --- Lane-dense fold of the batch dim into lanes (free, contiguous reshape).
    xf = x.reshape(padded // fold, fold * height).astype(compute_dtype)
    w1c, w2c, w3c = (w.astype(compute_dtype) for w in (w1, w2, w3))
    tm_f = tm // fold                          # folded rows per grid step (multiple of 8)

    def resident(arr):
        # Full-array block pinned to block (0,0): DMA'd once, VMEM-resident for all steps.
        return pl.BlockSpec(arr.shape, lambda i: (0, 0))

    # --- Cost hint (actual MXU work on folded shapes) + explicit VMEM budget.
    flops = 2 * (padded // fold) * sum(int(w.shape[0]) * int(w.shape[1])
                                       for w in (w1, w2, w3))
    bytes_accessed = (
        sum(int(a.size) * a.dtype.itemsize for a in (w1c, b1, w2c, b2, w3c, b3))
        + int(xf.size) * xf.dtype.itemsize
        + padded * height_out * jnp.dtype(out_dtype).itemsize)
    cbytes = compute_dtype.itemsize
    vmem_needed = (
        2 * sum(int(a.size) * a.dtype.itemsize for a in (w1c, b1, w2c, b2, w3c, b3))
        + 2 * tm_f * (fold * height) * cbytes          # streamed x tile, double-buffered
        + 2 * tm_f * (fold * height_out) * 4           # streamed out tile, double-buffered
        + tm_f * (int(w1.shape[1]) + int(w2.shape[1])) * 4)  # h1/h2 f32 temporaries
    vmem_limit = int(min(max(2 * vmem_needed, 32 * 1024 * 1024), 60 * 1024 * 1024))

    out = pl.pallas_call(
        functools.partial(ann_mlp_kernel, precision=precision),
        out_shape=jax.ShapeDtypeStruct((padded // fold, fold * height_out), out_dtype),
        grid=(g,),
        in_specs=[
            pl.BlockSpec((tm_f, fold * height), lambda i: (i, 0)),   # x: streamed per tile
            resident(w1c), resident(b1),
            resident(w2c), resident(b2),
            resident(w3c), resident(b3),
        ],
        out_specs=pl.BlockSpec((tm_f, fold * height_out), lambda i: (i, 0)),
        compiler_params=pltpu.CompilerParams(
            dimension_semantics=("parallel",),
            vmem_limit_bytes=vmem_limit),
        cost_estimate=pl.CostEstimate(
            flops=flops, transcendentals=0, bytes_accessed=bytes_accessed),
    )(xf, w1c, b1, w2c, b2, w3c, b3)

    # Unfold lanes back to logical rows and drop the padded rows.
    return out.reshape(padded, height_out)[:batch]


def reference_forward(x, params):
    # Pin HIGHEST precision so the reference is true-f32 like the kernel's HIGHEST path.
    hp = jax.lax.Precision.HIGHEST
    h1 = jnp.maximum(jnp.dot(x, params["w1"], precision=hp) + params["b1"], 0.0)
    h2 = jnp.maximum(jnp.dot(h1, params["w2"], precision=hp) + params["b2"], 0.0)
    return jnp.dot(h2, params["w3"], precision=hp) + params["b3"]


if __name__ == "__main__":
    # Small shapes consistent with the module: x is (batch, height).
    hidden_dim, width, height = 32, 4, 16
    FOLD = 8

    key = jax.random.PRNGKey(0)
    key, kx = jax.random.split(key)
    x = jax.random.normal(kx, (8, height), jnp.float32)
    params = init_params(key, hidden_dim, width, height)
    fparams = fold_params(params, fold=FOLD)          # one-time weight prep

    # 1) f32 (HIGHEST precision) correctness at tiny batch.
    out = jax.block_until_ready(ann_model_forward(x, fparams))
    ref = reference_forward(x, params)
    assert out.shape == (8, height), out.shape
    assert jnp.allclose(out, ref, atol=1e-5, rtol=1e-5), "mismatch vs reference"

    # 2) g-first padding policy: batch=300 -> single step, tm=320 (20 padded rows, not 212).
    key, kx2 = jax.random.split(key)
    x2 = jax.random.normal(kx2, (300, height), jnp.float32)
    out2 = jax.block_until_ready(ann_model_forward(x2, fparams))
    ref2 = reference_forward(x2, params)
    assert out2.shape == (300, height), out2.shape
    assert jnp.allclose(out2, ref2, atol=1e-5, rtol=1e-5), "mismatch vs reference (padded)"

    # 3) Multi-step grid (even step count): batch=1000, tile_m=256 -> 4 steps of 256 rows.
    key, kx3 = jax.random.split(key)
    x3 = jax.random.normal(kx3, (1000, height), jnp.float32)
    out3 = jax.block_until_ready(ann_model_forward(x3, fparams, tile_m=256))
    ref3 = reference_forward(x3, params)
    assert out3.shape == (1000, height), out3.shape
    assert jnp.allclose(out3, ref3, atol=1e-5, rtol=1e-5), "mismatch vs reference (tiled)"

    # 4) bf16 operand path (v6e/v7x fast path): loose tolerance vs the f32 reference.
    out_bf = jax.block_until_ready(
        ann_model_forward(x, fparams, compute_dtype=jnp.bfloat16))
    assert out_bf.shape == (8, height), out_bf.shape
    assert jnp.allclose(out_bf, ref, atol=5e-2, rtol=5e-2), "mismatch vs reference (bf16)"

    print("KERNEL_OK")
</pallas_src>

<mosaic_0001>
module attributes {stable_mosaic.version = 11 : i64} {
  func.func @ann_mlp_kernel(%arg0: i32, %arg1: memref<8x128xf32, #tpu.memory_space<vmem>>, %arg2: memref<128x256xf32, #tpu.memory_space<vmem>>, %arg3: memref<1x256xf32, #tpu.memory_space<vmem>>, %arg4: memref<256x1024xf32, #tpu.memory_space<vmem>>, %arg5: memref<1x1024xf32, #tpu.memory_space<vmem>>, %arg6: memref<1024x128xf32, #tpu.memory_space<vmem>>, %arg7: memref<1x128xf32, #tpu.memory_space<vmem>>, %arg8: memref<8x128xf32, #tpu.memory_space<vmem>>) attributes {dimension_semantics = [#tpu.dimension_semantics<parallel>], iteration_bounds = array<i64: 1>, scalar_prefetch = 0 : i64, scratch_operands = 0 : i64, tpu.core_type = #tpu.core_type<tc>, window_params = [{transform_indices = @transform_0, window_bounds = array<i64: 8, 128>}, {pipeline_mode = #tpu.pipeline_mode<synchronous>, transform_indices = @transform_1, window_bounds = array<i64: 128, 256>}, {pipeline_mode = #tpu.pipeline_mode<synchronous>, transform_indices = @transform_2, window_bounds = array<i64: 1, 256>}, {pipeline_mode = #tpu.pipeline_mode<synchronous>, transform_indices = @transform_3, window_bounds = array<i64: 256, 1024>}, {pipeline_mode = #tpu.pipeline_mode<synchronous>, transform_indices = @transform_4, window_bounds = array<i64: 1, 1024>}, {pipeline_mode = #tpu.pipeline_mode<synchronous>, transform_indices = @transform_5, window_bounds = array<i64: 1024, 128>}, {pipeline_mode = #tpu.pipeline_mode<synchronous>, transform_indices = @transform_6, window_bounds = array<i64: 1, 128>}, {transform_indices = @transform_7, window_bounds = array<i64: 8, 128>}]} {
    %c0 = arith.constant 0 : index
    %c0_0 = arith.constant 0 : index
    %0 = vector.load %arg1[%c0, %c0_0] : memref<8x128xf32, #tpu.memory_space<vmem>>, vector<8x128xf32>
    %c0_1 = arith.constant 0 : index
    %c0_2 = arith.constant 0 : index
    %1 = vector.load %arg2[%c0_1, %c0_2] : memref<128x256xf32, #tpu.memory_space<vmem>>, vector<128x256xf32>
    %cst = arith.constant dense<0.000000e+00> : vector<8x256xf32>
    %2 = tpu.matmul %0, %1, %cst {dimension_numbers = #tpu.dot_dimension_numbers<[1], [0], [0], [1], [0, 0, 1, 1], [], []>, precision = #tpu.contract_precision<fp32>} : vector<8x128xf32>, vector<128x256xf32>, vector<8x256xf32> -> vector<8x256xf32>
    %c0_3 = arith.constant 0 : index
    %c0_4 = arith.constant 0 : index
    %3 = vector.load %arg3[%c0_3, %c0_4] : memref<1x256xf32, #tpu.memory_space<vmem>>, vector<1x256xf32>
    %4 = vector.broadcast %3 : vector<1x256xf32> to vector<8x256xf32>
    %5 = arith.addf %2, %4 : vector<8x256xf32>
    %cst_5 = arith.constant 0.000000e+00 : f32
    %6 = vector.broadcast %cst_5 : f32 to vector<8x256xf32>
    %7 = arith.maximumf %5, %6 : vector<8x256xf32>
    %c0_6 = arith.constant 0 : index
    %c0_7 = arith.constant 0 : index
    %8 = vector.load %arg4[%c0_6, %c0_7] : memref<256x1024xf32, #tpu.memory_space<vmem>>, vector<256x1024xf32>
    %cst_8 = arith.constant dense<0.000000e+00> : vector<8x1024xf32>
    %9 = tpu.matmul %7, %8, %cst_8 {dimension_numbers = #tpu.dot_dimension_numbers<[1], [0], [0], [1], [0, 0, 1, 1], [], []>, precision = #tpu.contract_precision<fp32>} : vector<8x256xf32>, vector<256x1024xf32>, vector<8x1024xf32> -> vector<8x1024xf32>
    %c0_9 = arith.constant 0 : index
    %c0_10 = arith.constant 0 : index
    %10 = vector.load %arg5[%c0_9, %c0_10] : memref<1x1024xf32, #tpu.memory_space<vmem>>, vector<1x1024xf32>
    %11 = vector.broadcast %10 : vector<1x1024xf32> to vector<8x1024xf32>
    %12 = arith.addf %9, %11 : vector<8x1024xf32>
    %cst_11 = arith.constant 0.000000e+00 : f32
    %13 = vector.broadcast %cst_11 : f32 to vector<8x1024xf32>
    %14 = arith.maximumf %12, %13 : vector<8x1024xf32>
    %c0_12 = arith.constant 0 : index
    %c0_13 = arith.constant 0 : index
    %15 = vector.load %arg6[%c0_12, %c0_13] : memref<1024x128xf32, #tpu.memory_space<vmem>>, vector<1024x128xf32>
    %cst_14 = arith.constant dense<0.000000e+00> : vector<8x128xf32>
    %16 = tpu.matmul %14, %15, %cst_14 {dimension_numbers = #tpu.dot_dimension_numbers<[1], [0], [0], [1], [0, 0, 1, 1], [], []>, precision = #tpu.contract_precision<fp32>} : vector<8x1024xf32>, vector<1024x128xf32>, vector<8x128xf32> -> vector<8x128xf32>
    %c0_15 = arith.constant 0 : index
    %c0_16 = arith.constant 0 : index
    %17 = vector.load %arg7[%c0_15, %c0_16] : memref<1x128xf32, #tpu.memory_space<vmem>>, vector<1x128xf32>
    %18 = vector.broadcast %17 : vector<1x128xf32> to vector<8x128xf32>
    %19 = arith.addf %16, %18 : vector<8x128xf32>
    %c0_17 = arith.constant 0 : index
    %c0_18 = arith.constant 0 : index
    %20 = vector.load %arg8[%c0_17, %c0_18] : memref<8x128xf32, #tpu.memory_space<vmem>>, vector<8x128xf32>
    tpu.vector_store %arg8[%c0_17, %c0_18], %19 {strides = array<i32>} : memref<8x128xf32, #tpu.memory_space<vmem>>, vector<8x128xf32>,
    return
  }
  func.func @transform_0(%arg0: i32) -> (i32, i32) {
    %c0_i32 = arith.constant 0 : i32
    %c0_i32_0 = arith.constant 0 : i32
    return %arg0, %c0_i32 : i32, i32
  }
  func.func @transform_1(%arg0: i32) -> (i32, i32) {
    %c0_i32 = arith.constant 0 : i32
    %c0_i32_0 = arith.constant 0 : i32
    %c0_i32_1 = arith.constant 0 : i32
    return %c0_i32, %c0_i32_0 : i32, i32
  }
  func.func @transform_2(%arg0: i32) -> (i32, i32) {
    %c0_i32 = arith.constant 0 : i32
    %c0_i32_0 = arith.constant 0 : i32
    %c0_i32_1 = arith.constant 0 : i32
    return %c0_i32, %c0_i32_0 : i32, i32
  }
  func.func @transform_3(%arg0: i32) -> (i32, i32) {
    %c0_i32 = arith.constant 0 : i32
    %c0_i32_0 = arith.constant 0 : i32
    %c0_i32_1 = arith.constant 0 : i32
    return %c0_i32, %c0_i32_0 : i32, i32
  }
  func.func @transform_4(%arg0: i32) -> (i32, i32) {
    %c0_i32 = arith.constant 0 : i32
    %c0_i32_0 = arith.constant 0 : i32
    %c0_i32_1 = arith.constant 0 : i32
    return %c0_i32, %c0_i32_0 : i32, i32
  }
  func.func @transform_5(%arg0: i32) -> (i32, i32) {
    %c0_i32 = arith.constant 0 : i32
    %c0_i32_0 = arith.constant 0 : i32
    %c0_i32_1 = arith.constant 0 : i32
    return %c0_i32, %c0_i32_0 : i32, i32
  }
  func.func @transform_6(%arg0: i32) -> (i32, i32) {
    %c0_i32 = arith.constant 0 : i32
    %c0_i32_0 = arith.constant 0 : i32
    %c0_i32_1 = arith.constant 0 : i32
    return %c0_i32, %c0_i32_0 : i32, i32
  }
  func.func @transform_7(%arg0: i32) -> (i32, i32) {
    %c0_i32 = arith.constant 0 : i32
    %c0_i32_0 = arith.constant 0 : i32
    return %arg0, %c0_i32 : i32, i32
  }
}

</mosaic_0001>

<bundles_post_ra>
// kernel: tpu_custom_call.1
= control target key start
LH: loop header
LB: loop body
LE: loop exit
PB: predicated region body
PF: predicated region fallthrough
CT: control target
= control target key end

     0   :  { %12 = vsyncpa [#allocation3], 0  ;;  %s20582_s0 = inlined_call_operand.hbm [shape: f32[8,128], index: 0, kind: input, shape index: {}]   ;;  %s20583_s1 = inlined_call_operand.hbm [shape: f32[128,256], index: 1, kind: input, shape index: {}]   ;;  %s20584_s2 = inlined_call_operand.vmem [shape: f32[1,256], index: 2, kind: input, shape index: {}]   ;;  %s20585_s3 = inlined_call_operand.hbm [shape: f32[256,1024], index: 3, kind: input, shape index: {}]   ;;  %s20586_s4 = inlined_call_operand.vmem [shape: f32[1,1024], index: 4, kind: input, shape index: {}]   ;;  %s20587_s5 = inlined_call_operand.hbm [shape: f32[1024,128], index: 5, kind: input, shape index: {}]   ;;  %s20588_s6 = inlined_call_operand.vmem [shape: f32[1,128], index: 6, kind: input, shape index: {}]   ;;  %s20589_s7 = inlined_call_operand.hbm [shape: f32[8,128], index: 7, kind: output, shape index: {}]  }
   0x1   :  { %13 = vsyncpa [#allocation6], 0 }
   0x2   :  { %14 = vsyncpa [#allocation9], 0 }
   0x3   :  { %15 = vsyncpa [#allocation4], 0  ;;  %s13553_s24 = smov [#allocation5]   ;;  %s13435_s28 = scalar_lea.hbm %s20583_s1, 4096 }
   0x4   :  { %s31_s25 = sshll.u32 %s13553_s24, 4  ;;  %p13436_p0 = scmp.ne.s32.totalorder %s20583_s1, %s13435_s28  ;;  %s32_s25 = int_to_ptr.vmem [resolvable:$true] %s31_s25 }
   0x5   :  { %p13439_p1 = scmp.lt.u32.totalorder %s13435_s28, %s20583_s1 }
   0x7   :  { %p13441_p2 = pnand %p13439_p1, %p13436_p0 }
   0x9   :  { %13444 = shalt.err (!%p13441_p2)
}
   0xa   :  { %s13445_s10 = scalar_lea.vmem %s32_s25, 4096  ;;  %p13450_p4 = scmp.lt.s32.totalorder %s32_s25, %s32_s25 }
   0xb   :  { %p13446_p3 = scmp.ne.s32.totalorder %s32_s25, %s13445_s10  ;;  %p13451_p5 = scmp.lt.s32.totalorder %s13445_s10, %s13445_s10 }
   0xd   :  { %p13452_p6 = por %p13451_p5, %p13450_p4 }
   0xf   :  { %p13453_p7 = pnand %p13452_p6, %p13446_p3 }
  0x11   :  { %13456 = shalt.err (!%p13453_p7)
}
  0x12   :  { %s13554_s11 = smov 256   ;;  %s13555_s12 = smov 16  }
  0x13   :  { %37 = dma.hbm_to_vmem [thread:$0]  %s20583_s1, 4096, %s32_s25, [#allocation6], %s13554_s11, %s13554_s11, %s13555_s12  }
  0x14   :  { %s13556_s15 = smov [#allocation2]   ;;  %s13557_s17 = smov [#allocation7]  }
  0x15   :  { %s22_s16 = sshll.u32 %s13556_s15, 4  ;;  %s45_s18 = sshll.u32 %s13557_s17, 4  ;;  %s23_s16 = int_to_ptr.vmem [resolvable:$true] %s22_s16  ;;  %s46_s18 = int_to_ptr.vmem [resolvable:$true] %s45_s18 }
  0x16   :  { %s13457_s21 = scalar_lea.hbm %s20582_s0, 128 }
  0x17   :  { %p13458_p8 = scmp.ne.s32.totalorder %s20582_s0, %s13457_s21  ;;  %p13461_p9 = scmp.lt.u32.totalorder %s13457_s21, %s20582_s0 }
  0x19   :  { %p13463_p10 = pnand %p13461_p9, %p13458_p8 }
  0x1b   :  { %13466 = shalt.err (!%p13463_p10)
}
  0x1c   :  { %s13467_s1 = scalar_lea.vmem %s23_s16, 128  ;;  %p13472_p12 = scmp.lt.s32.totalorder %s23_s16, %s23_s16 }
  0x1d   :  { %p13468_p11 = scmp.ne.s32.totalorder %s23_s16, %s13467_s1  ;;  %p13473_p13 = scmp.lt.s32.totalorder %s13467_s1, %s13467_s1 }
  0x1f   :  { %p13474_p0 = por %p13473_p13, %p13472_p12 }
  0x21   :  { %p13475_p1 = pnand %p13474_p0, %p13468_p11 }
  0x23   :  { %13478 = shalt.err (!%p13475_p1)
}
  0x24   :  { %25 = dma.hbm_to_vmem [thread:$0]  %s20582_s0, 128, %s23_s16, [#allocation3]  }
  0x25   :  { %s13479_s30 = scalar_lea.hbm %s20585_s3, 32768 }
  0x26   :  { %p13480_p2 = scmp.ne.s32.totalorder %s20585_s3, %s13479_s30  ;;  %p13483_p3 = scmp.lt.u32.totalorder %s13479_s30, %s20585_s3 }
  0x28   :  { %p13485_p4 = pnand %p13483_p3, %p13480_p2 }
  0x2a   :  { %13488 = shalt.err (!%p13485_p4)
}
  0x2b   :  { %s13489_s12 = scalar_lea.vmem %s46_s18, 32768  ;;  %p13494_p6 = scmp.lt.s32.totalorder %s46_s18, %s46_s18 }
  0x2c   :  { %p13490_p5 = scmp.ne.s32.totalorder %s46_s18, %s13489_s12  ;;  %p13495_p7 = scmp.lt.s32.totalorder %s13489_s12, %s13489_s12 }
  0x2e   :  { %p13496_p8 = por %p13495_p7, %p13494_p6 }
  0x30   :  { %p13497_p9 = pnand %p13496_p8, %p13490_p5 }
  0x32   :  { %13500 = shalt.err (!%p13497_p9)
}
  0x33   :  { %s13558_s0 = smov 1024   ;;  %s13559_s13 = smov 64  }
  0x34   :  { %51 = dma.hbm_to_vmem [thread:$0]  %s20585_s3, 32768, %s46_s18, [#allocation6], %s13558_s0, %s13558_s0, %s13559_s13  }
  0x35   :  { %s13560_s16 = smov [#allocation8]   ;;  %s13501_s21 = scalar_lea.hbm %s20587_s5, 16384 }
  0x36   :  { %s59_s17 = sshll.u32 %s13560_s16, 4  ;;  %p13502_p10 = scmp.ne.s32.totalorder %s20587_s5, %s13501_s21  ;;  %s60_s17 = int_to_ptr.vmem [resolvable:$true] %s59_s17 }
  0x37   :  { %p13505_p11 = scmp.lt.u32.totalorder %s13501_s21, %s20587_s5 }
  0x39   :  { %p13507_p12 = pnand %p13505_p11, %p13502_p10 }
  0x3b   :  { %13510 = shalt.err (!%p13507_p12)
}
  0x3c   :  { %s13511_s1 = scalar_lea.vmem %s60_s17, 16384  ;;  %p13516_p0 = scmp.lt.s32.totalorder %s60_s17, %s60_s17 }
  0x3d   :  { %p13512_p13 = scmp.ne.s32.totalorder %s60_s17, %s13511_s1  ;;  %p13517_p1 = scmp.lt.s32.totalorder %s13511_s1, %s13511_s1 }
  0x3f   :  { %p13518_p2 = por %p13517_p1, %p13516_p0 }
  0x41   :  { %p13519_p3 = pnand %p13518_p2, %p13512_p13 }
  0x43   :  { %13522 = shalt.err (!%p13519_p3)
}
  0x44   :  { %s13561_s3 = smov 128   ;;  %s13562_s18 = smov 8  }
  0x45   :  { %65 = dma.hbm_to_vmem [thread:$0]  %s20587_s5, 16384, %s60_s17, [#allocation9], %s13561_s3, %s13561_s3, %s13562_s18  }
  0x46   :  { %13545 = dma.done.wait [#allocation3], 128  }
  0x47   :  { %13546 = vsyncadd [#allocation3], 4294967168 }
  0x48   :  { %13547 = dma.done.wait [#allocation6], 36864  }
  0x49   :  { %13548 = vsyncadd [#allocation6], 4294930432 }
  0x4a   :  { %13549 = dma.done.wait [#allocation9], 16384  }
  0x4b   :  { %13550 = vsyncadd [#allocation9], 4294950912  ;;  %v20592_v0 = vmov 0.0   ;;  %v82_v1 = vld [vmem:[#allocation5 + $0x8] sm:$0xff]  ;;  %v84_v2 = vld [vmem:[#allocation5 + $0x18] sm:$0xff] }
  0x4c   :  { %221 = vmatprep.mubr.f32.mxu0 %v20592_v0  ;;  %v81_v3 = vld [vmem:[#allocation5] sm:$0xff]  ;;  %v125_v4 = vand.u32 4294901760, %v82_v1  ;;  %v129_v5 = vand.u32 4294901760, %v84_v2  ;;  %v83_v6 = vld [vmem:[#allocation5 + $0x10] sm:$0xff]  ;;  %v86_v8 = vld [vmem:[#allocation5 + $0x28] sm:$0xff] }
  0x4d   :  { %v127_v7 = vand.u32 4294901760, %v81_v3  ;;  %v88_v9 = vld [vmem:[#allocation5 + $0x38] sm:$0xff]  ;;  %v131_v10 = vand.u32 4294901760, %v83_v6  ;;  %v133_v11 = vand.u32 4294901760, %v86_v8  ;;  %v85_v13 = vld [vmem:[#allocation5 + $0x20] sm:$0xff]  ;;  %v87_v14 = vld [vmem:[#allocation5 + $0x30] sm:$0xff] }
  0x4e   :  { %v137_v12 = vand.u32 4294901760, %v88_v9  ;;  %v90_v15 = vld [vmem:[#allocation5 + $0x48] sm:$0xff]  ;;  %v13654_v16 = vpack.c.bf16 %v129_v5, %v125_v4  ;;  %v92_v17 = vld [vmem:[#allocation5 + $0x58] sm:$0xff]  ;;  %v89_v18 = vld [vmem:[#allocation5 + $0x40] sm:$0xff]  ;;  %v135_v23 = vand.u32 4294901760, %v85_v13  ;;  %v139_v24 = vand.u32 4294901760, %v87_v14 }
  0x4f   :  { %v91_v19 = vld [vmem:[#allocation5 + $0x50] sm:$0xff]  ;;  %v13656_v20 = vpack.c.bf16 %v131_v10, %v127_v7  ;;  %v94_v22 = vld [vmem:[#allocation5 + $0x68] sm:$0xff]  ;;  %v141_v25 = vand.u32 4294901760, %v90_v15  ;;  %v145_v26 = vand.u32 4294901760, %v92_v17  ;;  %v143_v27 = vand.u32 4294901760, %v89_v18  ;;  %v96_v29 = vld [vmem:[#allocation5 + $0x78] sm:$0xff] }
  0x50   :  { %21907 = vst [vmem:[#allocation15_spill] sm:$0xff] %v13654_v16  ;;  %v13658_v21 = vpack.c.bf16 %v137_v12, %v133_v11  ;;  %10867 = vmatprep.subr.bf16.mxu0 %v13654_v16  ;;  %v147_v28 = vand.u32 4294901760, %v91_v19  ;;  %v93_v30 = vld [vmem:[#allocation5 + $0x60] sm:$0xff]  ;;  %v13663_v31 = vpack.c.bf16 %v139_v24, %v135_v23  ;;  %v149_v32 = vand.u32 4294901760, %v94_v22  ;;  %v95_v33 = vld [vmem:[#allocation5 + $0x70] sm:$0xff]  ;;  %v98_v34 = vld [vmem:[#allocation5 + $0x88] sm:$0xff] }
  0x51   :  { %21908 = vst [vmem:[#allocation16_spill] sm:$0xff] %v13656_v20  ;;  %10869 = vmatpush1.bf16.msra.mxu0 %v13656_v20  ;;  %v100_v35 = vld [vmem:[#allocation5 + $0x98] sm:$0xff]  ;;  %v13665_v36 = vsub.f32 %v82_v1, %v125_v4  ;;  %v13667_v37 = vsub.f32 %v84_v2, %v129_v5  ;;  %v13669_v38 = vsub.f32 %v81_v3, %v127_v7  ;;  %v153_v43 = vand.u32 4294901760, %v96_v29  ;;  %v97_v48 = vld [vmem:[#allocation5 + $0x80] sm:$0xff]  ;;  %v99_v49 = vld [vmem:[#allocation5 + $0x90] sm:$0xff] }
  0x52   :  { %21909 = vst [vmem:[#allocation17_spill] sm:$0xff] %v13658_v21  ;;  %10871 = vmatprep.subr.bf16.mxu0 %v13658_v21  ;;  %21910 = vst [vmem:[#allocation18_spill] sm:$0xff] %v13663_v31  ;;  %v13671_v39 = vpack.c.bf16 %v145_v26, %v141_v25  ;;  %v13673_v40 = vsub.f32 %v83_v6, %v131_v10  ;;  %v13675_v41 = vsub.f32 %v86_v8, %v133_v11  ;;  %v102_v54 = vld [vmem:[#allocation5 + $0xa8] sm:$0xff]  ;;  %v104_v55 = vld [vmem:[#allocation5 + $0xb8] sm:$0xff] }
  0x53   :  { %v13677_v42 = vpack.c.bf16 %v147_v28, %v143_v27  ;;  %v151_v44 = vand.u32 4294901760, %v93_v30  ;;  %v155_v45 = vand.u32 4294901760, %v95_v33  ;;  %v157_v46 = vand.u32 4294901760, %v98_v34  ;;  %v101_v56 = vld [vmem:[#allocation5 + $0xa0] sm:$0xff]  ;;  %v103_v61 = vld [vmem:[#allocation5 + $0xb0] sm:$0xff]  ;;  %v106_v62 = vld [vmem:[#allocation5 + $0xc8] sm:$0xff] }
  0x54   :  { %21911 = vst [vmem:[#allocation19_spill] sm:$0xff] %v13671_v39  ;;  %v161_v47 = vand.u32 4294901760, %v100_v35  ;;  %v13680_v50 = vsub.f32 %v88_v9, %v137_v12  ;;  %v13682_v51 = vsub.f32 %v85_v13, %v135_v23  ;;  %v13684_v52 = vsub.f32 %v87_v14, %v139_v24  ;;  %v108_v63 = vld [vmem:[#allocation5 + $0xd8] sm:$0xff]  ;;  %v105_v9 = vld [vmem:[#allocation5 + $0xc0] sm:$0xff]  ;;  %v107_v10 = vld [vmem:[#allocation5 + $0xd0] sm:$0xff] }
  0x55   :  { %21912 = vst [vmem:[#allocation20_spill] sm:$0xff] %v13677_v42  ;;  %10873 = vmatpush1.bf16.msra.mxu0 %v13663_v31  ;;  %v13687_v53 = vpack.c.bf16 %v153_v43, %v149_v32  ;;  %v13689_v57 = vsub.f32 %v90_v15, %v141_v25  ;;  %v13691_v58 = vsub.f32 %v92_v17, %v145_v26  ;;  %v159_v3 = vand.u32 4294901760, %v97_v48  ;;  %v80_v26 = vld [vmem:[#allocation2] sm:$0xff] }
  0x56   :  { %10875 = vmatprep.subr.bf16.mxu0 %v13671_v39  ;;  %v13693_v59 = vsub.f32 %v89_v18, %v143_v27  ;;  %v13695_v60 = vsub.f32 %v91_v19, %v147_v28  ;;  %v13697_v1 = vsub.f32 %v94_v22, %v149_v32  ;;  %v13699_v2 = vsub.f32 %v96_v29, %v153_v43  ;;  %v110_v43 = vld [vmem:[#allocation5 + $0xe8] sm:$0xff] }
  0x57   :  { %21913 = vst [vmem:[#allocation21_spill] sm:$0xff] %v13687_v53  ;;  %v163_v4 = vand.u32 4294901760, %v99_v49  ;;  %v13702_v5 = vpack.c.bf16 %v155_v45, %v151_v44  ;;  %v13704_v6 = vpack.c.bf16 %v161_v47, %v157_v46  ;;  %v165_v7 = vand.u32 4294901760, %v102_v54 }
  0x58   :  { %v169_v8 = vand.u32 4294901760, %v104_v55  ;;  %v167_v11 = vand.u32 4294901760, %v101_v56  ;;  %v171_v12 = vand.u32 4294901760, %v103_v61  ;;  %v173_v13 = vand.u32 4294901760, %v106_v62 }
  0x59   :  { %10877 = vmatpush1.bf16.msra.mxu0 %v13677_v42  ;;  %21914 = vst [vmem:[#allocation22_spill] sm:$0xff] %v13702_v5  ;;  %21915 = vst [vmem:[#allocation23_spill] sm:$0xff] %v13704_v6  ;;  %v177_v14 = vand.u32 4294901760, %v108_v63  ;;  %v13707_v15 = vsub.f32 %v93_v30, %v151_v44  ;;  %v13709_v17 = vsub.f32 %v95_v33, %v155_v45  ;;  %v175_v24 = vand.u32 4294901760, %v105_v9  ;;  %v112_v45 = vld [vmem:[#allocation5 + $0xf8] sm:$0xff] }
  0x5a   :  { %10879 = vmatprep.subr.bf16.mxu0 %v13687_v53  ;;  %v13711_v18 = vsub.f32 %v98_v34, %v157_v46  ;;  %v13713_v19 = vsub.f32 %v100_v35, %v161_v47  ;;  %v13715_v22 = vpack.c.bf16 %v163_v4, %v159_v3  ;;  %v13717_v23 = vsub.f32 %v97_v48, %v159_v3 }
  0x5b   :  { %v179_v25 = vand.u32 4294901760, %v107_v10  ;;  %v13720_v27 = vsub.f32 %v99_v49, %v163_v4  ;;  %v13722_v28 = vpack.c.bf16 %v169_v8, %v165_v7  ;;  %v13724_v29 = vsub.f32 %v102_v54, %v165_v7 }
  0x5c   :  { %21916 = vst [vmem:[#allocation24_spill] sm:$0xff] %v13715_v22  ;;  %v13726_v30 = vsub.f32 %v104_v55, %v169_v8  ;;  %v13729_v32 = vpack.c.bf16 %v171_v12, %v167_v11  ;;  %v13731_v33 = vsub.f32 %v101_v56, %v167_v11  ;;  %v13733_v34 = vsub.f32 %v103_v61, %v171_v12  ;;  %v109_v56 = vld [vmem:[#allocation5 + $0xe0] sm:$0xff]  ;;  %v13749_v61 = vld [vmem:[#allocation5 + $0xf0] sm:$0xff] }
  0x5d   :  { %10881 = vmatpush1.bf16.msra.mxu0 %v13702_v5  ;;  %21917 = vst [vmem:[#allocation25_spill] sm:$0xff] %v13722_v28  ;;  %v13735_v35 = vpack.c.bf16 %v177_v14, %v173_v13  ;;  %v13737_v44 = vsub.f32 %v106_v62, %v173_v13  ;;  %v20590_v46 = vand.u32 4294901760, %v13665_v36  ;;  %v20591_v47 = vand.u32 4294901760, %v13667_v37 }
  0x5e   :  { %10883 = vmatprep.subr.bf16.mxu0 %v13704_v6  ;;  %21918 = vst [vmem:[#allocation26_spill] sm:$0xff] %v13729_v32  ;;  %v13741_v48 = vand.u32 4294901760, %v80_v26  ;;  %v13743_v49 = vsub.f32 %v108_v63, %v177_v14  ;;  %v13745_v54 = vpack.c.bf16 %v179_v25, %v175_v24  ;;  %v13747_v55 = vsub.f32 %v105_v9, %v175_v24 }
  0x5f   :  { %21919 = vst [vmem:[#allocation27_spill] sm:$0xff] %v13735_v35  ;;  %v20594_v3 = vand.u32 4294901760, %v13669_v38  ;;  %v13753_v62 = vsub.f32 %v107_v10, %v179_v25  ;;  %v181_v4 = vand.u32 4294901760, %v110_v43  ;;  %v236_v7 = vsub.f32 %v13665_v36, %v20590_v46 }
  0x60   :  { %21920 = vst [vmem:[#allocation28_spill] sm:$0xff] %v13743_v49  ;;  %21921 = vst [vmem:[#allocation29_spill] sm:$0xff] %v13745_v54  ;;  %v248_v63 = vsub.f32 %v13667_v37, %v20591_v47  ;;  %v185_v8 = vand.u32 4294901760, %v112_v45  ;;  %v13763_v9 = vsub.f32 %v80_v26, %v13741_v48  ;;  %v20595_v11 = vand.u32 4294901760, %v13673_v40 }
  0x61   :  { %21922 = vst [vmem:[#allocation30_spill] sm:$0xff] %v13747_v55  ;;  %10885 = vmatpush1.bf16.msra.mxu0 %v13715_v22  ;;  %21923 = vst [vmem:[#allocation31_spill] sm:$0xff] %v13753_v62  ;;  %v20600_v10 = vand.u32 4294901760, %v13675_v41  ;;  %v183_v12 = vand.u32 4294901760, %v109_v56  ;;  %v20601_v14 = vand.u32 4294901760, %v13680_v50  ;;  %v237_v25 = vand.u32 4294901760, %v236_v7 }
  0x62   :  { %10887 = vmatprep.subr.bf16.mxu0 %v13722_v28  ;;  %21924 = vst [vmem:[#allocation32_spill] sm:$0xff] %v13763_v9  ;;  %v249_v46 = vand.u32 4294901760, %v248_v63  ;;  %v242_v26 = vsub.f32 %v13669_v38, %v20594_v3  ;;  %v254_v0 = vsub.f32 %v13673_v40, %v20595_v11  ;;  %v20610_v63 = vand.u32 4294901760, %v13684_v52 }
  0x63   :  { %v260_v13 = vsub.f32 %v13675_v41, %v20600_v10  ;;  %v272_v7 = vsub.f32 %v13680_v50, %v20601_v14  ;;  %v13786_v47 = vpack.c.bf16 %v185_v8, %v181_v4  ;;  %v13788_v3 = vsub.f32 %v110_v43, %v181_v4 }
  0x64   :  { %v13790_v24 = vsub.f32 %v112_v45, %v185_v8  ;;  %v21928_v10 = vand.u32 4294901760, %v13682_v51  ;;  %v20615_v22 = vand.u32 4294901760, %v13691_v58  ;;  %v10898_v43 = vpack.c.bf16 %v249_v46, %v237_v25 }
  0x65   :  { %10889 = vmatpush1.bf16.msra.mxu0 %v13729_v32  ;;  %21925 = vst [vmem:[#allocation33_spill] sm:$0xff] %v13786_v47  ;;  %v21926_v32 = vand.u32 4294901760, %v13749_v61  ;;  %v21929_v45 = vand.u32 4294901760, %v13763_v9  ;;  %v243_v8 = vand.u32 4294901760, %v242_v26  ;;  %v261_v6 = vand.u32 4294901760, %v260_v13 }
  0x66   :  { %10891 = vmatprep.subr.bf16.mxu0 %v13735_v35  ;;  %v266_v14 = vsub.f32 %v13682_v51, %v21928_v10  ;;  %v278_v35 = vsub.f32 %v13684_v52, %v20610_v63  ;;  %v273_v5 = vand.u32 4294901760, %v272_v7  ;;  %v20618_v10 = vand.u32 4294901760, %v13695_v60 }
  0x67   :  { %v13795_v28 = vpack.c.bf16 %v21926_v32, %v183_v12  ;;  %v225_v4 = vsub.f32 %v13763_v9, %v21929_v45  ;;  %v255_v32 = vand.u32 4294901760, %v254_v0  ;;  %v21930_v63 = vand.u32 4294901760, %v13689_v57 }
  0x68   :  { %v296_v25 = vsub.f32 %v13691_v58, %v20615_v22  ;;  %v20623_v26 = vand.u32 4294901760, %v13697_v1  ;;  %v20628_v45 = vand.u32 4294901760, %v13699_v2  ;;  %v267_v11 = vand.u32 4294901760, %v266_v14 }
  0x69   :  { %21927 = vst [vmem:[#allocation34_spill] sm:$0xff] %v13795_v28  ;;  %10893 = vmatpush1.bf16.msra.mxu0 %v13745_v54  ;;  %v284_v46 = vsub.f32 %v13689_v57, %v21930_v63  ;;  %v279_v0 = vand.u32 4294901760, %v278_v35  ;;  %v21931_v13 = vand.u32 4294901760, %v13693_v59  ;;  %v226_v54 = vand.u32 4294901760, %v225_v4 }
  0x6a   :  { %10895 = vmatprep.subr.bf16.mxu0 %v13786_v47  ;;  %v302_v47 = vsub.f32 %v13695_v60, %v20618_v10  ;;  %v308_v63 = vsub.f32 %v13697_v1, %v20623_v26  ;;  %v320_v22 = vsub.f32 %v13699_v2, %v20628_v45  ;;  %v13833_v35 = vsub.f32 %v109_v56, %v183_v12 }
  0x6b   :  { %v290_v7 = vsub.f32 %v13693_v59, %v21931_v13  ;;  %v10900_v13 = vpack.c.bf16 %v255_v32, %v243_v8  ;;  %v20639_v53 = vand.u32 4294901760, %v13709_v17  ;;  %v20633_v10 = vand.u32 4294901760, %v13711_v18 }
  0x6c   :  { %v10902_v4 = vpack.c.bf16 %v273_v5, %v261_v6  ;;  %v285_v42 = vand.u32 4294901760, %v284_v46  ;;  %v297_v39 = vand.u32 4294901760, %v296_v25  ;;  %v20632_v26 = vand.u32 4294901760, %v13713_v19 }
  0x6d   :  { %10897 = vmatpush1.bf16.msra.mxu0 %v13795_v28  ;;  %v10904_v31 = vpack.c.bf16 %v279_v0, %v267_v11  ;;  %v291_v21 = vand.u32 4294901760, %v290_v7  ;;  %v303_v45 = vand.u32 4294901760, %v302_v47  ;;  %v20631_v14 = vand.u32 4294901760, %v13717_v23 }
  0x6e   :  { %10899 = vmatprep.subr.bf16.mxu0 %v10898_v43  ;;  %v309_v28 = vand.u32 4294901760, %v308_v63  ;;  %v321_v56 = vand.u32 4294901760, %v320_v22  ;;  %v21932_v12 = vand.u32 4294901760, %v13707_v15  ;;  %v20634_v32 = vand.u32 4294901760, %v13720_v27 }
  0x6f   :  { %v326_v5 = vsub.f32 %v13709_v17, %v20639_v53  ;;  %v332_v6 = vsub.f32 %v13711_v18, %v20633_v10  ;;  %v344_v47 = vsub.f32 %v13713_v19, %v20632_v26  ;;  %v21933_v22 = vmov 0.0  }
  0x70   :  { %227 = vmatmul.mubr.f32.vlgmr.msra.gmra.mrb[0].mxu0 %v226_v54  ;;  %v314_v8 = vsub.f32 %v13707_v15, %v21932_v12  ;;  %v10906_v54 = vpack.c.bf16 %v297_v39, %v285_v42  ;;  %v338_v11 = vsub.f32 %v13717_v23, %v20631_v14  ;;  %v20638_v43 = vand.u32 4294901760, %v13724_v29 }
  0x71   :  { %10901 = vmatpush1.bf16.msra.mxu0 %v10900_v13  ;;  %457 = vmatprep.mubr.f32.mxu0 %v21933_v22  ;;  %v20637_v46 = vand.u32 4294901760, %v13726_v30  ;;  %v21934_v25 = vand.u32 4294901760, %v13749_v61  ;;  %v350_v7 = vsub.f32 %v13720_v27, %v20634_v32  ;;  %v20635_v63 = vand.u32 4294901760, %v13731_v33 }
  0x72   :  { %10903 = vmatprep.subr.bf16.mxu0 %v10902_v4  ;;  %v20636_v39 = vand.u32 4294901760, %v13733_v34  ;;  %v10908_v42 = vpack.c.bf16 %v303_v45, %v291_v21  ;;  %v10910_v13 = vpack.c.bf16 %v321_v56, %v309_v28  ;;  %v315_v4 = vand.u32 4294901760, %v314_v8 }
  0x73   :  { %v13861_v0 = vsub.f32 %v13749_v61, %v21934_v25  ;;  %v20642_v12 = vand.u32 4294901760, %v13737_v44  ;;  %v327_v14 = vand.u32 4294901760, %v326_v5  ;;  %v333_v26 = vand.u32 4294901760, %v332_v6 }
  0x74   :  { %v345_v10 = vand.u32 4294901760, %v344_v47  ;;  %v391_v61 = vand.u32 4294901760, %v13743_v49  ;;  %v339_v25 = vand.u32 4294901760, %v338_v11  ;;  %v356_v32 = vsub.f32 %v13724_v29, %v20638_v43 }
  0x75   :  { %10905 = vmatpush1.bf16.msra.mxu0 %v10904_v31  ;;  %v368_v21 = vsub.f32 %v13726_v30, %v20637_v46  ;;  %v385_v28 = vand.u32 4294901760, %v13747_v55  ;;  %v351_v45 = vand.u32 4294901760, %v350_v7  ;;  %v362_v31 = vsub.f32 %v13731_v33, %v20635_v63 }
  0x76   :  { %10907 = vmatprep.subr.bf16.mxu0 %v10906_v54  ;;  %v374_v56 = vsub.f32 %v13733_v34, %v20636_v39  ;;  %v397_v8 = vand.u32 4294901760, %v13753_v62  ;;  %v380_v5 = vsub.f32 %v13737_v44, %v20642_v12  ;;  %v392_v6 = vsub.f32 %v13743_v49, %v391_v61 }
  0x77   :  { %v403_v47 = vand.u32 4294901760, %v13788_v3  ;;  %v415_v54 = vand.u32 4294901760, %v13790_v24  ;;  %v10912_v11 = vpack.c.bf16 %v327_v14, %v315_v4  ;;  %v386_v7 = vsub.f32 %v13747_v55, %v385_v28 }
  0x78   :  { %v398_v63 = vsub.f32 %v13753_v62, %v397_v8  ;;  %v409_v39 = vand.u32 4294901760, %v13833_v35  ;;  %v10914_v46 = vpack.c.bf16 %v345_v10, %v333_v26  ;;  %v357_v43 = vand.u32 4294901760, %v356_v32 }
  0x79   :  { %10909 = vmatpush1.bf16.msra.mxu0 %v10908_v42  ;;  %v369_v53 = vand.u32 4294901760, %v368_v21  ;;  %v10916_v20 = vpack.c.bf16 %v351_v45, %v339_v25  ;;  %v363_v12 = vand.u32 4294901760, %v362_v31  ;;  %v375_v9 = vand.u32 4294901760, %v374_v56 }
  0x7a   :  { %10911 = vmatprep.subr.bf16.mxu0 %v10910_v13  ;;  %v381_v16 = vand.u32 4294901760, %v380_v5  ;;  %v393_v49 = vand.u32 4294901760, %v392_v6  ;;  %v404_v22 = vsub.f32 %v13788_v3, %v403_v47  ;;  %v416_v42 = vsub.f32 %v13790_v24, %v415_v54 }
  0x7b   :  { %v387_v14 = vand.u32 4294901760, %v386_v7  ;;  %v399_v4 = vand.u32 4294901760, %v398_v63  ;;  %v410_v62 = vsub.f32 %v13833_v35, %v409_v39  ;;  %v421_v55 = vand.u32 4294901760, %v13861_v0 }
  0x7c   :  { %v10918_v10 = vpack.c.bf16 %v369_v53, %v357_v43  ;;  %v10920_v26 = vpack.c.bf16 %v375_v9, %v363_v12  ;;  %v10922_v32 = vpack.c.bf16 %v393_v49, %v381_v16  ;;  %v405_v13 = vand.u32 4294901760, %v404_v22 }
  0x7d   :  { %10913 = vmatpush1.bf16.msra.mxu0 %v10912_v11  ;;  %v417_v25 = vand.u32 4294901760, %v416_v42  ;;  %v10924_v21 = vpack.c.bf16 %v399_v4, %v387_v14  ;;  %v411_v45 = vand.u32 4294901760, %v410_v62  ;;  %v422_v31 = vsub.f32 %v13861_v0, %v421_v55 }
  0x7e   :  { %10915 = vmatprep.subr.bf16.mxu0 %v10914_v46  ;;  %v21935_v56 = vand.u32 4294901760, %v13665_v36  ;;  %v21936_v5 = vand.u32 4294901760, %v13667_v37  ;;  %v21937_v6 = vand.u32 4294901760, %v13669_v38  ;;  %v21938_v53 = vand.u32 4294901760, %v13673_v40 }
  0x7f   :  { %v21939_v16 = vand.u32 4294901760, %v13675_v41  ;;  %v21941_v62 = vand.u32 4294901760, %v13682_v51  ;;  %v21942_v22 = vand.u32 4294901760, %v13684_v52  ;;  %v21943_v46 = vand.u32 4294901760, %v13689_v57 }
  0x80   :  { %v13902_v63 = vpack.c.bf16 %v21936_v5, %v21935_v56  ;;  %v13908_v9 = vpack.c.bf16 %v21938_v53, %v21937_v6  ;;  %v21944_v12 = vand.u32 4294901760, %v13691_v58  ;;  %v21945_v7 = vand.u32 4294901760, %v13693_v59 }
  0x81   :  { %10917 = vmatpush1.bf16.msra.mxu0 %v10916_v20  ;;  %v21940_v20 = vand.u32 4294901760, %v13680_v50  ;;  %v13920_v43 = vpack.c.bf16 %v21942_v22, %v21941_v62  ;;  %v21946_v42 = vand.u32 4294901760, %v13695_v60  ;;  %v21947_v4 = vand.u32 4294901760, %v13697_v1 }
  0x82   :  { %10919 = vmatprep.subr.bf16.mxu0 %v10918_v10  ;;  %v13926_v11 = vpack.c.bf16 %v21944_v12, %v21943_v46  ;;  %v21948_v10 = vand.u32 4294901760, %v13699_v2  ;;  %v21949_v5 = vand.u32 4294901760, %v13707_v15  ;;  %v21950_v6 = vand.u32 4294901760, %v13709_v17 }
  0x83   :  { %v13914_v49 = vpack.c.bf16 %v21940_v20, %v21939_v16  ;;  %v13932_v14 = vpack.c.bf16 %v21946_v42, %v21945_v7  ;;  %v21951_v16 = vand.u32 4294901760, %v13711_v18  ;;  %v21952_v20 = vand.u32 4294901760, %v13713_v19 }
  0x84   :  { %v13938_v56 = vpack.c.bf16 %v21948_v10, %v21947_v4  ;;  %v13944_v53 = vpack.c.bf16 %v21950_v6, %v21949_v5  ;;  %v21954_v22 = vand.u32 4294901760, %v13717_v23  ;;  %v21955_v46 = vand.u32 4294901760, %v13720_v27 }
  0x85   :  { %v13950_v62 = vpack.c.bf16 %v21952_v20, %v21951_v16  ;;  %v21957_v7 = vand.u32 4294901760, %v13724_v29  ;;  %v21958_v42 = vand.u32 4294901760, %v13726_v30  ;;  %v21959_v10 = vand.u32 4294901760, %v13731_v33  ;;  %10921 = vmatpush1.bf16.msra.mxu0 %v10920_v26 }
  0x86   :  { %v13956_v12 = vpack.c.bf16 %v21955_v46, %v21954_v22  ;;  %v21960_v5 = vand.u32 4294901760, %v13733_v34  ;;  %v21961_v16 = vand.u32 4294901760, %v13737_v44  ;;  %v13974_v22 = vpack.c.bf16 %v397_v8, %v385_v28  ;;  %10923 = vmatprep.subr.bf16.mxu0 %v10922_v32  ;;  %v983_v8 = vld [vmem:[#allocation7 + $0x8] sm:$0xff] }
  0x87   :  { %21953 = vst [vmem:[#allocation35_spill] sm:$0xff] %v13950_v62  ;;  %v13962_v4 = vpack.c.bf16 %v21958_v42, %v21957_v7  ;;  %v423_v62 = vand.u32 4294901760, %v422_v31  ;;  %v13976_v46 = vpack.c.bf16 %v415_v54, %v403_v47  ;;  %v10926_v7 = vpack.c.bf16 %v417_v25, %v405_v13  ;;  %v991_v47 = vld [vmem:[#allocation7 + $0x48] sm:$0xff]  ;;  %v13991_v54 = vld [vmem:[#allocation7 + $0x18] sm:$0xff]  ;;  %v14002_v13 = vld [vmem:[#allocation7 + $0x10] sm:$0xff] }
  0x88   :  { %21956 = vst [vmem:[#allocation36_spill] sm:$0xff] %v13956_v12  ;;  %v13968_v6 = vpack.c.bf16 %v21960_v5, %v21959_v10  ;;  %v13972_v20 = vpack.c.bf16 %v391_v61, %v21961_v16  ;;  %v13978_v12 = vpack.c.bf16 %v421_v55, %v409_v39  ;;  %v10930_v10 = vpack.c.bf16 %v13667_v37, %v13665_v36 }
  0x89   :  { %10925 = vmatpush1.bf16.msra.mxu0 %v10924_v21  ;;  %v10928_v42 = vpack.c.bf16 %v423_v62, %v411_v45  ;;  %v10932_v61 = vpack.c.bf16 %v13673_v40, %v13669_v38  ;;  %v10934_v28 = vpack.c.bf16 %v13680_v50, %v13675_v41  ;;  %v10936_v55 = vpack.c.bf16 %v13684_v52, %v13682_v51  ;;  %v13996_v41 = vld [vmem:[#allocation7 + $0x58] sm:$0xff]  ;;  %v982_v51 = vld [vmem:[#allocation7] sm:$0xff] }
  0x8a   :  { %10927 = vmatprep.subr.bf16.mxu0 %v10926_v7  ;;  %v10938_v39 = vpack.c.bf16 %v13691_v58, %v13689_v57  ;;  %v10940_v36 = vpack.c.bf16 %v13695_v60, %v13693_v59  ;;  %v21962_v37 = vmov 0.0   ;;  %v1280_v38 = vand.u32 4294901760, %v983_v8  ;;  %v990_v52 = vld [vmem:[#allocation7 + $0x40] sm:$0xff]  ;;  %v14004_v59 = vld [vmem:[#allocation7 + $0x50] sm:$0xff]  ;;  %v999_v60 = vld [vmem:[#allocation7 + $0x88] sm:$0xff] }
  0x8b   :  { %v1284_v40 = vand.u32 4294901760, %v991_v47  ;;  %v20651_v50 = vand.u32 4294901760, %v13991_v54  ;;  %v10942_v57 = vpack.c.bf16 %v13699_v2, %v13697_v1  ;;  %v20650_v58 = vand.u32 4294901760, %v13996_v41  ;;  %v1007_v1 = vld [vmem:[#allocation7 + $0xc8] sm:$0xff]  ;;  %v14017_v2 = vld [vmem:[#allocation7 + $0x98] sm:$0xff] }
  0x8c   :  { %v1282_v26 = vand.u32 4294901760, %v982_v51  ;;  %v1286_v32 = vand.u32 4294901760, %v990_v52  ;;  %v14008_v21 = vsub.f32 %v983_v8, %v1280_v38  ;;  %v14019_v62 = vld [vmem:[#allocation7 + $0xd8] sm:$0xff]  ;;  %v10944_v5 = vpack.c.bf16 %v13709_v17, %v13707_v15 }
  0x8d   :  { %10929 = vmatpush1.bf16.msra.mxu0 %v10928_v42  ;;  %v14006_v25 = vpack.c.bf16 %v1284_v40, %v1280_v38  ;;  %v14010_v45 = vsub.f32 %v991_v47, %v1284_v40  ;;  %v14015_v31 = vsub.f32 %v13991_v54, %v20651_v50  ;;  %v14026_v16 = vsub.f32 %v13996_v41, %v20650_v58  ;;  %v1006_v40 = vld [vmem:[#allocation7 + $0xc0] sm:$0xff]  ;;  %v1023_v58 = vld [vmem:[#allocation7 + $0x148] sm:$0xff] }
  0x8e   :  { %10931 = vmatprep.subr.bf16.mxu0 %v10930_v10  ;;  %21964 = vst [vmem:[#allocation38_spill] sm:$0xff] %v14008_v21  ;;  %v14028_v7 = vpack.c.bf16 %v1286_v32, %v1282_v26  ;;  %v14030_v42 = vsub.f32 %v982_v51, %v1282_v26  ;;  %v998_v10 = vld [vmem:[#allocation7 + $0x80] sm:$0xff]  ;;  %v20655_v8 = vand.u32 4294901760, %v14004_v59  ;;  %v1288_v15 = vand.u32 4294901760, %v999_v60  ;;  %v14042_v51 = vld [vmem:[#allocation7 + $0x90] sm:$0xff] }
  0x8f   :  { %21963 = vst [vmem:[#allocation37_spill] sm:$0xff] %v14006_v25  ;;  %21965 = vst [vmem:[#allocation39_spill] sm:$0xff] %v14010_v45  ;;  %11059 = vmatprep.subr.bf16.mxu1 %v14006_v25  ;;  %v10946_v17 = vpack.c.bf16 %v13713_v19, %v13711_v18  ;;  %v1292_v47 = vand.u32 4294901760, %v1007_v1  ;;  %v1290_v19 = vand.u32 4294901760, %v998_v10  ;;  %v14056_v26 = vld [vmem:[#allocation7 + $0xd0] sm:$0xff]  ;;  %v10948_v50 = vpack.c.bf16 %v13720_v27, %v13717_v23  ;;  %v14079_v27 = vld [vmem:[#allocation7 + $0x158] sm:$0xff] }
  0x90   :  { %459 = vmatmul.mubr.f32.vlgmr.msra.gmra.mrb[0].mxu0 %v13741_v48  ;;  %21966 = vst [vmem:[#allocation40_spill] sm:$0xff] %v14015_v31  ;;  %21967 = vst [vmem:[#allocation41_spill] sm:$0xff] %v14026_v16  ;;  %11061 = vmatpush1.bf16.msra.mxu1 %v14028_v7  ;;  %v14054_v18 = vsub.f32 %v999_v60, %v1288_v15  ;;  %v21978_v60 = vand.u32 4294901760, %v14019_v62  ;;  %v20664_v23 = vand.u32 4294901760, %v14042_v51 }
  0x91   :  { %10933 = vmatpush1.bf16.msra.mxu0 %v10932_v61  ;;  %593 = vmatprep.mubr.f32.mxu0 %v21962_v37  ;;  %21968 = vst [vmem:[#allocation42_spill] sm:$0xff] %v14028_v7  ;;  %21969 = vst [vmem:[#allocation43_spill] sm:$0xff] %v14030_v42  ;;  %v14033_v61 = vsub.f32 %v990_v52, %v1286_v32  ;;  %v1015_v32 = vld [vmem:[#allocation7 + $0x108] sm:$0xff]  ;;  %v14062_v38 = vsub.f32 %v1007_v1, %v1292_v47 }
  0x92   :  { %10935 = vmatprep.subr.bf16.mxu0 %v10934_v28  ;;  %v20652_v28 = vand.u32 4294901760, %v14002_v13  ;;  %21973 = vst [vmem:[#allocation47_spill] sm:$0xff] %v14054_v18  ;;  %v14074_v25 = vsub.f32 %v14019_v62, %v21978_v60  ;;  %v1294_v18 = vand.u32 4294901760, %v1006_v40  ;;  %v10950_v1 = vpack.c.bf16 %v13726_v30, %v13724_v29  ;;  %v14095_v29 = vld [vmem:[#allocation7 + $0x110] sm:$0xff] }
  0x93   :  { %21970 = vst [vmem:[#allocation44_spill] sm:$0xff] %v14033_v61  ;;  %21975 = vst [vmem:[#allocation49_spill] sm:$0xff] %v14062_v38  ;;  %v10958_v61 = vpack.c.bf16 %v13790_v24, %v13788_v3 }
  0x94   :  { %v14047_v52 = vsub.f32 %v14002_v13, %v20652_v28  ;;  %v21976_v28 = vand.u32 4294901760, %v14017_v2  ;;  %21979 = vst [vmem:[#allocation51_spill] sm:$0xff] %v14074_v25  ;;  %v14085_v60 = vpack.c.bf16 %v1294_v18, %v1290_v19  ;;  %v14087_v25 = vsub.f32 %v1006_v40, %v1294_v18  ;;  %v14107_v18 = vld [vmem:[#allocation7 + $0x150] sm:$0xff] }
  0x95   :  { %10937 = vmatpush1.bf16.msra.mxu0 %v10936_v55  ;;  %v14060_v55 = vpack.c.bf16 %v1292_v47, %v1288_v15  ;;  %v1300_v15 = vand.u32 4294901760, %v1023_v58  ;;  %v1014_v47 = vld [vmem:[#allocation7 + $0x100] sm:$0xff]  ;;  %21987 = vst [vmem:[#allocation59_spill] sm:$0xff] %v14107_v18  ;;  %v21992_v40 = vld [vmem:[#allocation28_spill] sm:$0xff]  ;;  %v22002_v38 = vand.u32 4294901760, %v14107_v18 }
  0x96   :  { %10939 = vmatprep.subr.bf16.mxu0 %v10938_v39  ;;  %21971 = vst [vmem:[#allocation45_spill] sm:$0xff] %v14047_v52  ;;  %v14052_v39 = vsub.f32 %v14004_v59, %v20655_v8  ;;  %v14067_v7 = vsub.f32 %v14017_v2, %v21976_v28  ;;  %v14069_v8 = vld [vmem:[#allocation7 + $0x118] sm:$0xff]  ;;  %v1296_v28 = vand.u32 4294901760, %v1015_v32  ;;  %21981 = vst [vmem:[#allocation53_spill] sm:$0xff] %v14085_v60 }
  0x97   :  { %21974 = vst [vmem:[#allocation48_spill] sm:$0xff] %v14060_v55  ;;  %11063 = vmatprep.subr.bf16.mxu1 %v14060_v55  ;;  %21982 = vst [vmem:[#allocation54_spill] sm:$0xff] %v14087_v25  ;;  %v14112_v25 = vsub.f32 %v1023_v58, %v1300_v15  ;;  %v14152_v52 = vsub.f32 %v14107_v18, %v22002_v38  ;;  %v1046_v38 = vld [vmem:[#allocation7 + $0x200] sm:$0xff] }
  0x98   :  { %21972 = vst [vmem:[#allocation46_spill] sm:$0xff] %v14052_v39  ;;  %21977 = vst [vmem:[#allocation50_spill] sm:$0xff] %v14067_v7  ;;  %v14076_v39 = vsub.f32 %v998_v10, %v1290_v19  ;;  %v14092_v10 = vsub.f32 %v14042_v51, %v20664_v23  ;;  %v14102_v55 = vpack.c.bf16 %v1300_v15, %v1296_v28  ;;  %v1031_v23 = vld [vmem:[#allocation7 + $0x188] sm:$0xff]  ;;  %11065 = vmatpush1.bf16.msra.mxu1 %v14085_v60  ;;  %v14130_v15 = vld [vmem:[#allocation7 + $0x1d8] sm:$0xff] }
  0x99   :  { %10941 = vmatpush1.bf16.msra.mxu0 %v10940_v36  ;;  %v20667_v36 = vand.u32 4294901760, %v14056_v26  ;;  %v14104_v19 = vsub.f32 %v1015_v32, %v1296_v28  ;;  %21988 = vst [vmem:[#allocation60_spill] sm:$0xff] %v14112_v25  ;;  %v1298_v32 = vand.u32 4294901760, %v1014_v47  ;;  %v14119_v28 = vld [vmem:[#allocation7 + $0x198] sm:$0xff]  ;;  %21995 = vst [vmem:[#allocation63_spill] sm:$0xff] %v14130_v15  ;;  %v1030_v25 = vld [vmem:[#allocation7 + $0x180] sm:$0xff] }
  0x9a   :  { %21980 = vst [vmem:[#allocation52_spill] sm:$0xff] %v14076_v39  ;;  %10943 = vmatprep.subr.bf16.mxu0 %v10942_v57  ;;  %21983 = vst [vmem:[#allocation55_spill] sm:$0xff] %v14092_v10  ;;  %v1022_v39 = vld [vmem:[#allocation7 + $0x140] sm:$0xff]  ;;  %v1039_v10 = vld [vmem:[#allocation7 + $0x1c8] sm:$0xff]  ;;  %v10952_v57 = vpack.c.bf16 %v13733_v34, %v13731_v33  ;;  %11067 = vmatprep.subr.bf16.mxu1 %v14102_v55  ;;  %v21993_v33 = vand.u32 4294901760, %v14079_v27 }
  0x9b   :  { %v14100_v30 = vsub.f32 %v14056_v26, %v20667_v36  ;;  %21985 = vst [vmem:[#allocation57_spill] sm:$0xff] %v14102_v55  ;;  %21986 = vst [vmem:[#allocation58_spill] sm:$0xff] %v14104_v19  ;;  %v21989_v36 = vand.u32 4294901760, %v14069_v8  ;;  %v10954_v19 = vpack.c.bf16 %v21992_v40, %v13737_v44  ;;  %v1302_v58 = vand.u32 4294901760, %v1022_v39  ;;  %v1038_v44 = vld [vmem:[#allocation7 + $0x1c0] sm:$0xff]  ;;  %v14135_v40 = vld [vmem:[#allocation7 + $0x190] sm:$0xff] }
  0x9c   :  { %21991 = vst [vmem:[#allocation62_spill] sm:$0xff] %v14119_v28  ;;  %v14127_v34 = vsub.f32 %v14079_v27, %v21993_v33  ;;  %21997 = vst [vmem:[#allocation65_spill] sm:$0xff] %v14135_v40  ;;  %v1047_v60 = vld [vmem:[#allocation7 + $0x208] sm:$0xff] }
  0x9d   :  { %21984 = vst [vmem:[#allocation56_spill] sm:$0xff] %v14100_v30  ;;  %10945 = vmatpush1.bf16.msra.mxu0 %v10944_v5  ;;  %v14117_v30 = vsub.f32 %v14069_v8, %v21989_v36  ;;  %v20681_v5 = vand.u32 4294901760, %v14095_v29  ;;  %v14132_v36 = vsub.f32 %v1014_v47, %v1298_v32  ;;  %v14137_v55 = vpack.c.bf16 %v1302_v58, %v1298_v32 }
  0x9e   :  { %10947 = vmatprep.subr.bf16.mxu0 %v10946_v17  ;;  %21994 = vst [vmem:[#allocation28_spill] sm:$0xff] %v14127_v34  ;;  %v1304_v17 = vand.u32 4294901760, %v1031_v23  ;;  %v14139_v7 = vsub.f32 %v1022_v39, %v1302_v58  ;;  %v20687_v47 = vand.u32 4294901760, %v14119_v28  ;;  %v1055_v34 = vld [vmem:[#allocation7 + $0x248] sm:$0xff]  ;;  %22003 = vst [vmem:[#allocation70_spill] sm:$0xff] %v14152_v52  ;;  %v14185_v52 = vld [vmem:[#allocation7 + $0x210] sm:$0xff] }
  0x9f   :  { %21990 = vst [vmem:[#allocation61_spill] sm:$0xff] %v14117_v30  ;;  %21996 = vst [vmem:[#allocation64_spill] sm:$0xff] %v14132_v36  ;;  %v1308_v30 = vand.u32 4294901760, %v1039_v10  ;;  %v14144_v33 = vsub.f32 %v14095_v29, %v20681_v5  ;;  %v14147_v36 = vld [vmem:[#allocation7 + $0x1d0] sm:$0xff]  ;;  %11069 = vmatpush1.bf16.msra.mxu1 %v14137_v55  ;;  %v22010_v5 = vld [vmem:[#allocation30_spill] sm:$0xff] }
  0xa0   :  { %21998 = vst [vmem:[#allocation66_spill] sm:$0xff] %v14137_v55  ;;  %21999 = vst [vmem:[#allocation67_spill] sm:$0xff] %v14139_v7  ;;  %v14156_v39 = vsub.f32 %v1031_v23, %v1304_v17  ;;  %v1310_v7 = vand.u32 4294901760, %v1038_v44  ;;  %v22011_v55 = vld [vmem:[#allocation31_spill] sm:$0xff]  ;;  %v1054_v23 = vld [vmem:[#allocation7 + $0x240] sm:$0xff] }
  0xa1   :  { %22000 = vst [vmem:[#allocation68_spill] sm:$0xff] %v14144_v33  ;;  %22001 = vst [vmem:[#allocation69_spill] sm:$0xff] %v14147_v36  ;;  %10949 = vmatpush1.bf16.msra.mxu0 %v10948_v50  ;;  %v14154_v32 = vpack.c.bf16 %v1308_v30, %v1304_v17  ;;  %v14158_v58 = vsub.f32 %v1039_v10, %v1308_v30  ;;  %v14165_v50 = vsub.f32 %v14119_v28, %v20687_v47  ;;  %v14172_v17 = vld [vmem:[#allocation7 + $0x258] sm:$0xff] }
  0xa2   :  { %22005 = vst [vmem:[#allocation72_spill] sm:$0xff] %v14156_v39  ;;  %10951 = vmatprep.subr.bf16.mxu0 %v10950_v1  ;;  %v1306_v33 = vand.u32 4294901760, %v1030_v25  ;;  %v1312_v10 = vand.u32 4294901760, %v1047_v60  ;;  %v1316_v30 = vand.u32 4294901760, %v1055_v34  ;;  %v14170_v1 = vld [vmem:[#allocation7 + $0x218] sm:$0xff]  ;;  %22009 = vst [vmem:[#allocation76_spill] sm:$0xff] %v14172_v17  ;;  %v14189_v42 = vsub.f32 %v1038_v44, %v1310_v7 }
  0xa3   :  { %22004 = vst [vmem:[#allocation71_spill] sm:$0xff] %v14154_v32  ;;  %22006 = vst [vmem:[#allocation73_spill] sm:$0xff] %v14158_v58  ;;  %11071 = vmatprep.subr.bf16.mxu1 %v14154_v32  ;;  %v10956_v58 = vpack.c.bf16 %v22011_v55, %v22010_v5  ;;  %v22012_v47 = vand.u32 4294901760, %v14130_v15  ;;  %v22018_v55 = vand.u32 4294901760, %v14135_v40  ;;  %v10960_v44 = vpack.c.bf16 %v13861_v0, %v13833_v35 }
  0xa4   :  { %22007 = vst [vmem:[#allocation74_spill] sm:$0xff] %v14165_v50  ;;  %22008 = vst [vmem:[#allocation75_spill] sm:$0xff] %v14170_v1  ;;  %v14181_v39 = vpack.c.bf16 %v1310_v7, %v1306_v33  ;;  %v14183_v32 = vsub.f32 %v1030_v25, %v1306_v33  ;;  %v14201_v33 = vld [vmem:[#allocation7 + $0x250] sm:$0xff]  ;;  %v14204_v3 = vpack.c.bf16 %v1316_v30, %v1312_v10 }
  0xa5   :  { %v14179_v50 = vsub.f32 %v14130_v15, %v22012_v47  ;;  %22016 = vst [vmem:[#allocation78_spill] sm:$0xff] %v14185_v52  ;;  %10953 = vmatpush1.bf16.msra.mxu0 %v10952_v57  ;;  %22017 = vst [vmem:[#allocation79_spill] sm:$0xff] %v14189_v42  ;;  %v14194_v5 = vsub.f32 %v14135_v40, %v22018_v55  ;;  %v22020_v47 = vand.u32 4294901760, %v14147_v36  ;;  %v20703_v57 = vand.u32 4294901760, %v14170_v1 }
  0xa6   :  { %22014 = vst [vmem:[#allocation31_spill] sm:$0xff] %v14181_v39  ;;  %22015 = vst [vmem:[#allocation77_spill] sm:$0xff] %v14183_v32  ;;  %v1063_v32 = vld [vmem:[#allocation7 + $0x288] sm:$0xff]  ;;  %10955 = vmatprep.subr.bf16.mxu0 %v10954_v19  ;;  %11073 = vmatpush1.bf16.msra.mxu1 %v14181_v39  ;;  %v14206_v24 = vsub.f32 %v1047_v60, %v1312_v10  ;;  %v14208_v7 = vsub.f32 %v1055_v34, %v1316_v30  ;;  %v1314_v55 = vand.u32 4294901760, %v1046_v38  ;;  %v14220_v30 = vld [vmem:[#allocation7 + $0x298] sm:$0xff] }
  0xa7   :  { %22013 = vst [vmem:[#allocation30_spill] sm:$0xff] %v14179_v50  ;;  %22019 = vst [vmem:[#allocation80_spill] sm:$0xff] %v14194_v5  ;;  %v14199_v25 = vsub.f32 %v14147_v36, %v22020_v47  ;;  %v1071_v50 = vld [vmem:[#allocation7 + $0x2c8] sm:$0xff]  ;;  %v1318_v47 = vand.u32 4294901760, %v1054_v23  ;;  %11075 = vmatprep.subr.bf16.mxu1 %v14204_v3  ;;  %v14217_v19 = vsub.f32 %v14170_v1, %v20703_v57  ;;  %v1320_v10 = vand.u32 4294901760, %v1063_v32  ;;  %v14222_v39 = vld [vmem:[#allocation7 + $0x2d8] sm:$0xff] }
  0xa8   :  { %22022 = vst [vmem:[#allocation82_spill] sm:$0xff] %v14201_v33  ;;  %22023 = vst [vmem:[#allocation83_spill] sm:$0xff] %v14204_v3  ;;  %v1324_v34 = vand.u32 4294901760, %v1071_v50  ;;  %v14233_v57 = vsub.f32 %v1046_v38, %v1314_v55  ;;  %v1062_v60 = vld [vmem:[#allocation7 + $0x280] sm:$0xff]  ;;  %v22037_v0 = vand.u32 4294901760, %v14201_v33  ;;  %v1079_v38 = vld [vmem:[#allocation7 + $0x308] sm:$0xff] }
  0xa9   :  { %22021 = vst [vmem:[#allocation81_spill] sm:$0xff] %v14199_v25  ;;  %22024 = vst [vmem:[#allocation84_spill] sm:$0xff] %v14206_v24  ;;  %10957 = vmatpush1.bf16.msra.mxu0 %v10956_v58  ;;  %v22029_v25 = vand.u32 4294901760, %v14172_v17  ;;  %v14235_v24 = vld [vmem:[#allocation7 + $0x290] sm:$0xff]  ;;  %v14237_v5 = vsub.f32 %v1054_v23, %v1318_v47  ;;  %v22035_v58 = vand.u32 4294901760, %v14185_v52 }
  0xaa   :  { %22025 = vst [vmem:[#allocation85_spill] sm:$0xff] %v14208_v7  ;;  %22026 = vst [vmem:[#allocation86_spill] sm:$0xff] %v14217_v19  ;;  %v14231_v7 = vpack.c.bf16 %v1318_v47, %v1314_v55  ;;  %v1070_v19 = vld [vmem:[#allocation7 + $0x2c0] sm:$0xff]  ;;  %10959 = vmatprep.subr.bf16.mxu0 %v10958_v61  ;;  %v1087_v55 = vld [vmem:[#allocation7 + $0x348] sm:$0xff]  ;;  %v14254_v61 = vsub.f32 %v1063_v32, %v1320_v10  ;;  %v14256_v23 = vsub.f32 %v1071_v50, %v1324_v34 }
  0xab   :  { %22027 = vst [vmem:[#allocation87_spill] sm:$0xff] %v14220_v30  ;;  %22028 = vst [vmem:[#allocation88_spill] sm:$0xff] %v14222_v39  ;;  %v14229_v3 = vsub.f32 %v14172_v17, %v22029_v25  ;;  %v14242_v35 = vsub.f32 %v14185_v52, %v22035_v58  ;;  %v14247_v25 = vsub.f32 %v14201_v33, %v22037_v0  ;;  %v20717_v47 = vand.u32 4294901760, %v14220_v30  ;;  %v22046_v58 = vld [vmem:[#allocation15_spill] sm:$0xff]  ;;  %v14282_v32 = vld [vmem:[#allocation7 + $0x310] sm:$0xff] }
  0xac   :  { %22031 = vst [vmem:[#allocation90_spill] sm:$0xff] %v14231_v7  ;;  %22032 = vst [vmem:[#allocation91_spill] sm:$0xff] %v14233_v57  ;;  %11077 = vmatpush1.bf16.msra.mxu1 %v14231_v7  ;;  %v14252_v57 = vpack.c.bf16 %v1324_v34, %v1320_v10  ;;  %v1328_v50 = vand.u32 4294901760, %v1079_v38  ;;  %v1332_v10 = vand.u32 4294901760, %v1087_v55  ;;  %v14268_v34 = vld [vmem:[#allocation7 + $0x318] sm:$0xff]  ;;  %v22047_v0 = vand.u32 4294901760, %v14222_v39 }
  0xad   :  { %22030 = vst [vmem:[#allocation89_spill] sm:$0xff] %v14229_v3  ;;  %22033 = vst [vmem:[#allocation92_spill] sm:$0xff] %v14235_v24  ;;  %v14249_v3 = vld [vmem:[#allocation7 + $0x2d0] sm:$0xff]  ;;  %10961 = vmatpush1.bf16.msra.mxu0 %v10960_v44  ;;  %v14265_v7 = vsub.f32 %v14220_v30, %v20717_v47  ;;  %v1078_v47 = vld [vmem:[#allocation7 + $0x300] sm:$0xff]  ;;  %v22053_v42 = vand.u32 4294901760, %v14235_v24 }
  0xae   :  { %22034 = vst [vmem:[#allocation93_spill] sm:$0xff] %v14237_v5  ;;  %22036 = vst [vmem:[#allocation94_spill] sm:$0xff] %v14242_v35  ;;  %v1322_v35 = vand.u32 4294901760, %v1062_v60  ;;  %v1326_v5 = vand.u32 4294901760, %v1070_v19  ;;  %11079 = vmatprep.subr.bf16.mxu1 %v14252_v57  ;;  %10963 = vmatprep.subr.bf16.mxu0 %v22046_v58  ;;  %v14276_v44 = vsub.f32 %v14222_v39, %v22047_v0  ;;  %v22055_v31 = vand.u32 4294901760, %v14249_v3 }
  0xaf   :  { %22038 = vst [vmem:[#allocation95_spill] sm:$0xff] %v14247_v25  ;;  %22039 = vst [vmem:[#allocation96_spill] sm:$0xff] %v14249_v3  ;;  %v14289_v16 = vsub.f32 %v14235_v24, %v22053_v42  ;;  %v20738_v42 = vand.u32 4294901760, %v14268_v34  ;;  %v1094_v24 = vld [vmem:[#allocation7 + $0x380] sm:$0xff] }
  0xb0   :  { %22040 = vst [vmem:[#allocation97_spill] sm:$0xff] %v14252_v57  ;;  %22041 = vst [vmem:[#allocation98_spill] sm:$0xff] %v14254_v61  ;;  %v14278_v57 = vpack.c.bf16 %v1326_v5, %v1322_v35  ;;  %v14280_v61 = vsub.f32 %v1062_v60, %v1322_v35  ;;  %v14284_v25 = vsub.f32 %v1070_v19, %v1326_v5  ;;  %v1095_v60 = vld [vmem:[#allocation7 + $0x388] sm:$0xff] }
  0xb1   :  { %22042 = vst [vmem:[#allocation99_spill] sm:$0xff] %v14256_v23  ;;  %22043 = vst [vmem:[#allocation100_spill] sm:$0xff] %v14265_v7  ;;  %v14270_v23 = vld [vmem:[#allocation7 + $0x358] sm:$0xff]  ;;  %v1086_v7 = vld [vmem:[#allocation7 + $0x340] sm:$0xff]  ;;  %v14294_v0 = vsub.f32 %v14249_v3, %v22055_v31  ;;  %v14300_v5 = vpack.c.bf16 %v1332_v10, %v1328_v50  ;;  %v14302_v19 = vsub.f32 %v1079_v38, %v1328_v50  ;;  %v1336_v50 = vand.u32 4294901760, %v1095_v60 }
  0xb2   :  { %22044 = vst [vmem:[#allocation101_spill] sm:$0xff] %v14268_v34  ;;  %22045 = vst [vmem:[#allocation102_spill] sm:$0xff] %v14270_v23  ;;  %v1103_v35 = vld [vmem:[#allocation7 + $0x3c8] sm:$0xff]  ;;  %11081 = vmatpush1.bf16.msra.mxu1 %v14278_v57  ;;  %v1334_v45 = vand.u32 4294901760, %v1086_v7  ;;  %v22063_v3 = vld [vmem:[#allocation17_spill] sm:$0xff]  ;;  %v14316_v38 = vsub.f32 %v14268_v34, %v20738_v42  ;;  %v22073_v34 = vand.u32 4294901760, %v14282_v32 }
  0xb3   :  { %22048 = vst [vmem:[#allocation15_spill] sm:$0xff] %v14276_v44  ;;  %22049 = vst [vmem:[#allocation103_spill] sm:$0xff] %v14278_v57  ;;  %v14296_v44 = vld [vmem:[#allocation7 + $0x350] sm:$0xff]  ;;  %11083 = vmatprep.subr.bf16.mxu1 %v14300_v5  ;;  %v14319_v57 = vld [vmem:[#allocation7 + $0x398] sm:$0xff] }
  0xb4   :  { %22050 = vst [vmem:[#allocation104_spill] sm:$0xff] %v14280_v61  ;;  %22051 = vst [vmem:[#allocation105_spill] sm:$0xff] %v14282_v32  ;;  %v22058_v61 = vld [vmem:[#allocation32_spill] sm:$0xff]  ;;  %v14321_v31 = vld [vmem:[#allocation7 + $0x3d8] sm:$0xff]  ;;  %v14339_v39 = vsub.f32 %v14282_v32, %v22073_v34  ;;  %v22075_v30 = vand.u32 4294901760, %v14296_v44  ;;  %v20757_v34 = vand.u32 4294901760, %v14319_v57 }
  0xb5   :  { %22052 = vst [vmem:[#allocation106_spill] sm:$0xff] %v14284_v25  ;;  %22054 = vst [vmem:[#allocation107_spill] sm:$0xff] %v14289_v16  ;;  %596 = vmatmul.mubr.f32.vlgmr.msra.gmra.mrb[0].mxu0 %v22058_v61  ;;  %v14304_v25 = vsub.f32 %v1087_v55, %v1332_v10  ;;  %v22062_v16 = vld [vmem:[#allocation16_spill] sm:$0xff]  ;;  %v1340_v10 = vand.u32 4294901760, %v1103_v35  ;;  %v1102_v42 = vld [vmem:[#allocation7 + $0x3c0] sm:$0xff]  ;;  %v14334_v55 = vsub.f32 %v1086_v7, %v1334_v45 }
  0xb6   :  { %22056 = vst [vmem:[#allocation108_spill] sm:$0xff] %v14294_v0  ;;  %22057 = vst [vmem:[#allocation109_spill] sm:$0xff] %v14296_v44  ;;  %10965 = vmatpush1.bf16.msra.mxu0 %v22062_v16  ;;  %698 = vmatprep.mubr.f32.mxu0 %v21962_v37  ;;  %v1330_v0 = vand.u32 4294901760, %v1078_v47  ;;  %v14352_v7 = vsub.f32 %v1095_v60, %v1336_v50  ;;  %v22090_v60 = vld [vmem:[#allocation20_spill] sm:$0xff] }
  0xb7   :  { %22059 = vst [vmem:[#allocation32_spill] sm:$0xff] %v14300_v5  ;;  %22060 = vst [vmem:[#allocation110_spill] sm:$0xff] %v14302_v19  ;;  %10967 = vmatprep.subr.bf16.mxu0 %v22063_v3 }
  0xb8   :  { %22061 = vst [vmem:[#allocation111_spill] sm:$0xff] %v14304_v25  ;;  %22064 = vst [vmem:[#allocation16_spill] sm:$0xff] %v14316_v38  ;;  %v22067_v25 = vand.u32 4294901760, %v14270_v23  ;;  %v14328_v19 = vpack.c.bf16 %v1334_v45, %v1330_v0  ;;  %v14330_v5 = vsub.f32 %v1078_v47, %v1330_v0  ;;  %v14332_v38 = vld [vmem:[#allocation7 + $0x390] sm:$0xff]  ;;  %v1111_v47 = vld [vmem:[#allocation7 + $0x408] sm:$0xff]  ;;  %v14350_v45 = vpack.c.bf16 %v1340_v10, %v1336_v50 }
  0xb9   :  { %22065 = vst [vmem:[#allocation17_spill] sm:$0xff] %v14319_v57  ;;  %22066 = vst [vmem:[#allocation112_spill] sm:$0xff] %v14321_v31  ;;  %v1119_v0 = vld [vmem:[#allocation7 + $0x448] sm:$0xff]  ;;  %v22092_v33 = vand.u32 4294901760, %v14332_v38 }
  0xba   :  { %v14326_v21 = vsub.f32 %v14270_v23, %v22067_v25  ;;  %22069 = vst [vmem:[#allocation114_spill] sm:$0xff] %v14328_v19  ;;  %22070 = vst [vmem:[#allocation115_spill] sm:$0xff] %v14330_v5  ;;  %v14344_v25 = vsub.f32 %v14296_v44, %v22075_v30  ;;  %v22078_v5 = vld [vmem:[#allocation18_spill] sm:$0xff]  ;;  %11085 = vmatpush1.bf16.msra.mxu1 %v14328_v19  ;;  %v20762_v30 = vand.u32 4294901760, %v14321_v31  ;;  %v1342_v44 = vand.u32 4294901760, %v1102_v42 }
  0xbb   :  { %22071 = vst [vmem:[#allocation116_spill] sm:$0xff] %v14332_v38  ;;  %22072 = vst [vmem:[#allocation117_spill] sm:$0xff] %v14334_v55  ;;  %10969 = vmatpush1.bf16.msra.mxu0 %v22078_v5  ;;  %v14354_v55 = vsub.f32 %v1103_v35, %v1340_v10  ;;  %11087 = vmatprep.subr.bf16.mxu1 %v14350_v45  ;;  %v14364_v19 = vsub.f32 %v14319_v57, %v20757_v34  ;;  %v1344_v35 = vand.u32 4294901760, %v1111_v47  ;;  %v14367_v10 = vld [vmem:[#allocation7 + $0x418] sm:$0xff]  ;;  %v1110_v23 = vld [vmem:[#allocation7 + $0x400] sm:$0xff] }
  0xbc   :  { %22068 = vst [vmem:[#allocation113_spill] sm:$0xff] %v14326_v21  ;;  %22074 = vst [vmem:[#allocation118_spill] sm:$0xff] %v14339_v39  ;;  %v14346_v21 = vld [vmem:[#allocation7 + $0x3d0] sm:$0xff]  ;;  %v22082_v39 = vld [vmem:[#allocation19_spill] sm:$0xff]  ;;  %v1348_v50 = vand.u32 4294901760, %v1119_v0  ;;  %v14383_v57 = vsub.f32 %v1102_v42, %v1342_v44  ;;  %v14388_v52 = vsub.f32 %v14332_v38, %v22092_v33  ;;  %v20777_v33 = vand.u32 4294901760, %v14367_v10 }
  0xbd   :  { %22076 = vst [vmem:[#allocation119_spill] sm:$0xff] %v14344_v25  ;;  %22077 = vst [vmem:[#allocation120_spill] sm:$0xff] %v14346_v21  ;;  %10971 = vmatprep.subr.bf16.mxu0 %v22082_v39  ;;  %v1338_v25 = vand.u32 4294901760, %v1094_v24  ;;  %v1118_v34 = vld [vmem:[#allocation7 + $0x440] sm:$0xff]  ;;  %v14401_v42 = vsub.f32 %v1111_v47, %v1344_v35  ;;  %v14429_v47 = vld [vmem:[#allocation7 + $0x490] sm:$0xff] }
  0xbe   :  { %22079 = vst [vmem:[#allocation18_spill] sm:$0xff] %v14350_v45  ;;  %22080 = vst [vmem:[#allocation121_spill] sm:$0xff] %v14352_v7  ;;  %v14374_v7 = vsub.f32 %v14321_v31, %v20762_v30  ;;  %v22094_v30 = vand.u32 4294901760, %v14346_v21  ;;  %v22097_v31 = vld [vmem:[#allocation21_spill] sm:$0xff]  ;;  %v22129_v40 = vand.u32 4294901760, %v14429_v47 }
  0xbf   :  { %22081 = vst [vmem:[#allocation122_spill] sm:$0xff] %v14354_v55  ;;  %22083 = vst [vmem:[#allocation19_spill] sm:$0xff] %v14364_v19  ;;  %v14369_v55 = vld [vmem:[#allocation7 + $0x458] sm:$0xff]  ;;  %v14376_v32 = vpack.c.bf16 %v1342_v44, %v1338_v25  ;;  %v14378_v45 = vsub.f32 %v1094_v24, %v1338_v25  ;;  %v14380_v19 = vld [vmem:[#allocation7 + $0x410] sm:$0xff]  ;;  %10973 = vmatpush1.bf16.msra.mxu0 %v22090_v60  ;;  %v14399_v44 = vpack.c.bf16 %v1348_v50, %v1344_v35 }
  0xc0   :  { %22084 = vst [vmem:[#allocation123_spill] sm:$0xff] %v14367_v10  ;;  %22085 = vst [vmem:[#allocation124_spill] sm:$0xff] %v14369_v55  ;;  %v14395_v24 = vld [vmem:[#allocation7 + $0x450] sm:$0xff]  ;;  %v1127_v25 = vld [vmem:[#allocation7 + $0x488] sm:$0xff]  ;;  %10975 = vmatprep.subr.bf16.mxu0 %v22097_v31  ;;  %v22112_v1 = vand.u32 4294901760, %v14380_v19  ;;  %v14485_v15 = vsub.f32 %v14429_v47, %v22129_v40 }
  0xc1   :  { %22086 = vst [vmem:[#allocation125_spill] sm:$0xff] %v14374_v7  ;;  %22087 = vst [vmem:[#allocation126_spill] sm:$0xff] %v14376_v32  ;;  %v14393_v7 = vsub.f32 %v14346_v21, %v22094_v30  ;;  %11089 = vmatpush1.bf16.msra.mxu1 %v14376_v32  ;;  %v1346_v30 = vand.u32 4294901760, %v1110_v23  ;;  %v14412_v32 = vsub.f32 %v14367_v10, %v20777_v33  ;;  %v1352_v35 = vand.u32 4294901760, %v1127_v25  ;;  %v1126_v33 = vld [vmem:[#allocation7 + $0x480] sm:$0xff]  ;;  %v22110_v10 = vld [vmem:[#allocation23_spill] sm:$0xff] }
  0xc2   :  { %22088 = vst [vmem:[#allocation127_spill] sm:$0xff] %v14378_v45  ;;  %22089 = vst [vmem:[#allocation128_spill] sm:$0xff] %v14380_v19  ;;  %v1135_v45 = vld [vmem:[#allocation7 + $0x4c8] sm:$0xff]  ;;  %11091 = vmatprep.subr.bf16.mxu1 %v14399_v44  ;;  %v14437_v36 = vsub.f32 %v14380_v19, %v22112_v1 }
  0xc3   :  { %22091 = vst [vmem:[#allocation20_spill] sm:$0xff] %v14383_v57  ;;  %22093 = vst [vmem:[#allocation129_spill] sm:$0xff] %v14388_v52  ;;  %v14403_v57 = vsub.f32 %v1119_v0, %v1348_v50  ;;  %v1356_v0 = vand.u32 4294901760, %v1135_v45  ;;  %v14415_v50 = vld [vmem:[#allocation7 + $0x498] sm:$0xff]  ;;  %v22104_v52 = vld [vmem:[#allocation22_spill] sm:$0xff]  ;;  %v14427_v38 = vsub.f32 %v1110_v23, %v1346_v30 }
  0xc4   :  { %22095 = vst [vmem:[#allocation130_spill] sm:$0xff] %v14393_v7  ;;  %22096 = vst [vmem:[#allocation131_spill] sm:$0xff] %v14395_v24  ;;  %v1350_v7 = vand.u32 4294901760, %v1118_v34  ;;  %10977 = vmatpush1.bf16.msra.mxu0 %v22104_v52  ;;  %v14444_v23 = vld [vmem:[#allocation7 + $0x4d0] sm:$0xff]  ;;  %v20797_v1 = vand.u32 4294901760, %v14415_v50 }
  0xc5   :  { %22098 = vst [vmem:[#allocation21_spill] sm:$0xff] %v14399_v44  ;;  %22099 = vst [vmem:[#allocation132_spill] sm:$0xff] %v14401_v42  ;;  %v22105_v42 = vand.u32 4294901760, %v14369_v55  ;;  %10979 = vmatprep.subr.bf16.mxu0 %v22110_v10  ;;  %v22131_v28 = vand.u32 4294901760, %v14444_v23 }
  0xc6   :  { %22100 = vst [vmem:[#allocation133_spill] sm:$0xff] %v14403_v57  ;;  %22101 = vst [vmem:[#allocation134_spill] sm:$0xff] %v14412_v32  ;;  %v14417_v57 = vld [vmem:[#allocation7 + $0x4d8] sm:$0xff]  ;;  %v14425_v44 = vpack.c.bf16 %v1350_v7, %v1346_v30  ;;  %v1134_v32 = vld [vmem:[#allocation7 + $0x4c0] sm:$0xff]  ;;  %v14432_v17 = vsub.f32 %v1118_v34, %v1350_v7  ;;  %v14449_v7 = vsub.f32 %v1127_v25, %v1352_v35 }
  0xc7   :  { %22102 = vst [vmem:[#allocation135_spill] sm:$0xff] %v14415_v50  ;;  %22103 = vst [vmem:[#allocation136_spill] sm:$0xff] %v14417_v57  ;;  %v14423_v21 = vsub.f32 %v14369_v55, %v22105_v42  ;;  %v22114_v42 = vand.u32 4294901760, %v14395_v24  ;;  %v1143_v30 = vld [vmem:[#allocation7 + $0x508] sm:$0xff]  ;;  %v14447_v55 = vpack.c.bf16 %v1356_v0, %v1352_v35  ;;  %v14451_v34 = vsub.f32 %v1135_v45, %v1356_v0  ;;  %v14464_v0 = vld [vmem:[#allocation7 + $0x518] sm:$0xff] }
  0xc8   :  { %22107 = vst [vmem:[#allocation137_spill] sm:$0xff] %v14425_v44  ;;  %22108 = vst [vmem:[#allocation138_spill] sm:$0xff] %v14427_v38  ;;  %v1151_v38 = vld [vmem:[#allocation7 + $0x548] sm:$0xff]  ;;  %11093 = vmatpush1.bf16.msra.mxu1 %v14425_v44  ;;  %v1358_v19 = vand.u32 4294901760, %v1134_v32  ;;  %v14461_v44 = vsub.f32 %v14415_v50, %v20797_v1  ;;  %v1360_v25 = vand.u32 4294901760, %v1143_v30  ;;  %v1142_v1 = vld [vmem:[#allocation7 + $0x500] sm:$0xff] }
  0xc9   :  { %22106 = vst [vmem:[#allocation22_spill] sm:$0xff] %v14423_v21  ;;  %22109 = vst [vmem:[#allocation139_spill] sm:$0xff] %v14429_v47  ;;  %v14442_v21 = vsub.f32 %v14395_v24, %v22114_v42  ;;  %11095 = vmatprep.subr.bf16.mxu1 %v14447_v55  ;;  %v1364_v35 = vand.u32 4294901760, %v1151_v38  ;;  %v22124_v42 = vand.u32 4294901760, %v14417_v57  ;;  %v14478_v45 = vld [vmem:[#allocation7 + $0x510] sm:$0xff]  ;;  %v20817_v40 = vand.u32 4294901760, %v14464_v0 }
  0xca   :  { %22111 = vst [vmem:[#allocation23_spill] sm:$0xff] %v14432_v17  ;;  %22113 = vst [vmem:[#allocation140_spill] sm:$0xff] %v14437_v36  ;;  %v1354_v17 = vand.u32 4294901760, %v1126_v33  ;;  %v14466_v36 = vld [vmem:[#allocation7 + $0x558] sm:$0xff]  ;;  %v14480_v50 = vsub.f32 %v1134_v32, %v1358_v19  ;;  %v14497_v32 = vsub.f32 %v1143_v30, %v1360_v25  ;;  %v22137_v47 = vld [vmem:[#allocation27_spill] sm:$0xff] }
  0xcb   :  { %22115 = vst [vmem:[#allocation141_spill] sm:$0xff] %v14442_v21  ;;  %22116 = vst [vmem:[#allocation142_spill] sm:$0xff] %v14444_v23  ;;  %v22120_v21 = vld [vmem:[#allocation24_spill] sm:$0xff]  ;;  %v14510_v30 = vsub.f32 %v14464_v0, %v20817_v40  ;;  %v1166_v40 = vld [vmem:[#allocation7 + $0x5c0] sm:$0xff] }
  0xcc   :  { %22117 = vst [vmem:[#allocation143_spill] sm:$0xff] %v14447_v55  ;;  %22118 = vst [vmem:[#allocation144_spill] sm:$0xff] %v14449_v7  ;;  %10981 = vmatpush1.bf16.msra.mxu0 %v22120_v21  ;;  %v14472_v7 = vsub.f32 %v14417_v57, %v22124_v42  ;;  %v14474_v55 = vpack.c.bf16 %v1358_v19, %v1354_v17  ;;  %v14476_v24 = vsub.f32 %v1126_v33, %v1354_v17  ;;  %v1159_v17 = vld [vmem:[#allocation7 + $0x588] sm:$0xff]  ;;  %v1158_v57 = vld [vmem:[#allocation7 + $0x580] sm:$0xff] }
  0xcd   :  { %22119 = vst [vmem:[#allocation145_spill] sm:$0xff] %v14451_v34  ;;  %22121 = vst [vmem:[#allocation24_spill] sm:$0xff] %v14461_v44  ;;  %v22123_v34 = vld [vmem:[#allocation25_spill] sm:$0xff]  ;;  %v1150_v44 = vld [vmem:[#allocation7 + $0x540] sm:$0xff]  ;;  %v14490_v42 = vsub.f32 %v14444_v23, %v22131_v28  ;;  %v14499_v19 = vsub.f32 %v1151_v38, %v1364_v35  ;;  %v1362_v28 = vand.u32 4294901760, %v1142_v1  ;;  %v22143_v38 = vand.u32 4294901760, %v14478_v45 }
  0xce   :  { %22122 = vst [vmem:[#allocation146_spill] sm:$0xff] %v14464_v0  ;;  %10983 = vmatprep.subr.bf16.mxu0 %v22123_v34  ;;  %22125 = vst [vmem:[#allocation25_spill] sm:$0xff] %v14472_v7  ;;  %v14492_v7 = vld [vmem:[#allocation7 + $0x550] sm:$0xff]  ;;  %v1167_v33 = vld [vmem:[#allocation7 + $0x5c8] sm:$0xff]  ;;  %11097 = vmatpush1.bf16.msra.mxu1 %v14474_v55 }
  0xcf   :  { %22126 = vst [vmem:[#allocation147_spill] sm:$0xff] %v14474_v55  ;;  %22127 = vst [vmem:[#allocation148_spill] sm:$0xff] %v14476_v24  ;;  %v14495_v24 = vpack.c.bf16 %v1364_v35, %v1360_v25  ;;  %v1368_v25 = vand.u32 4294901760, %v1159_v17  ;;  %v1372_v35 = vand.u32 4294901760, %v1167_v33  ;;  %v14513_v55 = vld [vmem:[#allocation7 + $0x598] sm:$0xff]  ;;  %v14531_v0 = vsub.f32 %v14478_v45, %v22143_v38 }
  0xd0   :  { %22128 = vst [vmem:[#allocation149_spill] sm:$0xff] %v14480_v50  ;;  %22130 = vst [vmem:[#allocation150_spill] sm:$0xff] %v14485_v15  ;;  %v22136_v15 = vld [vmem:[#allocation26_spill] sm:$0xff]  ;;  %v20821_v50 = vand.u32 4294901760, %v14466_v36  ;;  %v22145_v18 = vand.u32 4294901760, %v14492_v7  ;;  %v20833_v38 = vand.u32 4294901760, %v14513_v55 }
  0xd1   :  { %22132 = vst [vmem:[#allocation151_spill] sm:$0xff] %v14490_v42  ;;  %22133 = vst [vmem:[#allocation152_spill] sm:$0xff] %v14495_v24  ;;  %10985 = vmatpush1.bf16.msra.mxu0 %v22136_v15  ;;  %v1366_v42 = vand.u32 4294901760, %v1150_v44  ;;  %11099 = vmatprep.subr.bf16.mxu1 %v14495_v24  ;;  %v14524_v24 = vld [vmem:[#allocation7 + $0x5d8] sm:$0xff] }
  0xd2   :  { %22134 = vst [vmem:[#allocation153_spill] sm:$0xff] %v14497_v32  ;;  %22135 = vst [vmem:[#allocation154_spill] sm:$0xff] %v14499_v19  ;;  %10987 = vmatprep.subr.bf16.mxu0 %v22137_v47  ;;  %v14518_v19 = vsub.f32 %v14466_v36, %v20821_v50  ;;  %v14522_v32 = vsub.f32 %v1142_v1, %v1362_v28  ;;  %v14536_v50 = vsub.f32 %v14492_v7, %v22145_v18  ;;  %v14540_v1 = vld [vmem:[#allocation7 + $0x5d0] sm:$0xff] }
  0xd3   :  { %22138 = vst [vmem:[#allocation26_spill] sm:$0xff] %v14510_v30  ;;  %v14520_v23 = vpack.c.bf16 %v1366_v42, %v1362_v28  ;;  %v14526_v30 = vsub.f32 %v1150_v44, %v1366_v42  ;;  %22144 = vst [vmem:[#allocation158_spill] sm:$0xff] %v14531_v0  ;;  %v22147_v28 = vld [vmem:[#allocation29_spill] sm:$0xff]  ;;  %v14544_v44 = vpack.c.bf16 %v1372_v35, %v1368_v25  ;;  %v2656_v18 = vand.u32 4294901760, %v14524_v24 }
  0xd4   :  { %22139 = vst [vmem:[#allocation27_spill] sm:$0xff] %v14518_v19  ;;  %22141 = vst [vmem:[#allocation156_spill] sm:$0xff] %v14522_v32  ;;  %v14538_v19 = vld [vmem:[#allocation7 + $0x590] sm:$0xff]  ;;  %v14546_v42 = vsub.f32 %v1159_v17, %v1368_v25  ;;  %v22151_v0 = vld [vmem:[#allocation33_spill] sm:$0xff]  ;;  %v1374_v32 = vand.u32 4294901760, %v1166_v40 }
  0xd5   :  { %22140 = vst [vmem:[#allocation155_spill] sm:$0xff] %v14520_v23  ;;  %22142 = vst [vmem:[#allocation157_spill] sm:$0xff] %v14526_v30  ;;  %10989 = vmatpush1.bf16.msra.mxu0 %v22147_v28  ;;  %11101 = vmatpush1.bf16.msra.mxu1 %v14520_v23  ;;  %v14548_v30 = vsub.f32 %v1167_v33, %v1372_v35  ;;  %v14557_v23 = vsub.f32 %v14513_v55, %v20833_v38  ;;  %v2654_v17 = vand.u32 4294901760, %v14538_v19 }
  0xd6   :  { %22146 = vst [vmem:[#allocation159_spill] sm:$0xff] %v14536_v50  ;;  %22148 = vst [vmem:[#allocation29_spill] sm:$0xff] %v14544_v44  ;;  %10991 = vmatprep.subr.bf16.mxu0 %v22151_v0  ;;  %v1370_v50 = vand.u32 4294901760, %v1158_v57  ;;  %11103 = vmatprep.subr.bf16.mxu1 %v14544_v44  ;;  %v2658_v33 = vand.u32 4294901760, %v14540_v1  ;;  %v14564_v25 = vsub.f32 %v14524_v24, %v2656_v18 }
  0xd7   :  { %22149 = vst [vmem:[#allocation160_spill] sm:$0xff] %v14546_v42  ;;  %22150 = vst [vmem:[#allocation161_spill] sm:$0xff] %v14548_v30  ;;  %v22156_v42 = vld [vmem:[#allocation34_spill] sm:$0xff]  ;;  %v14571_v44 = vsub.f32 %v1166_v40, %v1374_v32  ;;  %v14576_v38 = vsub.f32 %v14538_v19, %v2654_v17 }
  0xd8   :  { %22152 = vst [vmem:[#allocation33_spill] sm:$0xff] %v14557_v23  ;;  %22153 = vst [vmem:[#allocation162_spill] sm:$0xff] %v14564_v25  ;;  %v14566_v35 = vpack.c.bf16 %v1374_v32, %v1370_v50  ;;  %v14568_v30 = vsub.f32 %v1158_v57, %v1370_v50  ;;  %v14581_v23 = vsub.f32 %v14540_v1, %v2658_v33  ;;  %v22160_v57 = vand.u32 4294901760, %v22058_v61  ;;  %v22162_v61 = vld [vmem:[#allocation36_spill] sm:$0xff]  ;;  %v1174_v1 = vld [vmem:[#allocation7 + $0x600] sm:$0xff] }
  0xd9   :  { %10993 = vmatpush1.bf16.msra.mxu0 %v22156_v42  ;;  %22157 = vst [vmem:[#allocation34_spill] sm:$0xff] %v14571_v44  ;;  %22158 = vst [vmem:[#allocation165_spill] sm:$0xff] %v14576_v38  ;;  %v22204_v32 = vld [vmem:[#allocation88_spill] sm:$0xff] }
  0xda   :  { %22154 = vst [vmem:[#allocation163_spill] sm:$0xff] %v14566_v35  ;;  %22155 = vst [vmem:[#allocation164_spill] sm:$0xff] %v14568_v30  ;;  %10995 = vmatprep.subr.bf16.mxu0 %v13902_v63  ;;  %11105 = vmatpush1.bf16.msra.mxu1 %v14566_v35  ;;  %v22161_v63 = vld [vmem:[#allocation35_spill] sm:$0xff]  ;;  %v22205_v40 = vand.u32 4294901760, %v22204_v32 }
  0xdb   :  { %22159 = vst [vmem:[#allocation166_spill] sm:$0xff] %v14581_v23  ;;  %v22242_v32 = vld [vmem:[#allocation135_spill] sm:$0xff] }
  0xdc   :  { %702 = vmatmul.mubr.f32.vlgmr.msra.gmra.mrb[0].mxu0 %v22160_v57 }
  0xdd   :  { %10997 = vmatpush1.bf16.msra.mxu0 %v13908_v9  ;;  %868 = vmatprep.mubr.f32.mxu0 %v21962_v37  ;;  %v22163_v9 = vand.u32 4294901760, %v13991_v54  ;;  %v22176_v54 = vand.u32 4294901760, %v14079_v27 }
  0xde   :  { %10999 = vmatprep.subr.bf16.mxu0 %v13914_v49  ;;  %v22164_v49 = vand.u32 4294901760, %v13996_v41  ;;  %v22179_v41 = vld [vmem:[#allocation59_spill] sm:$0xff] }
  0xe1   :  { %11001 = vmatpush1.bf16.msra.mxu0 %v13920_v43  ;;  %v14624_v43 = vpack.c.bf16 %v22164_v49, %v22163_v9  ;;  %v22212_v49 = vld [vmem:[#allocation101_spill] sm:$0xff] }
  0xe2   :  { %11003 = vmatprep.subr.bf16.mxu0 %v13926_v11  ;;  %v22166_v11 = vand.u32 4294901760, %v14002_v13  ;;  %v22180_v13 = vand.u32 4294901760, %v22179_v41  ;;  %v22222_v41 = vld [vmem:[#allocation17_spill] sm:$0xff] }
  0xe3   :  { %22165 = vst [vmem:[#allocation35_spill] sm:$0xff] %v14624_v43 }
  0xe5   :  { %11005 = vmatpush1.bf16.msra.mxu0 %v13932_v14  ;;  %v22167_v14 = vand.u32 4294901760, %v14004_v59 }
  0xe6   :  { %11007 = vmatprep.subr.bf16.mxu0 %v13938_v56 }
  0xe7   :  { %v14631_v56 = vpack.c.bf16 %v22167_v14, %v22166_v11  ;;  %v22213_v11 = vand.u32 4294901760, %v22212_v49  ;;  %v22214_v14 = vld [vmem:[#allocation102_spill] sm:$0xff] }
  0xe9   :  { %11009 = vmatpush1.bf16.msra.mxu0 %v13944_v53  ;;  %22168 = vst [vmem:[#allocation36_spill] sm:$0xff] %v14631_v56  ;;  %v22169_v53 = vand.u32 4294901760, %v14017_v2 }
  0xea   :  { %11011 = vmatprep.subr.bf16.mxu0 %v22161_v63  ;;  %v22209_v63 = vld [vmem:[#allocation96_spill] sm:$0xff] }
  0xed   :  { %11013 = vmatpush1.bf16.msra.mxu0 %v22162_v61  ;;  %v22210_v61 = vand.u32 4294901760, %v22209_v63 }
  0xee   :  { %11015 = vmatprep.subr.bf16.mxu0 %v13962_v4 }
  0xf1   :  { %11017 = vmatpush1.bf16.msra.mxu0 %v13968_v6  ;;  %v22172_v6 = vand.u32 4294901760, %v14042_v51 }
  0xf2   :  { %11019 = vmatprep.subr.bf16.mxu0 %v13972_v20  ;;  %v22173_v20 = vand.u32 4294901760, %v14056_v26  ;;  %v22189_v26 = vld [vmem:[#allocation69_spill] sm:$0xff] }
  0xf3   :  { %v22190_v27 = vand.u32 4294901760, %v22189_v26 }
  0xf5   :  { %11021 = vmatpush1.bf16.msra.mxu0 %v13974_v22  ;;  %v14646_v22 = vpack.c.bf16 %v22173_v20, %v22172_v6  ;;  %v22217_v6 = vld [vmem:[#allocation105_spill] sm:$0xff] }
  0xf6   :  { %11023 = vmatprep.subr.bf16.mxu0 %v13976_v46  ;;  %v22175_v46 = vand.u32 4294901760, %v14069_v8  ;;  %v22187_v8 = vld [vmem:[#allocation65_spill] sm:$0xff]  ;;  %v22218_v20 = vand.u32 4294901760, %v22217_v6  ;;  %v22252_v6 = vld [vmem:[#allocation146_spill] sm:$0xff] }
  0xf7   :  { %22174 = vst [vmem:[#allocation168_spill] sm:$0xff] %v14646_v22 }
  0xf9   :  { %11025 = vmatpush1.bf16.msra.mxu0 %v13978_v12  ;;  %v22170_v12 = vand.u32 4294901760, %v14019_v62  ;;  %v22184_v62 = vld [vmem:[#allocation63_spill] sm:$0xff] }
  0xfa   :  { %11027 = vmatprep.subr.bf16.mxu0 %v22046_v58 }
  0xfb   :  { %v14638_v4 = vpack.c.bf16 %v22170_v12, %v22169_v53  ;;  %v22215_v53 = vand.u32 4294901760, %v22214_v14 }
  0xfc   :  { %870 = vmatmul.mubr.f32.vlgmr.msra.gmra.mrb[0].mxu0 %v13741_v48 }
  0xfd   :  { %11029 = vmatpush1.bf16.msra.mxu0 %v22062_v16  ;;  %972 = vmatprep.mubr.f32.mxu0 %v21962_v37  ;;  %22171 = vst [vmem:[#allocation167_spill] sm:$0xff] %v14638_v4  ;;  %v14653_v37 = vpack.c.bf16 %v22176_v54, %v22175_v46  ;;  %v22185_v16 = vand.u32 4294901760, %v22184_v62  ;;  %v14709_v12 = vpack.c.bf16 %v22215_v53, %v22213_v11  ;;  %v22219_v46 = vld [vmem:[#allocation109_spill] sm:$0xff]  ;;  %v22249_v11 = vld [vmem:[#allocation142_spill] sm:$0xff] }
  0xfe   :  { %11031 = vmatprep.subr.bf16.mxu0 %v22063_v3  ;;  %v22194_v3 = vld [vmem:[#allocation76_spill] sm:$0xff]  ;;  %v22220_v54 = vand.u32 4294901760, %v22219_v46  ;;  %v22250_v14 = vand.u32 4294901760, %v22249_v11  ;;  %v22254_v46 = vand.u32 4294901760, %v14466_v36  ;;  %v14786_v36 = vpack.c.bf16 %v2658_v33, %v2654_v17  ;;  %v1182_v17 = vld [vmem:[#allocation7 + $0x640] sm:$0xff] }
  0xff   :  { %22177 = vst [vmem:[#allocation169_spill] sm:$0xff] %v14653_v37  ;;  %v22195_v58 = vand.u32 4294901760, %v22194_v3  ;;  %v22234_v3 = vld [vmem:[#allocation124_spill] sm:$0xff]  ;;  %v1190_v11 = vld [vmem:[#allocation7 + $0x680] sm:$0xff] }
 0x101   :  { %11033 = vmatpush1.bf16.msra.mxu0 %v22078_v5 }
 0x102   :  { %11035 = vmatprep.subr.bf16.mxu0 %v22082_v39 }
 0x105   :  { %11037 = vmatpush1.bf16.msra.mxu0 %v22090_v60 }
 0x106   :  { %11039 = vmatprep.subr.bf16.mxu0 %v22097_v31  ;;  %v22197_v31 = vld [vmem:[#allocation78_spill] sm:$0xff] }
 0x107   :  { %v22198_v60 = vand.u32 4294901760, %v22197_v31  ;;  %22216 = vst [vmem:[#allocation78_spill] sm:$0xff] %v14709_v12 }
 0x109   :  { %11041 = vmatpush1.bf16.msra.mxu0 %v22104_v52  ;;  %v22188_v52 = vand.u32 4294901760, %v22187_v8 }
 0x10a   :  { %11043 = vmatprep.subr.bf16.mxu0 %v22110_v10  ;;  %v22199_v10 = vld [vmem:[#allocation82_spill] sm:$0xff] }
 0x10d   :  { %11045 = vmatpush1.bf16.msra.mxu0 %v22120_v21  ;;  %v22182_v21 = vld [vmem:[#allocation62_spill] sm:$0xff] }
 0x10e   :  { %11047 = vmatprep.subr.bf16.mxu0 %v22123_v34  ;;  %v22183_v2 = vand.u32 4294901760, %v22182_v21  ;;  %v22202_v34 = vld [vmem:[#allocation87_spill] sm:$0xff]  ;;  %v22224_v21 = vld [vmem:[#allocation112_spill] sm:$0xff] }
 0x10f   :  { %22261 = vst [vmem:[#allocation112_spill] sm:$0xff] %v14786_v36 }
 0x110   :  { %v14667_v51 = vpack.c.bf16 %v22185_v16, %v22183_v2  ;;  %v22225_v2 = vand.u32 4294901760, %v22224_v21  ;;  %v22227_v16 = vld [vmem:[#allocation116_spill] sm:$0xff] }
 0x111   :  { %11049 = vmatpush1.bf16.msra.mxu0 %v22136_v15  ;;  %v14674_v15 = vpack.c.bf16 %v22190_v27, %v22188_v52  ;;  %v22228_v8 = vand.u32 4294901760, %v22227_v16  ;;  %v22229_v52 = vld [vmem:[#allocation120_spill] sm:$0xff] }
 0x112   :  { %11051 = vmatprep.subr.bf16.mxu0 %v22137_v47  ;;  %22186 = vst [vmem:[#allocation62_spill] sm:$0xff] %v14667_v51  ;;  %v22200_v47 = vand.u32 4294901760, %v22199_v10  ;;  %v22230_v26 = vand.u32 4294901760, %v22229_v52  ;;  %v1378_v52 = vand.u32 4294901760, %v1174_v1 }
 0x113   :  { %22191 = vst [vmem:[#allocation63_spill] sm:$0xff] %v14674_v15 }
 0x114   :  { %v14688_v50 = vpack.c.bf16 %v22200_v47, %v22198_v60  ;;  %v14730_v27 = vpack.c.bf16 %v22230_v26, %v22228_v8  ;;  %v22237_v60 = vld [vmem:[#allocation128_spill] sm:$0xff]  ;;  %v22239_v47 = vld [vmem:[#allocation131_spill] sm:$0xff]  ;;  %v14798_v8 = vld [vmem:[#allocation7 + $0x658] sm:$0xff]  ;;  %v1382_v26 = vand.u32 4294901760, %v1182_v17 }
 0x115   :  { %11053 = vmatpush1.bf16.msra.mxu0 %v22147_v28  ;;  %v22238_v10 = vand.u32 4294901760, %v22237_v60  ;;  %v2664_v33 = vand.u32 4294901760, %v14798_v8 }
 0x116   :  { %11055 = vmatprep.subr.bf16.mxu0 %v22151_v0  ;;  %22201 = vst [vmem:[#allocation69_spill] sm:$0xff] %v14688_v50  ;;  %v22203_v0 = vand.u32 4294901760, %v22202_v34  ;;  %22231 = vst [vmem:[#allocation88_spill] sm:$0xff] %v14730_v27  ;;  %v22240_v34 = vand.u32 4294901760, %v22239_v47  ;;  %v14806_v47 = vpack.c.bf16 %v1382_v26, %v1378_v52 }
 0x118   :  { %v14695_v28 = vpack.c.bf16 %v22205_v40, %v22203_v0  ;;  %v14744_v0 = vpack.c.bf16 %v22240_v34, %v22238_v10  ;;  %v22243_v40 = vand.u32 4294901760, %v22242_v32  ;;  %v1191_v34 = vld [vmem:[#allocation7 + $0x688] sm:$0xff] }
 0x119   :  { %11057 = vmatpush1.bf16.msra.mxu0 %v22156_v42  ;;  %v22207_v42 = vld [vmem:[#allocation92_spill] sm:$0xff]  ;;  %v1199_v32 = vld [vmem:[#allocation7 + $0x6c8] sm:$0xff] }
 0x11a   :  { %11443 = vmatprep.subr.bf16.mxu0 %v14624_v43  ;;  %v22208_v57 = vand.u32 4294901760, %v22207_v42  ;;  %22241 = vst [vmem:[#allocation96_spill] sm:$0xff] %v14744_v0  ;;  %v22244_v42 = vld [vmem:[#allocation136_spill] sm:$0xff] }
 0x11c   :  { %974 = vmatmul.mubr.f32.vlgmr.msra.gmra.mrb[0].mxu0 %v13741_v48  ;;  %v22178_v48 = vand.u32 4294901760, %v14095_v29  ;;  %v22192_v29 = vld [vmem:[#allocation75_spill] sm:$0xff]  ;;  %v14702_v9 = vpack.c.bf16 %v22210_v61, %v22208_v57  ;;  %v22245_v57 = vand.u32 4294901760, %v22244_v42 }
 0x11d   :  { %11445 = vmatpush1.bf16.msra.mxu0 %v14631_v56  ;;  %v22193_v39 = vand.u32 4294901760, %v22192_v29  ;;  %22206 = vst [vmem:[#allocation75_spill] sm:$0xff] %v14695_v28  ;;  %v22232_v29 = vld [vmem:[#allocation123_spill] sm:$0xff] }
 0x11e   :  { %11447 = vmatprep.subr.bf16.mxu0 %v14638_v4  ;;  %v14660_v59 = vpack.c.bf16 %v22180_v13, %v22178_v48  ;;  %22211 = vst [vmem:[#allocation76_spill] sm:$0xff] %v14702_v9  ;;  %v14716_v48 = vpack.c.bf16 %v22220_v54, %v22218_v20  ;;  %v22223_v13 = vand.u32 4294901760, %v22222_v41  ;;  %v14751_v63 = vpack.c.bf16 %v22245_v57, %v22243_v40  ;;  %v22247_v61 = vld [vmem:[#allocation139_spill] sm:$0xff]  ;;  %v1193_v40 = vld [vmem:[#allocation7 + $0x698] sm:$0xff] }
 0x11f   :  { %v14681_v5 = vpack.c.bf16 %v22195_v58, %v22193_v39  ;;  %v22233_v39 = vand.u32 4294901760, %v22232_v29  ;;  %v22235_v58 = vand.u32 4294901760, %v22234_v3  ;;  %v22248_v49 = vand.u32 4294901760, %v22247_v61  ;;  %v1176_v29 = vld [vmem:[#allocation7 + $0x610] sm:$0xff]  ;;  %22264 = vst [vmem:[#allocation123_spill] sm:$0xff] %v14806_v47 }
 0x120   :  { %22181 = vst [vmem:[#allocation59_spill] sm:$0xff] %v14660_v59  ;;  %22221 = vst [vmem:[#allocation82_spill] sm:$0xff] %v14716_v48  ;;  %v14723_v62 = vpack.c.bf16 %v22225_v2, %v22223_v13  ;;  %v22253_v20 = vand.u32 4294901760, %v22252_v6  ;;  %v22256_v41 = vand.u32 4294901760, %v14478_v45  ;;  %v22257_v13 = vand.u32 4294901760, %v14492_v7  ;;  %v14790_v7 = vld [vmem:[#allocation7 + $0x608] sm:$0xff] }
 0x121   :  { %11449 = vmatpush1.bf16.msra.mxu0 %v14646_v22  ;;  %22196 = vst [vmem:[#allocation65_spill] sm:$0xff] %v14681_v5  ;;  %v14737_v31 = vpack.c.bf16 %v22235_v58, %v22233_v39  ;;  %22246 = vst [vmem:[#allocation101_spill] sm:$0xff] %v14751_v63  ;;  %v14758_v53 = vpack.c.bf16 %v22250_v14, %v22248_v49  ;;  %v22259_v2 = vand.u32 4294901760, %v14513_v55  ;;  %v14792_v45 = vld [vmem:[#allocation7 + $0x648] sm:$0xff]  ;;  %v14794_v55 = vld [vmem:[#allocation7 + $0x618] sm:$0xff]  ;;  %v1376_v24 = vand.u32 4294901760, %v14790_v7 }
 0x122   :  { %11451 = vmatprep.subr.bf16.mxu0 %v14653_v37  ;;  %22226 = vst [vmem:[#allocation87_spill] sm:$0xff] %v14723_v62  ;;  %v14765_v54 = vpack.c.bf16 %v22254_v46, %v22253_v20  ;;  %v14772_v21 = vpack.c.bf16 %v22257_v13, %v22256_v41  ;;  %v2660_v19 = vand.u32 4294901760, %v14794_v55  ;;  %v1184_v39 = vld [vmem:[#allocation7 + $0x650] sm:$0xff]  ;;  %v2662_v58 = vand.u32 4294901760, %v1176_v29  ;;  %v1201_v49 = vld [vmem:[#allocation7 + $0x6d8] sm:$0xff]  ;;  %v1198_v14 = vld [vmem:[#allocation7 + $0x6c0] sm:$0xff] }
 0x123   :  { %22236 = vst [vmem:[#allocation92_spill] sm:$0xff] %v14737_v31  ;;  %22251 = vst [vmem:[#allocation102_spill] sm:$0xff] %v14758_v53  ;;  %v14779_v16 = vpack.c.bf16 %v2656_v18, %v22259_v2  ;;  %v1380_v18 = vand.u32 4294901760, %v14792_v45  ;;  %v2666_v60 = vand.u32 4294901760, %v1184_v39  ;;  %v1384_v57 = vand.u32 4294901760, %v1191_v34  ;;  %v1192_v13 = vld [vmem:[#allocation7 + $0x690] sm:$0xff] }
 0x124   :  { %22255 = vst [vmem:[#allocation105_spill] sm:$0xff] %v14765_v54  ;;  %22258 = vst [vmem:[#allocation109_spill] sm:$0xff] %v14772_v21  ;;  %v14804_v10 = vpack.c.bf16 %v2664_v33, %v2660_v19  ;;  %v1388_v61 = vand.u32 4294901760, %v1199_v32  ;;  %v2668_v6 = vand.u32 4294901760, %v1193_v40  ;;  %v2672_v20 = vand.u32 4294901760, %v1201_v49  ;;  %v1200_v2 = vld [vmem:[#allocation7 + $0x6d0] sm:$0xff] }
 0x125   :  { %11453 = vmatpush1.bf16.msra.mxu0 %v14660_v59  ;;  %22260 = vst [vmem:[#allocation17_spill] sm:$0xff] %v14779_v16  ;;  %v14802_v3 = vpack.c.bf16 %v1380_v18, %v1376_v24  ;;  %v14809_v42 = vpack.c.bf16 %v2666_v60, %v2662_v58  ;;  %v1386_v46 = vand.u32 4294901760, %v1190_v11  ;;  %v1390_v41 = vand.u32 4294901760, %v1198_v14 }
 0x126   :  { %11455 = vmatprep.subr.bf16.mxu0 %v14667_v51  ;;  %22263 = vst [vmem:[#allocation120_spill] sm:$0xff] %v14804_v10  ;;  %v2674_v35 = vand.u32 4294901760, %v1200_v2  ;;  %v14829_v51 = vsub.f32 %v14790_v7, %v1376_v24  ;;  %v14832_v59 = vsub.f32 %v14792_v45, %v1380_v18  ;;  %v14840_v37 = vsub.f32 %v1174_v1, %v1378_v52 }
 0x127   :  { %22262 = vst [vmem:[#allocation116_spill] sm:$0xff] %v14802_v3  ;;  %11107 = vmatprep.subr.bf16.mxu1 %v14802_v3  ;;  %22265 = vst [vmem:[#allocation124_spill] sm:$0xff] %v14809_v42  ;;  %v14814_v3 = vpack.c.bf16 %v1388_v61, %v1384_v57  ;;  %v14844_v22 = vsub.f32 %v1176_v29, %v2662_v58  ;;  %v14846_v4 = vsub.f32 %v1184_v39, %v2666_v60  ;;  %v1225_v58 = vld [vmem:[#allocation7 + $0x798] sm:$0xff] }
 0x128   :  { %11109 = vmatpush1.bf16.msra.mxu1 %v14806_v47  ;;  %22271 = vst [vmem:[#allocation142_spill] sm:$0xff] %v14829_v51  ;;  %22272 = vst [vmem:[#allocation146_spill] sm:$0xff] %v14832_v59  ;;  %v14849_v7 = vsub.f32 %v1191_v34, %v1384_v57  ;;  %v14851_v45 = vsub.f32 %v1199_v32, %v1388_v61  ;;  %v14853_v24 = vsub.f32 %v1193_v40, %v2668_v6  ;;  %v1233_v60 = vld [vmem:[#allocation7 + $0x7d8] sm:$0xff]  ;;  %v1222_v34 = vld [vmem:[#allocation7 + $0x780] sm:$0xff] }
 0x129   :  { %11457 = vmatpush1.bf16.msra.mxu0 %v14674_v15  ;;  %22266 = vst [vmem:[#allocation128_spill] sm:$0xff] %v14814_v3  ;;  %11111 = vmatprep.subr.bf16.mxu1 %v14814_v3  ;;  %22275 = vst [vmem:[#allocation172_spill] sm:$0xff] %v14840_v37  ;;  %v14857_v18 = vsub.f32 %v1190_v11, %v1386_v46  ;;  %v14863_v1 = vsub.f32 %v1200_v2, %v2674_v35  ;;  %v1230_v57 = vld [vmem:[#allocation7 + $0x7c0] sm:$0xff] }
 0x12a   :  { %11459 = vmatprep.subr.bf16.mxu0 %v14681_v5  ;;  %22277 = vst [vmem:[#allocation174_spill] sm:$0xff] %v14844_v22  ;;  %22278 = vst [vmem:[#allocation175_spill] sm:$0xff] %v14846_v4  ;;  %v22310_v2 = vld [vmem:[#allocation38_spill] sm:$0xff] }
 0x12b   :  { %22279 = vst [vmem:[#allocation176_spill] sm:$0xff] %v14849_v7  ;;  %22280 = vst [vmem:[#allocation177_spill] sm:$0xff] %v14851_v45 }
 0x12c   :  { %22281 = vst [vmem:[#allocation178_spill] sm:$0xff] %v14853_v24  ;;  %22283 = vst [vmem:[#allocation180_spill] sm:$0xff] %v14857_v18 }
 0x12d   :  { %11461 = vmatpush1.bf16.msra.mxu0 %v14688_v50  ;;  %22286 = vst [vmem:[#allocation183_spill] sm:$0xff] %v14863_v1 }
 0x12e   :  { %11463 = vmatprep.subr.bf16.mxu0 %v14695_v28  ;;  %v1216_v28 = vld [vmem:[#allocation7 + $0x750] sm:$0xff] }
 0x12f   :  { %v2682_v15 = vand.u32 4294901760, %v1216_v28 }
 0x131   :  { %11465 = vmatpush1.bf16.msra.mxu0 %v14702_v9  ;;  %v1208_v9 = vld [vmem:[#allocation7 + $0x710] sm:$0xff] }
 0x132   :  { %11467 = vmatprep.subr.bf16.mxu0 %v14709_v12  ;;  %v2678_v5 = vand.u32 4294901760, %v1208_v9 }
 0x135   :  { %11469 = vmatpush1.bf16.msra.mxu0 %v14716_v48 }
 0x136   :  { %11471 = vmatprep.subr.bf16.mxu0 %v14723_v62 }
 0x139   :  { %11473 = vmatpush1.bf16.msra.mxu0 %v14730_v27  ;;  %v1206_v27 = vld [vmem:[#allocation7 + $0x700] sm:$0xff] }
 0x13a   :  { %11475 = vmatprep.subr.bf16.mxu0 %v14737_v31  ;;  %v1217_v31 = vld [vmem:[#allocation7 + $0x758] sm:$0xff]  ;;  %v1394_v12 = vand.u32 4294901760, %v1206_v27 }
 0x13b   :  { %v2680_v48 = vand.u32 4294901760, %v1217_v31 }
 0x13d   :  { %11477 = vmatpush1.bf16.msra.mxu0 %v14744_v0  ;;  %v14873_v32 = vsub.f32 %v1217_v31, %v2680_v48  ;;  %v2684_v31 = vand.u32 4294901760, %v1225_v58 }
 0x13e   :  { %11479 = vmatprep.subr.bf16.mxu0 %v14751_v63 }
 0x13f   :  { %22291 = vst [vmem:[#allocation188_spill] sm:$0xff] %v14873_v32 }
 0x141   :  { %11481 = vmatpush1.bf16.msra.mxu0 %v14758_v53  ;;  %v1209_v53 = vld [vmem:[#allocation7 + $0x718] sm:$0xff] }
 0x142   :  { %11483 = vmatprep.subr.bf16.mxu0 %v14765_v54  ;;  %v1207_v54 = vld [vmem:[#allocation7 + $0x708] sm:$0xff]  ;;  %v2676_v62 = vand.u32 4294901760, %v1209_v53 }
 0x143   :  { %v1392_v63 = vand.u32 4294901760, %v1207_v54 }
 0x144   :  { %v14869_v29 = vpack.c.bf16 %v2680_v48, %v2676_v62  ;;  %v14871_v39 = vsub.f32 %v1209_v53, %v2676_v62  ;;  %v14884_v62 = vsub.f32 %v1208_v9, %v2678_v5  ;;  %v14886_v53 = vsub.f32 %v1216_v28, %v2682_v15 }
 0x145   :  { %11485 = vmatpush1.bf16.msra.mxu0 %v14772_v21  ;;  %v14818_v21 = vpack.c.bf16 %v1390_v41, %v1386_v46  ;;  %v14865_v52 = vsub.f32 %v1207_v54, %v1392_v63  ;;  %v1232_v54 = vld [vmem:[#allocation7 + $0x7d0] sm:$0xff]  ;;  %v14898_v28 = vsub.f32 %v1225_v58, %v2684_v31 }
 0x146   :  { %11487 = vmatprep.subr.bf16.mxu0 %v14779_v16  ;;  %v14816_v16 = vpack.c.bf16 %v2672_v20, %v2668_v6  ;;  %22289 = vst [vmem:[#allocation186_spill] sm:$0xff] %v14869_v29  ;;  %22290 = vst [vmem:[#allocation187_spill] sm:$0xff] %v14871_v39 }
 0x147   :  { %22268 = vst [vmem:[#allocation135_spill] sm:$0xff] %v14818_v21  ;;  %11113 = vmatpush1.bf16.msra.mxu1 %v14818_v21  ;;  %v14835_v21 = vsub.f32 %v14794_v55, %v2660_v19  ;;  %v14855_v55 = vsub.f32 %v1201_v49, %v2672_v20  ;;  %22287 = vst [vmem:[#allocation184_spill] sm:$0xff] %v14865_v52  ;;  %v2690_v49 = vand.u32 4294901760, %v1232_v54 }
 0x148   :  { %22267 = vst [vmem:[#allocation131_spill] sm:$0xff] %v14816_v16  ;;  %22296 = vst [vmem:[#allocation193_spill] sm:$0xff] %v14884_v62 }
 0x149   :  { %11489 = vmatpush1.bf16.msra.mxu0 %v14786_v36  ;;  %v2670_v36 = vand.u32 4294901760, %v1192_v13  ;;  %22273 = vst [vmem:[#allocation170_spill] sm:$0xff] %v14835_v21  ;;  %22282 = vst [vmem:[#allocation179_spill] sm:$0xff] %v14855_v55 }
 0x14a   :  { %11491 = vmatprep.subr.bf16.mxu0 %v14804_v10  ;;  %v1215_v10 = vld [vmem:[#allocation7 + $0x748] sm:$0xff]  ;;  %22297 = vst [vmem:[#allocation194_spill] sm:$0xff] %v14886_v53  ;;  %22302 = vst [vmem:[#allocation199_spill] sm:$0xff] %v14898_v28 }
 0x14b   :  { %v14821_v47 = vpack.c.bf16 %v2674_v35, %v2670_v36  ;;  %v1396_v0 = vand.u32 4294901760, %v1215_v10  ;;  %v14861_v19 = vsub.f32 %v1192_v13, %v2670_v36  ;;  %v14877_v36 = vsub.f32 %v1206_v27, %v1394_v12 }
 0x14c   :  { %v1402_v27 = vand.u32 4294901760, %v1222_v34  ;;  %v14914_v13 = vsub.f32 %v1232_v54, %v2690_v49 }
 0x14d   :  { %11493 = vmatpush1.bf16.msra.mxu0 %v14809_v42  ;;  %22269 = vst [vmem:[#allocation136_spill] sm:$0xff] %v14821_v47  ;;  %v1214_v42 = vld [vmem:[#allocation7 + $0x740] sm:$0xff]  ;;  %v14826_v50 = vpack.c.bf16 %v1396_v0, %v1392_v63  ;;  %22285 = vst [vmem:[#allocation182_spill] sm:$0xff] %v14861_v19  ;;  %v1224_v63 = vld [vmem:[#allocation7 + $0x790] sm:$0xff] }
 0x14e   :  { %11495 = vmatprep.subr.bf16.mxu0 %v14816_v16  ;;  %v1398_v3 = vand.u32 4294901760, %v1214_v42  ;;  %v14838_v16 = vsub.f32 %v14798_v8, %v2664_v33  ;;  %v14859_v8 = vsub.f32 %v1198_v14, %v1390_v41  ;;  %v1231_v33 = vld [vmem:[#allocation7 + $0x7c8] sm:$0xff]  ;;  %22293 = vst [vmem:[#allocation190_spill] sm:$0xff] %v14877_v36  ;;  %v2686_v61 = vand.u32 4294901760, %v1224_v63  ;;  %22309 = vst [vmem:[#allocation206_spill] sm:$0xff] %v14914_v13 }
 0x14f   :  { %22270 = vst [vmem:[#allocation139_spill] sm:$0xff] %v14826_v50  ;;  %11115 = vmatprep.subr.bf16.mxu1 %v14826_v50  ;;  %v1404_v48 = vand.u32 4294901760, %v1231_v33  ;;  %v14904_v6 = vsub.f32 %v1222_v34, %v1402_v27  ;;  %v22318_v50 = vld [vmem:[#allocation47_spill] sm:$0xff] }
 0x150   :  { %22274 = vst [vmem:[#allocation171_spill] sm:$0xff] %v14838_v16  ;;  %22284 = vst [vmem:[#allocation181_spill] sm:$0xff] %v14859_v8  ;;  %v14875_v40 = vpack.c.bf16 %v1398_v3, %v1394_v12  ;;  %v14879_v35 = vsub.f32 %v1214_v42, %v1398_v3  ;;  %v2688_v12 = vand.u32 4294901760, %v1233_v60  ;;  %v1406_v42 = vand.u32 4294901760, %v1230_v57 }
 0x151   :  { %11497 = vmatpush1.bf16.msra.mxu0 %v14821_v47  ;;  %v14842_v47 = vsub.f32 %v1182_v17, %v1382_v26  ;;  %v1223_v17 = vld [vmem:[#allocation7 + $0x788] sm:$0xff]  ;;  %v14867_v26 = vsub.f32 %v1215_v10, %v1396_v0  ;;  %v14882_v0 = vpack.c.bf16 %v2682_v15, %v2678_v5  ;;  %v14894_v5 = vsub.f32 %v1231_v33, %v1404_v48 }
 0x152   :  { %22292 = vst [vmem:[#allocation189_spill] sm:$0xff] %v14875_v40  ;;  %22294 = vst [vmem:[#allocation191_spill] sm:$0xff] %v14879_v35  ;;  %11499 = vmatprep.subr.bf16.mxu0 %v14869_v29  ;;  %v1400_v10 = vand.u32 4294901760, %v1223_v17  ;;  %11117 = vmatpush1.bf16.msra.mxu1 %v14875_v40  ;;  %v14896_v15 = vpack.c.bf16 %v2688_v12, %v2684_v31  ;;  %v14900_v9 = vsub.f32 %v1233_v60, %v2688_v12  ;;  %v22311_v33 = vld [vmem:[#allocation39_spill] sm:$0xff]  ;;  %v22312_v60 = vld [vmem:[#allocation40_spill] sm:$0xff] }
 0x153   :  { %22276 = vst [vmem:[#allocation173_spill] sm:$0xff] %v14842_v47  ;;  %22288 = vst [vmem:[#allocation185_spill] sm:$0xff] %v14867_v26  ;;  %v14902_v14 = vpack.c.bf16 %v1406_v42, %v1402_v27  ;;  %v14906_v20 = vsub.f32 %v1230_v57, %v1406_v42  ;;  %v14910_v46 = vpack.c.bf16 %v2690_v49, %v2686_v61  ;;  %v20904_v58 = vand.u32 4294901760, %v22311_v33  ;;  %v22313_v57 = vld [vmem:[#allocation41_spill] sm:$0xff] }
 0x154   :  { %22295 = vst [vmem:[#allocation192_spill] sm:$0xff] %v14882_v0  ;;  %v14890_v3 = vsub.f32 %v1223_v17, %v1400_v10  ;;  %v14892_v11 = vpack.c.bf16 %v1404_v48, %v1400_v10  ;;  %22300 = vst [vmem:[#allocation197_spill] sm:$0xff] %v14894_v5  ;;  %v14912_v41 = vsub.f32 %v1224_v63, %v2686_v61  ;;  %v20899_v17 = vand.u32 4294901760, %v22310_v2 }
 0x155   :  { %11501 = vmatpush1.bf16.msra.mxu0 %v14882_v0  ;;  %22301 = vst [vmem:[#allocation198_spill] sm:$0xff] %v14896_v15  ;;  %22303 = vst [vmem:[#allocation200_spill] sm:$0xff] %v14900_v9  ;;  %v20911_v34 = vand.u32 4294901760, %v22312_v60  ;;  %v20918_v10 = vand.u32 4294901760, %v22313_v57  ;;  %v1440_v63 = vsub.f32 %v22311_v33, %v20904_v58  ;;  %v22315_v58 = vld [vmem:[#allocation44_spill] sm:$0xff]  ;;  %v22316_v0 = vld [vmem:[#allocation45_spill] sm:$0xff] }
 0x156   :  { %22298 = vst [vmem:[#allocation195_spill] sm:$0xff] %v14890_v3  ;;  %22299 = vst [vmem:[#allocation196_spill] sm:$0xff] %v14892_v11  ;;  %11119 = vmatprep.subr.bf16.mxu1 %v14892_v11  ;;  %11503 = vmatprep.subr.bf16.mxu0 %v14896_v15  ;;  %v1428_v48 = vsub.f32 %v22310_v2, %v20899_v17  ;;  %v115_v17 = vlaneseq  ;;  %v20922_v11 = vand.u32 4294901760, %v22315_v58 }
 0x157   :  { %22304 = vst [vmem:[#allocation201_spill] sm:$0xff] %v14902_v14  ;;  %22305 = vst [vmem:[#allocation202_spill] sm:$0xff] %v14904_v6  ;;  %11121 = vmatpush1.bf16.msra.mxu1 %v14902_v14  ;;  %v2712_v54 = vsub.f32 %v22312_v60, %v20911_v34  ;;  %v2724_v31 = vsub.f32 %v22313_v57, %v20918_v10  ;;  %v1441_v27 = vand.u32 4294901760, %v1440_v63  ;;  %v22314_v14 = vld [vmem:[#allocation43_spill] sm:$0xff]  ;;  %v22317_v34 = vld [vmem:[#allocation46_spill] sm:$0xff] }
 0x158   :  { %22306 = vst [vmem:[#allocation203_spill] sm:$0xff] %v14906_v20  ;;  %22307 = vst [vmem:[#allocation204_spill] sm:$0xff] %v14910_v46  ;;  %v1429_v12 = vand.u32 4294901760, %v1428_v48  ;;  %v20919_v15 = vand.u32 4294901760, %v22314_v14  ;;  %v20926_v29 = vand.u32 4294901760, %v22317_v34  ;;  %v22319_v10 = vld [vmem:[#allocation49_spill] sm:$0xff]  ;;  %v1446_v56 = vsub.f32 %v22315_v58, %v20922_v11 }
 0x159   :  { %22308 = vst [vmem:[#allocation205_spill] sm:$0xff] %v14912_v41  ;;  %11505 = vmatpush1.bf16.msra.mxu0 %v14910_v46  ;;  %v2713_v42 = vand.u32 4294901760, %v2712_v54  ;;  %v2725_v61 = vand.u32 4294901760, %v2724_v31  ;;  %v22320_v63 = vld [vmem:[#allocation50_spill] sm:$0xff]  ;;  %v22321_v31 = vld [vmem:[#allocation51_spill] sm:$0xff]  ;;  %v22325_v48 = vand.u32 4294901760, %v22316_v0 }
 0x15a   :  { %v11122_v49 = vpack.c.bf16 %v1441_v27, %v1429_v12  ;;  %v22322_v27 = vld [vmem:[#allocation52_spill] sm:$0xff]  ;;  %v1434_v40 = vsub.f32 %v22314_v14, %v20919_v15  ;;  %v22327_v12 = vand.u32 4294901760, %v22319_v10  ;;  %v22328_v43 = vand.u32 4294901760, %v22320_v63  ;;  %v113_v14 = vld [vmem:[%s20584_s2] sm:$0x3]  ;;  %v22347_v6 = vld [vmem:[#allocation67_spill] sm:$0xff] }
 0x15b   :  { %v11506_v46 = vpack.c.bf16 %v2725_v61, %v2713_v42  ;;  %v2718_v54 = vsub.f32 %v22316_v0, %v22325_v48  ;;  %v2730_v42 = vsub.f32 %v22317_v34, %v20926_v29  ;;  %v22326_v61 = vand.u32 4294901760, %v22318_v50  ;;  %v22330_v0 = vld [vmem:[#allocation55_spill] sm:$0xff]  ;;  %v22333_v57 = vld [vmem:[#allocation56_spill] sm:$0xff] }
 0x15c   :  { %11123 = vmatprep.subr.bf16.mxu1 %v11122_v49  ;;  %v14944_v49 = vshrl.u32 %v115_v17, 7  ;;  %v1464_v15 = vsub.f32 %v22319_v10, %v22327_v12  ;;  %v2736_v11 = vsub.f32 %v22320_v63, %v22328_v43  ;;  %v22329_v58 = vand.u32 4294901760, %v22321_v31  ;;  %v22334_v10 = vld [vmem:[#allocation58_spill] sm:$0xff] }
 0x15d   :  { %11507 = vmatprep.subr.bf16.mxu0 %v11506_v46  ;;  %v22323_v46 = vld [vmem:[#allocation54_spill] sm:$0xff]  ;;  %v1452_v17 = vsub.f32 %v22318_v50, %v22326_v61  ;;  %v22331_v29 = vand.u32 4294901760, %v22322_v27  ;;  %v1435_v33 = vand.u32 4294901760, %v1434_v40  ;;  %v2731_v2 = vand.u32 4294901760, %v2730_v42 }
 0x15e   :  { %22324 = vst [vmem:[#allocation207_spill] sm:$0xff] %v14944_v49  ;;  %v2748_v48 = vsub.f32 %v22321_v31, %v22329_v58  ;;  %v22332_v61 = vand.u32 4294901760, %v22323_v46  ;;  %v22335_v58 = vld [vmem:[#allocation60_spill] sm:$0xff]  ;;  %v22336_v60 = vand.u32 4294901760, %v22330_v0  ;;  %v22337_v40 = vand.u32 4294901760, %v22333_v57 }
 0x15f   :  { %v1458_v34 = vsub.f32 %v22322_v27, %v22331_v29  ;;  %v1447_v29 = vand.u32 4294901760, %v1446_v56  ;;  %v2719_v27 = vand.u32 4294901760, %v2718_v54  ;;  %v1453_v13 = vand.u32 4294901760, %v1452_v17  ;;  %v22342_v17 = vld [vmem:[#allocation61_spill] sm:$0xff] }
 0x160   :  { %v1470_v50 = vsub.f32 %v22323_v46, %v22332_v61  ;;  %v1465_v61 = vand.u32 4294901760, %v1464_v15  ;;  %v2737_v46 = vand.u32 4294901760, %v2736_v11  ;;  %v2749_v12 = vand.u32 4294901760, %v2748_v48  ;;  %v22345_v48 = vld [vmem:[#allocation28_spill] sm:$0xff] }
 0x161   :  { %v2742_v43 = vsub.f32 %v22330_v0, %v22336_v60  ;;  %v1459_v41 = vand.u32 4294901760, %v1458_v34  ;;  %v2754_v31 = vsub.f32 %v22333_v57, %v22337_v40  ;;  %v22338_v20 = vand.u32 4294901760, %v22334_v10  ;;  %v22346_v57 = vld [vmem:[#allocation64_spill] sm:$0xff] }
 0x162   :  { %v1471_v63 = vand.u32 4294901760, %v1470_v50  ;;  %v22339_v54 = vsub.s32 0, %v14944_v49  ;;  %v22341_v11 = vand.u32 4294901760, %v22335_v58  ;;  %v22343_v50 = vsub.s32 1, %v14944_v49 }
 0x163   :  { %v1476_v56 = vsub.f32 %v22334_v10, %v22338_v20  ;;  %v15009_v10 = vpack.c.bf16 %v1447_v29, %v1435_v33  ;;  %v15015_v9 = vpack.c.bf16 %v2749_v12, %v2737_v46  ;;  %v2743_v60 = vand.u32 4294901760, %v2742_v43  ;;  %v22355_v33 = vld [vmem:[#allocation70_spill] sm:$0xff]  ;;  %v22359_v46 = vld [vmem:[#allocation72_spill] sm:$0xff]  ;;  %v22360_v43 = vld [vmem:[#allocation73_spill] sm:$0xff] }
 0x164   :  { %v14996_v42 = vrot.slane %v113_v14, %v22339_v54  ;;  %v1488_v15 = vsub.f32 %v22335_v58, %v22341_v11  ;;  %v15004_v34 = vrot.slane %v113_v14, %v22343_v50  ;;  %v15011_v54 = vpack.c.bf16 %v2731_v2, %v2719_v27  ;;  %v22354_v58 = vld [vmem:[#allocation68_spill] sm:$0xff]  ;;  %v22363_v20 = vld [vmem:[#allocation77_spill] sm:$0xff] }
 0x165   :  { %22348 = vst [vmem:[#allocation210_spill] sm:$0xff] %v15009_v10  ;;  %22351 = vst [vmem:[#allocation213_spill] sm:$0xff] %v15015_v9  ;;  %v15017_v11 = vpack.c.bf16 %v1471_v63, %v1459_v41  ;;  %v2755_v49 = vand.u32 4294901760, %v2754_v31  ;;  %v1477_v14 = vand.u32 4294901760, %v1476_v56  ;;  %v22353_v40 = vand.u32 4294901760, %v22342_v17  ;;  %v22361_v56 = vld [vmem:[#allocation74_spill] sm:$0xff] }
 0x166   :  { %22340 = vst [vmem:[#allocation208_spill] sm:$0xff] %v14996_v42  ;;  %22344 = vst [vmem:[#allocation209_spill] sm:$0xff] %v15004_v34  ;;  %v15013_v42 = vpack.c.bf16 %v1465_v61, %v1453_v13  ;;  %v1489_v50 = vand.u32 4294901760, %v1488_v15  ;;  %v22356_v2 = vand.u32 4294901760, %v22345_v48  ;;  %v22357_v27 = vand.u32 4294901760, %v22346_v57  ;;  %v22366_v9 = vld [vmem:[#allocation80_spill] sm:$0xff] }
 0x167   :  { %22349 = vst [vmem:[#allocation211_spill] sm:$0xff] %v15011_v54  ;;  %22352 = vst [vmem:[#allocation214_spill] sm:$0xff] %v15017_v11  ;;  %v2760_v0 = vsub.f32 %v22342_v17, %v22353_v40  ;;  %v22358_v63 = vand.u32 4294901760, %v22347_v6  ;;  %v22362_v40 = vld [vmem:[#allocation30_spill] sm:$0xff]  ;;  %v15038_v11 = vpack.c.bf16 %v2755_v49, %v2743_v60  ;;  %v22369_v12 = vand.u32 4294901760, %v22354_v58  ;;  %v22384_v34 = vld [vmem:[#allocation93_spill] sm:$0xff] }
 0x168   :  { %22350 = vst [vmem:[#allocation212_spill] sm:$0xff] %v15013_v42  ;;  %v2772_v13 = vsub.f32 %v22345_v48, %v22356_v2  ;;  %v1482_v41 = vsub.f32 %v22346_v57, %v22357_v27  ;;  %v22365_v2 = vld [vmem:[#allocation79_spill] sm:$0xff]  ;;  %v22367_v57 = vld [vmem:[#allocation81_spill] sm:$0xff]  ;;  %v15043_v54 = vpack.c.bf16 %v1489_v50, %v1477_v14  ;;  %v22370_v15 = vand.u32 4294901760, %v22355_v33 }
 0x169   :  { %v1494_v31 = vsub.f32 %v22347_v6, %v22358_v63  ;;  %22364 = vst [vmem:[#allocation215_spill] sm:$0xff] %v15038_v11  ;;  %v2761_v63 = vand.u32 4294901760, %v2760_v0  ;;  %v2766_v61 = vsub.f32 %v22354_v58, %v22369_v12  ;;  %v22371_v48 = vand.u32 4294901760, %v22359_v46  ;;  %v22382_v11 = vld [vmem:[#allocation89_spill] sm:$0xff] }
 0x16a   :  { %22368 = vst [vmem:[#allocation216_spill] sm:$0xff] %v15043_v54  ;;  %v2778_v29 = vsub.f32 %v22355_v33, %v22370_v15  ;;  %v2773_v17 = vand.u32 4294901760, %v2772_v13  ;;  %v1483_v49 = vand.u32 4294901760, %v1482_v41  ;;  %v22372_v42 = vand.u32 4294901760, %v22360_v43  ;;  %v22381_v54 = vld [vmem:[#allocation86_spill] sm:$0xff] }
 0x16b   :  { %v1495_v60 = vand.u32 4294901760, %v1494_v31  ;;  %v1500_v27 = vsub.f32 %v22359_v46, %v22371_v48  ;;  %v22373_v0 = vand.u32 4294901760, %v22361_v56  ;;  %v22374_v12 = vand.u32 4294901760, %v22362_v40 }
 0x16c   :  { %v1512_v14 = vsub.f32 %v22360_v43, %v22372_v42  ;;  %v22375_v13 = vand.u32 4294901760, %v22363_v20  ;;  %v22376_v31 = vand.u32 4294901760, %v22365_v2  ;;  %v22377_v15 = vand.u32 4294901760, %v22366_v9 }
 0x16d   :  { %v2784_v50 = vsub.f32 %v22361_v56, %v22373_v0  ;;  %v2796_v58 = vsub.f32 %v22362_v40, %v22374_v12  ;;  %v22378_v43 = vand.u32 4294901760, %v22367_v57  ;;  %v22379_v56 = vld [vmem:[#allocation84_spill] sm:$0xff]  ;;  %v2767_v33 = vand.u32 4294901760, %v2766_v61  ;;  %v22380_v40 = vld [vmem:[#allocation85_spill] sm:$0xff] }
 0x16e   :  { %v1506_v41 = vsub.f32 %v22363_v20, %v22375_v13  ;;  %v1518_v48 = vsub.f32 %v22365_v2, %v22376_v31  ;;  %v2790_v42 = vsub.f32 %v22366_v9, %v22377_v15  ;;  %v2779_v12 = vand.u32 4294901760, %v2778_v29  ;;  %v22383_v31 = vld [vmem:[#allocation91_spill] sm:$0xff] }
 0x16f   :  { %v2802_v0 = vsub.f32 %v22367_v57, %v22378_v43  ;;  %v20967_v6 = vand.u32 4294901760, %v22380_v40  ;;  %v1501_v20 = vand.u32 4294901760, %v1500_v27  ;;  %v20966_v10 = vand.u32 4294901760, %v22382_v11 }
 0x170   :  { %v20968_v2 = vand.u32 4294901760, %v22383_v31  ;;  %v20971_v28 = vand.u32 4294901760, %v22384_v34  ;;  %v1513_v15 = vand.u32 4294901760, %v1512_v14  ;;  %v2785_v9 = vand.u32 4294901760, %v2784_v50  ;;  %v22388_v50 = vld [vmem:[#allocation94_spill] sm:$0xff] }
 0x171   :  { %v2797_v5 = vand.u32 4294901760, %v2796_v58  ;;  %v1507_v3 = vand.u32 4294901760, %v1506_v41  ;;  %v1519_v43 = vand.u32 4294901760, %v1518_v48  ;;  %v2791_v57 = vand.u32 4294901760, %v2790_v42  ;;  %v22396_v41 = vld [vmem:[#allocation98_spill] sm:$0xff] }
 0x172   :  { %v2803_v46 = vand.u32 4294901760, %v2802_v0  ;;  %v22385_v29 = vand.u32 4294901760, %v22379_v56  ;;  %v15086_v13 = vpack.c.bf16 %v2773_v17, %v2761_v63  ;;  %v15091_v27 = vsub.f32 %v22380_v40, %v20967_v6 }
 0x173   :  { %v22387_v14 = vand.u32 4294901760, %v22381_v54  ;;  %v15099_v48 = vpack.c.bf16 %v1495_v60, %v1483_v49  ;;  %v15104_v42 = vsub.f32 %v22382_v11, %v20966_v10  ;;  %v15109_v17 = vsub.f32 %v22383_v31, %v20968_v2  ;;  %v22393_v60 = vld [vmem:[#allocation95_spill] sm:$0xff]  ;;  %v22401_v2 = vld [vmem:[#allocation149_spill] sm:$0xff] }
 0x174   :  { %v15084_v61 = vsub.f32 %v22379_v56, %v22385_v29  ;;  %22386 = vst [vmem:[#allocation217_spill] sm:$0xff] %v15086_v13  ;;  %v15114_v63 = vsub.f32 %v22384_v34, %v20971_v28  ;;  %v15116_v0 = vpack.c.bf16 %v2779_v12, %v2767_v33  ;;  %v15118_v29 = vpack.c.bf16 %v1513_v15, %v1501_v20  ;;  %v22399_v12 = vld [vmem:[#allocation25_spill] sm:$0xff]  ;;  %v22400_v28 = vld [vmem:[#allocation148_spill] sm:$0xff] }
 0x175   :  { %v15096_v58 = vsub.f32 %v22381_v54, %v22387_v14  ;;  %22389 = vst [vmem:[#allocation218_spill] sm:$0xff] %v15099_v48  ;;  %v15120_v49 = vpack.c.bf16 %v2797_v5, %v2785_v9  ;;  %v20973_v14 = vand.u32 4294901760, %v22393_v60  ;;  %v15123_v10 = vpack.c.bf16 %v1519_v43, %v1507_v3  ;;  %v22398_v5 = vld [vmem:[#allocation24_spill] sm:$0xff] }
 0x176   :  { %22390 = vst [vmem:[#allocation219_spill] sm:$0xff] %v15116_v0  ;;  %22391 = vst [vmem:[#allocation220_spill] sm:$0xff] %v15118_v29  ;;  %v15125_v6 = vpack.c.bf16 %v2803_v46, %v2791_v57  ;;  %v22397_v33 = vand.u32 4294901760, %v22388_v50  ;;  %v20977_v9 = vand.u32 4294901760, %v22398_v5  ;;  %v20980_v15 = vand.u32 4294901760, %v22399_v12 }
 0x177   :  { %22392 = vst [vmem:[#allocation221_spill] sm:$0xff] %v15120_v49  ;;  %22394 = vst [vmem:[#allocation222_spill] sm:$0xff] %v15123_v10  ;;  %v15144_v43 = vsub.f32 %v22393_v60, %v20973_v14  ;;  %v20982_v11 = vand.u32 4294901760, %v22400_v28  ;;  %v22402_v3 = vand.u32 4294901760, %v22396_v41  ;;  %v22404_v60 = vld [vmem:[#allocation151_spill] sm:$0xff]  ;;  %v22405_v40 = vand.u32 4294901760, %v22401_v2 }
 0x178   :  { %22395 = vst [vmem:[#allocation223_spill] sm:$0xff] %v15125_v6  ;;  %v15134_v20 = vsub.f32 %v22388_v50, %v22397_v33  ;;  %v2928_v33 = vsub.f32 %v22398_v5, %v20977_v9  ;;  %v2940_v46 = vsub.f32 %v22399_v12, %v20980_v15  ;;  %v22403_v50 = vld [vmem:[#allocation150_spill] sm:$0xff]  ;;  %v20984_v34 = vand.u32 4294901760, %v22404_v60  ;;  %v22406_v6 = vld [vmem:[#allocation153_spill] sm:$0xff] }
 0x179   :  { %v15154_v57 = vsub.f32 %v22396_v41, %v22402_v3  ;;  %v20983_v14 = vand.u32 4294901760, %v22403_v50  ;;  %v1650_v31 = vsub.f32 %v22400_v28, %v20982_v11  ;;  %v1662_v3 = vsub.f32 %v22401_v2, %v22405_v40  ;;  %v22408_v11 = vld [vmem:[#allocation154_spill] sm:$0xff]  ;;  %v22505_v28 = vld [vmem:[#allocation157_spill] sm:$0xff] }
 0x17a   :  { %v2929_v9 = vand.u32 4294901760, %v2928_v33  ;;  %v2941_v41 = vand.u32 4294901760, %v2940_v46  ;;  %v2946_v56 = vsub.f32 %v22404_v60, %v20984_v34  ;;  %v20989_v54 = vand.u32 4294901760, %v22406_v6  ;;  %v22407_v33 = vld [vmem:[#allocation99_spill] sm:$0xff]  ;;  %v22411_v60 = vld [vmem:[#allocation26_spill] sm:$0xff] }
 0x17b   :  { %v2934_v15 = vsub.f32 %v22403_v50, %v20983_v14  ;;  %v1651_v49 = vand.u32 4294901760, %v1650_v31  ;;  %v1663_v29 = vand.u32 4294901760, %v1662_v3  ;;  %v20988_v0 = vand.u32 4294901760, %v22408_v11  ;;  %v22412_v31 = vld [vmem:[#allocation27_spill] sm:$0xff] }
 0x17c   :  { %v15177_v48 = vpack.c.bf16 %v2941_v41, %v2929_v9  ;;  %v2947_v46 = vand.u32 4294901760, %v2946_v56  ;;  %v1668_v14 = vsub.f32 %v22406_v6, %v20989_v54  ;;  %v20991_v10 = vand.u32 4294901760, %v22411_v60  ;;  %v22414_v9 = vld [vmem:[#allocation156_spill] sm:$0xff]  ;;  %v22415_v56 = vld [vmem:[#allocation157_spill] sm:$0xff] }
 0x17d   :  { %v2935_v40 = vand.u32 4294901760, %v2934_v15  ;;  %v15182_v13 = vpack.c.bf16 %v1663_v29, %v1651_v49  ;;  %v1680_v34 = vsub.f32 %v22408_v11, %v20988_v0  ;;  %v20993_v3 = vand.u32 4294901760, %v22412_v31  ;;  %v22416_v0 = vld [vmem:[#allocation158_spill] sm:$0xff] }
 0x17e   :  { %22409 = vst [vmem:[#allocation24_spill] sm:$0xff] %v15177_v48  ;;  %v1669_v41 = vand.u32 4294901760, %v1668_v14  ;;  %v20996_v15 = vand.u32 4294901760, %v22414_v9  ;;  %v20997_v48 = vand.u32 4294901760, %v22415_v56  ;;  %v2952_v29 = vsub.f32 %v22411_v60, %v20991_v10 }
 0x17f   :  { %22410 = vst [vmem:[#allocation25_spill] sm:$0xff] %v15182_v13  ;;  %v15189_v50 = vpack.c.bf16 %v2947_v46, %v2935_v40  ;;  %v1681_v2 = vand.u32 4294901760, %v1680_v34  ;;  %v2964_v49 = vsub.f32 %v22412_v31, %v20993_v3  ;;  %v21000_v54 = vand.u32 4294901760, %v22416_v0  ;;  %v22417_v46 = vld [vmem:[#allocation159_spill] sm:$0xff] }
 0x180   :  { %v1674_v40 = vsub.f32 %v22414_v9, %v20996_v15  ;;  %v1686_v14 = vsub.f32 %v22415_v56, %v20997_v48  ;;  %v21001_v34 = vand.u32 4294901760, %v22417_v46  ;;  %v2953_v10 = vand.u32 4294901760, %v2952_v29 }
 0x181   :  { %22413 = vst [vmem:[#allocation224_spill] sm:$0xff] %v15189_v50  ;;  %v22418_v50 = vld [vmem:[#allocation160_spill] sm:$0xff]  ;;  %v15208_v11 = vpack.c.bf16 %v1681_v2, %v1669_v41  ;;  %v2965_v60 = vand.u32 4294901760, %v2964_v49  ;;  %v2958_v3 = vsub.f32 %v22416_v0, %v21000_v54  ;;  %v22421_v41 = vld [vmem:[#allocation161_spill] sm:$0xff] }
 0x182   :  { %v21002_v13 = vand.u32 4294901760, %v22418_v50  ;;  %v1675_v31 = vand.u32 4294901760, %v1674_v40  ;;  %v1687_v6 = vand.u32 4294901760, %v1686_v14  ;;  %v2970_v15 = vsub.f32 %v22417_v46, %v21001_v34  ;;  %v22422_v49 = vld [vmem:[#allocation33_spill] sm:$0xff] }
 0x183   :  { %22419 = vst [vmem:[#allocation225_spill] sm:$0xff] %v15208_v11  ;;  %v15219_v56 = vpack.c.bf16 %v2965_v60, %v2953_v10  ;;  %v2959_v2 = vand.u32 4294901760, %v2958_v3  ;;  %v21003_v29 = vand.u32 4294901760, %v22421_v41  ;;  %v21004_v11 = vand.u32 4294901760, %v22422_v49 }
 0x184   :  { %v1692_v48 = vsub.f32 %v22418_v50, %v21002_v13  ;;  %v15223_v9 = vpack.c.bf16 %v1687_v6, %v1675_v31  ;;  %v2971_v54 = vand.u32 4294901760, %v2970_v15  ;;  %v21005_v14 = vand.u32 4294901760, %v14564_v25 }
 0x185   :  { %22420 = vst [vmem:[#allocation226_spill] sm:$0xff] %v15219_v56  ;;  %v1704_v34 = vsub.f32 %v22421_v41, %v21003_v29  ;;  %v2976_v10 = vsub.f32 %v22422_v49, %v21004_v11  ;;  %v21006_v60 = vand.u32 4294901760, %v14568_v30  ;;  %v21009_v3 = vand.u32 4294901760, %v14571_v44 }
 0x186   :  { %22423 = vst [vmem:[#allocation227_spill] sm:$0xff] %v15223_v9  ;;  %v1693_v40 = vand.u32 4294901760, %v1692_v48  ;;  %v15234_v13 = vpack.c.bf16 %v2971_v54, %v2959_v2  ;;  %v2988_v6 = vsub.f32 %v14564_v25, %v21005_v14  ;;  %v21010_v48 = vand.u32 4294901760, %v14576_v38 }
 0x187   :  { %v21013_v31 = vand.u32 4294901760, %v14581_v23  ;;  %v1705_v15 = vand.u32 4294901760, %v1704_v34  ;;  %v2977_v29 = vand.u32 4294901760, %v2976_v10  ;;  %v1698_v11 = vsub.f32 %v14568_v30, %v21006_v60 }
 0x188   :  { %22424 = vst [vmem:[#allocation228_spill] sm:$0xff] %v15234_v13  ;;  %v1710_v9 = vsub.f32 %v14571_v44, %v21009_v3  ;;  %v2989_v54 = vand.u32 4294901760, %v2988_v6  ;;  %v2982_v2 = vsub.f32 %v14576_v38, %v21010_v48  ;;  %v21016_v34 = vand.u32 4294901760, %v14829_v51 }
 0x189   :  { %v2994_v14 = vsub.f32 %v14581_v23, %v21013_v31  ;;  %v15254_v10 = vpack.c.bf16 %v1705_v15, %v1693_v40  ;;  %v1699_v13 = vand.u32 4294901760, %v1698_v11  ;;  %v21014_v60 = vand.u32 4294901760, %v14832_v59 }
 0x18a   :  { %v1711_v56 = vand.u32 4294901760, %v1710_v9  ;;  %v15257_v30 = vpack.c.bf16 %v2989_v54, %v2977_v29  ;;  %v2983_v3 = vand.u32 4294901760, %v2982_v2  ;;  %v1716_v48 = vsub.f32 %v14829_v51, %v21016_v34 }
 0x18b   :  { %22425 = vst [vmem:[#allocation229_spill] sm:$0xff] %v15254_v10  ;;  %v2995_v6 = vand.u32 4294901760, %v2994_v14  ;;  %v1728_v31 = vsub.f32 %v14832_v59, %v21014_v60  ;;  %v21015_v40 = vand.u32 4294901760, %v14835_v21  ;;  %v21017_v11 = vand.u32 4294901760, %v14838_v16  ;;  %v22566_v59 = vld [vmem:[#allocation145_spill] sm:$0xff] }
 0x18c   :  { %22426 = vst [vmem:[#allocation230_spill] sm:$0xff] %v15257_v30  ;;  %v15262_v38 = vpack.c.bf16 %v1711_v56, %v1699_v13  ;;  %v1717_v29 = vand.u32 4294901760, %v1716_v48  ;;  %v21018_v15 = vand.u32 4294901760, %v14840_v37  ;;  %v21019_v14 = vand.u32 4294901760, %v14842_v47 }
 0x18d   :  { %v15269_v9 = vpack.c.bf16 %v2995_v6, %v2983_v3  ;;  %v1729_v54 = vand.u32 4294901760, %v1728_v31  ;;  %v3000_v13 = vsub.f32 %v14835_v21, %v21015_v40  ;;  %v3012_v56 = vsub.f32 %v14838_v16, %v21017_v11  ;;  %v22517_v16 = vld [vmem:[#allocation214_spill] sm:$0xff] }
 0x18e   :  { %22427 = vst [vmem:[#allocation231_spill] sm:$0xff] %v15262_v38  ;;  %v21020_v2 = vand.u32 4294901760, %v14844_v22  ;;  %v1722_v3 = vsub.f32 %v14840_v37, %v21018_v15  ;;  %v1734_v48 = vsub.f32 %v14842_v47, %v21019_v14  ;;  %v21021_v31 = vand.u32 4294901760, %v14846_v4  ;;  %v22528_v21 = vld [vmem:[#allocation122_spill] sm:$0xff]  ;;  %v22538_v47 = vld [vmem:[#allocation125_spill] sm:$0xff] }
 0x18f   :  { %22428 = vst [vmem:[#allocation232_spill] sm:$0xff] %v15269_v9  ;;  %v21022_v6 = vand.u32 4294901760, %v14849_v7  ;;  %v15288_v60 = vpack.c.bf16 %v1729_v54, %v1717_v29  ;;  %v3001_v40 = vand.u32 4294901760, %v3000_v13  ;;  %v3013_v34 = vand.u32 4294901760, %v3012_v56 }
 0x190   :  { %v3006_v11 = vsub.f32 %v14844_v22, %v21020_v2  ;;  %v1723_v9 = vand.u32 4294901760, %v1722_v3  ;;  %v1735_v38 = vand.u32 4294901760, %v1734_v48  ;;  %v3018_v15 = vsub.f32 %v14846_v4, %v21021_v31  ;;  %v22539_v22 = vld [vmem:[#allocation218_spill] sm:$0xff] }
 0x191   :  { %22429 = vst [vmem:[#allocation233_spill] sm:$0xff] %v15288_v60  ;;  %v1740_v14 = vsub.f32 %v14849_v7, %v21022_v6  ;;  %v15299_v30 = vpack.c.bf16 %v3013_v34, %v3001_v40  ;;  %v21023_v54 = vand.u32 4294901760, %v14851_v45  ;;  %v21024_v13 = vand.u32 4294901760, %v14853_v24  ;;  %v22551_v7 = vld [vmem:[#allocation223_spill] sm:$0xff] }
 0x192   :  { %v3007_v29 = vand.u32 4294901760, %v3006_v11  ;;  %v15303_v56 = vpack.c.bf16 %v1735_v38, %v1723_v9  ;;  %v3019_v2 = vand.u32 4294901760, %v3018_v15  ;;  %v21025_v48 = vand.u32 4294901760, %v14855_v55 }
 0x193   :  { %22430 = vst [vmem:[#allocation234_spill] sm:$0xff] %v15299_v30  ;;  %v1741_v3 = vand.u32 4294901760, %v1740_v14  ;;  %v1752_v31 = vsub.f32 %v14851_v45, %v21023_v54  ;;  %v3024_v34 = vsub.f32 %v14853_v24, %v21024_v13  ;;  %v21026_v40 = vand.u32 4294901760, %v14857_v18 }
 0x194   :  { %22431 = vst [vmem:[#allocation235_spill] sm:$0xff] %v15303_v56  ;;  %v21027_v11 = vand.u32 4294901760, %v14859_v8  ;;  %v15314_v6 = vpack.c.bf16 %v3019_v2, %v3007_v29  ;;  %v3036_v38 = vsub.f32 %v14855_v55, %v21025_v48  ;;  %v21028_v9 = vand.u32 4294901760, %v14861_v19 }
 0x195   :  { %v21029_v15 = vand.u32 4294901760, %v14863_v1  ;;  %v1753_v14 = vand.u32 4294901760, %v1752_v31  ;;  %v3025_v54 = vand.u32 4294901760, %v3024_v34  ;;  %v1746_v13 = vsub.f32 %v14857_v18, %v21026_v40 }
 0x196   :  { %22432 = vst [vmem:[#allocation236_spill] sm:$0xff] %v15314_v6  ;;  %v1758_v56 = vsub.f32 %v14859_v8, %v21027_v11  ;;  %v3037_v2 = vand.u32 4294901760, %v3036_v38  ;;  %v3030_v29 = vsub.f32 %v14861_v19, %v21028_v9  ;;  %v21031_v31 = vand.u32 4294901760, %v14865_v52 }
 0x197   :  { %v3042_v48 = vsub.f32 %v14863_v1, %v21029_v15  ;;  %v15334_v34 = vpack.c.bf16 %v1753_v14, %v1741_v3  ;;  %v1747_v6 = vand.u32 4294901760, %v1746_v13  ;;  %v21030_v40 = vand.u32 4294901760, %v14867_v26 }
 0x198   :  { %v1759_v30 = vand.u32 4294901760, %v1758_v56  ;;  %v15337_v60 = vpack.c.bf16 %v3037_v2, %v3025_v54  ;;  %v3031_v11 = vand.u32 4294901760, %v3030_v29  ;;  %v1764_v9 = vsub.f32 %v14865_v52, %v21031_v31 }
 0x199   :  { %22433 = vst [vmem:[#allocation237_spill] sm:$0xff] %v15334_v34  ;;  %v3043_v38 = vand.u32 4294901760, %v3042_v48  ;;  %v1776_v15 = vsub.f32 %v14867_v26, %v21030_v40  ;;  %v21032_v3 = vand.u32 4294901760, %v14871_v39  ;;  %v21033_v13 = vand.u32 4294901760, %v14873_v32 }
 0x19a   :  { %22434 = vst [vmem:[#allocation238_spill] sm:$0xff] %v15337_v60  ;;  %v15342_v10 = vpack.c.bf16 %v1759_v30, %v1747_v6  ;;  %v1765_v54 = vand.u32 4294901760, %v1764_v9  ;;  %v21034_v14 = vand.u32 4294901760, %v14877_v36  ;;  %v21035_v48 = vand.u32 4294901760, %v14879_v35 }
 0x19b   :  { %v15349_v56 = vpack.c.bf16 %v3043_v38, %v3031_v11  ;;  %v1777_v2 = vand.u32 4294901760, %v1776_v15  ;;  %v3048_v30 = vsub.f32 %v14871_v39, %v21032_v3  ;;  %v3060_v6 = vsub.f32 %v14873_v32, %v21033_v13  ;;  %v22437_v38 = vld [vmem:[#allocation195_spill] sm:$0xff] }
 0x19c   :  { %22435 = vst [vmem:[#allocation239_spill] sm:$0xff] %v15342_v10  ;;  %v21038_v29 = vand.u32 4294901760, %v14884_v62  ;;  %v1770_v11 = vsub.f32 %v14877_v36, %v21034_v14  ;;  %v1782_v9 = vsub.f32 %v14879_v35, %v21035_v48  ;;  %v21041_v15 = vand.u32 4294901760, %v14886_v53 }
 0x19d   :  { %22436 = vst [vmem:[#allocation240_spill] sm:$0xff] %v15349_v56  ;;  %v21042_v40 = vand.u32 4294901760, %v22437_v38  ;;  %v15368_v31 = vpack.c.bf16 %v1777_v2, %v1765_v54  ;;  %v3049_v3 = vand.u32 4294901760, %v3048_v30  ;;  %v3061_v56 = vand.u32 4294901760, %v3060_v6  ;;  %v22440_v2 = vld [vmem:[#allocation197_spill] sm:$0xff]  ;;  %v22441_v6 = vld [vmem:[#allocation199_spill] sm:$0xff] }
 0x19e   :  { %v3054_v13 = vsub.f32 %v14884_v62, %v21038_v29  ;;  %v1771_v10 = vand.u32 4294901760, %v1770_v11  ;;  %v1783_v60 = vand.u32 4294901760, %v1782_v9  ;;  %v3066_v14 = vsub.f32 %v14886_v53, %v21041_v15  ;;  %v22443_v9 = vld [vmem:[#allocation200_spill] sm:$0xff] }
 0x19f   :  { %22438 = vst [vmem:[#allocation241_spill] sm:$0xff] %v15368_v31  ;;  %v1788_v48 = vsub.f32 %v22437_v38, %v21042_v40  ;;  %v15379_v34 = vpack.c.bf16 %v3061_v56, %v3049_v3  ;;  %v21046_v30 = vand.u32 4294901760, %v22440_v2  ;;  %v21047_v31 = vand.u32 4294901760, %v22441_v6  ;;  %v22444_v56 = vld [vmem:[#allocation202_spill] sm:$0xff]  ;;  %v22445_v40 = vld [vmem:[#allocation203_spill] sm:$0xff] }
 0x1a0   :  { %v3055_v54 = vand.u32 4294901760, %v3054_v13  ;;  %v15383_v35 = vpack.c.bf16 %v1783_v60, %v1771_v10  ;;  %v3067_v29 = vand.u32 4294901760, %v3066_v14  ;;  %v21050_v62 = vand.u32 4294901760, %v22443_v9  ;;  %v22447_v10 = vld [vmem:[#allocation205_spill] sm:$0xff] }
 0x1a1   :  { %22439 = vst [vmem:[#allocation242_spill] sm:$0xff] %v15379_v34  ;;  %v1789_v11 = vand.u32 4294901760, %v1788_v48  ;;  %v1800_v15 = vsub.f32 %v22440_v2, %v21046_v30  ;;  %v3072_v3 = vsub.f32 %v22441_v6, %v21047_v31  ;;  %v21054_v13 = vand.u32 4294901760, %v22444_v56  ;;  %v22448_v48 = vld [vmem:[#allocation206_spill] sm:$0xff] }
 0x1a2   :  { %22442 = vst [vmem:[#allocation243_spill] sm:$0xff] %v15383_v35  ;;  %v21058_v34 = vand.u32 4294901760, %v22445_v40  ;;  %v15394_v38 = vpack.c.bf16 %v3067_v29, %v3055_v54  ;;  %v3084_v60 = vsub.f32 %v22443_v9, %v21050_v62  ;;  %v21064_v14 = vand.u32 4294901760, %v22447_v10  ;;  %v22449_v54 = vld [vmem:[#allocation100_spill] sm:$0xff] }
 0x1a3   :  { %v21070_v35 = vand.u32 4294901760, %v22448_v48  ;;  %v1801_v53 = vand.u32 4294901760, %v1800_v15  ;;  %v3073_v30 = vand.u32 4294901760, %v3072_v3  ;;  %v1794_v31 = vsub.f32 %v22444_v56, %v21054_v13  ;;  %v22450_v3 = vld [vmem:[#allocation208_spill] sm:$0xff] }
 0x1a4   :  { %22446 = vst [vmem:[#allocation244_spill] sm:$0xff] %v15394_v38  ;;  %v1806_v6 = vsub.f32 %v22445_v40, %v21058_v34  ;;  %v3085_v2 = vand.u32 4294901760, %v3084_v60  ;;  %v3078_v62 = vsub.f32 %v22447_v10, %v21064_v14  ;;  %v22451_v34 = vld [vmem:[#allocation209_spill] sm:$0xff]  ;;  %v2827_v14 = vand.u32 4294901760, %v15144_v43  ;;  %v22453_v10 = vld [vmem:[#allocation15_spill] sm:$0xff] }
 0x1a5   :  { %v3090_v15 = vsub.f32 %v22448_v48, %v21070_v35  ;;  %v15415_v13 = vpack.c.bf16 %v1801_v53, %v1789_v11  ;;  %v1795_v56 = vand.u32 4294901760, %v1794_v31  ;;  %v21071_v52 = vand.u32 4294901760, %v22453_v10  ;;  %v22549_v48 = vld [vmem:[#allocation132_spill] sm:$0xff] }
 0x1a6   :  { %v1807_v32 = vand.u32 4294901760, %v1806_v6  ;;  %v15418_v39 = vpack.c.bf16 %v3085_v2, %v3073_v30  ;;  %v3079_v60 = vand.u32 4294901760, %v3078_v62  ;;  %v22456_v53 = vand.u32 4294901760, %v15091_v27 }
 0x1a7   :  { %v3091_v38 = vand.u32 4294901760, %v3090_v15  ;;  %v22460_v43 = vand.u32 4294901760, %v15096_v58  ;;  %v22463_v27 = vand.u32 4294901760, %v15114_v63  ;;  %v22466_v58 = vld [vmem:[#allocation104_spill] sm:$0xff]  ;;  %v22483_v15 = vld [vmem:[#allocation119_spill] sm:$0xff]  ;;  %v22534_v18 = vand.u32 4294901760, %v15154_v57 }
 0x1a8   :  { %22452 = vst [vmem:[#allocation208_spill] sm:$0xff] %v15418_v39  ;;  %v15422_v1 = vpack.c.bf16 %v1807_v32, %v1795_v56  ;;  %v22461_v32 = vand.u32 4294901760, %v15104_v42  ;;  %v22467_v42 = vld [vmem:[#allocation106_spill] sm:$0xff]  ;;  %v22540_v57 = vld [vmem:[#allocation219_spill] sm:$0xff] }
 0x1a9   :  { %v15435_v62 = vpack.c.bf16 %v3091_v38, %v3079_v60  ;;  %v22465_v38 = vand.u32 4294901760, %v22449_v54  ;;  %v15471_v60 = vsub.f32 %v22453_v10, %v21071_v52  ;;  %v22477_v52 = vld [vmem:[#allocation113_spill] sm:$0xff]  ;;  %v22484_v56 = vand.u32 4294901760, %v22467_v42 }
 0x1aa   :  { %22454 = vst [vmem:[#allocation209_spill] sm:$0xff] %v15422_v1  ;;  %v22480_v10 = vld [vmem:[#allocation117_spill] sm:$0xff]  ;;  %v22507_v1 = vld [vmem:[#allocation211_spill] sm:$0xff] }
 0x1ab   :  { %22458 = vst [vmem:[#allocation245_spill] sm:$0xff] %v15435_v62 }
 0x1ef   :  { %v975_v29 = vpop.f32.mrb[0].mxu0 }
 0x1f0   :  { %v13362_v9 = vadd.f32 %v975_v29, %v22450_v3  ;;  %v977_v36 = vpop.f32.mrb[1].mxu0  ;;  %v22455_v29 = vand.u32 4294901760, %v15084_v61  ;;  %v22462_v61 = vand.u32 4294901760, %v15109_v17  ;;  %v22469_v17 = vand.u32 4294901760, %v15134_v20 }
 0x1f1   :  { %v13363_v40 = vadd.f32 %v977_v36, %v22451_v34  ;;  %v22457_v36 = vand.u32 4294901760, %v22407_v33 }
 0x1f2   :  { %v980_v26 = vmax.f32 %v13362_v9, 0.0  ;;  %v15428_v31 = vpack.c.bf16 %v22456_v53, %v22455_v29  ;;  %v15449_v30 = vpack.c.bf16 %v22463_v27, %v22462_v61  ;;  %v15457_v9 = vsub.f32 %v22449_v54, %v22465_v38  ;;  %v22470_v29 = vld [vmem:[#allocation107_spill] sm:$0xff]  ;;  %v22481_v54 = vld [vmem:[#allocation118_spill] sm:$0xff] }
 0x1f3   :  { %v981_v35 = vmax.f32 %v13363_v40, 0.0  ;;  %v15433_v34 = vsub.f32 %v22407_v33, %v22457_v36  ;;  %v15443_v40 = vpack.c.bf16 %v22461_v32, %v22460_v43  ;;  %v15466_v63 = vpack.c.bf16 %v2827_v14, %v22469_v17  ;;  %v22472_v32 = vld [vmem:[#allocation108_spill] sm:$0xff]  ;;  %v22475_v14 = vld [vmem:[#allocation111_spill] sm:$0xff] }
 0x1f4   :  { %v15437_v2 = vand.u32 4294901760, %v980_v26  ;;  %v22476_v17 = vld [vmem:[#allocation16_spill] sm:$0xff]  ;;  %v22482_v38 = vand.u32 4294901760, %v22466_v58  ;;  %v15506_v43 = vsub.f32 %v22467_v42, %v22484_v56  ;;  %v22485_v61 = vand.u32 4294901760, %v22470_v29 }
 0x1f5   :  { %v15452_v11 = vand.u32 4294901760, %v981_v35  ;;  %v22486_v33 = vand.u32 4294901760, %v22472_v32  ;;  %v22489_v42 = vand.u32 4294901760, %v22476_v17  ;;  %v22535_v55 = vand.u32 4294901760, %v15433_v34 }
 0x1f6   :  { %22459 = vst [vmem:[#allocation246_spill] sm:$0xff] %v15437_v2  ;;  %v15462_v3 = vsub.f32 %v980_v26, %v15437_v2  ;;  %v22473_v26 = vld [vmem:[#allocation110_spill] sm:$0xff]  ;;  %v15498_v6 = vsub.f32 %v22466_v58, %v22482_v38  ;;  %v1567_v39 = vand.u32 4294901760, %v15506_v43  ;;  %v21130_v43 = vand.u32 4294901760, %v22538_v47 }
 0x1f7   :  { %22464 = vst [vmem:[#allocation247_spill] sm:$0xff] %v15452_v11  ;;  %v15475_v36 = vsub.f32 %v981_v35, %v15452_v11  ;;  %v22479_v35 = vld [vmem:[#allocation115_spill] sm:$0xff]  ;;  %v15516_v38 = vsub.f32 %v22472_v32, %v22486_v33  ;;  %v22487_v2 = vand.u32 4294901760, %v22473_v26  ;;  %v11142_v19 = vpack.c.bf16 %v22535_v55, %v22534_v18 }
 0x1f8   :  { %22468 = vst [vmem:[#allocation248_spill] sm:$0xff] %v15462_v3  ;;  %v15481_v20 = vand.u32 4294901760, %v15462_v3 }
 0x1f9   :  { %22471 = vst [vmem:[#allocation249_spill] sm:$0xff] %v15475_v36  ;;  %v15487_v53 = vand.u32 4294901760, %v15475_v36 }
 0x1fa   :  { %22474 = vst [vmem:[#allocation250_spill] sm:$0xff] %v15481_v20  ;;  %v1417_v27 = vsub.f32 %v15462_v3, %v15481_v20  ;;  %v15511_v20 = vsub.f32 %v22470_v29, %v22485_v61  ;;  %v15521_v3 = vsub.f32 %v22473_v26, %v22487_v2  ;;  %v15531_v61 = vsub.f32 %v22476_v17, %v22489_v42 }
 0x1fb   :  { %22478 = vst [vmem:[#allocation251_spill] sm:$0xff] %v15487_v53  ;;  %v1411_v62 = vsub.f32 %v15475_v36, %v15487_v53  ;;  %v22488_v53 = vand.u32 4294901760, %v22475_v14  ;;  %v22490_v29 = vand.u32 4294901760, %v22477_v52  ;;  %v22492_v2 = vand.u32 4294901760, %v22479_v35  ;;  %v22501_v36 = vld [vmem:[#allocation154_spill] sm:$0xff] }
 0x1fc   :  { %v22494_v42 = vand.u32 4294901760, %v22481_v54  ;;  %v15555_v58 = vand.u32 4294901760, %v1417_v27  ;;  %v22499_v27 = vld [vmem:[#allocation151_spill] sm:$0xff]  ;;  %v2857_v24 = vand.u32 4294901760, %v15531_v61 }
 0x1fd   :  { %v15526_v56 = vsub.f32 %v22475_v14, %v22488_v53  ;;  %v15536_v33 = vsub.f32 %v22477_v52, %v22490_v29  ;;  %v15538_v32 = vand.u32 4294901760, %v1411_v62  ;;  %v15543_v26 = vsub.f32 %v22479_v35, %v22492_v2  ;;  %v22497_v35 = vld [vmem:[#allocation149_spill] sm:$0xff]  ;;  %v22504_v2 = vld [vmem:[#allocation156_spill] sm:$0xff] }
 0x1fe   :  { %v22493_v53 = vand.u32 4294901760, %v22480_v10  ;;  %v15553_v17 = vsub.f32 %v22481_v54, %v22494_v42  ;;  %22495 = vst [vmem:[#allocation253_spill] sm:$0xff] %v15555_v58  ;;  %v22496_v62 = vand.u32 4294901760, %v22483_v15  ;;  %v1555_v52 = vand.u32 4294901760, %v15498_v6  ;;  %v22506_v42 = vld [vmem:[#allocation210_spill] sm:$0xff]  ;;  %v22511_v6 = vld [vmem:[#allocation213_spill] sm:$0xff] }
 0x1ff   :  { %22491 = vst [vmem:[#allocation252_spill] sm:$0xff] %v15538_v32  ;;  %1413 = vmatprep.mubr.f32.mxu1 %v15538_v32  ;;  %2697 = vmatprep.mubr.f32.mxu0 %v15538_v32  ;;  %v2839_v54 = vand.u32 4294901760, %v15511_v20  ;;  %v2851_v32 = vand.u32 4294901760, %v15516_v38  ;;  %v22519_v20 = vld [vmem:[#allocation121_spill] sm:$0xff]  ;;  %v1585_v37 = vand.u32 4294901760, %v15526_v56  ;;  %v2869_v55 = vand.u32 4294901760, %v15536_v33 }
 0x200   :  { %v15548_v14 = vsub.f32 %v22480_v10, %v22493_v53  ;;  %v15560_v29 = vsub.f32 %v22483_v15, %v22496_v62  ;;  %v2845_v53 = vand.u32 4294901760, %v15471_v60  ;;  %v22500_v10 = vld [vmem:[#allocation153_spill] sm:$0xff]  ;;  %1419 = vmatmul.mubr.f32.vlgmr.msra.gmra.mrb[0].mxu1 %v15555_v58  ;;  %2703 = vmatmul.mubr.f32.vlgmr.msra.gmra.mrb[2].mxu0 %v15555_v58  ;;  %v22510_v58 = vld [vmem:[#allocation212_spill] sm:$0xff]  ;;  %v22518_v60 = vld [vmem:[#allocation215_spill] sm:$0xff]  ;;  %v15645_v45 = vpack.c.bf16 %v1567_v39, %v1555_v52 }
 0x201   :  { %11125 = vmatpush1.bf16.msra.mxu1 %v22506_v42  ;;  %11509 = vmatpush1.bf16.msra.mxu0 %v22507_v1  ;;  %v22526_v42 = vld [vmem:[#allocation216_spill] sm:$0xff]  ;;  %v1579_v18 = vand.u32 4294901760, %v15543_v26  ;;  %v11528_v56 = vpack.c.bf16 %v2851_v32, %v2839_v54  ;;  %v2863_v61 = vand.u32 4294901760, %v15553_v17  ;;  %v22547_v17 = vld [vmem:[#allocation129_spill] sm:$0xff] }
 0x202   :  { %1810 = vmatprep.mubr.f32.mxu1 %v15452_v11  ;;  %3094 = vmatprep.mubr.f32.mxu0 %v15452_v11  ;;  %v1591_v34 = vand.u32 4294901760, %v15548_v14  ;;  %v22542_v39 = vld [vmem:[#allocation220_spill] sm:$0xff]  ;;  %v2892_v14 = vsub.f32 %v22538_v47, %v21130_v43  ;;  %v22552_v1 = vld [vmem:[#allocation133_spill] sm:$0xff] }
 0x203   :  { %11127 = vmatprep.subr.bf16.mxu1 %v22510_v58  ;;  %11511 = vmatprep.subr.bf16.mxu0 %v22511_v6  ;;  %v22527_v6 = vld [vmem:[#allocation217_spill] sm:$0xff]  ;;  %v21137_v43 = vand.u32 4294901760, %v22552_v1 }
 0x204   :  { %v2893_v4 = vand.u32 4294901760, %v2892_v14  ;;  %v22561_v14 = vld [vmem:[#allocation23_spill] sm:$0xff] }
 0x205   :  { %11129 = vmatpush1.bf16.msra.mxu1 %v22517_v16  ;;  %11513 = vmatpush1.bf16.msra.mxu0 %v22518_v60  ;;  %v1573_v60 = vand.u32 4294901760, %v15521_v3  ;;  %v22543_v3 = vld [vmem:[#allocation221_spill] sm:$0xff]  ;;  %v11148_v16 = vpack.c.bf16 %v1591_v34, %v1579_v18 }
 0x206   :  { %11131 = vmatprep.subr.bf16.mxu1 %v22526_v42  ;;  %11515 = vmatprep.subr.bf16.mxu0 %v22527_v6  ;;  %v22536_v42 = vand.u32 4294901760, %v15457_v9  ;;  %v22537_v6 = vld [vmem:[#allocation19_spill] sm:$0xff]  ;;  %v22541_v9 = vand.u32 4294901760, %v22519_v20 }
 0x207   :  { %v21129_v11 = vand.u32 4294901760, %v22537_v6  ;;  %v11146_v32 = vpack.c.bf16 %v1585_v37, %v1573_v60 }
 0x208   :  { %v11526_v8 = vpack.c.bf16 %v2845_v53, %v22536_v42  ;;  %v1596_v52 = vsub.f32 %v22519_v20, %v22541_v9  ;;  %v22544_v53 = vand.u32 4294901760, %v22528_v21  ;;  %v22545_v42 = vld [vmem:[#allocation127_spill] sm:$0xff]  ;;  %v22546_v9 = vld [vmem:[#allocation20_spill] sm:$0xff] }
 0x209   :  { %11133 = vmatpush1.bf16.msra.mxu1 %v22539_v22  ;;  %11517 = vmatpush1.bf16.msra.mxu0 %v22540_v57  ;;  %v2875_v22 = vand.u32 4294901760, %v15560_v29  ;;  %v2880_v26 = vsub.f32 %v22537_v6, %v21129_v11  ;;  %v22548_v29 = vld [vmem:[#allocation130_spill] sm:$0xff]  ;;  %v11530_v11 = vpack.c.bf16 %v2869_v55, %v2857_v24  ;;  %v22556_v24 = vand.u32 4294901760, %v22546_v9  ;;  %v22563_v57 = vld [vmem:[#allocation141_spill] sm:$0xff] }
 0x20a   :  { %11135 = vmatprep.subr.bf16.mxu1 %v22542_v39  ;;  %11519 = vmatprep.subr.bf16.mxu0 %v22543_v3  ;;  %v1608_v33 = vsub.f32 %v22528_v21, %v22544_v53  ;;  %v22550_v53 = vld [vmem:[#allocation222_spill] sm:$0xff]  ;;  %v1597_v38 = vand.u32 4294901760, %v1596_v52  ;;  %v22558_v18 = vand.u32 4294901760, %v22548_v29  ;;  %v22559_v52 = vand.u32 4294901760, %v22549_v48 }
 0x20b   :  { %v11532_v37 = vpack.c.bf16 %v2875_v22, %v2863_v61  ;;  %v22553_v39 = vld [vmem:[#allocation134_spill] sm:$0xff]  ;;  %v2881_v58 = vand.u32 4294901760, %v2880_v26  ;;  %v1614_v55 = vsub.f32 %v22546_v9, %v22556_v24  ;;  %v1632_v26 = vsub.f32 %v22552_v1, %v21137_v43  ;;  %v22562_v24 = vld [vmem:[#allocation140_spill] sm:$0xff] }
 0x20c   :  { %v1609_v60 = vand.u32 4294901760, %v1608_v33  ;;  %v21142_v54 = vand.u32 4294901760, %v22553_v39  ;;  %v22554_v3 = vld [vmem:[#allocation22_spill] sm:$0xff]  ;;  %v2898_v34 = vsub.f32 %v22548_v29, %v22558_v18  ;;  %v1620_v61 = vsub.f32 %v22549_v48, %v22559_v52  ;;  %v22565_v33 = vld [vmem:[#allocation144_spill] sm:$0xff] }
 0x20d   :  { %11137 = vmatpush1.bf16.msra.mxu1 %v22550_v53  ;;  %11521 = vmatpush1.bf16.msra.mxu0 %v22551_v7  ;;  %v22555_v53 = vand.u32 4294901760, %v22545_v42  ;;  %v22560_v22 = vld [vmem:[#allocation138_spill] sm:$0xff]  ;;  %v21143_v43 = vand.u32 4294901760, %v22566_v59 }
 0x20e   :  { %11139 = vmatprep.subr.bf16.mxu1 %v15428_v31  ;;  %11523 = vmatprep.subr.bf16.mxu0 %v15443_v40  ;;  %v22557_v31 = vand.u32 4294901760, %v22547_v17  ;;  %v2904_v52 = vsub.f32 %v22553_v39, %v21142_v54  ;;  %v11150_v15 = vpack.c.bf16 %v1609_v60, %v1597_v38  ;;  %v2899_v18 = vand.u32 4294901760, %v2898_v34 }
 0x20f   :  { %v1602_v7 = vsub.f32 %v22545_v42, %v22555_v53  ;;  %v11534_v53 = vpack.c.bf16 %v2893_v4, %v2881_v58  ;;  %v1633_v54 = vand.u32 4294901760, %v1632_v26  ;;  %v22569_v38 = vand.u32 4294901760, %v22562_v24 }
 0x210   :  { %v2886_v40 = vsub.f32 %v22547_v17, %v22557_v31  ;;  %v1615_v31 = vand.u32 4294901760, %v1614_v55  ;;  %v22570_v58 = vand.u32 4294901760, %v22563_v57 }
 0x211   :  { %11141 = vmatpush1.bf16.msra.mxu1 %v15449_v30  ;;  %11525 = vmatpush1.bf16.msra.mxu0 %v15466_v63  ;;  %v22564_v30 = vand.u32 4294901760, %v22554_v3  ;;  %v1603_v23 = vand.u32 4294901760, %v1602_v7  ;;  %v2910_v4 = vsub.f32 %v22562_v24, %v22569_v38  ;;  %v2905_v7 = vand.u32 4294901760, %v2904_v52 }
 0x212   :  { %11143 = vmatprep.subr.bf16.mxu1 %v11142_v19  ;;  %11527 = vmatprep.subr.bf16.mxu0 %v11526_v8  ;;  %v2887_v62 = vand.u32 4294901760, %v2886_v40  ;;  %v1621_v19 = vand.u32 4294901760, %v1620_v61  ;;  %v22567_v8 = vand.u32 4294901760, %v22560_v22  ;;  %v2922_v60 = vsub.f32 %v22563_v57, %v22570_v58 }
 0x213   :  { %v2916_v63 = vsub.f32 %v22554_v3, %v22564_v30  ;;  %v22568_v30 = vand.u32 4294901760, %v22561_v14  ;;  %v1656_v40 = vsub.f32 %v22566_v59, %v21143_v43  ;;  %v11152_v34 = vpack.c.bf16 %v1615_v31, %v1603_v23  ;;  %v22580_v31 = vld [vmem:[#allocation230_spill] sm:$0xff] }
 0x214   :  { %v1626_v44 = vsub.f32 %v22560_v22, %v22567_v8  ;;  %v11536_v61 = vpack.c.bf16 %v2899_v18, %v2887_v62  ;;  %v2923_v38 = vand.u32 4294901760, %v2922_v60  ;;  %v22575_v62 = vld [vmem:[#allocation225_spill] sm:$0xff]  ;;  %v22581_v18 = vld [vmem:[#allocation231_spill] sm:$0xff]  ;;  %v22584_v60 = vld [vmem:[#allocation234_spill] sm:$0xff] }
 0x215   :  { %11145 = vmatpush1.bf16.msra.mxu1 %v15645_v45  ;;  %11529 = vmatpush1.bf16.msra.mxu0 %v11528_v56  ;;  %v1638_v51 = vsub.f32 %v22561_v14, %v22568_v30  ;;  %v2917_v55 = vand.u32 4294901760, %v2916_v63  ;;  %v22571_v45 = vand.u32 4294901760, %v22565_v33  ;;  %v2911_v30 = vand.u32 4294901760, %v2910_v4  ;;  %v22583_v4 = vld [vmem:[#allocation233_spill] sm:$0xff] }
 0x216   :  { %11147 = vmatprep.subr.bf16.mxu1 %v11146_v32  ;;  %11531 = vmatprep.subr.bf16.mxu0 %v11530_v11  ;;  %v1627_v26 = vand.u32 4294901760, %v1626_v44  ;;  %v11154_v11 = vpack.c.bf16 %v1633_v54, %v1621_v19  ;;  %v1657_v63 = vand.u32 4294901760, %v1656_v40  ;;  %v22572_v44 = vld [vmem:[#allocation24_spill] sm:$0xff]  ;;  %v22577_v54 = vld [vmem:[#allocation227_spill] sm:$0xff]  ;;  %v22588_v40 = vld [vmem:[#allocation238_spill] sm:$0xff] }
 0x217   :  { %v1644_v56 = vsub.f32 %v22565_v33, %v22571_v45  ;;  %v1639_v8 = vand.u32 4294901760, %v1638_v51  ;;  %v11538_v32 = vpack.c.bf16 %v2917_v55, %v2905_v7  ;;  %v11540_v45 = vpack.c.bf16 %v2923_v38, %v2911_v30  ;;  %v22573_v51 = vld [vmem:[#allocation25_spill] sm:$0xff]  ;;  %v22582_v19 = vld [vmem:[#allocation232_spill] sm:$0xff]  ;;  %v22585_v7 = vld [vmem:[#allocation235_spill] sm:$0xff] }
 0x218   :  { %v22586_v55 = vld [vmem:[#allocation236_spill] sm:$0xff]  ;;  %v22593_v30 = vld [vmem:[#allocation243_spill] sm:$0xff] }
 0x219   :  { %11149 = vmatpush1.bf16.msra.mxu1 %v11148_v16  ;;  %11533 = vmatpush1.bf16.msra.mxu0 %v11532_v37  ;;  %v1645_v52 = vand.u32 4294901760, %v1644_v56  ;;  %v11156_v58 = vpack.c.bf16 %v1639_v8, %v1627_v26  ;;  %v22576_v16 = vld [vmem:[#allocation226_spill] sm:$0xff]  ;;  %v22578_v37 = vld [vmem:[#allocation228_spill] sm:$0xff]  ;;  %v22587_v56 = vld [vmem:[#allocation237_spill] sm:$0xff] }
 0x21a   :  { %11151 = vmatprep.subr.bf16.mxu1 %v11150_v15  ;;  %11535 = vmatprep.subr.bf16.mxu0 %v11534_v53  ;;  %v22574_v15 = vld [vmem:[#allocation224_spill] sm:$0xff]  ;;  %v22579_v53 = vld [vmem:[#allocation229_spill] sm:$0xff]  ;;  %v22592_v8 = vld [vmem:[#allocation242_spill] sm:$0xff] }
 0x21b   :  { %v11158_v23 = vpack.c.bf16 %v1657_v63, %v1645_v52  ;;  %v22591_v26 = vld [vmem:[#allocation241_spill] sm:$0xff]  ;;  %v22594_v38 = vld [vmem:[#allocation244_spill] sm:$0xff]  ;;  %v22597_v52 = vld [vmem:[#allocation39_spill] sm:$0xff] }
 0x21d   :  { %11153 = vmatpush1.bf16.msra.mxu1 %v11152_v34  ;;  %11537 = vmatpush1.bf16.msra.mxu0 %v11536_v61  ;;  %v22589_v34 = vld [vmem:[#allocation239_spill] sm:$0xff]  ;;  %v22590_v61 = vld [vmem:[#allocation240_spill] sm:$0xff] }
 0x21e   :  { %11155 = vmatprep.subr.bf16.mxu1 %v11154_v11  ;;  %11539 = vmatprep.subr.bf16.mxu0 %v11538_v32  ;;  %v22595_v11 = vld [vmem:[#allocation208_spill] sm:$0xff]  ;;  %v22596_v32 = vld [vmem:[#allocation38_spill] sm:$0xff] }
 0x21f   :  { %v11186_v63 = vpack.c.bf16 %v22597_v52, %v22596_v32 }
 0x221   :  { %11157 = vmatpush1.bf16.msra.mxu1 %v11156_v58  ;;  %11541 = vmatpush1.bf16.msra.mxu0 %v11540_v45  ;;  %v22598_v58 = vld [vmem:[#allocation40_spill] sm:$0xff]  ;;  %v22599_v45 = vld [vmem:[#allocation41_spill] sm:$0xff] }
 0x222   :  { %11159 = vmatprep.subr.bf16.mxu1 %v11158_v23  ;;  %11543 = vmatprep.subr.bf16.mxu0 %v22572_v44  ;;  %v11570_v23 = vpack.c.bf16 %v22599_v45, %v22598_v58  ;;  %v22600_v44 = vld [vmem:[#allocation209_spill] sm:$0xff] }
 0x225   :  { %11161 = vmatpush1.bf16.msra.mxu1 %v22573_v51  ;;  %11545 = vmatpush1.bf16.msra.mxu0 %v22574_v15  ;;  %v22601_v51 = vld [vmem:[#allocation245_spill] sm:$0xff]  ;;  %v22602_v15 = vld [vmem:[#allocation43_spill] sm:$0xff] }
 0x226   :  { %11163 = vmatprep.subr.bf16.mxu1 %v22575_v62  ;;  %11547 = vmatprep.subr.bf16.mxu0 %v22576_v16  ;;  %v22603_v62 = vld [vmem:[#allocation44_spill] sm:$0xff] }
 0x227   :  { %v11188_v16 = vpack.c.bf16 %v22603_v62, %v22602_v15 }
 0x229   :  { %11165 = vmatpush1.bf16.msra.mxu1 %v22577_v54  ;;  %11549 = vmatpush1.bf16.msra.mxu0 %v22578_v37  ;;  %v22604_v54 = vld [vmem:[#allocation45_spill] sm:$0xff]  ;;  %v22605_v37 = vld [vmem:[#allocation46_spill] sm:$0xff] }
 0x22a   :  { %11167 = vmatprep.subr.bf16.mxu1 %v22579_v53  ;;  %11551 = vmatprep.subr.bf16.mxu0 %v22580_v31  ;;  %v22606_v53 = vld [vmem:[#allocation47_spill] sm:$0xff]  ;;  %v22607_v31 = vld [vmem:[#allocation49_spill] sm:$0xff] }
 0x22d   :  { %11169 = vmatpush1.bf16.msra.mxu1 %v22581_v18  ;;  %11553 = vmatpush1.bf16.msra.mxu0 %v22582_v19  ;;  %v11190_v18 = vpack.c.bf16 %v22607_v31, %v22606_v53  ;;  %v22608_v19 = vld [vmem:[#allocation50_spill] sm:$0xff] }
 0x22e   :  { %11171 = vmatprep.subr.bf16.mxu1 %v22583_v4  ;;  %11555 = vmatprep.subr.bf16.mxu0 %v22584_v60  ;;  %v22609_v4 = vld [vmem:[#allocation51_spill] sm:$0xff] }
 0x22f   :  { %v11574_v60 = vpack.c.bf16 %v22609_v4, %v22608_v19 }
 0x231   :  { %11173 = vmatpush1.bf16.msra.mxu1 %v22585_v7  ;;  %11557 = vmatpush1.bf16.msra.mxu0 %v22586_v55  ;;  %v22610_v7 = vld [vmem:[#allocation246_spill] sm:$0xff]  ;;  %v22611_v55 = vld [vmem:[#allocation249_spill] sm:$0xff] }
 0x232   :  { %11175 = vmatprep.subr.bf16.mxu1 %v22587_v56  ;;  %11559 = vmatprep.subr.bf16.mxu0 %v22588_v40  ;;  %v22612_v56 = vld [vmem:[#allocation52_spill] sm:$0xff]  ;;  %v22613_v40 = vld [vmem:[#allocation54_spill] sm:$0xff] }
 0x235   :  { %11177 = vmatpush1.bf16.msra.mxu1 %v22589_v34  ;;  %11561 = vmatpush1.bf16.msra.mxu0 %v22590_v61  ;;  %v11192_v34 = vpack.c.bf16 %v22613_v40, %v22612_v56  ;;  %v22614_v61 = vld [vmem:[#allocation55_spill] sm:$0xff]  ;;  %v22624_v40 = vld [vmem:[#allocation72_spill] sm:$0xff]  ;;  %v22625_v56 = vld [vmem:[#allocation73_spill] sm:$0xff] }
 0x236   :  { %11179 = vmatprep.subr.bf16.mxu1 %v22591_v26  ;;  %11563 = vmatprep.subr.bf16.mxu0 %v22592_v8  ;;  %v22615_v26 = vld [vmem:[#allocation56_spill] sm:$0xff] }
 0x237   :  { %v11576_v8 = vpack.c.bf16 %v22615_v26, %v22614_v61  ;;  %v11198_v26 = vpack.c.bf16 %v22625_v56, %v22624_v40  ;;  %v22626_v61 = vld [vmem:[#allocation74_spill] sm:$0xff]  ;;  %v22637_v40 = vld [vmem:[#allocation93_spill] sm:$0xff] }
 0x239   :  { %11181 = vmatpush1.bf16.msra.mxu1 %v22593_v30  ;;  %11565 = vmatpush1.bf16.msra.mxu0 %v22594_v38  ;;  %v22616_v30 = vld [vmem:[#allocation58_spill] sm:$0xff]  ;;  %v22617_v38 = vld [vmem:[#allocation60_spill] sm:$0xff] }
 0x23a   :  { %11183 = vmatprep.subr.bf16.mxu1 %v15415_v13  ;;  %11567 = vmatprep.subr.bf16.mxu0 %v22595_v11  ;;  %v11572_v13 = vpack.c.bf16 %v22605_v37, %v22604_v54  ;;  %v11194_v11 = vpack.c.bf16 %v22617_v38, %v22616_v30  ;;  %v22627_v38 = vld [vmem:[#allocation30_spill] sm:$0xff]  ;;  %v22629_v30 = vld [vmem:[#allocation79_spill] sm:$0xff] }
 0x23d   :  { %11185 = vmatpush1.bf16.msra.mxu1 %v22600_v44  ;;  %11569 = vmatpush1.bf16.msra.mxu0 %v22601_v51  ;;  %v22620_v51 = vld [vmem:[#allocation64_spill] sm:$0xff] }
 0x23e   :  { %11187 = vmatprep.subr.bf16.mxu1 %v11186_v63  ;;  %11571 = vmatprep.subr.bf16.mxu0 %v11570_v23  ;;  %v22618_v63 = vld [vmem:[#allocation61_spill] sm:$0xff]  ;;  %v22619_v23 = vld [vmem:[#allocation28_spill] sm:$0xff] }
 0x23f   :  { %v11578_v44 = vpack.c.bf16 %v22619_v23, %v22618_v63 }
 0x240   :  { %1812 = vmatmul.mubr.f32.vlgmr.msra.gmra.mrb[0].mxu1 %v22610_v7  ;;  %3096 = vmatmul.mubr.f32.vlgmr.msra.gmra.mrb[2].mxu0 %v22610_v7  ;;  %v22623_v7 = vld [vmem:[#allocation70_spill] sm:$0xff] }
 0x241   :  { %11189 = vmatpush1.bf16.msra.mxu1 %v11188_v16  ;;  %2012 = vmatprep.mubr.f32.mxu1 %v22611_v55  ;;  %v22621_v16 = vld [vmem:[#allocation67_spill] sm:$0xff] }
 0x242   :  { %11573 = vmatpush1.bf16.msra.mxu0 %v11572_v13  ;;  %3296 = vmatprep.mubr.f32.mxu0 %v22611_v55  ;;  %v11196_v43 = vpack.c.bf16 %v22621_v16, %v22620_v51  ;;  %v22622_v13 = vld [vmem:[#allocation68_spill] sm:$0xff]  ;;  %v22631_v16 = vld [vmem:[#allocation81_spill] sm:$0xff] }
 0x243   :  { %11191 = vmatprep.subr.bf16.mxu1 %v11190_v18  ;;  %11575 = vmatprep.subr.bf16.mxu0 %v11574_v60  ;;  %v11580_v55 = vpack.c.bf16 %v22623_v7, %v22622_v13  ;;  %v11582_v18 = vpack.c.bf16 %v22627_v38, %v22626_v61  ;;  %v22628_v60 = vld [vmem:[#allocation77_spill] sm:$0xff]  ;;  %v22634_v7 = vld [vmem:[#allocation86_spill] sm:$0xff] }
 0x244   :  { %v11200_v23 = vpack.c.bf16 %v22629_v30, %v22628_v60  ;;  %v22633_v51 = vld [vmem:[#allocation85_spill] sm:$0xff]  ;;  %v22639_v30 = vld [vmem:[#allocation95_spill] sm:$0xff] }
 0x245   :  { %11193 = vmatpush1.bf16.msra.mxu1 %v11192_v34  ;;  %v22630_v34 = vld [vmem:[#allocation80_spill] sm:$0xff]  ;;  %v22635_v13 = vld [vmem:[#allocation89_spill] sm:$0xff]  ;;  %v22641_v60 = vld [vmem:[#allocation99_spill] sm:$0xff] }
 0x246   :  { %11577 = vmatpush1.bf16.msra.mxu0 %v11576_v8  ;;  %11195 = vmatprep.subr.bf16.mxu1 %v11194_v11  ;;  %v11584_v8 = vpack.c.bf16 %v22631_v16, %v22630_v34  ;;  %v22632_v11 = vld [vmem:[#allocation84_spill] sm:$0xff]  ;;  %v11586_v56 = vpack.c.bf16 %v22635_v13, %v22634_v7  ;;  %v22643_v34 = vld [vmem:[#allocation15_spill] sm:$0xff] }
 0x247   :  { %11579 = vmatprep.subr.bf16.mxu0 %v11578_v44  ;;  %v11202_v63 = vpack.c.bf16 %v22633_v51, %v22632_v11  ;;  %v22636_v44 = vld [vmem:[#allocation91_spill] sm:$0xff]  ;;  %v22642_v16 = vld [vmem:[#allocation100_spill] sm:$0xff]  ;;  %v22645_v11 = vld [vmem:[#allocation106_spill] sm:$0xff] }
 0x248   :  { %v11204_v38 = vpack.c.bf16 %v22637_v40, %v22636_v44  ;;  %v11590_v51 = vpack.c.bf16 %v22643_v34, %v22642_v16  ;;  %v22647_v40 = vld [vmem:[#allocation108_spill] sm:$0xff]  ;;  %v22649_v44 = vld [vmem:[#allocation111_spill] sm:$0xff] }
 0x249   :  { %11197 = vmatpush1.bf16.msra.mxu1 %v11196_v43  ;;  %v22638_v43 = vld [vmem:[#allocation94_spill] sm:$0xff] }
 0x24a   :  { %11581 = vmatpush1.bf16.msra.mxu0 %v11580_v55  ;;  %11199 = vmatprep.subr.bf16.mxu1 %v11198_v26  ;;  %v11588_v55 = vpack.c.bf16 %v22639_v30, %v22638_v43  ;;  %v22640_v26 = vld [vmem:[#allocation98_spill] sm:$0xff]  ;;  %v22650_v30 = vld [vmem:[#allocation16_spill] sm:$0xff]  ;;  %v22651_v43 = vld [vmem:[#allocation113_spill] sm:$0xff] }
 0x24b   :  { %11583 = vmatprep.subr.bf16.mxu0 %v11582_v18  ;;  %v11206_v61 = vpack.c.bf16 %v22641_v60, %v22640_v26  ;;  %v22644_v18 = vld [vmem:[#allocation104_spill] sm:$0xff]  ;;  %v11594_v60 = vpack.c.bf16 %v22651_v43, %v22650_v30  ;;  %v22653_v26 = vld [vmem:[#allocation117_spill] sm:$0xff] }
 0x24c   :  { %v11208_v13 = vpack.c.bf16 %v22645_v11, %v22644_v18  ;;  %v22655_v11 = vld [vmem:[#allocation119_spill] sm:$0xff] }
 0x24d   :  { %11201 = vmatpush1.bf16.msra.mxu1 %v11200_v23  ;;  %v22646_v23 = vld [vmem:[#allocation107_spill] sm:$0xff] }
 0x24e   :  { %11585 = vmatpush1.bf16.msra.mxu0 %v11584_v8  ;;  %11203 = vmatprep.subr.bf16.mxu1 %v11202_v63  ;;  %v11592_v8 = vpack.c.bf16 %v22647_v40, %v22646_v23  ;;  %v22648_v63 = vld [vmem:[#allocation110_spill] sm:$0xff] }
 0x24f   :  { %11587 = vmatprep.subr.bf16.mxu0 %v11586_v56  ;;  %v11210_v7 = vpack.c.bf16 %v22649_v44, %v22648_v63  ;;  %v22652_v56 = vld [vmem:[#allocation115_spill] sm:$0xff]  ;;  %v11598_v44 = vpack.c.bf16 %v22538_v47, %v22537_v6 }
 0x250   :  { %v11212_v34 = vpack.c.bf16 %v22653_v26, %v22652_v56 }
 0x251   :  { %11205 = vmatpush1.bf16.msra.mxu1 %v11204_v38  ;;  %v22654_v38 = vld [vmem:[#allocation118_spill] sm:$0xff] }
 0x252   :  { %11589 = vmatpush1.bf16.msra.mxu0 %v11588_v55  ;;  %11207 = vmatprep.subr.bf16.mxu1 %v11206_v61  ;;  %v11596_v55 = vpack.c.bf16 %v22655_v11, %v22654_v38  ;;  %v11214_v61 = vpack.c.bf16 %v22528_v21, %v22519_v20 }
 0x253   :  { %11591 = vmatprep.subr.bf16.mxu0 %v11590_v51  ;;  %v11216_v51 = vpack.c.bf16 %v22546_v9, %v22545_v42 }
 0x255   :  { %11209 = vmatpush1.bf16.msra.mxu1 %v11208_v13  ;;  %v11600_v13 = vpack.c.bf16 %v22548_v29, %v22547_v17 }
 0x256   :  { %11593 = vmatpush1.bf16.msra.mxu0 %v11592_v8  ;;  %11211 = vmatprep.subr.bf16.mxu1 %v11210_v7  ;;  %v11218_v7 = vpack.c.bf16 %v22552_v1, %v22549_v48  ;;  %v11602_v8 = vpack.c.bf16 %v22554_v3, %v22553_v39 }
 0x257   :  { %11595 = vmatprep.subr.bf16.mxu0 %v11594_v60  ;;  %v11220_v60 = vpack.c.bf16 %v22561_v14, %v22560_v22 }
 0x259   :  { %11213 = vmatpush1.bf16.msra.mxu1 %v11212_v34  ;;  %v11604_v34 = vpack.c.bf16 %v22563_v57, %v22562_v24  ;;  %v22661_v57 = vpack.c.bf16 %v22501_v36, %v22500_v10  ;;  %v22670_v36 = vld [vmem:[#allocation164_spill] sm:$0xff] }
 0x25a   :  { %11597 = vmatpush1.bf16.msra.mxu0 %v11596_v55  ;;  %11215 = vmatprep.subr.bf16.mxu1 %v11214_v61  ;;  %v11222_v55 = vpack.c.bf16 %v22566_v59, %v22565_v33  ;;  %v22657_v61 = vld [vmem:[#allocation148_spill] sm:$0xff] }
 0x25b   :  { %11599 = vmatprep.subr.bf16.mxu0 %v11598_v44  ;;  %v22656_v44 = vpack.c.bf16 %v22399_v12, %v22398_v5 }
 0x25d   :  { %11217 = vmatpush1.bf16.msra.mxu1 %v11216_v51  ;;  %v22658_v51 = vpack.c.bf16 %v22497_v35, %v22657_v61 }
 0x25e   :  { %11601 = vmatpush1.bf16.msra.mxu0 %v11600_v13  ;;  %11219 = vmatprep.subr.bf16.mxu1 %v11218_v7  ;;  %v22659_v13 = vld [vmem:[#allocation150_spill] sm:$0xff] }
 0x25f   :  { %11603 = vmatprep.subr.bf16.mxu0 %v11602_v8  ;;  %v22660_v7 = vpack.c.bf16 %v22499_v27, %v22659_v13  ;;  %v22662_v8 = vld [vmem:[#allocation27_spill] sm:$0xff] }
 0x261   :  { %11221 = vmatpush1.bf16.msra.mxu1 %v11220_v60  ;;  %v22663_v60 = vld [vmem:[#allocation26_spill] sm:$0xff] }
 0x262   :  { %11605 = vmatpush1.bf16.msra.mxu0 %v11604_v34  ;;  %11223 = vmatprep.subr.bf16.mxu1 %v11222_v55  ;;  %v22664_v34 = vpack.c.bf16 %v22662_v8, %v22663_v60  ;;  %v22665_v55 = vpack.c.bf16 %v22505_v28, %v22504_v2  ;;  %v22673_v60 = vld [vmem:[#allocation165_spill] sm:$0xff]  ;;  %v22676_v2 = vld [vmem:[#allocation142_spill] sm:$0xff] }
 0x263   :  { %11607 = vmatprep.subr.bf16.mxu0 %v22656_v44  ;;  %v22666_v44 = vpack.c.bf16 %v22417_v46, %v22416_v0  ;;  %v22679_v0 = vld [vmem:[#allocation170_spill] sm:$0xff] }
 0x265   :  { %11225 = vmatpush1.bf16.msra.mxu1 %v22658_v51  ;;  %v22667_v51 = vpack.c.bf16 %v22421_v41, %v22418_v50  ;;  %v22682_v50 = vld [vmem:[#allocation172_spill] sm:$0xff] }
 0x266   :  { %11609 = vmatpush1.bf16.msra.mxu0 %v22660_v7  ;;  %11227 = vmatprep.subr.bf16.mxu1 %v22661_v57  ;;  %v22668_v7 = vpack.c.bf16 %v14564_v25, %v22422_v49  ;;  %v22669_v57 = vld [vmem:[#allocation34_spill] sm:$0xff] }
 0x267   :  { %11611 = vmatprep.subr.bf16.mxu0 %v22664_v34  ;;  %v22671_v8 = vpack.c.bf16 %v22669_v57, %v22670_v36  ;;  %v22672_v34 = vld [vmem:[#allocation166_spill] sm:$0xff]  ;;  %v22688_v36 = vld [vmem:[#allocation176_spill] sm:$0xff] }
 0x268   :  { %v22674_v28 = vpack.c.bf16 %v22672_v34, %v22673_v60  ;;  %v22685_v49 = vld [vmem:[#allocation174_spill] sm:$0xff] }
 0x269   :  { %11229 = vmatpush1.bf16.msra.mxu1 %v22665_v55  ;;  %v22675_v55 = vld [vmem:[#allocation146_spill] sm:$0xff] }
 0x26a   :  { %11613 = vmatpush1.bf16.msra.mxu0 %v22666_v44  ;;  %11231 = vmatprep.subr.bf16.mxu1 %v22667_v51  ;;  %v22677_v46 = vpack.c.bf16 %v22675_v55, %v22676_v2  ;;  %v22678_v44 = vld [vmem:[#allocation171_spill] sm:$0xff]  ;;  %v22681_v51 = vld [vmem:[#allocation173_spill] sm:$0xff]  ;;  %v22691_v60 = vld [vmem:[#allocation178_spill] sm:$0xff] }
 0x26b   :  { %11615 = vmatprep.subr.bf16.mxu0 %v22668_v7  ;;  %v22680_v41 = vpack.c.bf16 %v22678_v44, %v22679_v0  ;;  %v22683_v25 = vpack.c.bf16 %v22681_v51, %v22682_v50  ;;  %v22684_v7 = vld [vmem:[#allocation175_spill] sm:$0xff]  ;;  %v22694_v2 = vld [vmem:[#allocation180_spill] sm:$0xff]  ;;  %v22697_v0 = vld [vmem:[#allocation182_spill] sm:$0xff] }
 0x26c   :  { %v22686_v57 = vpack.c.bf16 %v22684_v7, %v22685_v49  ;;  %v22700_v50 = vld [vmem:[#allocation184_spill] sm:$0xff]  ;;  %v22703_v49 = vld [vmem:[#allocation187_spill] sm:$0xff] }
 0x26d   :  { %11233 = vmatpush1.bf16.msra.mxu1 %v22671_v8  ;;  %v22687_v8 = vld [vmem:[#allocation177_spill] sm:$0xff] }
 0x26e   :  { %11617 = vmatpush1.bf16.msra.mxu0 %v22674_v28  ;;  %11235 = vmatprep.subr.bf16.mxu1 %v22677_v46  ;;  %v22689_v34 = vpack.c.bf16 %v22687_v8, %v22688_v36  ;;  %v22690_v28 = vld [vmem:[#allocation179_spill] sm:$0xff]  ;;  %v22693_v46 = vld [vmem:[#allocation181_spill] sm:$0xff]  ;;  %v22706_v36 = vld [vmem:[#allocation190_spill] sm:$0xff] }
 0x26f   :  { %11619 = vmatprep.subr.bf16.mxu0 %v22680_v41  ;;  %v22692_v55 = vpack.c.bf16 %v22690_v28, %v22691_v60  ;;  %v22695_v44 = vpack.c.bf16 %v22693_v46, %v22694_v2  ;;  %v22696_v41 = vld [vmem:[#allocation183_spill] sm:$0xff]  ;;  %v22709_v60 = vld [vmem:[#allocation193_spill] sm:$0xff] }
 0x270   :  { %v22698_v51 = vpack.c.bf16 %v22696_v41, %v22697_v0  ;;  %v22712_v2 = vld [vmem:[#allocation195_spill] sm:$0xff] }
 0x271   :  { %11237 = vmatpush1.bf16.msra.mxu1 %v22683_v25  ;;  %v22699_v25 = vld [vmem:[#allocation185_spill] sm:$0xff]  ;;  %v22715_v0 = vld [vmem:[#allocation199_spill] sm:$0xff] }
 0x272   :  { %11621 = vmatpush1.bf16.msra.mxu0 %v22686_v57  ;;  %11239 = vmatprep.subr.bf16.mxu1 %v22689_v34  ;;  %v22701_v7 = vpack.c.bf16 %v22699_v25, %v22700_v50  ;;  %v22702_v57 = vld [vmem:[#allocation188_spill] sm:$0xff]  ;;  %v22705_v34 = vld [vmem:[#allocation191_spill] sm:$0xff]  ;;  %v22718_v50 = vld [vmem:[#allocation202_spill] sm:$0xff] }
 0x273   :  { %11623 = vmatprep.subr.bf16.mxu0 %v22692_v55  ;;  %v22704_v8 = vpack.c.bf16 %v22702_v57, %v22703_v49  ;;  %v22707_v28 = vpack.c.bf16 %v22705_v34, %v22706_v36  ;;  %v22708_v55 = vld [vmem:[#allocation194_spill] sm:$0xff]  ;;  %v22721_v49 = vld [vmem:[#allocation205_spill] sm:$0xff] }
 0x274   :  { %v22710_v46 = vpack.c.bf16 %v22708_v55, %v22709_v60  ;;  %v22724_v55 = vld [vmem:[#allocation35_spill] sm:$0xff] }
 0x275   :  { %11241 = vmatpush1.bf16.msra.mxu1 %v22695_v44  ;;  %v22711_v44 = vld [vmem:[#allocation197_spill] sm:$0xff] }
 0x276   :  { %11625 = vmatpush1.bf16.msra.mxu0 %v22698_v51  ;;  %11243 = vmatprep.subr.bf16.mxu1 %v22701_v7  ;;  %v22713_v41 = vpack.c.bf16 %v22711_v44, %v22712_v2  ;;  %v22714_v51 = vld [vmem:[#allocation200_spill] sm:$0xff]  ;;  %v22717_v7 = vld [vmem:[#allocation203_spill] sm:$0xff] }
 0x277   :  { %11627 = vmatprep.subr.bf16.mxu0 %v22704_v8  ;;  %v22716_v25 = vpack.c.bf16 %v22714_v51, %v22715_v0  ;;  %v22719_v57 = vpack.c.bf16 %v22717_v7, %v22718_v50  ;;  %v22720_v8 = vld [vmem:[#allocation206_spill] sm:$0xff]  ;;  %v22727_v51 = vld [vmem:[#allocation251_spill] sm:$0xff]  ;;  %v22791_v50 = vld [vmem:[#allocation201_spill] sm:$0xff] }
 0x278   :  { %v22722_v34 = vpack.c.bf16 %v22720_v8, %v22721_v49  ;;  %v22730_v8 = vld [vmem:[#allocation167_spill] sm:$0xff]  ;;  %v22734_v49 = vld [vmem:[#allocation169_spill] sm:$0xff] }
 0x279   :  { %11245 = vmatpush1.bf16.msra.mxu1 %v22707_v28  ;;  %v22723_v28 = vld [vmem:[#allocation37_spill] sm:$0xff]  ;;  %v22737_v7 = vld [vmem:[#allocation71_spill] sm:$0xff] }
 0x27a   :  { %11629 = vmatpush1.bf16.msra.mxu0 %v22710_v46  ;;  %11247 = vmatprep.subr.bf16.mxu1 %v22713_v41  ;;  %v22725_v46 = vld [vmem:[#allocation248_spill] sm:$0xff]  ;;  %v22726_v41 = vld [vmem:[#allocation42_spill] sm:$0xff] }
 0x27b   :  { %11631 = vmatprep.subr.bf16.mxu0 %v22716_v25  ;;  %v22728_v25 = vld [vmem:[#allocation36_spill] sm:$0xff] }
 0x27d   :  { %11249 = vmatpush1.bf16.msra.mxu1 %v22719_v57  ;;  %v22729_v57 = vld [vmem:[#allocation48_spill] sm:$0xff] }
 0x27e   :  { %11633 = vmatpush1.bf16.msra.mxu0 %v22722_v34  ;;  %11251 = vmatprep.subr.bf16.mxu1 %v22723_v28  ;;  %v22731_v34 = vld [vmem:[#allocation53_spill] sm:$0xff]  ;;  %v22732_v28 = vld [vmem:[#allocation168_spill] sm:$0xff] }
 0x27f   :  { %11635 = vmatprep.subr.bf16.mxu0 %v22724_v55  ;;  %v22733_v55 = vld [vmem:[#allocation57_spill] sm:$0xff] }
 0x280   :  { %2015 = vmatmul.mubr.f32.vlgmr.msra.gmra.mrb[0].mxu1 %v22725_v46 }
 0x281   :  { %3299 = vmatmul.mubr.f32.vlgmr.msra.gmra.mrb[2].mxu0 %v22725_v46  ;;  %11253 = vmatpush1.bf16.msra.mxu1 %v22726_v41  ;;  %v22735_v46 = vld [vmem:[#allocation66_spill] sm:$0xff]  ;;  %v22736_v41 = vld [vmem:[#allocation59_spill] sm:$0xff] }
 0x282   :  { %2152 = vmatprep.mubr.f32.mxu1 %v22727_v51  ;;  %11637 = vmatpush1.bf16.msra.mxu0 %v22728_v25  ;;  %v22738_v25 = vld [vmem:[#allocation62_spill] sm:$0xff] }
 0x283   :  { %3436 = vmatprep.mubr.f32.mxu0 %v22727_v51  ;;  %11255 = vmatprep.subr.bf16.mxu1 %v22729_v57  ;;  %v22739_v51 = vld [vmem:[#allocation31_spill] sm:$0xff] }
 0x284   :  { %11639 = vmatprep.subr.bf16.mxu0 %v22730_v8  ;;  %v22740_v57 = vld [vmem:[#allocation63_spill] sm:$0xff] }
 0x285   :  { %11257 = vmatpush1.bf16.msra.mxu1 %v22731_v34  ;;  %v22741_v8 = vld [vmem:[#allocation83_spill] sm:$0xff]  ;;  %v22742_v34 = vld [vmem:[#allocation65_spill] sm:$0xff] }
 0x286   :  { %11641 = vmatpush1.bf16.msra.mxu0 %v22732_v28  ;;  %11259 = vmatprep.subr.bf16.mxu1 %v22733_v55  ;;  %v22743_v28 = vld [vmem:[#allocation90_spill] sm:$0xff]  ;;  %v22744_v55 = vld [vmem:[#allocation69_spill] sm:$0xff] }
 0x287   :  { %11643 = vmatprep.subr.bf16.mxu0 %v22734_v49  ;;  %v22745_v49 = vld [vmem:[#allocation97_spill] sm:$0xff] }
 0x289   :  { %11261 = vmatpush1.bf16.msra.mxu1 %v22735_v46  ;;  %v22746_v46 = vld [vmem:[#allocation75_spill] sm:$0xff] }
 0x28a   :  { %11645 = vmatpush1.bf16.msra.mxu0 %v22736_v41  ;;  %11263 = vmatprep.subr.bf16.mxu1 %v22737_v7  ;;  %v22747_v41 = vld [vmem:[#allocation103_spill] sm:$0xff]  ;;  %v22748_v7 = vld [vmem:[#allocation76_spill] sm:$0xff] }
 0x28b   :  { %11647 = vmatprep.subr.bf16.mxu0 %v22738_v25  ;;  %v22749_v25 = vld [vmem:[#allocation32_spill] sm:$0xff] }
 0x28d   :  { %11265 = vmatpush1.bf16.msra.mxu1 %v22739_v51  ;;  %v22750_v51 = vld [vmem:[#allocation78_spill] sm:$0xff] }
 0x28e   :  { %11649 = vmatpush1.bf16.msra.mxu0 %v22740_v57  ;;  %11267 = vmatprep.subr.bf16.mxu1 %v22741_v8  ;;  %v22751_v57 = vld [vmem:[#allocation114_spill] sm:$0xff] }
 0x28f   :  { %11651 = vmatprep.subr.bf16.mxu0 %v22742_v34  ;;  %v22752_v8 = vld [vmem:[#allocation82_spill] sm:$0xff] }
 0x290   :  { %v22753_v34 = vld [vmem:[#allocation18_spill] sm:$0xff] }
 0x291   :  { %11269 = vmatpush1.bf16.msra.mxu1 %v22743_v28  ;;  %v22754_v28 = vld [vmem:[#allocation87_spill] sm:$0xff] }
 0x292   :  { %11653 = vmatpush1.bf16.msra.mxu0 %v22744_v55  ;;  %11271 = vmatprep.subr.bf16.mxu1 %v22745_v49  ;;  %v22755_v55 = vld [vmem:[#allocation126_spill] sm:$0xff]  ;;  %v22756_v49 = vld [vmem:[#allocation88_spill] sm:$0xff] }
 0x293   :  { %11655 = vmatprep.subr.bf16.mxu0 %v22746_v46  ;;  %v22757_v46 = vld [vmem:[#allocation21_spill] sm:$0xff] }
 0x295   :  { %11273 = vmatpush1.bf16.msra.mxu1 %v22747_v41  ;;  %v22758_v41 = vld [vmem:[#allocation92_spill] sm:$0xff] }
 0x296   :  { %11657 = vmatpush1.bf16.msra.mxu0 %v22748_v7  ;;  %11275 = vmatprep.subr.bf16.mxu1 %v22749_v25  ;;  %v22759_v7 = vld [vmem:[#allocation137_spill] sm:$0xff]  ;;  %v22760_v25 = vld [vmem:[#allocation96_spill] sm:$0xff] }
 0x297   :  { %11659 = vmatprep.subr.bf16.mxu0 %v22750_v51  ;;  %v22761_v51 = vld [vmem:[#allocation143_spill] sm:$0xff] }
 0x299   :  { %11277 = vmatpush1.bf16.msra.mxu1 %v22751_v57  ;;  %v22762_v57 = vld [vmem:[#allocation101_spill] sm:$0xff] }
 0x29a   :  { %11661 = vmatpush1.bf16.msra.mxu0 %v22752_v8  ;;  %11279 = vmatprep.subr.bf16.mxu1 %v22753_v34  ;;  %v22763_v8 = vld [vmem:[#allocation147_spill] sm:$0xff]  ;;  %v22764_v34 = vld [vmem:[#allocation102_spill] sm:$0xff] }
 0x29b   :  { %11663 = vmatprep.subr.bf16.mxu0 %v22754_v28  ;;  %v22765_v28 = vld [vmem:[#allocation152_spill] sm:$0xff] }
 0x29d   :  { %11281 = vmatpush1.bf16.msra.mxu1 %v22755_v55  ;;  %v22766_v55 = vld [vmem:[#allocation105_spill] sm:$0xff] }
 0x29e   :  { %11665 = vmatpush1.bf16.msra.mxu0 %v22756_v49  ;;  %11283 = vmatprep.subr.bf16.mxu1 %v22757_v46  ;;  %v22767_v49 = vld [vmem:[#allocation155_spill] sm:$0xff]  ;;  %v22768_v46 = vld [vmem:[#allocation109_spill] sm:$0xff] }
 0x29f   :  { %11667 = vmatprep.subr.bf16.mxu0 %v22758_v41  ;;  %v22769_v41 = vld [vmem:[#allocation29_spill] sm:$0xff] }
 0x2a1   :  { %11285 = vmatpush1.bf16.msra.mxu1 %v22759_v7  ;;  %v22770_v7 = vld [vmem:[#allocation17_spill] sm:$0xff] }
 0x2a2   :  { %11669 = vmatpush1.bf16.msra.mxu0 %v22760_v25  ;;  %11287 = vmatprep.subr.bf16.mxu1 %v22761_v51  ;;  %v22771_v25 = vld [vmem:[#allocation163_spill] sm:$0xff]  ;;  %v22772_v51 = vld [vmem:[#allocation112_spill] sm:$0xff] }
 0x2a3   :  { %11671 = vmatprep.subr.bf16.mxu0 %v22762_v57  ;;  %v22773_v57 = vld [vmem:[#allocation116_spill] sm:$0xff] }
 0x2a5   :  { %11289 = vmatpush1.bf16.msra.mxu1 %v22763_v8  ;;  %v22774_v8 = vld [vmem:[#allocation120_spill] sm:$0xff] }
 0x2a6   :  { %11673 = vmatpush1.bf16.msra.mxu0 %v22764_v34  ;;  %11291 = vmatprep.subr.bf16.mxu1 %v22765_v28  ;;  %v22775_v34 = vld [vmem:[#allocation123_spill] sm:$0xff]  ;;  %v22776_v28 = vld [vmem:[#allocation124_spill] sm:$0xff] }
 0x2a7   :  { %11675 = vmatprep.subr.bf16.mxu0 %v22766_v55  ;;  %v22777_v55 = vld [vmem:[#allocation128_spill] sm:$0xff] }
 0x2a9   :  { %11293 = vmatpush1.bf16.msra.mxu1 %v22767_v49  ;;  %v22778_v49 = vld [vmem:[#allocation131_spill] sm:$0xff] }
 0x2aa   :  { %11677 = vmatpush1.bf16.msra.mxu0 %v22768_v46  ;;  %11295 = vmatprep.subr.bf16.mxu1 %v22769_v41  ;;  %v22779_v46 = vld [vmem:[#allocation135_spill] sm:$0xff]  ;;  %v22780_v41 = vld [vmem:[#allocation136_spill] sm:$0xff] }
 0x2ab   :  { %11679 = vmatprep.subr.bf16.mxu0 %v22770_v7  ;;  %v22781_v7 = vld [vmem:[#allocation139_spill] sm:$0xff] }
 0x2ad   :  { %11297 = vmatpush1.bf16.msra.mxu1 %v22771_v25  ;;  %v22782_v25 = vld [vmem:[#allocation186_spill] sm:$0xff] }
 0x2ae   :  { %11681 = vmatpush1.bf16.msra.mxu0 %v22772_v51  ;;  %11299 = vmatprep.subr.bf16.mxu1 %v22773_v57  ;;  %v22783_v51 = vld [vmem:[#allocation189_spill] sm:$0xff]  ;;  %v22784_v57 = vld [vmem:[#allocation192_spill] sm:$0xff] }
 0x2af   :  { %11683 = vmatprep.subr.bf16.mxu0 %v22774_v8  ;;  %v22785_v8 = vld [vmem:[#allocation196_spill] sm:$0xff] }
 0x2b1   :  { %11301 = vmatpush1.bf16.msra.mxu1 %v22775_v34 }
 0x2b2   :  { %11685 = vmatpush1.bf16.msra.mxu0 %v22776_v28  ;;  %11303 = vmatprep.subr.bf16.mxu1 %v22777_v55  ;;  %v22786_v28 = vand.u32 4294901760, %v22596_v32  ;;  %v22787_v55 = vand.u32 4294901760, %v22597_v52  ;;  %v22795_v32 = vand.u32 4294901760, %v22604_v54  ;;  %v22796_v52 = vand.u32 4294901760, %v22605_v37  ;;  %v22802_v54 = vld [vmem:[#allocation52_spill] sm:$0xff]  ;;  %v22804_v37 = vld [vmem:[#allocation54_spill] sm:$0xff] }
 0x2b3   :  { %11687 = vmatprep.subr.bf16.mxu0 %v22778_v49  ;;  %v22788_v49 = vld [vmem:[#allocation198_spill] sm:$0xff] }
 0x2b4   :  { %v11314_v34 = vpack.c.bf16 %v22787_v55, %v22786_v28  ;;  %v11700_v55 = vpack.c.bf16 %v22796_v52, %v22795_v32  ;;  %v22809_v32 = vld [vmem:[#allocation56_spill] sm:$0xff] }
 0x2b5   :  { %11305 = vmatpush1.bf16.msra.mxu1 %v22779_v46  ;;  %v22789_v46 = vand.u32 4294901760, %v22598_v58  ;;  %v22797_v58 = vand.u32 4294901760, %v22606_v53  ;;  %v22807_v53 = vld [vmem:[#allocation55_spill] sm:$0xff]  ;;  %v22810_v52 = vand.u32 4294901760, %v22809_v32 }
 0x2b6   :  { %11689 = vmatpush1.bf16.msra.mxu0 %v22780_v41  ;;  %11307 = vmatprep.subr.bf16.mxu1 %v22781_v7  ;;  %v22790_v41 = vand.u32 4294901760, %v22599_v45  ;;  %v22798_v45 = vand.u32 4294901760, %v22607_v31  ;;  %v22808_v31 = vand.u32 4294901760, %v22807_v53 }
 0x2b7   :  { %11691 = vmatprep.subr.bf16.mxu0 %v22782_v25 }
 0x2b8   :  { %v11698_v7 = vpack.c.bf16 %v22790_v41, %v22789_v46  ;;  %v11318_v28 = vpack.c.bf16 %v22798_v45, %v22797_v58  ;;  %v22799_v46 = vld [vmem:[#allocation250_spill] sm:$0xff]  ;;  %v22803_v41 = vand.u32 4294901760, %v22802_v54  ;;  %v11704_v58 = vpack.c.bf16 %v22810_v52, %v22808_v31  ;;  %v22823_v52 = vld [vmem:[#allocation68_spill] sm:$0xff] }
 0x2b9   :  { %11309 = vmatpush1.bf16.msra.mxu1 %v22783_v51  ;;  %v22792_v51 = vand.u32 4294901760, %v22602_v15  ;;  %v22800_v15 = vand.u32 4294901760, %v22608_v19  ;;  %v22811_v19 = vld [vmem:[#allocation58_spill] sm:$0xff] }
 0x2ba   :  { %11693 = vmatpush1.bf16.msra.mxu0 %v22784_v57  ;;  %11311 = vmatprep.subr.bf16.mxu1 %v22785_v8  ;;  %v22793_v57 = vand.u32 4294901760, %v22603_v62  ;;  %v22794_v8 = vld [vmem:[#allocation204_spill] sm:$0xff]  ;;  %v22801_v62 = vand.u32 4294901760, %v22609_v4  ;;  %v22812_v45 = vand.u32 4294901760, %v22811_v19  ;;  %v22824_v19 = vand.u32 4294901760, %v22823_v52 }
 0x2bb   :  { %11695 = vmatprep.subr.bf16.mxu0 %v22788_v49  ;;  %v22813_v4 = vld [vmem:[#allocation60_spill] sm:$0xff] }
 0x2bc   :  { %v11316_v25 = vpack.c.bf16 %v22793_v57, %v22792_v51  ;;  %v11702_v51 = vpack.c.bf16 %v22801_v62, %v22800_v15  ;;  %v22805_v57 = vand.u32 4294901760, %v22804_v37  ;;  %v22814_v15 = vand.u32 4294901760, %v22813_v4  ;;  %v22817_v37 = vld [vmem:[#allocation28_spill] sm:$0xff] }
 0x2bd   :  { %11313 = vmatpush1.bf16.msra.mxu1 %v22791_v50  ;;  %v22839_v52 = vld [vmem:[#allocation80_spill] sm:$0xff] }
 0x2be   :  { %11697 = vmatpush1.bf16.msra.mxu0 %v22794_v8  ;;  %11315 = vmatprep.subr.bf16.mxu1 %v11314_v34  ;;  %v22806_v34 = vld [vmem:[#allocation247_spill] sm:$0xff]  ;;  %v11322_v62 = vpack.c.bf16 %v22814_v15, %v22812_v45  ;;  %v22825_v45 = vld [vmem:[#allocation70_spill] sm:$0xff] }
 0x2bf   :  { %11699 = vmatprep.subr.bf16.mxu0 %v11698_v7  ;;  %v11320_v7 = vpack.c.bf16 %v22805_v57, %v22803_v41  ;;  %v22818_v41 = vand.u32 4294901760, %v22817_v37  ;;  %v22826_v4 = vand.u32 4294901760, %v22825_v45  ;;  %v22841_v45 = vld [vmem:[#allocation81_spill] sm:$0xff] }
 0x2c0   :  { %2156 = vmatmul.mubr.f32.vlgmr.msra.gmra.mrb[0].mxu1 %v22799_v46 }
 0x2c1   :  { %3440 = vmatmul.mubr.f32.vlgmr.msra.gmra.mrb[2].mxu0 %v22799_v46  ;;  %11317 = vmatpush1.bf16.msra.mxu1 %v11316_v25  ;;  %v22815_v25 = vld [vmem:[#allocation61_spill] sm:$0xff]  ;;  %v22821_v46 = vld [vmem:[#allocation67_spill] sm:$0xff]  ;;  %v11708_v15 = vpack.c.bf16 %v22826_v4, %v22824_v19  ;;  %v22840_v19 = vand.u32 4294901760, %v22839_v52  ;;  %v22842_v4 = vand.u32 4294901760, %v22841_v45  ;;  %v22855_v52 = vld [vmem:[#allocation94_spill] sm:$0xff] }
 0x2c2   :  { %2419 = vmatprep.mubr.f32.mxu1 %v22806_v34  ;;  %11701 = vmatpush1.bf16.msra.mxu0 %v11700_v55  ;;  %v22816_v54 = vand.u32 4294901760, %v22815_v25  ;;  %v22819_v55 = vld [vmem:[#allocation64_spill] sm:$0xff]  ;;  %v22822_v32 = vand.u32 4294901760, %v22821_v46  ;;  %v22829_v25 = vld [vmem:[#allocation73_spill] sm:$0xff]  ;;  %v22857_v45 = vld [vmem:[#allocation95_spill] sm:$0xff] }
 0x2c3   :  { %3703 = vmatprep.mubr.f32.mxu0 %v22806_v34  ;;  %11319 = vmatprep.subr.bf16.mxu1 %v11318_v28  ;;  %v22820_v53 = vand.u32 4294901760, %v22819_v55  ;;  %v22827_v28 = vld [vmem:[#allocation72_spill] sm:$0xff]  ;;  %v22830_v50 = vand.u32 4294901760, %v22829_v25  ;;  %v22835_v46 = vld [vmem:[#allocation77_spill] sm:$0xff] }
 0x2c4   :  { %v11706_v57 = vpack.c.bf16 %v22818_v41, %v22816_v54  ;;  %11703 = vmatprep.subr.bf16.mxu0 %v11702_v51  ;;  %v22828_v8 = vand.u32 4294901760, %v22827_v28  ;;  %v22831_v51 = vld [vmem:[#allocation74_spill] sm:$0xff]  ;;  %v11712_v28 = vpack.c.bf16 %v22842_v4, %v22840_v19  ;;  %v22856_v19 = vand.u32 4294901760, %v22855_v52 }
 0x2c5   :  { %11321 = vmatpush1.bf16.msra.mxu1 %v11320_v7  ;;  %v11324_v31 = vpack.c.bf16 %v22822_v32, %v22820_v53  ;;  %v22832_v7 = vand.u32 4294901760, %v22831_v51  ;;  %v22833_v54 = vld [vmem:[#allocation30_spill] sm:$0xff]  ;;  %v22858_v4 = vand.u32 4294901760, %v22857_v45 }
 0x2c6   :  { %11705 = vmatpush1.bf16.msra.mxu0 %v11704_v58  ;;  %11323 = vmatprep.subr.bf16.mxu1 %v11322_v62  ;;  %v11326_v37 = vpack.c.bf16 %v22830_v50, %v22828_v8  ;;  %v22834_v41 = vand.u32 4294901760, %v22833_v54  ;;  %v22836_v58 = vand.u32 4294901760, %v22835_v46  ;;  %v22837_v62 = vld [vmem:[#allocation79_spill] sm:$0xff]  ;;  %v22843_v50 = vld [vmem:[#allocation84_spill] sm:$0xff]  ;;  %v22849_v54 = vld [vmem:[#allocation89_spill] sm:$0xff] }
 0x2c7   :  { %11707 = vmatprep.subr.bf16.mxu0 %v11706_v57  ;;  %v22838_v53 = vand.u32 4294901760, %v22837_v62  ;;  %v22844_v8 = vand.u32 4294901760, %v22843_v50  ;;  %v22845_v57 = vld [vmem:[#allocation85_spill] sm:$0xff]  ;;  %v11716_v50 = vpack.c.bf16 %v22858_v4, %v22856_v19  ;;  %v22872_v19 = vld [vmem:[#allocation111_spill] sm:$0xff] }
 0x2c8   :  { %v11710_v55 = vpack.c.bf16 %v22834_v41, %v22832_v7  ;;  %v22846_v25 = vand.u32 4294901760, %v22845_v57  ;;  %v22847_v7 = vld [vmem:[#allocation86_spill] sm:$0xff]  ;;  %v22850_v41 = vand.u32 4294901760, %v22849_v54  ;;  %v22861_v57 = vld [vmem:[#allocation99_spill] sm:$0xff] }
 0x2c9   :  { %11325 = vmatpush1.bf16.msra.mxu1 %v11324_v31  ;;  %v11328_v32 = vpack.c.bf16 %v22838_v53, %v22836_v58  ;;  %v22848_v31 = vand.u32 4294901760, %v22847_v7  ;;  %v22851_v58 = vld [vmem:[#allocation91_spill] sm:$0xff] }
 0x2ca   :  { %11709 = vmatpush1.bf16.msra.mxu0 %v11708_v15  ;;  %11327 = vmatprep.subr.bf16.mxu1 %v11326_v37  ;;  %v11330_v51 = vpack.c.bf16 %v22846_v25, %v22844_v8  ;;  %v22852_v15 = vand.u32 4294901760, %v22851_v58  ;;  %v22853_v37 = vld [vmem:[#allocation93_spill] sm:$0xff]  ;;  %v22859_v8 = vld [vmem:[#allocation98_spill] sm:$0xff]  ;;  %v22862_v25 = vand.u32 4294901760, %v22861_v57  ;;  %v22880_v57 = vand.u32 4294901760, %v22519_v20 }
 0x2cb   :  { %11711 = vmatprep.subr.bf16.mxu0 %v11710_v55  ;;  %v11714_v46 = vpack.c.bf16 %v22850_v41, %v22848_v31  ;;  %v22854_v62 = vand.u32 4294901760, %v22853_v37  ;;  %v22860_v55 = vand.u32 4294901760, %v22859_v8  ;;  %v22864_v31 = vld [vmem:[#allocation15_spill] sm:$0xff]  ;;  %v22869_v37 = vand.u32 4294901760, %v22646_v23 }
 0x2cc   :  { %v22865_v54 = vand.u32 4294901760, %v22864_v31  ;;  %v22877_v8 = vand.u32 4294901760, %v22653_v26  ;;  %v22884_v26 = vand.u32 4294901760, %v22545_v42  ;;  %v22887_v20 = vand.u32 4294901760, %v22548_v29 }
 0x2cd   :  { %11329 = vmatpush1.bf16.msra.mxu1 %v11328_v32  ;;  %v11332_v53 = vpack.c.bf16 %v22854_v62, %v22852_v15  ;;  %v11334_v7 = vpack.c.bf16 %v22862_v25, %v22860_v55  ;;  %v22863_v32 = vand.u32 4294901760, %v22642_v16  ;;  %v22870_v62 = vand.u32 4294901760, %v22647_v40 }
 0x2ce   :  { %11713 = vmatpush1.bf16.msra.mxu0 %v11712_v28  ;;  %11331 = vmatprep.subr.bf16.mxu1 %v11330_v51  ;;  %v22866_v28 = vand.u32 4294901760, %v22644_v18  ;;  %v22867_v51 = vld [vmem:[#allocation106_spill] sm:$0xff]  ;;  %v22873_v16 = vand.u32 4294901760, %v22872_v19  ;;  %v22875_v18 = vand.u32 4294901760, %v22651_v43  ;;  %v22878_v40 = vand.u32 4294901760, %v22654_v38 }
 0x2cf   :  { %11715 = vmatprep.subr.bf16.mxu0 %v11714_v46  ;;  %v11718_v41 = vpack.c.bf16 %v22865_v54, %v22863_v32  ;;  %v22868_v58 = vand.u32 4294901760, %v22867_v51  ;;  %v11720_v52 = vpack.c.bf16 %v22870_v62, %v22869_v37  ;;  %v22871_v46 = vand.u32 4294901760, %v22648_v63  ;;  %v22906_v19 = vld [vmem:[#allocation154_spill] sm:$0xff] }
 0x2d0   :  { %v22879_v63 = vand.u32 4294901760, %v22655_v11  ;;  %v22882_v43 = vand.u32 4294901760, %v22537_v6  ;;  %v22885_v32 = vand.u32 4294901760, %v22546_v9  ;;  %v22886_v11 = vand.u32 4294901760, %v22547_v17 }
 0x2d1   :  { %11333 = vmatpush1.bf16.msra.mxu1 %v11332_v53  ;;  %v11336_v15 = vpack.c.bf16 %v22868_v58, %v22866_v28  ;;  %v11338_v45 = vpack.c.bf16 %v22873_v16, %v22871_v46  ;;  %v22874_v53 = vand.u32 4294901760, %v22650_v30  ;;  %v22881_v30 = vand.u32 4294901760, %v22528_v21 }
 0x2d2   :  { %11717 = vmatpush1.bf16.msra.mxu0 %v11716_v50  ;;  %11335 = vmatprep.subr.bf16.mxu1 %v11334_v7  ;;  %v22876_v50 = vand.u32 4294901760, %v22652_v56  ;;  %v11724_v55 = vpack.c.bf16 %v22879_v63, %v22878_v40  ;;  %v22883_v56 = vand.u32 4294901760, %v22538_v47  ;;  %v11344_v38 = vpack.c.bf16 %v22885_v32, %v22884_v26  ;;  %v22926_v26 = vld [vmem:[#allocation162_spill] sm:$0xff] }
 0x2d3   :  { %11719 = vmatprep.subr.bf16.mxu0 %v11718_v41  ;;  %v11722_v4 = vpack.c.bf16 %v22875_v18, %v22874_v53  ;;  %v11342_v25 = vpack.c.bf16 %v22881_v30, %v22880_v57  ;;  %v11728_v21 = vpack.c.bf16 %v22887_v20, %v22886_v11  ;;  %v22888_v31 = vand.u32 4294901760, %v22549_v48  ;;  %v22895_v48 = vld [vmem:[#allocation141_spill] sm:$0xff]  ;;  %v22910_v53 = vld [vmem:[#allocation27_spill] sm:$0xff]  ;;  %v22928_v20 = vld [vmem:[#allocation164_spill] sm:$0xff] }
 0x2d4   :  { %v11340_v23 = vpack.c.bf16 %v22877_v8, %v22876_v50  ;;  %v11726_v7 = vpack.c.bf16 %v22883_v56, %v22882_v43  ;;  %v22889_v6 = vand.u32 4294901760, %v22552_v1  ;;  %v22890_v47 = vand.u32 4294901760, %v22553_v39  ;;  %v22914_v50 = vld [vmem:[#allocation157_spill] sm:$0xff]  ;;  %v987_v11 = vld [vmem:[#allocation7 + $0x28] sm:$0xff] }
 0x2d5   :  { %11337 = vmatpush1.bf16.msra.mxu1 %v11336_v15  ;;  %v22891_v42 = vand.u32 4294901760, %v22554_v3  ;;  %v22892_v9 = vand.u32 4294901760, %v22560_v22  ;;  %v22893_v28 = vand.u32 4294901760, %v22561_v14  ;;  %v22894_v29 = vand.u32 4294901760, %v22562_v24  ;;  %v22922_v30 = vld [vmem:[#allocation161_spill] sm:$0xff] }
 0x2d6   :  { %11721 = vmatpush1.bf16.msra.mxu0 %v11720_v52  ;;  %11339 = vmatprep.subr.bf16.mxu1 %v11338_v45  ;;  %v11346_v54 = vpack.c.bf16 %v22889_v6, %v22888_v31  ;;  %v22896_v51 = vand.u32 4294901760, %v22895_v48  ;;  %v22897_v58 = vand.u32 4294901760, %v22565_v33  ;;  %v22898_v39 = vand.u32 4294901760, %v22566_v59  ;;  %v22924_v56 = vld [vmem:[#allocation33_spill] sm:$0xff]  ;;  %v22930_v31 = vld [vmem:[#allocation34_spill] sm:$0xff] }
 0x2d7   :  { %11723 = vmatprep.subr.bf16.mxu0 %v11722_v4  ;;  %v11730_v41 = vpack.c.bf16 %v22891_v42, %v22890_v47  ;;  %v11348_v17 = vpack.c.bf16 %v22893_v28, %v22892_v9  ;;  %v22899_v3 = vand.u32 4294901760, %v22398_v5  ;;  %v22900_v22 = vand.u32 4294901760, %v22399_v12  ;;  %v22908_v12 = vld [vmem:[#allocation26_spill] sm:$0xff]  ;;  %v22932_v47 = vld [vmem:[#allocation165_spill] sm:$0xff] }
 0x2d8   :  { %v11732_v1 = vpack.c.bf16 %v22896_v51, %v22894_v29  ;;  %v11350_v15 = vpack.c.bf16 %v22898_v39, %v22897_v58  ;;  %v22901_v14 = vand.u32 4294901760, %v22657_v61  ;;  %v22902_v62 = vand.u32 4294901760, %v22497_v35  ;;  %v22912_v35 = vld [vmem:[#allocation156_spill] sm:$0xff]  ;;  %v22938_v48 = vld [vmem:[#allocation146_spill] sm:$0xff]  ;;  %v995_v58 = vld [vmem:[#allocation7 + $0x68] sm:$0xff] }
 0x2d9   :  { %11341 = vmatpush1.bf16.msra.mxu1 %v11340_v23  ;;  %v11734_v37 = vpack.c.bf16 %v22900_v22, %v22899_v3  ;;  %v22903_v52 = vand.u32 4294901760, %v22659_v13  ;;  %v22904_v33 = vand.u32 4294901760, %v22499_v27  ;;  %v22905_v46 = vand.u32 4294901760, %v22500_v10  ;;  %v22916_v27 = vld [vmem:[#allocation158_spill] sm:$0xff]  ;;  %v22918_v10 = vld [vmem:[#allocation159_spill] sm:$0xff]  ;;  %v989_v39 = vld [vmem:[#allocation7 + $0x38] sm:$0xff] }
 0x2da   :  { %11725 = vmatpush1.bf16.msra.mxu0 %v11724_v55  ;;  %11343 = vmatprep.subr.bf16.mxu1 %v11342_v25  ;;  %v11352_v24 = vpack.c.bf16 %v22902_v62, %v22901_v14  ;;  %v22907_v5 = vand.u32 4294901760, %v22906_v19  ;;  %v22909_v45 = vand.u32 4294901760, %v22908_v12  ;;  %v22911_v61 = vand.u32 4294901760, %v22910_v53  ;;  %v22920_v55 = vld [vmem:[#allocation160_spill] sm:$0xff]  ;;  %v22940_v3 = vld [vmem:[#allocation170_spill] sm:$0xff] }
 0x2db   :  { %11727 = vmatprep.subr.bf16.mxu0 %v11726_v7  ;;  %v11736_v59 = vpack.c.bf16 %v22904_v33, %v22903_v52  ;;  %v22913_v4 = vand.u32 4294901760, %v22912_v35  ;;  %v22915_v8 = vand.u32 4294901760, %v22914_v50  ;;  %v22917_v23 = vand.u32 4294901760, %v22916_v27  ;;  %v22946_v33 = vld [vmem:[#allocation173_spill] sm:$0xff]  ;;  %v22948_v19 = vld [vmem:[#allocation174_spill] sm:$0xff]  ;;  %v22952_v53 = vld [vmem:[#allocation176_spill] sm:$0xff] }
 0x2dc   :  { %v11354_v16 = vpack.c.bf16 %v22907_v5, %v22905_v46  ;;  %v11738_v18 = vpack.c.bf16 %v22911_v61, %v22909_v45  ;;  %v22919_v40 = vand.u32 4294901760, %v22918_v10  ;;  %v22921_v57 = vand.u32 4294901760, %v22920_v55  ;;  %v22956_v50 = vld [vmem:[#allocation178_spill] sm:$0xff]  ;;  %v22960_v10 = vld [vmem:[#allocation180_spill] sm:$0xff]  ;;  %v22962_v55 = vld [vmem:[#allocation181_spill] sm:$0xff] }
 0x2dd   :  { %11345 = vmatpush1.bf16.msra.mxu1 %v11344_v38  ;;  %v11356_v13 = vpack.c.bf16 %v22915_v8, %v22913_v4  ;;  %v22923_v25 = vand.u32 4294901760, %v22922_v30  ;;  %v22925_v7 = vand.u32 4294901760, %v22924_v56  ;;  %v22927_v32 = vand.u32 4294901760, %v22926_v26 }
 0x2de   :  { %11729 = vmatpush1.bf16.msra.mxu0 %v11728_v21  ;;  %11347 = vmatprep.subr.bf16.mxu1 %v11346_v54  ;;  %v11740_v63 = vpack.c.bf16 %v22919_v40, %v22917_v23  ;;  %v22929_v21 = vand.u32 4294901760, %v22928_v20  ;;  %v22931_v6 = vand.u32 4294901760, %v22930_v31  ;;  %v22933_v42 = vand.u32 4294901760, %v22932_v47  ;;  %v986_v20 = vld [vmem:[#allocation7 + $0x20] sm:$0xff]  ;;  %v988_v47 = vld [vmem:[#allocation7 + $0x30] sm:$0xff] }
 0x2df   :  { %11731 = vmatprep.subr.bf16.mxu0 %v11730_v41  ;;  %v11358_v43 = vpack.c.bf16 %v22923_v25, %v22921_v57  ;;  %v11742_v38 = vpack.c.bf16 %v22927_v32, %v22925_v7  ;;  %v22934_v41 = vld [vmem:[#allocation166_spill] sm:$0xff]  ;;  %v22939_v51 = vand.u32 4294901760, %v22938_v48  ;;  %v22941_v22 = vand.u32 4294901760, %v22940_v3  ;;  %v22966_v7 = vld [vmem:[#allocation183_spill] sm:$0xff] }
 0x2e0   :  { %v11360_v54 = vpack.c.bf16 %v22931_v6, %v22929_v21  ;;  %v22935_v9 = vand.u32 4294901760, %v22934_v41  ;;  %v22949_v5 = vand.u32 4294901760, %v22948_v19  ;;  %v22953_v61 = vand.u32 4294901760, %v22952_v53  ;;  %v22964_v25 = vld [vmem:[#allocation182_spill] sm:$0xff]  ;;  %v22968_v41 = vld [vmem:[#allocation184_spill] sm:$0xff] }
 0x2e1   :  { %11349 = vmatpush1.bf16.msra.mxu1 %v11348_v17  ;;  %v22936_v17 = vld [vmem:[#allocation142_spill] sm:$0xff]  ;;  %v22957_v8 = vand.u32 4294901760, %v22956_v50  ;;  %v22961_v40 = vand.u32 4294901760, %v22960_v10  ;;  %v22963_v57 = vand.u32 4294901760, %v22962_v55  ;;  %v22965_v56 = vand.u32 4294901760, %v22964_v25 }
 0x2e2   :  { %11733 = vmatpush1.bf16.msra.mxu0 %v11732_v1  ;;  %11351 = vmatprep.subr.bf16.mxu1 %v11350_v15  ;;  %v11744_v28 = vpack.c.bf16 %v22935_v9, %v22933_v42  ;;  %v22937_v29 = vand.u32 4294901760, %v22936_v17  ;;  %v997_v15 = vld [vmem:[#allocation7 + $0x78] sm:$0xff]  ;;  %v22967_v26 = vand.u32 4294901760, %v22966_v7  ;;  %v3852_v21 = vand.u32 4294901760, %v995_v58  ;;  %v996_v42 = vld [vmem:[#allocation7 + $0x70] sm:$0xff]  ;;  %v22980_v19 = vld [vmem:[#allocation194_spill] sm:$0xff] }
 0x2e3   :  { %11735 = vmatprep.subr.bf16.mxu0 %v11734_v37  ;;  %v22942_v37 = vld [vmem:[#allocation171_spill] sm:$0xff]  ;;  %v16212_v30 = vpack.c.bf16 %v22963_v57, %v22961_v40  ;;  %v5132_v31 = vand.u32 4294901760, %v989_v39  ;;  %v5136_v6 = vand.u32 4294901760, %v997_v15  ;;  %v22969_v9 = vand.u32 4294901760, %v22968_v41  ;;  %v22970_v17 = vld [vmem:[#allocation185_spill] sm:$0xff]  ;;  %v22987_v10 = vld [vmem:[#allocation202_spill] sm:$0xff] }
 0x2e4   :  { %v11362_v1 = vpack.c.bf16 %v22939_v51, %v22937_v29  ;;  %v22943_v14 = vand.u32 4294901760, %v22942_v37  ;;  %v16218_v32 = vpack.c.bf16 %v22967_v26, %v22965_v56  ;;  %v22971_v29 = vand.u32 4294901760, %v22970_v17  ;;  %v22972_v51 = vld [vmem:[#allocation187_spill] sm:$0xff]  ;;  %v22993_v25 = vld [vmem:[#allocation206_spill] sm:$0xff]  ;;  %v1005_v41 = vld [vmem:[#allocation7 + $0xb8] sm:$0xff] }
 0x2e5   :  { %11353 = vmatpush1.bf16.msra.mxu1 %v11352_v24  ;;  %v22944_v24 = vld [vmem:[#allocation172_spill] sm:$0xff]  ;;  %v22973_v3 = vand.u32 4294901760, %v22972_v51  ;;  %v22983_v53 = vand.u32 4294901760, %v22711_v44  ;;  %v22989_v40 = vld [vmem:[#allocation203_spill] sm:$0xff]  ;;  %v22991_v44 = vld [vmem:[#allocation205_spill] sm:$0xff]  ;;  %v5134_v7 = vand.u32 4294901760, %v988_v47 }
 0x2e6   :  { %11737 = vmatpush1.bf16.msra.mxu0 %v11736_v59  ;;  %11355 = vmatprep.subr.bf16.mxu1 %v11354_v16  ;;  %v11746_v62 = vpack.c.bf16 %v22943_v14, %v22941_v22  ;;  %v22945_v52 = vand.u32 4294901760, %v22944_v24  ;;  %v22947_v59 = vand.u32 4294901760, %v22946_v33  ;;  %v22950_v16 = vld [vmem:[#allocation175_spill] sm:$0xff]  ;;  %v16224_v48 = vpack.c.bf16 %v22971_v29, %v22969_v9  ;;  %v22974_v22 = vld [vmem:[#allocation188_spill] sm:$0xff]  ;;  %v1013_v9 = vld [vmem:[#allocation7 + $0xf8] sm:$0xff] }
 0x2e7   :  { %11739 = vmatprep.subr.bf16.mxu0 %v11738_v18  ;;  %v22951_v12 = vand.u32 4294901760, %v22950_v16  ;;  %v22954_v18 = vld [vmem:[#allocation177_spill] sm:$0xff]  ;;  %v22975_v37 = vand.u32 4294901760, %v22974_v22  ;;  %v22977_v24 = vld [vmem:[#allocation191_spill] sm:$0xff]  ;;  %v22992_v57 = vand.u32 4294901760, %v22991_v44  ;;  %v5138_v26 = vand.u32 4294901760, %v996_v42 }
 0x2e8   :  { %v11364_v46 = vpack.c.bf16 %v22947_v59, %v22945_v52  ;;  %v22955_v35 = vand.u32 4294901760, %v22954_v18  ;;  %v22978_v52 = vand.u32 4294901760, %v22977_v24  ;;  %v22979_v59 = vand.u32 4294901760, %v22709_v60  ;;  %v1003_v60 = vld [vmem:[#allocation7 + $0xa8] sm:$0xff]  ;;  %v1002_v51 = vld [vmem:[#allocation7 + $0xa0] sm:$0xff] }
 0x2e9   :  { %11357 = vmatpush1.bf16.msra.mxu1 %v11356_v13  ;;  %v11748_v45 = vpack.c.bf16 %v22951_v12, %v22949_v5  ;;  %v22958_v13 = vld [vmem:[#allocation179_spill] sm:$0xff]  ;;  %v16230_v14 = vpack.c.bf16 %v22975_v37, %v22973_v3  ;;  %v22981_v5 = vand.u32 4294901760, %v22980_v19  ;;  %v22982_v12 = vand.u32 4294901760, %v22712_v2  ;;  %v1010_v3 = vld [vmem:[#allocation7 + $0xe0] sm:$0xff] }
 0x2ea   :  { %v11366_v4 = vpack.c.bf16 %v22955_v35, %v22953_v61  ;;  %11741 = vmatpush1.bf16.msra.mxu0 %v11740_v63  ;;  %11359 = vmatprep.subr.bf16.mxu1 %v11358_v43  ;;  %v22959_v27 = vand.u32 4294901760, %v22958_v13  ;;  %v994_v63 = vld [vmem:[#allocation7 + $0x60] sm:$0xff]  ;;  %v3848_v43 = vand.u32 4294901760, %v987_v11  ;;  %v22984_v18 = vand.u32 4294901760, %v22715_v0 }
 0x2eb   :  { %11743 = vmatprep.subr.bf16.mxu0 %v11742_v38  ;;  %v22976_v38 = vand.u32 4294901760, %v22706_v36  ;;  %v16242_v16 = vpack.c.bf16 %v22981_v5, %v22979_v59  ;;  %v16248_v61 = vpack.c.bf16 %v22983_v53, %v22982_v12  ;;  %v22985_v36 = vld [vmem:[#allocation200_spill] sm:$0xff]  ;;  %v3854_v13 = vand.u32 4294901760, %v994_v63  ;;  %v1021_v53 = vld [vmem:[#allocation7 + $0x138] sm:$0xff] }
 0x2ec   :  { %v11750_v23 = vpack.c.bf16 %v22959_v27, %v22957_v8  ;;  %v22986_v35 = vand.u32 4294901760, %v22985_v36  ;;  %v3850_v8 = vand.u32 4294901760, %v986_v20  ;;  %v1011_v27 = vld [vmem:[#allocation7 + $0xe8] sm:$0xff]  ;;  %v22990_v2 = vand.u32 4294901760, %v22989_v40  ;;  %v1012_v59 = vld [vmem:[#allocation7 + $0xf0] sm:$0xff] }
 0x2ed   :  { %v16236_v33 = vpack.c.bf16 %v22978_v52, %v22976_v38  ;;  %11361 = vmatpush1.bf16.msra.mxu1 %v11360_v54  ;;  %v22988_v54 = vand.u32 4294901760, %v22987_v10  ;;  %v22994_v0 = vand.u32 4294901760, %v22993_v25  ;;  %v16268_v17 = vpack.c.bf16 %v3852_v21, %v3848_v43  ;;  %v1004_v52 = vld [vmem:[#allocation7 + $0xb0] sm:$0xff] }
 0x2ee   :  { %v16254_v50 = vpack.c.bf16 %v22986_v35, %v22984_v18  ;;  %11745 = vmatpush1.bf16.msra.mxu0 %v11744_v28  ;;  %11363 = vmatprep.subr.bf16.mxu1 %v11362_v1  ;;  %v16270_v28 = vsub.f32 %v987_v11, %v3848_v43  ;;  %v16272_v1 = vsub.f32 %v995_v58, %v3852_v21  ;;  %v3856_v38 = vand.u32 4294901760, %v1003_v60  ;;  %v1029_v18 = vld [vmem:[#allocation7 + $0x178] sm:$0xff]  ;;  %v1018_v35 = vld [vmem:[#allocation7 + $0x120] sm:$0xff]  ;;  %v1020_v10 = vld [vmem:[#allocation7 + $0x130] sm:$0xff] }
 0x2ef   :  { %v16260_v55 = vpack.c.bf16 %v22990_v2, %v22988_v54  ;;  %v16266_v56 = vpack.c.bf16 %v22994_v0, %v22992_v57  ;;  %11747 = vmatprep.subr.bf16.mxu0 %v11746_v62  ;;  %22995 = vst [vmem:[#allocation149_spill] sm:$0xff] %v16268_v17  ;;  %v16274_v29 = vpack.c.bf16 %v5136_v6, %v5132_v31  ;;  %v3860_v24 = vand.u32 4294901760, %v1011_v27  ;;  %v1028_v54 = vld [vmem:[#allocation7 + $0x170] sm:$0xff]  ;;  %v1035_v0 = vld [vmem:[#allocation7 + $0x1a8] sm:$0xff] }
 0x2f0   :  { %22996 = vst [vmem:[#allocation151_spill] sm:$0xff] %v16270_v28  ;;  %22997 = vst [vmem:[#allocation153_spill] sm:$0xff] %v16272_v1  ;;  %v16276_v22 = vsub.f32 %v989_v39, %v5132_v31  ;;  %v16278_v37 = vsub.f32 %v997_v15, %v5136_v6  ;;  %v16280_v62 = vpack.c.bf16 %v3854_v13, %v3850_v8  ;;  %v5140_v11 = vand.u32 4294901760, %v1005_v41  ;;  %v1019_v31 = vld [vmem:[#allocation7 + $0x128] sm:$0xff] }
 0x2f1   :  { %22998 = vst [vmem:[#allocation210_spill] sm:$0xff] %v16274_v29  ;;  %11365 = vmatpush1.bf16.msra.mxu1 %v11364_v46  ;;  %v16282_v19 = vsub.f32 %v986_v20, %v3850_v8  ;;  %v5144_v58 = vand.u32 4294901760, %v1013_v9  ;;  %v16284_v43 = vsub.f32 %v994_v63, %v3854_v13  ;;  %v16286_v21 = vpack.c.bf16 %v5138_v26, %v5134_v7  ;;  %v1027_v6 = vld [vmem:[#allocation7 + $0x168] sm:$0xff]  ;;  %v1026_v8 = vld [vmem:[#allocation7 + $0x160] sm:$0xff] }
 0x2f2   :  { %22999 = vst [vmem:[#allocation211_spill] sm:$0xff] %v16276_v22  ;;  %23000 = vst [vmem:[#allocation212_spill] sm:$0xff] %v16278_v37  ;;  %11749 = vmatpush1.bf16.msra.mxu0 %v11748_v45  ;;  %11367 = vmatprep.subr.bf16.mxu1 %v11366_v4  ;;  %v3858_v39 = vand.u32 4294901760, %v1002_v51  ;;  %v3862_v15 = vand.u32 4294901760, %v1010_v3  ;;  %v16288_v5 = vsub.f32 %v988_v47, %v5134_v7  ;;  %v5142_v12 = vand.u32 4294901760, %v1004_v52  ;;  %v1043_v7 = vld [vmem:[#allocation7 + $0x1e8] sm:$0xff] }
 0x2f3   :  { %23001 = vst [vmem:[#allocation213_spill] sm:$0xff] %v16280_v62  ;;  %23002 = vst [vmem:[#allocation214_spill] sm:$0xff] %v16282_v19  ;;  %11751 = vmatprep.subr.bf16.mxu0 %v11750_v23  ;;  %v16290_v46 = vsub.f32 %v996_v42, %v5138_v26  ;;  %v5146_v20 = vand.u32 4294901760, %v1012_v59  ;;  %v16292_v36 = vpack.c.bf16 %v3860_v24, %v3856_v38  ;;  %v3864_v42 = vand.u32 4294901760, %v1019_v31 }
 0x2f4   :  { %23003 = vst [vmem:[#allocation215_spill] sm:$0xff] %v16284_v43  ;;  %23004 = vst [vmem:[#allocation121_spill] sm:$0xff] %v16286_v21  ;;  %v16294_v45 = vsub.f32 %v1003_v60, %v3856_v38  ;;  %v16296_v4 = vsub.f32 %v1011_v27, %v3860_v24  ;;  %v16298_v63 = vsub.f32 %v1005_v41, %v5140_v11  ;;  %v3868_v13 = vand.u32 4294901760, %v1027_v6 }
 0x2f5   :  { %23005 = vst [vmem:[#allocation216_spill] sm:$0xff] %v16288_v5  ;;  %23006 = vst [vmem:[#allocation217_spill] sm:$0xff] %v16290_v46  ;;  %11369 = vmatpush1.bf16.msra.mxu1 %v16212_v30  ;;  %v16301_v23 = vpack.c.bf16 %v5144_v58, %v5140_v11  ;;  %v16303_v47 = vsub.f32 %v1013_v9, %v5144_v58  ;;  %v16307_v60 = vpack.c.bf16 %v3862_v15, %v3858_v39  ;;  %v1037_v9 = vld [vmem:[#allocation7 + $0x1b8] sm:$0xff]  ;;  %v1034_v11 = vld [vmem:[#allocation7 + $0x1a0] sm:$0xff] }
 0x2f6   :  { %23007 = vst [vmem:[#allocation122_spill] sm:$0xff] %v16292_v36  ;;  %23008 = vst [vmem:[#allocation19_spill] sm:$0xff] %v16294_v45  ;;  %11753 = vmatpush1.bf16.msra.mxu0 %v16218_v32  ;;  %11371 = vmatprep.subr.bf16.mxu1 %v16224_v48  ;;  %v16309_v27 = vsub.f32 %v1002_v51, %v3858_v39  ;;  %v5148_v40 = vand.u32 4294901760, %v1021_v53  ;;  %v5152_v2 = vand.u32 4294901760, %v1029_v18  ;;  %v3866_v57 = vand.u32 4294901760, %v1018_v35  ;;  %v1045_v51 = vld [vmem:[#allocation7 + $0x1f8] sm:$0xff] }
 0x2f7   :  { %23009 = vst [vmem:[#allocation125_spill] sm:$0xff] %v16296_v4  ;;  %23010 = vst [vmem:[#allocation218_spill] sm:$0xff] %v16298_v63  ;;  %11755 = vmatprep.subr.bf16.mxu0 %v16230_v14  ;;  %v16312_v30 = vsub.f32 %v1010_v3, %v3862_v15  ;;  %v16314_v44 = vpack.c.bf16 %v5146_v20, %v5142_v12  ;;  %v3870_v25 = vand.u32 4294901760, %v1026_v8  ;;  %v5150_v48 = vand.u32 4294901760, %v1020_v10  ;;  %v1042_v58 = vld [vmem:[#allocation7 + $0x1e0] sm:$0xff]  ;;  %v1036_v15 = vld [vmem:[#allocation7 + $0x1b0] sm:$0xff] }
 0x2f8   :  { %23011 = vst [vmem:[#allocation219_spill] sm:$0xff] %v16301_v23  ;;  %23012 = vst [vmem:[#allocation220_spill] sm:$0xff] %v16303_v47  ;;  %v16316_v26 = vsub.f32 %v1004_v52, %v5142_v12  ;;  %v16318_v32 = vsub.f32 %v1012_v59, %v5146_v20  ;;  %v5154_v41 = vand.u32 4294901760, %v1028_v54  ;;  %v16321_v38 = vpack.c.bf16 %v3868_v13, %v3864_v42  ;;  %v1044_v12 = vld [vmem:[#allocation7 + $0x1f0] sm:$0xff] }
 0x2f9   :  { %23013 = vst [vmem:[#allocation221_spill] sm:$0xff] %v16307_v60  ;;  %23014 = vst [vmem:[#allocation127_spill] sm:$0xff] %v16309_v27  ;;  %11373 = vmatpush1.bf16.msra.mxu1 %v16236_v33  ;;  %v16323_v14 = vsub.f32 %v1019_v31, %v3864_v42  ;;  %v16325_v3 = vsub.f32 %v1027_v6, %v3868_v13  ;;  %v16327_v24 = vsub.f32 %v1021_v53, %v5148_v40 }
 0x2fa   :  { %23015 = vst [vmem:[#allocation20_spill] sm:$0xff] %v16312_v30  ;;  %23016 = vst [vmem:[#allocation129_spill] sm:$0xff] %v16314_v44  ;;  %11757 = vmatpush1.bf16.msra.mxu0 %v16242_v16  ;;  %11375 = vmatprep.subr.bf16.mxu1 %v16248_v61  ;;  %v16331_v52 = vpack.c.bf16 %v5152_v2, %v5148_v40  ;;  %v16333_v59 = vsub.f32 %v1029_v18, %v5152_v2  ;;  %v3872_v39 = vand.u32 4294901760, %v1035_v0  ;;  %v1051_v18 = vld [vmem:[#allocation7 + $0x228] sm:$0xff] }
 0x2fb   :  { %23017 = vst [vmem:[#allocation130_spill] sm:$0xff] %v16316_v26  ;;  %23018 = vst [vmem:[#allocation132_spill] sm:$0xff] %v16318_v32  ;;  %v3876_v33 = vand.u32 4294901760, %v1043_v7  ;;  %11759 = vmatprep.subr.bf16.mxu0 %v16254_v50  ;;  %v16336_v31 = vpack.c.bf16 %v3870_v25, %v3866_v57  ;;  %v16338_v6 = vsub.f32 %v1018_v35, %v3866_v57  ;;  %v5156_v20 = vand.u32 4294901760, %v1037_v9  ;;  %v1059_v40 = vld [vmem:[#allocation7 + $0x268] sm:$0xff]  ;;  %v1053_v35 = vld [vmem:[#allocation7 + $0x238] sm:$0xff] }
 0x2fc   :  { %23019 = vst [vmem:[#allocation222_spill] sm:$0xff] %v16321_v38  ;;  %23020 = vst [vmem:[#allocation223_spill] sm:$0xff] %v16323_v14  ;;  %v5160_v53 = vand.u32 4294901760, %v1045_v51  ;;  %v16340_v42 = vsub.f32 %v1026_v8, %v3870_v25  ;;  %v16342_v16 = vpack.c.bf16 %v5154_v41, %v5150_v48  ;;  %v3874_v61 = vand.u32 4294901760, %v1034_v11  ;;  %v1061_v57 = vld [vmem:[#allocation7 + $0x278] sm:$0xff] }
 0x2fd   :  { %23021 = vst [vmem:[#allocation133_spill] sm:$0xff] %v16325_v3  ;;  %23022 = vst [vmem:[#allocation134_spill] sm:$0xff] %v16327_v24  ;;  %v3878_v13 = vand.u32 4294901760, %v1042_v58  ;;  %11377 = vmatpush1.bf16.msra.mxu1 %v16260_v55  ;;  %v16345_v2 = vsub.f32 %v1020_v10, %v5150_v48  ;;  %v5158_v50 = vand.u32 4294901760, %v1036_v15  ;;  %v5162_v24 = vand.u32 4294901760, %v1044_v12  ;;  %v23031_v8 = vld [vmem:[#allocation37_spill] sm:$0xff] }
 0x2fe   :  { %23023 = vst [vmem:[#allocation22_spill] sm:$0xff] %v16331_v52  ;;  %23024 = vst [vmem:[#allocation138_spill] sm:$0xff] %v16333_v59  ;;  %v16347_v59 = vsub.f32 %v1028_v54, %v5154_v41  ;;  %11761 = vmatpush1.bf16.msra.mxu0 %v16266_v56  ;;  %11379 = vmatprep.subr.bf16.mxu1 %v23031_v8  ;;  %v16351_v25 = vpack.c.bf16 %v3876_v33, %v3872_v39  ;;  %v3880_v54 = vand.u32 4294901760, %v1051_v18  ;;  %v1050_v41 = vld [vmem:[#allocation7 + $0x220] sm:$0xff]  ;;  %v1172_v52 = vld [vmem:[#allocation7 + $0x5f0] sm:$0xff] }
 0x2ff   :  { %23025 = vst [vmem:[#allocation23_spill] sm:$0xff] %v16336_v31  ;;  %23026 = vst [vmem:[#allocation140_spill] sm:$0xff] %v16338_v6  ;;  %v16355_v6 = vsub.f32 %v1043_v7, %v3876_v33  ;;  %v16358_v55 = vpack.c.bf16 %v5160_v53, %v5156_v20  ;;  %v16360_v10 = vsub.f32 %v1037_v9, %v5156_v20  ;;  %v3884_v48 = vand.u32 4294901760, %v1059_v40  ;;  %v1052_v7 = vld [vmem:[#allocation7 + $0x230] sm:$0xff] }
 0x300   :  { %23027 = vst [vmem:[#allocation144_spill] sm:$0xff] %v16340_v42  ;;  %23028 = vst [vmem:[#allocation145_spill] sm:$0xff] %v16342_v16  ;;  %v16353_v42 = vsub.f32 %v1035_v0, %v3872_v39  ;;  %v23035_v16 = vld [vmem:[#allocation35_spill] sm:$0xff]  ;;  %v16363_v56 = vsub.f32 %v1045_v51, %v5160_v53  ;;  %v16365_v8 = vpack.c.bf16 %v3878_v13, %v3874_v61  ;;  %v5164_v0 = vand.u32 4294901760, %v1053_v35  ;;  %v1060_v33 = vld [vmem:[#allocation7 + $0x270] sm:$0xff] }
 0x301   :  { %23029 = vst [vmem:[#allocation24_spill] sm:$0xff] %v16345_v2  ;;  %23030 = vst [vmem:[#allocation25_spill] sm:$0xff] %v16347_v59  ;;  %11763 = vmatprep.subr.bf16.mxu0 %v23035_v16  ;;  %v1058_v59 = vld [vmem:[#allocation7 + $0x260] sm:$0xff]  ;;  %v5168_v39 = vand.u32 4294901760, %v1061_v57  ;;  %v16369_v9 = vsub.f32 %v1034_v11, %v3874_v61  ;;  %v16371_v20 = vsub.f32 %v1042_v58, %v3878_v13  ;;  %v23045_v51 = vld [vmem:[#allocation36_spill] sm:$0xff]  ;;  %v5166_v13 = vand.u32 4294901760, %v1052_v7 }
 0x302   :  { %23032 = vst [vmem:[#allocation224_spill] sm:$0xff] %v16351_v25  ;;  %23033 = vst [vmem:[#allocation225_spill] sm:$0xff] %v16353_v42  ;;  %v23038_v2 = vld [vmem:[#allocation246_spill] sm:$0xff]  ;;  %v1075_v42 = vld [vmem:[#allocation7 + $0x2e8] sm:$0xff]  ;;  %v16377_v53 = vsub.f32 %v1036_v15, %v5158_v50  ;;  %v16383_v58 = vpack.c.bf16 %v3884_v48, %v3880_v54  ;;  %v16385_v61 = vsub.f32 %v1051_v18, %v3880_v54 }
 0x303   :  { %23034 = vst [vmem:[#allocation226_spill] sm:$0xff] %v16355_v6  ;;  %23036 = vst [vmem:[#allocation227_spill] sm:$0xff] %v16358_v55  ;;  %2421 = vmatmul.mubr.f32.vlgmr.msra.gmra.mrb[0].mxu1 %v23038_v2  ;;  %3705 = vmatmul.mubr.f32.vlgmr.msra.gmra.mrb[2].mxu0 %v23038_v2  ;;  %v23041_v16 = vld [vmem:[#allocation42_spill] sm:$0xff]  ;;  %v1067_v6 = vld [vmem:[#allocation7 + $0x2a8] sm:$0xff]  ;;  %v3886_v55 = vand.u32 4294901760, %v1058_v59  ;;  %v16388_v15 = vsub.f32 %v1059_v40, %v3884_v48 }
 0x304   :  { %23037 = vst [vmem:[#allocation228_spill] sm:$0xff] %v16360_v10  ;;  %23039 = vst [vmem:[#allocation229_spill] sm:$0xff] %v16363_v56  ;;  %11381 = vmatpush1.bf16.msra.mxu1 %v23041_v16  ;;  %v16373_v10 = vpack.c.bf16 %v5162_v24, %v5158_v50  ;;  %2556 = vmatprep.mubr.f32.mxu1 %v22806_v34  ;;  %v16379_v56 = vsub.f32 %v1044_v12, %v5162_v24  ;;  %v1069_v25 = vld [vmem:[#allocation7 + $0x2b8] sm:$0xff]  ;;  %v23048_v11 = vld [vmem:[#allocation48_spill] sm:$0xff]  ;;  %v3888_v12 = vand.u32 4294901760, %v1067_v6 }
 0x305   :  { %23040 = vst [vmem:[#allocation230_spill] sm:$0xff] %v16365_v8  ;;  %23042 = vst [vmem:[#allocation231_spill] sm:$0xff] %v16369_v9  ;;  %11765 = vmatpush1.bf16.msra.mxu0 %v23045_v51  ;;  %v3882_v8 = vand.u32 4294901760, %v1050_v41  ;;  %v1077_v16 = vld [vmem:[#allocation7 + $0x2f8] sm:$0xff]  ;;  %3840 = vmatprep.mubr.f32.mxu0 %v22806_v34  ;;  %v23051_v9 = vld [vmem:[#allocation167_spill] sm:$0xff]  ;;  %v16390_v24 = vpack.c.bf16 %v5168_v39, %v5164_v0  ;;  %v3892_v50 = vand.u32 4294901760, %v1075_v42 }
 0x306   :  { %23043 = vst [vmem:[#allocation232_spill] sm:$0xff] %v16371_v20  ;;  %23044 = vst [vmem:[#allocation233_spill] sm:$0xff] %v16373_v10  ;;  %11383 = vmatprep.subr.bf16.mxu1 %v23048_v11  ;;  %v5170_v20 = vand.u32 4294901760, %v1060_v33  ;;  %11767 = vmatprep.subr.bf16.mxu0 %v23051_v9  ;;  %v1066_v51 = vld [vmem:[#allocation7 + $0x2a0] sm:$0xff]  ;;  %v16393_v34 = vsub.f32 %v1053_v35, %v5164_v0  ;;  %v16395_v11 = vsub.f32 %v1061_v57, %v5168_v39  ;;  %v23057_v10 = vld [vmem:[#allocation168_spill] sm:$0xff] }
 0x307   :  { %23046 = vst [vmem:[#allocation234_spill] sm:$0xff] %v16377_v53  ;;  %23047 = vst [vmem:[#allocation235_spill] sm:$0xff] %v16379_v56  ;;  %v1074_v56 = vld [vmem:[#allocation7 + $0x2e0] sm:$0xff]  ;;  %v23054_v53 = vld [vmem:[#allocation53_spill] sm:$0xff]  ;;  %v5172_v18 = vand.u32 4294901760, %v1069_v25  ;;  %v5176_v54 = vand.u32 4294901760, %v1077_v16  ;;  %v16399_v48 = vpack.c.bf16 %v3886_v55, %v3882_v8  ;;  %v16401_v9 = vsub.f32 %v1050_v41, %v3882_v8 }
 0x308   :  { %23049 = vst [vmem:[#allocation236_spill] sm:$0xff] %v16383_v58  ;;  %23050 = vst [vmem:[#allocation237_spill] sm:$0xff] %v16385_v61  ;;  %11385 = vmatpush1.bf16.msra.mxu1 %v23054_v53  ;;  %v1068_v61 = vld [vmem:[#allocation7 + $0x2b0] sm:$0xff]  ;;  %v23058_v40 = vld [vmem:[#allocation57_spill] sm:$0xff]  ;;  %v16406_v35 = vpack.c.bf16 %v5170_v20, %v5166_v13  ;;  %v16408_v57 = vsub.f32 %v1052_v7, %v5166_v13  ;;  %v3890_v0 = vand.u32 4294901760, %v1066_v51  ;;  %v3894_v39 = vand.u32 4294901760, %v1074_v56 }
 0x309   :  { %23052 = vst [vmem:[#allocation238_spill] sm:$0xff] %v16388_v15  ;;  %23053 = vst [vmem:[#allocation239_spill] sm:$0xff] %v16390_v24  ;;  %v1076_v58 = vld [vmem:[#allocation7 + $0x2f0] sm:$0xff]  ;;  %11769 = vmatpush1.bf16.msra.mxu0 %v23057_v10  ;;  %11387 = vmatprep.subr.bf16.mxu1 %v23058_v40  ;;  %v16403_v15 = vsub.f32 %v1058_v59, %v3886_v55  ;;  %v23062_v24 = vld [vmem:[#allocation169_spill] sm:$0xff]  ;;  %v16412_v10 = vpack.c.bf16 %v3892_v50, %v3888_v12  ;;  %v5174_v40 = vand.u32 4294901760, %v1068_v61 }
 0x30a   :  { %23055 = vst [vmem:[#allocation240_spill] sm:$0xff] %v16393_v34  ;;  %23056 = vst [vmem:[#allocation241_spill] sm:$0xff] %v16395_v11  ;;  %11771 = vmatprep.subr.bf16.mxu0 %v23062_v24  ;;  %v1083_v53 = vld [vmem:[#allocation7 + $0x328] sm:$0xff]  ;;  %v16410_v34 = vsub.f32 %v1060_v33, %v5170_v20  ;;  %v1085_v41 = vld [vmem:[#allocation7 + $0x338] sm:$0xff]  ;;  %v16415_v55 = vsub.f32 %v1067_v6, %v3888_v12  ;;  %v16417_v24 = vsub.f32 %v1075_v42, %v3892_v50 }
 0x30b   :  { %23059 = vst [vmem:[#allocation242_spill] sm:$0xff] %v16399_v48  ;;  %23060 = vst [vmem:[#allocation243_spill] sm:$0xff] %v16401_v9  ;;  %v1091_v11 = vld [vmem:[#allocation7 + $0x368] sm:$0xff]  ;;  %v5178_v48 = vand.u32 4294901760, %v1076_v58  ;;  %v1093_v8 = vld [vmem:[#allocation7 + $0x378] sm:$0xff]  ;;  %v16419_v7 = vpack.c.bf16 %v5176_v54, %v5172_v18  ;;  %v16421_v13 = vsub.f32 %v1069_v25, %v5172_v18  ;;  %v16427_v9 = vsub.f32 %v1066_v51, %v3890_v0 }
 0x30c   :  { %23061 = vst [vmem:[#allocation244_spill] sm:$0xff] %v16403_v15  ;;  %23063 = vst [vmem:[#allocation208_spill] sm:$0xff] %v16406_v35  ;;  %v23067_v59 = vld [vmem:[#allocation66_spill] sm:$0xff]  ;;  %v23072_v33 = vld [vmem:[#allocation59_spill] sm:$0xff]  ;;  %v16430_v50 = vpack.c.bf16 %v3894_v39, %v3890_v0  ;;  %v16432_v25 = vsub.f32 %v1074_v56, %v3894_v39  ;;  %v5180_v18 = vand.u32 4294901760, %v1085_v41 }
 0x30d   :  { %23064 = vst [vmem:[#allocation38_spill] sm:$0xff] %v16408_v57  ;;  %23065 = vst [vmem:[#allocation39_spill] sm:$0xff] %v16410_v34  ;;  %11389 = vmatpush1.bf16.msra.mxu1 %v23067_v59  ;;  %v1082_v57 = vld [vmem:[#allocation7 + $0x320] sm:$0xff]  ;;  %11773 = vmatpush1.bf16.msra.mxu0 %v23072_v33  ;;  %v23073_v20 = vld [vmem:[#allocation71_spill] sm:$0xff]  ;;  %v16425_v34 = vsub.f32 %v1077_v16, %v5176_v54  ;;  %v3900_v59 = vand.u32 4294901760, %v1091_v11  ;;  %v16436_v33 = vsub.f32 %v1068_v61, %v5174_v40 }
 0x30e   :  { %23066 = vst [vmem:[#allocation40_spill] sm:$0xff] %v16412_v10  ;;  %23068 = vst [vmem:[#allocation41_spill] sm:$0xff] %v16415_v55  ;;  %v1090_v15 = vld [vmem:[#allocation7 + $0x360] sm:$0xff]  ;;  %11391 = vmatprep.subr.bf16.mxu1 %v23073_v20  ;;  %v3896_v10 = vand.u32 4294901760, %v1083_v53  ;;  %v1084_v6 = vld [vmem:[#allocation7 + $0x330] sm:$0xff]  ;;  %v3898_v16 = vand.u32 4294901760, %v1082_v57 }
 0x30f   :  { %23069 = vst [vmem:[#allocation209_spill] sm:$0xff] %v16417_v24  ;;  %23070 = vst [vmem:[#allocation245_spill] sm:$0xff] %v16419_v7  ;;  %v1092_v12 = vld [vmem:[#allocation7 + $0x370] sm:$0xff]  ;;  %v23076_v42 = vld [vmem:[#allocation62_spill] sm:$0xff]  ;;  %v16434_v24 = vpack.c.bf16 %v5178_v48, %v5174_v40  ;;  %v3902_v54 = vand.u32 4294901760, %v1090_v15  ;;  %v5182_v0 = vand.u32 4294901760, %v1084_v6  ;;  %v16447_v40 = vsub.f32 %v1091_v11, %v3900_v59 }
 0x310   :  { %23071 = vst [vmem:[#allocation43_spill] sm:$0xff] %v16421_v13  ;;  %23074 = vst [vmem:[#allocation44_spill] sm:$0xff] %v16425_v34  ;;  %11775 = vmatprep.subr.bf16.mxu0 %v23076_v42  ;;  %v5184_v13 = vand.u32 4294901760, %v1093_v8  ;;  %v1099_v51 = vld [vmem:[#allocation7 + $0x3a8] sm:$0xff]  ;;  %v16439_v34 = vsub.f32 %v1076_v58, %v5178_v48  ;;  %v16441_v55 = vsub.f32 %v1083_v53, %v3896_v10  ;;  %v5186_v42 = vand.u32 4294901760, %v1092_v12  ;;  %v1101_v56 = vld [vmem:[#allocation7 + $0x3b8] sm:$0xff] }
 0x311   :  { %23075 = vst [vmem:[#allocation45_spill] sm:$0xff] %v16427_v9  ;;  %23077 = vst [vmem:[#allocation46_spill] sm:$0xff] %v16430_v50  ;;  %v1107_v20 = vld [vmem:[#allocation7 + $0x3e8] sm:$0xff]  ;;  %v1109_v39 = vld [vmem:[#allocation7 + $0x3f8] sm:$0xff]  ;;  %v16445_v61 = vpack.c.bf16 %v3900_v59, %v3896_v10  ;;  %v16456_v35 = vpack.c.bf16 %v3902_v54, %v3898_v16  ;;  %v16458_v10 = vsub.f32 %v1082_v57, %v3898_v16  ;;  %v5188_v11 = vand.u32 4294901760, %v1101_v56 }
 0x312   :  { %23078 = vst [vmem:[#allocation47_spill] sm:$0xff] %v16432_v25  ;;  %23079 = vst [vmem:[#allocation49_spill] sm:$0xff] %v16434_v24  ;;  %v23081_v9 = vld [vmem:[#allocation31_spill] sm:$0xff]  ;;  %v1098_v24 = vld [vmem:[#allocation7 + $0x3a0] sm:$0xff]  ;;  %v16452_v48 = vpack.c.bf16 %v5184_v13, %v5180_v18  ;;  %v16454_v53 = vsub.f32 %v1093_v8, %v5184_v13  ;;  %v5192_v59 = vand.u32 4294901760, %v1109_v39  ;;  %v16469_v57 = vsub.f32 %v1092_v12, %v5186_v42 }
 0x313   :  { %23080 = vst [vmem:[#allocation50_spill] sm:$0xff] %v16436_v33  ;;  %11393 = vmatpush1.bf16.msra.mxu1 %v23081_v9  ;;  %23082 = vst [vmem:[#allocation51_spill] sm:$0xff] %v16439_v34  ;;  %v23084_v25 = vld [vmem:[#allocation63_spill] sm:$0xff]  ;;  %v16449_v33 = vsub.f32 %v1085_v41, %v5180_v18  ;;  %v1106_v9 = vld [vmem:[#allocation7 + $0x3e0] sm:$0xff]  ;;  %v3908_v34 = vand.u32 4294901760, %v1107_v20  ;;  %v3906_v18 = vand.u32 4294901760, %v1098_v24 }
 0x314   :  { %23083 = vst [vmem:[#allocation100_spill] sm:$0xff] %v16441_v55  ;;  %11777 = vmatpush1.bf16.msra.mxu0 %v23084_v25  ;;  %v23085_v50 = vld [vmem:[#allocation83_spill] sm:$0xff]  ;;  %23086 = vst [vmem:[#allocation104_spill] sm:$0xff] %v16445_v61  ;;  %v23089_v58 = vld [vmem:[#allocation65_spill] sm:$0xff]  ;;  %v3904_v55 = vand.u32 4294901760, %v1099_v51  ;;  %v16478_v61 = vsub.f32 %v1101_v56, %v5188_v11 }
 0x315   :  { %11395 = vmatprep.subr.bf16.mxu1 %v23085_v50  ;;  %23087 = vst [vmem:[#allocation107_spill] sm:$0xff] %v16447_v40  ;;  %23088 = vst [vmem:[#allocation108_spill] sm:$0xff] %v16449_v33  ;;  %11779 = vmatprep.subr.bf16.mxu0 %v23089_v58  ;;  %v1100_v7 = vld [vmem:[#allocation7 + $0x3b0] sm:$0xff]  ;;  %v23094_v41 = vld [vmem:[#allocation90_spill] sm:$0xff]  ;;  %v16461_v50 = vsub.f32 %v1090_v15, %v3902_v54  ;;  %v16463_v33 = vpack.c.bf16 %v5186_v42, %v5182_v0  ;;  %v3910_v58 = vand.u32 4294901760, %v1106_v9 }
 0x316   :  { %23090 = vst [vmem:[#allocation110_spill] sm:$0xff] %v16452_v48  ;;  %23091 = vst [vmem:[#allocation16_spill] sm:$0xff] %v16454_v53  ;;  %v1108_v25 = vld [vmem:[#allocation7 + $0x3f0] sm:$0xff]  ;;  %v1115_v8 = vld [vmem:[#allocation7 + $0x428] sm:$0xff]  ;;  %v16467_v48 = vsub.f32 %v1084_v6, %v5182_v0  ;;  %v5190_v16 = vand.u32 4294901760, %v1100_v7  ;;  %v16472_v54 = vpack.c.bf16 %v3908_v34, %v3904_v55  ;;  %v16482_v6 = vsub.f32 %v1109_v39, %v5192_v59 }
 0x317   :  { %23092 = vst [vmem:[#allocation113_spill] sm:$0xff] %v16456_v35  ;;  %23093 = vst [vmem:[#allocation115_spill] sm:$0xff] %v16458_v10  ;;  %11397 = vmatpush1.bf16.msra.mxu1 %v23094_v41  ;;  %v1123_v13 = vld [vmem:[#allocation7 + $0x468] sm:$0xff]  ;;  %v23097_v53 = vld [vmem:[#allocation69_spill] sm:$0xff]  ;;  %v5194_v10 = vand.u32 4294901760, %v1108_v25  ;;  %v3912_v12 = vand.u32 4294901760, %v1115_v8  ;;  %v16491_v39 = vsub.f32 %v1106_v9, %v3910_v58 }
 0x318   :  { %23095 = vst [vmem:[#allocation117_spill] sm:$0xff] %v16461_v50  ;;  %23096 = vst [vmem:[#allocation118_spill] sm:$0xff] %v16463_v33  ;;  %11781 = vmatpush1.bf16.msra.mxu0 %v23097_v53  ;;  %v23098_v40 = vld [vmem:[#allocation97_spill] sm:$0xff]  ;;  %v23101_v15 = vld [vmem:[#allocation75_spill] sm:$0xff]  ;;  %v16474_v50 = vsub.f32 %v1099_v51, %v3904_v55  ;;  %v16476_v33 = vsub.f32 %v1107_v20, %v3908_v34  ;;  %v16480_v53 = vpack.c.bf16 %v5192_v59, %v5188_v11 }
 0x319   :  { %11399 = vmatprep.subr.bf16.mxu1 %v23098_v40  ;;  %23099 = vst [vmem:[#allocation119_spill] sm:$0xff] %v16467_v48  ;;  %23100 = vst [vmem:[#allocation148_spill] sm:$0xff] %v16469_v57  ;;  %v1117_v35 = vld [vmem:[#allocation7 + $0x438] sm:$0xff]  ;;  %11783 = vmatprep.subr.bf16.mxu0 %v23101_v15  ;;  %v3916_v0 = vand.u32 4294901760, %v1123_v13  ;;  %v1114_v42 = vld [vmem:[#allocation7 + $0x420] sm:$0xff]  ;;  %v16485_v48 = vpack.c.bf16 %v3910_v58, %v3906_v18  ;;  %v16487_v15 = vsub.f32 %v1098_v24, %v3906_v18 }
 0x31a   :  { %v1125_v41 = vld [vmem:[#allocation7 + $0x478] sm:$0xff]  ;;  %23102 = vst [vmem:[#allocation150_spill] sm:$0xff] %v16472_v54  ;;  %23103 = vst [vmem:[#allocation190_spill] sm:$0xff] %v16474_v50  ;;  %v1122_v40 = vld [vmem:[#allocation7 + $0x460] sm:$0xff]  ;;  %v5196_v55 = vand.u32 4294901760, %v1117_v35  ;;  %v16493_v59 = vpack.c.bf16 %v5194_v10, %v5190_v16  ;;  %v16498_v24 = vsub.f32 %v1108_v25, %v5194_v10  ;;  %v16500_v18 = vsub.f32 %v1115_v8, %v3912_v12 }
 0x31b   :  { %23104 = vst [vmem:[#allocation193_spill] sm:$0xff] %v16476_v33  ;;  %23105 = vst [vmem:[#allocation197_spill] sm:$0xff] %v16478_v61  ;;  %v23108_v57 = vld [vmem:[#allocation103_spill] sm:$0xff]  ;;  %v5200_v51 = vand.u32 4294901760, %v1125_v41  ;;  %v1116_v34 = vld [vmem:[#allocation7 + $0x430] sm:$0xff]  ;;  %v3918_v50 = vand.u32 4294901760, %v1122_v40  ;;  %v16504_v9 = vsub.f32 %v1123_v13, %v3916_v0 }
 0x31c   :  { %23106 = vst [vmem:[#allocation195_spill] sm:$0xff] %v16480_v53  ;;  %23107 = vst [vmem:[#allocation199_spill] sm:$0xff] %v16482_v6  ;;  %11401 = vmatpush1.bf16.msra.mxu1 %v23108_v57  ;;  %v1124_v20 = vld [vmem:[#allocation7 + $0x470] sm:$0xff]  ;;  %v16495_v6 = vsub.f32 %v1100_v7, %v5190_v16  ;;  %v1131_v61 = vld [vmem:[#allocation7 + $0x4a8] sm:$0xff]  ;;  %v16502_v53 = vpack.c.bf16 %v3916_v0, %v3912_v12  ;;  %v5198_v58 = vand.u32 4294901760, %v1116_v34 }
 0x31d   :  { %23109 = vst [vmem:[#allocation198_spill] sm:$0xff] %v16485_v48  ;;  %23110 = vst [vmem:[#allocation52_spill] sm:$0xff] %v16487_v15  ;;  %v23111_v56 = vld [vmem:[#allocation76_spill] sm:$0xff]  ;;  %v1139_v57 = vld [vmem:[#allocation7 + $0x4e8] sm:$0xff]  ;;  %v3914_v15 = vand.u32 4294901760, %v1114_v42  ;;  %v3920_v25 = vand.u32 4294901760, %v1131_v61  ;;  %v16513_v13 = vsub.f32 %v1125_v41, %v5200_v51 }
 0x31e   :  { %11785 = vmatpush1.bf16.msra.mxu0 %v23111_v56  ;;  %v23112_v11 = vld [vmem:[#allocation32_spill] sm:$0xff]  ;;  %23113 = vst [vmem:[#allocation54_spill] sm:$0xff] %v16491_v39  ;;  %23114 = vst [vmem:[#allocation55_spill] sm:$0xff] %v16493_v59  ;;  %v23116_v33 = vld [vmem:[#allocation78_spill] sm:$0xff]  ;;  %v16507_v39 = vpack.c.bf16 %v5200_v51, %v5196_v55  ;;  %v3924_v10 = vand.u32 4294901760, %v1139_v57 }
 0x31f   :  { %11403 = vmatprep.subr.bf16.mxu1 %v23112_v11  ;;  %23115 = vst [vmem:[#allocation56_spill] sm:$0xff] %v16495_v6  ;;  %11787 = vmatprep.subr.bf16.mxu0 %v23116_v33  ;;  %23117 = vst [vmem:[#allocation58_spill] sm:$0xff] %v16498_v24  ;;  %v1133_v48 = vld [vmem:[#allocation7 + $0x4b8] sm:$0xff]  ;;  %v5202_v11 = vand.u32 4294901760, %v1124_v20  ;;  %v1130_v7 = vld [vmem:[#allocation7 + $0x4a0] sm:$0xff]  ;;  %v16509_v33 = vsub.f32 %v1117_v35, %v5196_v55  ;;  %v16515_v0 = vsub.f32 %v1114_v42, %v3914_v15 }
 0x320   :  { %23118 = vst [vmem:[#allocation60_spill] sm:$0xff] %v16500_v18  ;;  %v1141_v56 = vld [vmem:[#allocation7 + $0x4f8] sm:$0xff]  ;;  %23119 = vst [vmem:[#allocation61_spill] sm:$0xff] %v16502_v53  ;;  %v1138_v16 = vld [vmem:[#allocation7 + $0x4e0] sm:$0xff]  ;;  %v16520_v35 = vsub.f32 %v1122_v40, %v3918_v50  ;;  %v3922_v55 = vand.u32 4294901760, %v1130_v7  ;;  %v16533_v40 = vsub.f32 %v1139_v57, %v3924_v10 }
 0x321   :  { %23120 = vst [vmem:[#allocation28_spill] sm:$0xff] %v16504_v9  ;;  %v23121_v6 = vld [vmem:[#allocation114_spill] sm:$0xff]  ;;  %23122 = vst [vmem:[#allocation64_spill] sm:$0xff] %v16507_v39  ;;  %v1132_v8 = vld [vmem:[#allocation7 + $0x4b0] sm:$0xff]  ;;  %v5204_v9 = vand.u32 4294901760, %v1133_v48  ;;  %v5208_v53 = vand.u32 4294901760, %v1141_v56  ;;  %v16522_v31 = vpack.c.bf16 %v5202_v11, %v5198_v58 }
 0x322   :  { %11405 = vmatpush1.bf16.msra.mxu1 %v23121_v6  ;;  %23123 = vst [vmem:[#allocation67_spill] sm:$0xff] %v16509_v33  ;;  %v1140_v18 = vld [vmem:[#allocation7 + $0x4f0] sm:$0xff]  ;;  %v23124_v24 = vld [vmem:[#allocation82_spill] sm:$0xff]  ;;  %23126 = vst [vmem:[#allocation68_spill] sm:$0xff] %v16513_v13  ;;  %v16518_v6 = vpack.c.bf16 %v3918_v50, %v3914_v15  ;;  %v3926_v33 = vand.u32 4294901760, %v1138_v16  ;;  %v5206_v41 = vand.u32 4294901760, %v1132_v8  ;;  %v16527_v13 = vsub.f32 %v1124_v20, %v5202_v11 }
 0x323   :  { %11789 = vmatpush1.bf16.msra.mxu0 %v23124_v24  ;;  %v23125_v12 = vld [vmem:[#allocation18_spill] sm:$0xff]  ;;  %23127 = vst [vmem:[#allocation70_spill] sm:$0xff] %v16515_v0  ;;  %v23128_v59 = vld [vmem:[#allocation87_spill] sm:$0xff]  ;;  %23130 = vst [vmem:[#allocation73_spill] sm:$0xff] %v16520_v35  ;;  %v16524_v24 = vsub.f32 %v1116_v34, %v5198_v58  ;;  %v5210_v51 = vand.u32 4294901760, %v1140_v18  ;;  %v16529_v15 = vpack.c.bf16 %v3924_v10, %v3920_v25 }
 0x324   :  { %11407 = vmatprep.subr.bf16.mxu1 %v23125_v12  ;;  %11791 = vmatprep.subr.bf16.mxu0 %v23128_v59  ;;  %23129 = vst [vmem:[#allocation72_spill] sm:$0xff] %v16518_v6  ;;  %v1147_v39 = vld [vmem:[#allocation7 + $0x528] sm:$0xff]  ;;  %23131 = vst [vmem:[#allocation74_spill] sm:$0xff] %v16522_v31  ;;  %v1149_v42 = vld [vmem:[#allocation7 + $0x538] sm:$0xff]  ;;  %v16531_v50 = vsub.f32 %v1131_v61, %v3920_v25  ;;  %v16537_v34 = vpack.c.bf16 %v5208_v53, %v5204_v9 }
 0x325   :  { %v1155_v54 = vld [vmem:[#allocation7 + $0x568] sm:$0xff]  ;;  %23132 = vst [vmem:[#allocation30_spill] sm:$0xff] %v16524_v24  ;;  %v1157_v12 = vld [vmem:[#allocation7 + $0x578] sm:$0xff]  ;;  %v23133_v0 = vld [vmem:[#allocation126_spill] sm:$0xff]  ;;  %v16539_v58 = vsub.f32 %v1133_v48, %v5204_v9  ;;  %v3928_v24 = vand.u32 4294901760, %v1147_v39  ;;  %v16544_v61 = vpack.c.bf16 %v3926_v33, %v3922_v55  ;;  %v5212_v57 = vand.u32 4294901760, %v1149_v42 }
 0x326   :  { %11409 = vmatpush1.bf16.msra.mxu1 %v23133_v0  ;;  %23134 = vst [vmem:[#allocation77_spill] sm:$0xff] %v16527_v13  ;;  %23135 = vst [vmem:[#allocation79_spill] sm:$0xff] %v16529_v15  ;;  %v23138_v59 = vld [vmem:[#allocation88_spill] sm:$0xff]  ;;  %v23139_v35 = vld [vmem:[#allocation21_spill] sm:$0xff]  ;;  %v3932_v31 = vand.u32 4294901760, %v1155_v54  ;;  %v16542_v13 = vsub.f32 %v1141_v56, %v5208_v53  ;;  %v5216_v25 = vand.u32 4294901760, %v1157_v12  ;;  %v16550_v48 = vpack.c.bf16 %v5210_v51, %v5206_v41 }
 0x327   :  { %23136 = vst [vmem:[#allocation80_spill] sm:$0xff] %v16531_v50  ;;  %23137 = vst [vmem:[#allocation81_spill] sm:$0xff] %v16533_v40  ;;  %11793 = vmatpush1.bf16.msra.mxu0 %v23138_v59  ;;  %11411 = vmatprep.subr.bf16.mxu1 %v23139_v35  ;;  %v1146_v6 = vld [vmem:[#allocation7 + $0x520] sm:$0xff]  ;;  %v1148_v20 = vld [vmem:[#allocation7 + $0x530] sm:$0xff]  ;;  %v16546_v59 = vsub.f32 %v1130_v7, %v3922_v55  ;;  %v16548_v35 = vsub.f32 %v1138_v16, %v3926_v33 }
 0x328   :  { %23140 = vst [vmem:[#allocation84_spill] sm:$0xff] %v16537_v34  ;;  %23141 = vst [vmem:[#allocation85_spill] sm:$0xff] %v16539_v58  ;;  %v1154_v0 = vld [vmem:[#allocation7 + $0x560] sm:$0xff]  ;;  %v23142_v11 = vld [vmem:[#allocation92_spill] sm:$0xff]  ;;  %v16552_v9 = vsub.f32 %v1132_v8, %v5206_v41  ;;  %v16555_v53 = vsub.f32 %v1140_v18, %v5210_v51  ;;  %v3930_v56 = vand.u32 4294901760, %v1146_v6  ;;  %v16559_v33 = vpack.c.bf16 %v3932_v31, %v3928_v24 }
 0x329   :  { %11795 = vmatprep.subr.bf16.mxu0 %v23142_v11  ;;  %23143 = vst [vmem:[#allocation86_spill] sm:$0xff] %v16542_v13  ;;  %23144 = vst [vmem:[#allocation89_spill] sm:$0xff] %v16544_v61  ;;  %v1156_v10 = vld [vmem:[#allocation7 + $0x570] sm:$0xff]  ;;  %v1163_v58 = vld [vmem:[#allocation7 + $0x5a8] sm:$0xff]  ;;  %v3934_v11 = vand.u32 4294901760, %v1154_v0  ;;  %v5214_v13 = vand.u32 4294901760, %v1148_v20  ;;  %v16561_v8 = vsub.f32 %v1147_v39, %v3928_v24  ;;  %v16563_v41 = vsub.f32 %v1155_v54, %v3932_v31 }
 0x32a   :  { %23145 = vst [vmem:[#allocation91_spill] sm:$0xff] %v16546_v59  ;;  %23146 = vst [vmem:[#allocation93_spill] sm:$0xff] %v16548_v35  ;;  %v1171_v40 = vld [vmem:[#allocation7 + $0x5e8] sm:$0xff]  ;;  %v1165_v50 = vld [vmem:[#allocation7 + $0x5b8] sm:$0xff]  ;;  %v16566_v18 = vpack.c.bf16 %v5216_v25, %v5212_v57  ;;  %v16568_v51 = vsub.f32 %v1149_v42, %v5212_v57  ;;  %v16571_v39 = vsub.f32 %v1157_v12, %v5216_v25 }
 0x32b   :  { %23147 = vst [vmem:[#allocation94_spill] sm:$0xff] %v16550_v48  ;;  %23148 = vst [vmem:[#allocation95_spill] sm:$0xff] %v16552_v9  ;;  %v23149_v34 = vld [vmem:[#allocation137_spill] sm:$0xff]  ;;  %v1162_v15 = vld [vmem:[#allocation7 + $0x5a0] sm:$0xff]  ;;  %v5218_v9 = vand.u32 4294901760, %v1156_v10  ;;  %v3940_v35 = vand.u32 4294901760, %v1171_v40  ;;  %v16573_v31 = vpack.c.bf16 %v3934_v11, %v3930_v56  ;;  %v16575_v54 = vsub.f32 %v1146_v6, %v3930_v56 }
 0x32c   :  { %11413 = vmatpush1.bf16.msra.mxu1 %v23149_v34  ;;  %23150 = vst [vmem:[#allocation98_spill] sm:$0xff] %v16555_v53  ;;  %v1173_v61 = vld [vmem:[#allocation7 + $0x5f8] sm:$0xff]  ;;  %v1170_v7 = vld [vmem:[#allocation7 + $0x5e0] sm:$0xff]  ;;  %v23151_v55 = vld [vmem:[#allocation96_spill] sm:$0xff]  ;;  %v3936_v53 = vand.u32 4294901760, %v1163_v58  ;;  %v5220_v48 = vand.u32 4294901760, %v1165_v50  ;;  %v16577_v24 = vsub.f32 %v1154_v0, %v3934_v11 }
 0x32d   :  { %11797 = vmatpush1.bf16.msra.mxu0 %v23151_v55  ;;  %v23152_v16 = vld [vmem:[#allocation143_spill] sm:$0xff]  ;;  %23153 = vst [vmem:[#allocation99_spill] sm:$0xff] %v16559_v33  ;;  %23154 = vst [vmem:[#allocation15_spill] sm:$0xff] %v16561_v8  ;;  %v23156_v34 = vld [vmem:[#allocation101_spill] sm:$0xff]  ;;  %v5224_v55 = vand.u32 4294901760, %v1173_v61  ;;  %v3938_v3 = vand.u32 4294901760, %v1162_v15  ;;  %v16585_v8 = vsub.f32 %v1156_v10, %v5218_v9  ;;  %v16592_v56 = vsub.f32 %v1171_v40, %v3940_v35 }
 0x32e   :  { %11415 = vmatprep.subr.bf16.mxu1 %v23152_v16  ;;  %23155 = vst [vmem:[#allocation106_spill] sm:$0xff] %v16563_v41  ;;  %11799 = vmatprep.subr.bf16.mxu0 %v23156_v34  ;;  %23157 = vst [vmem:[#allocation111_spill] sm:$0xff] %v16566_v18  ;;  %v1164_v59 = vld [vmem:[#allocation7 + $0x5b0] sm:$0xff]  ;;  %v3942_v16 = vand.u32 4294901760, %v1170_v7  ;;  %v23159_v33 = vld [vmem:[#allocation147_spill] sm:$0xff]  ;;  %v16583_v41 = vsub.f32 %v1148_v20, %v5214_v13  ;;  %v16588_v6 = vpack.c.bf16 %v3940_v35, %v3936_v53 }
 0x32f   :  { %23158 = vst [vmem:[#allocation141_spill] sm:$0xff] %v16568_v51  ;;  %23160 = vst [vmem:[#allocation154_spill] sm:$0xff] %v16571_v39  ;;  %v1179_v42 = vld [vmem:[#allocation7 + $0x628] sm:$0xff]  ;;  %v23164_v57 = vld [vmem:[#allocation102_spill] sm:$0xff]  ;;  %v16581_v51 = vpack.c.bf16 %v5218_v9, %v5214_v13  ;;  %v16590_v0 = vsub.f32 %v1163_v58, %v3936_v53  ;;  %v5226_v11 = vand.u32 4294901760, %v1172_v52  ;;  %v16596_v13 = vsub.f32 %v1165_v50, %v5220_v48 }
 0x330   :  { %11417 = vmatpush1.bf16.msra.mxu1 %v23159_v33  ;;  %23161 = vst [vmem:[#allocation26_spill] sm:$0xff] %v16573_v31  ;;  %23162 = vst [vmem:[#allocation27_spill] sm:$0xff] %v16575_v54  ;;  %v23165_v34 = vld [vmem:[#allocation152_spill] sm:$0xff]  ;;  %v5222_v33 = vand.u32 4294901760, %v1164_v59  ;;  %v1187_v12 = vld [vmem:[#allocation7 + $0x668] sm:$0xff]  ;;  %v16598_v20 = vsub.f32 %v1173_v61, %v5224_v55  ;;  %v16600_v10 = vpack.c.bf16 %v3942_v16, %v3938_v3 }
 0x331   :  { %23163 = vst [vmem:[#allocation156_spill] sm:$0xff] %v16577_v24  ;;  %11801 = vmatpush1.bf16.msra.mxu0 %v23164_v57  ;;  %11419 = vmatprep.subr.bf16.mxu1 %v23165_v34  ;;  %23166 = vst [vmem:[#allocation157_spill] sm:$0xff] %v16581_v51  ;;  %v1181_v25 = vld [vmem:[#allocation7 + $0x638] sm:$0xff]  ;;  %v1178_v57 = vld [vmem:[#allocation7 + $0x620] sm:$0xff]  ;;  %v16594_v24 = vpack.c.bf16 %v5224_v55, %v5220_v48  ;;  %v3948_v58 = vand.u32 4294901760, %v1187_v12  ;;  %v16605_v50 = vsub.f32 %v1162_v15, %v3938_v3 }
 0x332   :  { %23167 = vst [vmem:[#allocation158_spill] sm:$0xff] %v16583_v41  ;;  %23168 = vst [vmem:[#allocation159_spill] sm:$0xff] %v16585_v8  ;;  %v1189_v39 = vld [vmem:[#allocation7 + $0x678] sm:$0xff]  ;;  %v1186_v34 = vld [vmem:[#allocation7 + $0x660] sm:$0xff]  ;;  %v3944_v41 = vand.u32 4294901760, %v1179_v42  ;;  %v5228_v53 = vand.u32 4294901760, %v1181_v25  ;;  %v16607_v61 = vsub.f32 %v1170_v7, %v3942_v16 }
 0x333   :  { %v23169_v31 = vld [vmem:[#allocation105_spill] sm:$0xff]  ;;  %23170 = vst [vmem:[#allocation160_spill] sm:$0xff] %v16588_v6  ;;  %23171 = vst [vmem:[#allocation161_spill] sm:$0xff] %v16590_v0  ;;  %v1180_v9 = vld [vmem:[#allocation7 + $0x630] sm:$0xff]  ;;  %v5232_v40 = vand.u32 4294901760, %v1189_v39  ;;  %v3946_v48 = vand.u32 4294901760, %v1178_v57 }
 0x334   :  { %11803 = vmatprep.subr.bf16.mxu0 %v23169_v31  ;;  %23172 = vst [vmem:[#allocation33_spill] sm:$0xff] %v16592_v56  ;;  %23173 = vst [vmem:[#allocation162_spill] sm:$0xff] %v16594_v24  ;;  %v1188_v8 = vld [vmem:[#allocation7 + $0x670] sm:$0xff]  ;;  %v23177_v31 = vld [vmem:[#allocation155_spill] sm:$0xff]  ;;  %v3950_v55 = vand.u32 4294901760, %v1186_v34  ;;  %v16616_v24 = vsub.f32 %v1179_v42, %v3944_v41  ;;  %v5230_v51 = vand.u32 4294901760, %v1180_v9 }
 0x335   :  { %23174 = vst [vmem:[#allocation164_spill] sm:$0xff] %v16596_v13  ;;  %23175 = vst [vmem:[#allocation34_spill] sm:$0xff] %v16598_v20  ;;  %11421 = vmatpush1.bf16.msra.mxu1 %v23177_v31  ;;  %v1195_v35 = vld [vmem:[#allocation7 + $0x6a8] sm:$0xff]  ;;  %v23178_v0 = vld [vmem:[#allocation109_spill] sm:$0xff]  ;;  %v16610_v13 = vpack.c.bf16 %v5226_v11, %v5222_v33  ;;  %v16612_v31 = vsub.f32 %v1164_v59, %v5222_v33  ;;  %v16623_v59 = vpack.c.bf16 %v5232_v40, %v5228_v53 }
 0x336   :  { %23176 = vst [vmem:[#allocation165_spill] sm:$0xff] %v16600_v10  ;;  %v1203_v56 = vld [vmem:[#allocation7 + $0x6e8] sm:$0xff]  ;;  %11805 = vmatpush1.bf16.msra.mxu0 %v23178_v0  ;;  %v23179_v54 = vld [vmem:[#allocation29_spill] sm:$0xff]  ;;  %23180 = vst [vmem:[#allocation166_spill] sm:$0xff] %v16605_v50  ;;  %v16614_v10 = vsub.f32 %v1172_v52, %v5226_v11  ;;  %v3952_v3 = vand.u32 4294901760, %v1195_v35  ;;  %v16619_v50 = vpack.c.bf16 %v3948_v58, %v3944_v41 }
 0x337   :  { %11423 = vmatprep.subr.bf16.mxu1 %v23179_v54  ;;  %23181 = vst [vmem:[#allocation142_spill] sm:$0xff] %v16607_v61  ;;  %v23182_v20 = vld [vmem:[#allocation17_spill] sm:$0xff]  ;;  %23183 = vst [vmem:[#allocation146_spill] sm:$0xff] %v16610_v13  ;;  %v5234_v54 = vand.u32 4294901760, %v1188_v8  ;;  %v3956_v15 = vand.u32 4294901760, %v1203_v56  ;;  %v1194_v7 = vld [vmem:[#allocation7 + $0x6a0] sm:$0xff]  ;;  %v16625_v52 = vsub.f32 %v1181_v25, %v5228_v53  ;;  %v16629_v11 = vsub.f32 %v1189_v39, %v5232_v40 }
 0x338   :  { %11807 = vmatprep.subr.bf16.mxu0 %v23182_v20  ;;  %23184 = vst [vmem:[#allocation170_spill] sm:$0xff] %v16612_v31  ;;  %23185 = vst [vmem:[#allocation171_spill] sm:$0xff] %v16614_v10  ;;  %v1197_v6 = vld [vmem:[#allocation7 + $0x6b8] sm:$0xff]  ;;  %v1202_v16 = vld [vmem:[#allocation7 + $0x6e0] sm:$0xff]  ;;  %v16621_v20 = vsub.f32 %v1187_v12, %v3948_v58  ;;  %v16634_v12 = vsub.f32 %v1178_v57, %v3946_v48  ;;  %v16636_v58 = vsub.f32 %v1186_v34, %v3950_v55 }
 0x339   :  { %23186 = vst [vmem:[#allocation172_spill] sm:$0xff] %v16616_v24  ;;  %v1205_v0 = vld [vmem:[#allocation7 + $0x6f8] sm:$0xff]  ;;  %v23187_v61 = vld [vmem:[#allocation163_spill] sm:$0xff]  ;;  %23188 = vst [vmem:[#allocation173_spill] sm:$0xff] %v16619_v50  ;;  %v16631_v24 = vpack.c.bf16 %v3950_v55, %v3946_v48  ;;  %v5236_v10 = vand.u32 4294901760, %v1197_v6  ;;  %v3954_v25 = vand.u32 4294901760, %v1194_v7  ;;  %v16642_v39 = vsub.f32 %v1188_v8, %v5234_v54 }
 0x33a   :  { %11425 = vmatpush1.bf16.msra.mxu1 %v23187_v61  ;;  %23189 = vst [vmem:[#allocation174_spill] sm:$0xff] %v16621_v20  ;;  %23190 = vst [vmem:[#allocation175_spill] sm:$0xff] %v16623_v59  ;;  %v23192_v42 = vld [vmem:[#allocation112_spill] sm:$0xff]  ;;  %v5240_v31 = vand.u32 4294901760, %v1205_v0  ;;  %v3958_v53 = vand.u32 4294901760, %v1202_v16  ;;  %v16644_v40 = vpack.c.bf16 %v3956_v15, %v3952_v3  ;;  %v1213_v20 = vld [vmem:[#allocation7 + $0x738] sm:$0xff]  ;;  %v16649_v57 = vsub.f32 %v1203_v56, %v3956_v15 }
 0x33b   :  { %23191 = vst [vmem:[#allocation176_spill] sm:$0xff] %v16625_v52  ;;  %11809 = vmatpush1.bf16.msra.mxu0 %v23192_v42  ;;  %v23193_v33 = vld [vmem:[#allocation116_spill] sm:$0xff]  ;;  %23194 = vst [vmem:[#allocation177_spill] sm:$0xff] %v16629_v11  ;;  %v16638_v52 = vpack.c.bf16 %v5234_v54, %v5230_v51  ;;  %v16640_v42 = vsub.f32 %v1180_v9, %v5230_v51  ;;  %v1219_v11 = vld [vmem:[#allocation7 + $0x768] sm:$0xff]  ;;  %v16655_v54 = vsub.f32 %v1197_v6, %v5236_v10 }
 0x33c   :  { %11427 = vmatprep.subr.bf16.mxu1 %v23193_v33  ;;  %23195 = vst [vmem:[#allocation178_spill] sm:$0xff] %v16631_v24  ;;  %v1196_v13 = vld [vmem:[#allocation7 + $0x6b0] sm:$0xff]  ;;  %23197 = vst [vmem:[#allocation179_spill] sm:$0xff] %v16634_v12  ;;  %v1211_v33 = vld [vmem:[#allocation7 + $0x728] sm:$0xff]  ;;  %v16653_v9 = vpack.c.bf16 %v5240_v31, %v5236_v10  ;;  %v16660_v56 = vpack.c.bf16 %v3958_v53, %v3954_v25  ;;  %v16662_v15 = vsub.f32 %v1194_v7, %v3954_v25 }
 0x33d   :  { %v1204_v61 = vld [vmem:[#allocation7 + $0x6f0] sm:$0xff]  ;;  %23198 = vst [vmem:[#allocation180_spill] sm:$0xff] %v16636_v58  ;;  %23199 = vst [vmem:[#allocation181_spill] sm:$0xff] %v16638_v52  ;;  %v23203_v24 = vld [vmem:[#allocation123_spill] sm:$0xff]  ;;  %v5238_v34 = vand.u32 4294901760, %v1196_v13  ;;  %v16665_v10 = vsub.f32 %v1202_v16, %v3958_v53 }
 0x33e   :  { %v23196_v41 = vld [vmem:[#allocation120_spill] sm:$0xff]  ;;  %23200 = vst [vmem:[#allocation182_spill] sm:$0xff] %v16640_v42  ;;  %23201 = vst [vmem:[#allocation183_spill] sm:$0xff] %v16642_v39  ;;  %11429 = vmatpush1.bf16.msra.mxu1 %v23203_v24  ;;  %v5242_v48 = vand.u32 4294901760, %v1204_v61  ;;  %v1221_v55 = vld [vmem:[#allocation7 + $0x778] sm:$0xff]  ;;  %v16657_v39 = vsub.f32 %v1205_v0, %v5240_v31 }
 0x33f   :  { %11811 = vmatprep.subr.bf16.mxu0 %v23196_v41  ;;  %23202 = vst [vmem:[#allocation184_spill] sm:$0xff] %v16644_v40  ;;  %v16647_v41 = vsub.f32 %v1195_v35, %v3952_v3  ;;  %23205 = vst [vmem:[#allocation187_spill] sm:$0xff] %v16649_v57  ;;  %v1210_v58 = vld [vmem:[#allocation7 + $0x720] sm:$0xff]  ;;  %v23206_v51 = vld [vmem:[#allocation124_spill] sm:$0xff]  ;;  %v3960_v57 = vand.u32 4294901760, %v1211_v33  ;;  %v5244_v40 = vand.u32 4294901760, %v1213_v20  ;;  %v16671_v25 = vsub.f32 %v1196_v13, %v5238_v34 }
 0x340   :  { %v1218_v12 = vld [vmem:[#allocation7 + $0x760] sm:$0xff]  ;;  %11813 = vmatpush1.bf16.msra.mxu0 %v23206_v51  ;;  %v23207_v8 = vld [vmem:[#allocation128_spill] sm:$0xff]  ;;  %23208 = vst [vmem:[#allocation188_spill] sm:$0xff] %v16653_v9  ;;  %23209 = vst [vmem:[#allocation191_spill] sm:$0xff] %v16655_v54  ;;  %v3962_v52 = vand.u32 4294901760, %v1210_v58  ;;  %v16667_v31 = vpack.c.bf16 %v5242_v48, %v5238_v34 }
 0x341   :  { %23204 = vst [vmem:[#allocation185_spill] sm:$0xff] %v16647_v41  ;;  %11431 = vmatprep.subr.bf16.mxu1 %v23207_v8  ;;  %23210 = vst [vmem:[#allocation194_spill] sm:$0xff] %v16657_v39  ;;  %v1212_v24 = vld [vmem:[#allocation7 + $0x730] sm:$0xff]  ;;  %v23211_v3 = vld [vmem:[#allocation131_spill] sm:$0xff]  ;;  %v3964_v41 = vand.u32 4294901760, %v1219_v11  ;;  %v5248_v8 = vand.u32 4294901760, %v1221_v55  ;;  %v16678_v53 = vsub.f32 %v1211_v33, %v3960_v57 }
 0x342   :  { %v1220_v35 = vld [vmem:[#allocation7 + $0x770] sm:$0xff]  ;;  %11815 = vmatprep.subr.bf16.mxu0 %v23211_v3  ;;  %23212 = vst [vmem:[#allocation200_spill] sm:$0xff] %v16660_v56  ;;  %23213 = vst [vmem:[#allocation202_spill] sm:$0xff] %v16662_v15  ;;  %v1227_v42 = vld [vmem:[#allocation7 + $0x7a8] sm:$0xff]  ;;  %v3966_v9 = vand.u32 4294901760, %v1218_v12  ;;  %v5246_v0 = vand.u32 4294901760, %v1212_v24  ;;  %v16673_v15 = vsub.f32 %v1204_v61, %v5242_v48  ;;  %v16690_v34 = vsub.f32 %v1210_v58, %v3962_v52 }
 0x343   :  { %v1235_v51 = vld [vmem:[#allocation7 + $0x7e8] sm:$0xff]  ;;  %23215 = vst [vmem:[#allocation203_spill] sm:$0xff] %v16665_v10  ;;  %23216 = vst [vmem:[#allocation205_spill] sm:$0xff] %v16667_v31  ;;  %v5250_v3 = vand.u32 4294901760, %v1220_v35  ;;  %v23217_v39 = vld [vmem:[#allocation136_spill] sm:$0xff]  ;;  %v3968_v54 = vand.u32 4294901760, %v1227_v42  ;;  %v16676_v16 = vpack.c.bf16 %v3964_v41, %v3960_v57  ;;  %v16682_v10 = vsub.f32 %v1213_v20, %v5244_v40 }
 0x344   :  { %v23214_v6 = vld [vmem:[#allocation135_spill] sm:$0xff]  ;;  %11817 = vmatpush1.bf16.msra.mxu0 %v23217_v39  ;;  %23219 = vst [vmem:[#allocation206_spill] sm:$0xff] %v16673_v15  ;;  %v3972_v56 = vand.u32 4294901760, %v1235_v51  ;;  %v1229_v59 = vld [vmem:[#allocation7 + $0x7b8] sm:$0xff]  ;;  %v23220_v18 = vld [vmem:[#allocation186_spill] sm:$0xff]  ;;  %v16684_v39 = vpack.c.bf16 %v5248_v8, %v5244_v40  ;;  %v16686_v13 = vsub.f32 %v1221_v55, %v5248_v8  ;;  %v16688_v61 = vpack.c.bf16 %v3966_v9, %v3962_v52 }
 0x345   :  { %11433 = vmatpush1.bf16.msra.mxu1 %v23214_v6  ;;  %v23218_v7 = vld [vmem:[#allocation139_spill] sm:$0xff]  ;;  %v1237_v50 = vld [vmem:[#allocation7 + $0x7f8] sm:$0xff]  ;;  %11819 = vmatprep.subr.bf16.mxu0 %v23220_v18  ;;  %23221 = vst [vmem:[#allocation37_spill] sm:$0xff] %v16676_v16  ;;  %23222 = vst [vmem:[#allocation35_spill] sm:$0xff] %v16678_v53  ;;  %v16680_v6 = vsub.f32 %v1219_v11, %v3964_v41  ;;  %v16693_v18 = vsub.f32 %v1218_v12, %v3966_v9  ;;  %v5252_v11 = vand.u32 4294901760, %v1229_v59 }
 0x346   :  { %11435 = vmatprep.subr.bf16.mxu1 %v23218_v7  ;;  %23224 = vst [vmem:[#allocation36_spill] sm:$0xff] %v16682_v10  ;;  %23225 = vst [vmem:[#allocation48_spill] sm:$0xff] %v16684_v39  ;;  %v1226_v48 = vld [vmem:[#allocation7 + $0x7a0] sm:$0xff]  ;;  %v23229_v15 = vld [vmem:[#allocation189_spill] sm:$0xff]  ;;  %v16695_v33 = vpack.c.bf16 %v5250_v3, %v5246_v0  ;;  %v5256_v41 = vand.u32 4294901760, %v1237_v50  ;;  %v16701_v8 = vsub.f32 %v1212_v24, %v5246_v0  ;;  %v21303_v12 = vand.u32 4294901760, %v16270_v28 }
 0x347   :  { %23223 = vst [vmem:[#allocation42_spill] sm:$0xff] %v16680_v6  ;;  %23226 = vst [vmem:[#allocation167_spill] sm:$0xff] %v16686_v13  ;;  %v1234_v7 = vld [vmem:[#allocation7 + $0x7e0] sm:$0xff]  ;;  %v1228_v20 = vld [vmem:[#allocation7 + $0x7b0] sm:$0xff]  ;;  %v16703_v52 = vsub.f32 %v1220_v35, %v5250_v3  ;;  %v16705_v58 = vpack.c.bf16 %v3972_v56, %v3968_v54  ;;  %v16709_v9 = vsub.f32 %v1227_v42, %v3968_v54  ;;  %v21306_v42 = vand.u32 4294901760, %v16276_v22 }
 0x348   :  { %23227 = vst [vmem:[#allocation53_spill] sm:$0xff] %v16688_v61  ;;  %23228 = vst [vmem:[#allocation168_spill] sm:$0xff] %v16690_v34  ;;  %v16697_v57 = vld [vmem:[#allocation7 + $0x7f0] sm:$0xff]  ;;  %v21304_v34 = vand.u32 4294901760, %v16272_v1  ;;  %v16712_v13 = vsub.f32 %v1235_v51, %v3972_v56  ;;  %v5254_v24 = vand.u32 4294901760, %v1228_v20  ;;  %v23240_v0 = vld [vmem:[#allocation201_spill] sm:$0xff]  ;;  %v16718_v3 = vpack.c.bf16 %v5256_v41, %v5252_v11 }
 0x349   :  { %11437 = vmatpush1.bf16.msra.mxu1 %v23229_v15  ;;  %23230 = vst [vmem:[#allocation57_spill] sm:$0xff] %v16693_v18  ;;  %23231 = vst [vmem:[#allocation169_spill] sm:$0xff] %v16695_v33  ;;  %v23232_v40 = vld [vmem:[#allocation192_spill] sm:$0xff]  ;;  %v3970_v15 = vand.u32 4294901760, %v1226_v48  ;;  %v3974_v18 = vand.u32 4294901760, %v1234_v7  ;;  %v21305_v35 = vand.u32 4294901760, %v16697_v57 }
 0x34a   :  { %11821 = vmatpush1.bf16.msra.mxu0 %v23232_v40  ;;  %v23233_v55 = vld [vmem:[#allocation196_spill] sm:$0xff]  ;;  %23234 = vst [vmem:[#allocation66_spill] sm:$0xff] %v16701_v8  ;;  %23235 = vst [vmem:[#allocation59_spill] sm:$0xff] %v16703_v52  ;;  %v16714_v40 = vsub.f32 %v1229_v59, %v5252_v11  ;;  %v16730_v59 = vsub.f32 %v16270_v28, %v21303_v12  ;;  %v21307_v56 = vand.u32 4294901760, %v16278_v37 }
 0x34b   :  { %11439 = vmatprep.subr.bf16.mxu1 %v23233_v55  ;;  %23236 = vst [vmem:[#allocation71_spill] sm:$0xff] %v16705_v58  ;;  %11823 = vmatprep.subr.bf16.mxu0 %v22788_v49  ;;  %23237 = vst [vmem:[#allocation62_spill] sm:$0xff] %v16709_v9  ;;  %v16720_v55 = vsub.f32 %v1237_v50, %v5256_v41  ;;  %v16722_v49 = vsub.f32 %v1226_v48, %v3970_v15  ;;  %v23244_v54 = vld [vmem:[#allocation204_spill] sm:$0xff] }
 0x34c   :  { %23238 = vst [vmem:[#allocation31_spill] sm:$0xff] %v16712_v13  ;;  %23239 = vst [vmem:[#allocation63_spill] sm:$0xff] %v16714_v40  ;;  %v16736_v48 = vpack.c.bf16 %v3974_v18, %v3970_v15  ;;  %v16738_v11 = vsub.f32 %v1234_v7, %v3974_v18  ;;  %v4008_v41 = vsub.f32 %v16272_v1, %v21304_v34  ;;  %v23249_v12 = vld [vmem:[#allocation252_spill] sm:$0xff]  ;;  %v3997_v51 = vand.u32 4294901760, %v16730_v59  ;;  %v23370_v13 = vld [vmem:[#allocation111_spill] sm:$0xff] }
 0x34d   :  { %11441 = vmatpush1.bf16.msra.mxu1 %v23240_v0  ;;  %23241 = vst [vmem:[#allocation83_spill] sm:$0xff] %v16718_v3  ;;  %23242 = vst [vmem:[#allocation65_spill] sm:$0xff] %v16720_v55  ;;  %v21312_v0 = vand.u32 4294901760, %v16288_v5  ;;  %v16753_v7 = vpack.c.bf16 %v21305_v35, %v5254_v24  ;;  %v16755_v18 = vsub.f32 %v1228_v20, %v5254_v24  ;;  %v23250_v35 = vand.u32 4294901760, %v16282_v19  ;;  %v23311_v1 = vld [vmem:[#allocation240_spill] sm:$0xff]  ;;  %v23319_v55 = vld [vmem:[#allocation150_spill] sm:$0xff] }
 0x34e   :  { %23243 = vst [vmem:[#allocation90_spill] sm:$0xff] %v16722_v49  ;;  %11825 = vmatpush1.bf16.msra.mxu0 %v23244_v54  ;;  %11827 = vmatprep.subr.bf16.mxu1 %v16268_v17  ;;  %23245 = vst [vmem:[#allocation69_spill] sm:$0xff] %v16736_v48  ;;  %v5280_v15 = vsub.f32 %v16276_v22, %v21306_v42  ;;  %v5292_v50 = vsub.f32 %v16278_v37, %v21307_v56  ;;  %v23251_v24 = vand.u32 4294901760, %v16284_v43  ;;  %v23309_v22 = vld [vmem:[#allocation49_spill] sm:$0xff]  ;;  %v23318_v49 = vld [vmem:[#allocation118_spill] sm:$0xff] }
 0x34f   :  { %12211 = vmatprep.subr.bf16.mxu0 %v16274_v29  ;;  %23246 = vst [vmem:[#allocation97_spill] sm:$0xff] %v16738_v11  ;;  %23247 = vst [vmem:[#allocation75_spill] sm:$0xff] %v16753_v7  ;;  %v4002_v20 = vsub.f32 %v16282_v19, %v23250_v35  ;;  %v4009_v34 = vand.u32 4294901760, %v4008_v41  ;;  %v5286_v59 = vsub.f32 %v16288_v5, %v21312_v0  ;;  %v23252_v35 = vand.u32 4294901760, %v16290_v46  ;;  %v23299_v19 = vld [vmem:[#allocation238_spill] sm:$0xff]  ;;  %v23376_v10 = vld [vmem:[#allocation160_spill] sm:$0xff] }
 0x350   :  { %2558 = vmatmul.mubr.f32.vlgmr.msra.gmra.mrb[0].mxu1 %v23038_v2  ;;  %23248 = vst [vmem:[#allocation103_spill] sm:$0xff] %v16755_v18  ;;  %v4014_v42 = vsub.f32 %v16284_v43, %v23251_v24  ;;  %v23253_v24 = vand.u32 4294901760, %v16294_v45  ;;  %v23254_v41 = vand.u32 4294901760, %v16296_v4  ;;  %v23255_v0 = vand.u32 4294901760, %v16298_v63  ;;  %v23292_v43 = vld [vmem:[#allocation208_spill] sm:$0xff]  ;;  %v23374_v40 = vld [vmem:[#allocation26_spill] sm:$0xff] }
 0x351   :  { %3842 = vmatmul.mubr.f32.vlgmr.msra.gmra.mrb[2].mxu0 %v23038_v2  ;;  %11829 = vmatpush1.bf16.msra.mxu1 %v16280_v62  ;;  %v23256_v56 = vand.u32 4294901760, %v16303_v47  ;;  %v5293_v29 = vand.u32 4294901760, %v5292_v50  ;;  %v4003_v17 = vand.u32 4294901760, %v4002_v20  ;;  %v23258_v2 = vand.u32 4294901760, %v16309_v27  ;;  %v23261_v50 = vld [vmem:[#allocation23_spill] sm:$0xff] }
 0x352   :  { %3981 = vmatprep.mubr.f32.mxu1 %v23249_v12  ;;  %12213 = vmatpush1.bf16.msra.mxu0 %v16286_v21  ;;  %v5298_v21 = vsub.f32 %v16290_v46, %v23252_v35  ;;  %v5304_v54 = vsub.f32 %v16298_v63, %v23255_v0  ;;  %v4015_v0 = vand.u32 4294901760, %v4014_v42  ;;  %v23257_v63 = vld [vmem:[#allocation22_spill] sm:$0xff]  ;;  %v23259_v35 = vand.u32 4294901760, %v16312_v30 }
 0x353   :  { %5265 = vmatprep.mubr.f32.mxu0 %v23249_v12  ;;  %11831 = vmatprep.subr.bf16.mxu1 %v16292_v36  ;;  %v4020_v12 = vsub.f32 %v16294_v45, %v23253_v24  ;;  %v4032_v36 = vsub.f32 %v16296_v4, %v23254_v41  ;;  %v5281_v41 = vand.u32 4294901760, %v5280_v15  ;;  %v23260_v24 = vld [vmem:[#allocation133_spill] sm:$0xff]  ;;  %v23262_v20 = vand.u32 4294901760, %v16316_v26  ;;  %v23290_v46 = vld [vmem:[#allocation234_spill] sm:$0xff] }
 0x354   :  { %12215 = vmatprep.subr.bf16.mxu0 %v16301_v23  ;;  %v5316_v23 = vsub.f32 %v16303_v47, %v23256_v56  ;;  %v4026_v56 = vsub.f32 %v16309_v27, %v23258_v2  ;;  %v4038_v62 = vsub.f32 %v16312_v30, %v23259_v35  ;;  %v5305_v15 = vand.u32 4294901760, %v5304_v54  ;;  %v23266_v54 = vld [vmem:[#allocation224_spill] sm:$0xff]  ;;  %v23269_v47 = vld [vmem:[#allocation134_spill] sm:$0xff] }
 0x355   :  { %11833 = vmatpush1.bf16.msra.mxu1 %v16307_v60  ;;  %v5287_v60 = vand.u32 4294901760, %v5286_v59  ;;  %v4021_v4 = vand.u32 4294901760, %v4020_v12  ;;  %v16814_v59 = vsub.f32 %v16316_v26, %v23262_v20  ;;  %v23263_v2 = vand.u32 4294901760, %v16318_v32  ;;  %v23271_v26 = vld [vmem:[#allocation227_spill] sm:$0xff]  ;;  %v23495_v6 = vld [vmem:[#allocation90_spill] sm:$0xff] }
 0x356   :  { %12217 = vmatpush1.bf16.msra.mxu0 %v16314_v44  ;;  %11835 = vmatprep.subr.bf16.mxu1 %v16321_v38  ;;  %v5299_v44 = vand.u32 4294901760, %v5298_v21  ;;  %v4033_v38 = vand.u32 4294901760, %v4032_v36  ;;  %v5317_v42 = vand.u32 4294901760, %v5316_v23  ;;  %v23264_v35 = vand.u32 4294901760, %v16323_v14  ;;  %v23265_v36 = vld [vmem:[#allocation145_spill] sm:$0xff] }
 0x357   :  { %12219 = vmatprep.subr.bf16.mxu0 %v23257_v63  ;;  %v16819_v63 = vsub.f32 %v16318_v32, %v23263_v2  ;;  %v23267_v23 = vand.u32 4294901760, %v16697_v57  ;;  %v16833_v20 = vpack.c.bf16 %v4009_v34, %v3997_v51  ;;  %v23270_v2 = vld [vmem:[#allocation138_spill] sm:$0xff]  ;;  %v4027_v30 = vand.u32 4294901760, %v4026_v56  ;;  %v23289_v56 = vld [vmem:[#allocation232_spill] sm:$0xff] }
 0x358   :  { %v16824_v21 = vsub.f32 %v16323_v14, %v23264_v35  ;;  %v4039_v35 = vand.u32 4294901760, %v4038_v62  ;;  %v23272_v14 = vand.u32 4294901760, %v23260_v24  ;;  %v16844_v45 = vpack.c.bf16 %v5293_v29, %v5281_v41  ;;  %v23276_v29 = vld [vmem:[#allocation236_spill] sm:$0xff]  ;;  %v23282_v62 = vld [vmem:[#allocation25_spill] sm:$0xff] }
 0x359   :  { %11837 = vmatpush1.bf16.msra.mxu1 %v23261_v50  ;;  %v16831_v12 = vsub.f32 %v16697_v57, %v23267_v23  ;;  %v16846_v57 = vpack.c.bf16 %v4015_v0, %v4003_v17  ;;  %v16848_v34 = vpack.c.bf16 %v5299_v44, %v5287_v60  ;;  %v16850_v51 = vpack.c.bf16 %v4033_v38, %v4021_v4  ;;  %v23274_v23 = vld [vmem:[#allocation230_spill] sm:$0xff]  ;;  %v23275_v50 = vld [vmem:[#allocation233_spill] sm:$0xff]  ;;  %v23279_v38 = vld [vmem:[#allocation144_spill] sm:$0xff] }
 0x35a   :  { %12221 = vmatpush1.bf16.msra.mxu0 %v23265_v36  ;;  %11839 = vmatprep.subr.bf16.mxu1 %v23266_v54  ;;  %v16841_v36 = vsub.f32 %v23260_v24, %v23272_v14  ;;  %v23273_v54 = vld [vmem:[#allocation140_spill] sm:$0xff]  ;;  %v16853_v32 = vpack.c.bf16 %v5317_v42, %v5305_v15  ;;  %v23277_v17 = vand.u32 4294901760, %v23269_v47  ;;  %v23278_v4 = vand.u32 4294901760, %v23270_v2  ;;  %v23281_v42 = vld [vmem:[#allocation239_spill] sm:$0xff]  ;;  %v23286_v15 = vld [vmem:[#allocation229_spill] sm:$0xff] }
 0x35b   :  { %23268 = vst [vmem:[#allocation76_spill] sm:$0xff] %v16831_v12  ;;  %12223 = vmatprep.subr.bf16.mxu0 %v23271_v26  ;;  %v21353_v27 = vand.u32 4294901760, %v23273_v54  ;;  %v23280_v0 = vld [vmem:[#allocation24_spill] sm:$0xff]  ;;  %v16873_v14 = vpack.c.bf16 %v4039_v35, %v4027_v30  ;;  %v23288_v30 = vld [vmem:[#allocation231_spill] sm:$0xff]  ;;  %v23297_v5 = vand.u32 4294901760, %v23282_v62  ;;  %v23313_v12 = vld [vmem:[#allocation110_spill] sm:$0xff] }
 0x35c   :  { %v16863_v60 = vsub.f32 %v23269_v47, %v23277_v17  ;;  %v16868_v44 = vsub.f32 %v23270_v2, %v23278_v4  ;;  %v23285_v41 = vld [vmem:[#allocation228_spill] sm:$0xff]  ;;  %v23294_v47 = vand.u32 4294901760, %v23279_v38  ;;  %v23295_v35 = vand.u32 4294901760, %v23280_v0 }
 0x35d   :  { %11841 = vmatpush1.bf16.msra.mxu1 %v23274_v23  ;;  %v16879_v17 = vsub.f32 %v23273_v54, %v21353_v27  ;;  %v23284_v23 = vld [vmem:[#allocation226_spill] sm:$0xff]  ;;  %v23291_v27 = vld [vmem:[#allocation235_spill] sm:$0xff] }
 0x35e   :  { %12225 = vmatpush1.bf16.msra.mxu0 %v23275_v50  ;;  %11843 = vmatprep.subr.bf16.mxu1 %v23276_v29  ;;  %v23283_v50 = vld [vmem:[#allocation225_spill] sm:$0xff]  ;;  %v23293_v29 = vld [vmem:[#allocation40_spill] sm:$0xff]  ;;  %v5329_v26 = vand.u32 4294901760, %v16863_v60  ;;  %v5341_v2 = vand.u32 4294901760, %v16868_v44  ;;  %v4062_v4 = vsub.f32 %v23279_v38, %v23294_v47  ;;  %v5334_v24 = vsub.f32 %v23280_v0, %v23295_v35 }
 0x35f   :  { %12227 = vmatprep.subr.bf16.mxu0 %v23281_v42  ;;  %v23287_v42 = vld [vmem:[#allocation242_spill] sm:$0xff]  ;;  %v4051_v54 = vand.u32 4294901760, %v16879_v17  ;;  %v23300_v37 = vand.u32 4294901760, %v23283_v50  ;;  %v23301_v38 = vand.u32 4294901760, %v23284_v23  ;;  %v23303_v0 = vand.u32 4294901760, %v23286_v15 }
 0x360   :  { %v23305_v44 = vand.u32 4294901760, %v23288_v30 }
 0x361   :  { %11845 = vmatpush1.bf16.msra.mxu1 %v23287_v42  ;;  %v23296_v42 = vld [vmem:[#allocation245_spill] sm:$0xff]  ;;  %v4068_v47 = vsub.f32 %v23283_v50, %v23300_v37  ;;  %v4080_v35 = vsub.f32 %v23284_v23, %v23301_v38  ;;  %v23306_v37 = vand.u32 4294901760, %v23289_v56  ;;  %v23307_v38 = vand.u32 4294901760, %v23290_v46 }
 0x362   :  { %12229 = vmatpush1.bf16.msra.mxu0 %v23292_v43  ;;  %11847 = vmatprep.subr.bf16.mxu1 %v23293_v29  ;;  %v5346_v29 = vsub.f32 %v23282_v62, %v23297_v5  ;;  %v23298_v43 = vld [vmem:[#allocation237_spill] sm:$0xff]  ;;  %v5364_v5 = vsub.f32 %v23286_v15, %v23303_v0  ;;  %v23304_v62 = vld [vmem:[#allocation46_spill] sm:$0xff]  ;;  %v4074_v60 = vsub.f32 %v23288_v30, %v23305_v44  ;;  %v23310_v0 = vld [vmem:[#allocation104_spill] sm:$0xff]  ;;  %v5335_v15 = vand.u32 4294901760, %v5334_v24 }
 0x363   :  { %12231 = vmatprep.subr.bf16.mxu0 %v23296_v42  ;;  %v23302_v42 = vand.u32 4294901760, %v23285_v41  ;;  %v4086_v50 = vsub.f32 %v23289_v56, %v23306_v37  ;;  %v5358_v23 = vsub.f32 %v23290_v46, %v23307_v38  ;;  %v23312_v30 = vld [vmem:[#allocation241_spill] sm:$0xff]  ;;  %v23314_v56 = vand.u32 4294901760, %v23298_v43 }
 0x364   :  { %v5347_v37 = vand.u32 4294901760, %v5346_v29  ;;  %v23315_v46 = vand.u32 4294901760, %v23299_v19  ;;  %v5365_v18 = vand.u32 4294901760, %v5364_v5  ;;  %v23317_v44 = vld [vmem:[#allocation113_spill] sm:$0xff]  ;;  %v4075_v28 = vand.u32 4294901760, %v4074_v60  ;;  %v23325_v60 = vld [vmem:[#allocation195_spill] sm:$0xff] }
 0x365   :  { %v5352_v17 = vsub.f32 %v23285_v41, %v23302_v42  ;;  %11849 = vmatpush1.bf16.msra.mxu1 %v23304_v62  ;;  %v23308_v42 = vand.u32 4294901760, %v23291_v27  ;;  %v4063_v62 = vand.u32 4294901760, %v4062_v4  ;;  %v4092_v38 = vsub.f32 %v23298_v43, %v23314_v56  ;;  %v23365_v43 = vld [vmem:[#allocation94_spill] sm:$0xff] }
 0x366   :  { %12233 = vmatpush1.bf16.msra.mxu0 %v23309_v22  ;;  %11851 = vmatprep.subr.bf16.mxu1 %v23310_v0  ;;  %v23316_v22 = vld [vmem:[#allocation243_spill] sm:$0xff]  ;;  %v4069_v0 = vand.u32 4294901760, %v4068_v47  ;;  %v4081_v4 = vand.u32 4294901760, %v4080_v35  ;;  %v4087_v11 = vand.u32 4294901760, %v4086_v50  ;;  %v23320_v56 = vand.u32 4294901760, %v16814_v59 }
 0x367   :  { %v5370_v41 = vsub.f32 %v23291_v27, %v23308_v42  ;;  %12235 = vmatprep.subr.bf16.mxu0 %v23313_v12  ;;  %v4104_v42 = vsub.f32 %v23299_v19, %v23315_v46  ;;  %v5353_v24 = vand.u32 4294901760, %v5352_v17  ;;  %v5359_v12 = vand.u32 4294901760, %v5358_v23  ;;  %v23324_v23 = vld [vmem:[#allocation244_spill] sm:$0xff] }
 0x368   :  { %v23321_v46 = vand.u32 4294901760, %v16819_v63  ;;  %v23322_v47 = vand.u32 4294901760, %v23311_v1  ;;  %v23323_v17 = vand.u32 4294901760, %v23312_v30  ;;  %v4093_v5 = vand.u32 4294901760, %v4092_v38  ;;  %v23330_v38 = vld [vmem:[#allocation198_spill] sm:$0xff] }
 0x369   :  { %11853 = vmatpush1.bf16.msra.mxu1 %v23317_v44  ;;  %v5371_v29 = vand.u32 4294901760, %v5370_v41  ;;  %v4105_v27 = vand.u32 4294901760, %v4104_v42  ;;  %v23326_v59 = vand.u32 4294901760, %v23316_v22  ;;  %v16976_v41 = vpack.c.bf16 %v4063_v62, %v4051_v54  ;;  %v23334_v62 = vld [vmem:[#allocation39_spill] sm:$0xff] }
 0x36a   :  { %12237 = vmatpush1.bf16.msra.mxu0 %v23318_v49  ;;  %11855 = vmatprep.subr.bf16.mxu1 %v23319_v55  ;;  %v16952_v19 = vpack.c.bf16 %v23321_v46, %v23320_v56  ;;  %v5376_v35 = vsub.f32 %v23311_v1, %v23322_v47  ;;  %v5388_v50 = vsub.f32 %v23312_v30, %v23323_v17  ;;  %v23327_v56 = vld [vmem:[#allocation38_spill] sm:$0xff]  ;;  %v23328_v55 = vand.u32 4294901760, %v16824_v21  ;;  %v23331_v21 = vld [vmem:[#allocation55_spill] sm:$0xff]  ;;  %v23352_v30 = vld [vmem:[#allocation84_spill] sm:$0xff] }
 0x36b   :  { %12239 = vmatprep.subr.bf16.mxu0 %v23325_v60  ;;  %v16965_v63 = vsub.f32 %v23316_v22, %v23326_v59  ;;  %v23329_v47 = vand.u32 4294901760, %v16841_v36  ;;  %v16974_v17 = vpack.c.bf16 %v5341_v2, %v5329_v26  ;;  %v16978_v60 = vpack.c.bf16 %v5347_v37, %v5335_v15  ;;  %v23337_v37 = vld [vmem:[#allocation41_spill] sm:$0xff]  ;;  %v23347_v22 = vld [vmem:[#allocation74_spill] sm:$0xff] }
 0x36c   :  { %v16981_v42 = vpack.c.bf16 %v4081_v4, %v4069_v0  ;;  %v16983_v59 = vpack.c.bf16 %v5365_v18, %v5353_v24  ;;  %v16985_v44 = vpack.c.bf16 %v4087_v11, %v4075_v28  ;;  %v16987_v46 = vpack.c.bf16 %v5371_v29, %v5359_v12  ;;  %v23335_v0 = vld [vmem:[#allocation64_spill] sm:$0xff]  ;;  %v23338_v24 = vld [vmem:[#allocation209_spill] sm:$0xff]  ;;  %v23344_v28 = vld [vmem:[#allocation50_spill] sm:$0xff] }
 0x36d   :  { %v16972_v49 = vpack.c.bf16 %v23329_v47, %v23328_v55  ;;  %11857 = vmatpush1.bf16.msra.mxu1 %v23330_v38  ;;  %v23332_v55 = vld [vmem:[#allocation61_spill] sm:$0xff]  ;;  %v5377_v26 = vand.u32 4294901760, %v5376_v35  ;;  %v5389_v36 = vand.u32 4294901760, %v5388_v50  ;;  %v23333_v54 = vand.u32 4294901760, %v23324_v23  ;;  %v23339_v35 = vld [vmem:[#allocation43_spill] sm:$0xff]  ;;  %v23340_v47 = vld [vmem:[#allocation44_spill] sm:$0xff] }
 0x36e   :  { %12241 = vmatpush1.bf16.msra.mxu0 %v23331_v21  ;;  %11859 = vmatprep.subr.bf16.mxu1 %v23332_v55  ;;  %v16998_v18 = vpack.c.bf16 %v4105_v27, %v4093_v5  ;;  %v23336_v11 = vand.u32 4294901760, %v23327_v56  ;;  %v23341_v15 = vld [vmem:[#allocation45_spill] sm:$0xff]  ;;  %v23343_v27 = vld [vmem:[#allocation47_spill] sm:$0xff]  ;;  %v23350_v55 = vand.u32 4294901760, %v23334_v62 }
 0x36f   :  { %v16994_v2 = vsub.f32 %v23324_v23, %v23333_v54  ;;  %12243 = vmatprep.subr.bf16.mxu0 %v23335_v0  ;;  %v23342_v0 = vld [vmem:[#allocation72_spill] sm:$0xff]  ;;  %v23345_v38 = vld [vmem:[#allocation51_spill] sm:$0xff]  ;;  %v17018_v29 = vpack.c.bf16 %v5389_v36, %v5377_v26  ;;  %v23361_v36 = vand.u32 4294901760, %v23343_v27 }
 0x370   :  { %v17004_v12 = vsub.f32 %v23327_v56, %v23336_v11  ;;  %v23346_v11 = vld [vmem:[#allocation100_spill] sm:$0xff]  ;;  %v23348_v4 = vld [vmem:[#allocation79_spill] sm:$0xff]  ;;  %v5394_v50 = vsub.f32 %v23334_v62, %v23350_v55  ;;  %v23353_v56 = vand.u32 4294901760, %v23337_v37  ;;  %v23357_v55 = vand.u32 4294901760, %v23339_v35 }
 0x371   :  { %11861 = vmatpush1.bf16.msra.mxu1 %v23342_v0  ;;  %23349 = vst [vmem:[#allocation32_spill] sm:$0xff] %v17018_v29  ;;  %v4111_v54 = vand.u32 4294901760, %v16994_v2  ;;  %v23351_v0 = vld [vmem:[#allocation107_spill] sm:$0xff]  ;;  %v23355_v26 = vld [vmem:[#allocation16_spill] sm:$0xff]  ;;  %v23356_v2 = vand.u32 4294901760, %v23338_v24  ;;  %v23359_v62 = vand.u32 4294901760, %v23341_v15 }
 0x372   :  { %12245 = vmatpush1.bf16.msra.mxu0 %v23347_v22  ;;  %11863 = vmatprep.subr.bf16.mxu1 %v23348_v4  ;;  %v5383_v23 = vand.u32 4294901760, %v17004_v12  ;;  %v4116_v21 = vsub.f32 %v23337_v37, %v23353_v56  ;;  %v23354_v22 = vld [vmem:[#allocation108_spill] sm:$0xff]  ;;  %v5400_v5 = vsub.f32 %v23339_v35, %v23357_v55  ;;  %v23360_v37 = vld [vmem:[#allocation89_spill] sm:$0xff]  ;;  %v4134_v4 = vsub.f32 %v23343_v27, %v23361_v36  ;;  %v23368_v27 = vld [vmem:[#allocation115_spill] sm:$0xff] }
 0x373   :  { %12247 = vmatprep.subr.bf16.mxu0 %v23352_v30  ;;  %v4128_v1 = vsub.f32 %v23338_v24, %v23356_v2  ;;  %v23358_v30 = vand.u32 4294901760, %v23340_v47  ;;  %v4122_v56 = vsub.f32 %v23341_v15, %v23359_v62  ;;  %v23362_v2 = vand.u32 4294901760, %v23344_v28  ;;  %v23366_v62 = vld [vmem:[#allocation99_spill] sm:$0xff]  ;;  %v23375_v29 = vld [vmem:[#allocation157_spill] sm:$0xff] }
 0x374   :  { %v23363_v55 = vand.u32 4294901760, %v23345_v38  ;;  %v23367_v15 = vand.u32 4294901760, %v23351_v0  ;;  %v5401_v52 = vand.u32 4294901760, %v5400_v5 }
 0x375   :  { %v5412_v12 = vsub.f32 %v23340_v47, %v23358_v30  ;;  %11865 = vmatpush1.bf16.msra.mxu1 %v23360_v37  ;;  %v5406_v24 = vsub.f32 %v23344_v28, %v23362_v2  ;;  %v23364_v30 = vand.u32 4294901760, %v23346_v11  ;;  %v5395_v37 = vand.u32 4294901760, %v5394_v50  ;;  %v23369_v2 = vld [vmem:[#allocation117_spill] sm:$0xff]  ;;  %v23373_v50 = vld [vmem:[#allocation119_spill] sm:$0xff] }
 0x376   :  { %v5418_v35 = vsub.f32 %v23345_v38, %v23363_v55  ;;  %12249 = vmatpush1.bf16.msra.mxu0 %v23365_v43  ;;  %11867 = vmatprep.subr.bf16.mxu1 %v23366_v62  ;;  %v4152_v36 = vsub.f32 %v23351_v0, %v23367_v15  ;;  %v4117_v55 = vand.u32 4294901760, %v4116_v21  ;;  %v23371_v38 = vand.u32 4294901760, %v23354_v22 }
 0x377   :  { %v4140_v47 = vsub.f32 %v23346_v11, %v23364_v30  ;;  %12251 = vmatprep.subr.bf16.mxu0 %v23370_v13  ;;  %v23372_v43 = vand.u32 4294901760, %v23355_v26  ;;  %v4129_v9 = vand.u32 4294901760, %v4128_v1  ;;  %v5413_v15 = vand.u32 4294901760, %v5412_v12  ;;  %v23379_v12 = vld [vmem:[#allocation148_spill] sm:$0xff]  ;;  %v23380_v11 = vld [vmem:[#allocation162_spill] sm:$0xff] }
 0x378   :  { %v5424_v30 = vsub.f32 %v23354_v22, %v23371_v38  ;;  %v4123_v0 = vand.u32 4294901760, %v4122_v56  ;;  %v4135_v28 = vand.u32 4294901760, %v4134_v4  ;;  %v5407_v8 = vand.u32 4294901760, %v5406_v24  ;;  %v23392_v56 = vld [vmem:[#allocation175_spill] sm:$0xff] }
 0x379   :  { %v5436_v62 = vsub.f32 %v23355_v26, %v23372_v43  ;;  %11869 = vmatpush1.bf16.msra.mxu1 %v23374_v40  ;;  %v5419_v13 = vand.u32 4294901760, %v5418_v35  ;;  %v4141_v21 = vand.u32 4294901760, %v4140_v47  ;;  %v4153_v38 = vand.u32 4294901760, %v4152_v36  ;;  %v23386_v26 = vld [vmem:[#allocation165_spill] sm:$0xff] }
 0x37a   :  { %12253 = vmatpush1.bf16.msra.mxu0 %v23375_v29  ;;  %11871 = vmatprep.subr.bf16.mxu1 %v23376_v10  ;;  %v23377_v22 = vand.u32 4294901760, %v23368_v27  ;;  %v23378_v1 = vand.u32 4294901760, %v23369_v2  ;;  %v5425_v4 = vand.u32 4294901760, %v5424_v30  ;;  %v23381_v35 = vand.u32 4294901760, %v23373_v50  ;;  %v23382_v10 = vld [vmem:[#allocation190_spill] sm:$0xff] }
 0x37b   :  { %12255 = vmatprep.subr.bf16.mxu0 %v23380_v11  ;;  %v5437_v24 = vand.u32 4294901760, %v5436_v62  ;;  %v23383_v29 = vand.u32 4294901760, %v16965_v63  ;;  %v17096_v30 = vpack.c.bf16 %v4129_v9, %v4117_v55  ;;  %v17098_v62 = vpack.c.bf16 %v5413_v15, %v5401_v52  ;;  %v23389_v63 = vld [vmem:[#allocation173_spill] sm:$0xff] }
 0x37c   :  { %v4146_v43 = vsub.f32 %v23368_v27, %v23377_v22  ;;  %v4158_v5 = vsub.f32 %v23369_v2, %v23378_v1  ;;  %v5430_v47 = vsub.f32 %v23373_v50, %v23381_v35  ;;  %v17091_v22 = vpack.c.bf16 %v5395_v37, %v5383_v23  ;;  %v23384_v27 = vld [vmem:[#allocation193_spill] sm:$0xff]  ;;  %v23387_v35 = vld [vmem:[#allocation199_spill] sm:$0xff]  ;;  %v23388_v50 = vld [vmem:[#allocation146_spill] sm:$0xff] }
 0x37d   :  { %v17089_v40 = vpack.c.bf16 %v4111_v54, %v23383_v29  ;;  %v21412_v1 = vand.u32 4294901760, %v23384_v27  ;;  %v23385_v2 = vld [vmem:[#allocation197_spill] sm:$0xff]  ;;  %11873 = vmatpush1.bf16.msra.mxu1 %v23386_v26  ;;  %v17100_v11 = vpack.c.bf16 %v4135_v28, %v4123_v0  ;;  %v21417_v36 = vand.u32 4294901760, %v23387_v35 }
 0x37e   :  { %12257 = vmatpush1.bf16.msra.mxu0 %v23388_v50  ;;  %11875 = vmatprep.subr.bf16.mxu1 %v23389_v63  ;;  %v17105_v23 = vpack.c.bf16 %v5419_v13, %v5407_v8  ;;  %v17107_v37 = vpack.c.bf16 %v4153_v38, %v4141_v21  ;;  %v4147_v29 = vand.u32 4294901760, %v4146_v43  ;;  %v4159_v54 = vand.u32 4294901760, %v4158_v5  ;;  %v23397_v38 = vld [vmem:[#allocation52_spill] sm:$0xff]  ;;  %v23398_v5 = vld [vmem:[#allocation54_spill] sm:$0xff]  ;;  %v23403_v26 = vld [vmem:[#allocation181_spill] sm:$0xff] }
 0x37f   :  { %12259 = vmatprep.subr.bf16.mxu0 %v23392_v56  ;;  %v17110_v9 = vpack.c.bf16 %v5437_v24, %v5425_v4  ;;  %v5431_v52 = vand.u32 4294901760, %v5430_v47  ;;  %v23394_v0 = vand.u32 4294901760, %v23379_v12  ;;  %v23395_v55 = vand.u32 4294901760, %v23382_v10  ;;  %v23399_v24 = vld [vmem:[#allocation178_spill] sm:$0xff]  ;;  %v23402_v50 = vld [vmem:[#allocation60_spill] sm:$0xff] }
 0x380   :  { %23390 = vst [vmem:[#allocation78_spill] sm:$0xff] %v17105_v23  ;;  %23391 = vst [vmem:[#allocation114_spill] sm:$0xff] %v17107_v37  ;;  %v4176_v13 = vsub.f32 %v23384_v27, %v21412_v1  ;;  %v23396_v8 = vand.u32 4294901760, %v23385_v2  ;;  %v5460_v47 = vsub.f32 %v23387_v35, %v21417_v36  ;;  %v23401_v56 = vld [vmem:[#allocation58_spill] sm:$0xff]  ;;  %v23404_v27 = vld [vmem:[#allocation184_spill] sm:$0xff] }
 0x381   :  { %23393 = vst [vmem:[#allocation82_spill] sm:$0xff] %v17110_v9  ;;  %v5442_v28 = vsub.f32 %v23379_v12, %v23394_v0  ;;  %v4164_v15 = vsub.f32 %v23382_v10, %v23395_v55  ;;  %11877 = vmatpush1.bf16.msra.mxu1 %v23399_v24  ;;  %v23400_v0 = vld [vmem:[#allocation56_spill] sm:$0xff]  ;;  %v23409_v35 = vld [vmem:[#allocation70_spill] sm:$0xff]  ;;  %v23410_v37 = vld [vmem:[#allocation73_spill] sm:$0xff]  ;;  %v23415_v63 = vand.u32 4294901760, %v23401_v56 }
 0x382   :  { %v5448_v21 = vsub.f32 %v23385_v2, %v23396_v8  ;;  %12261 = vmatpush1.bf16.msra.mxu0 %v23403_v26  ;;  %11879 = vmatprep.subr.bf16.mxu1 %v23404_v27  ;;  %v17135_v8 = vpack.c.bf16 %v4159_v54, %v4147_v29  ;;  %v23405_v43 = vld [vmem:[#allocation28_spill] sm:$0xff]  ;;  %v23406_v2 = vld [vmem:[#allocation67_spill] sm:$0xff]  ;;  %v4177_v23 = vand.u32 4294901760, %v4176_v13  ;;  %v23411_v27 = vand.u32 4294901760, %v23397_v38 }
 0x383   :  { %v23407_v10 = vld [vmem:[#allocation68_spill] sm:$0xff]  ;;  %v5443_v36 = vand.u32 4294901760, %v5442_v28  ;;  %v4165_v55 = vand.u32 4294901760, %v4164_v15  ;;  %v23412_v54 = vand.u32 4294901760, %v23398_v5  ;;  %v5461_v12 = vand.u32 4294901760, %v5460_v47 }
 0x384   :  { %v23408_v9 = vld [vmem:[#allocation188_spill] sm:$0xff]  ;;  %v5449_v26 = vand.u32 4294901760, %v5448_v21  ;;  %v4170_v29 = vsub.f32 %v23397_v38, %v23411_v27  ;;  %v23414_v28 = vand.u32 4294901760, %v23400_v0  ;;  %v5466_v13 = vsub.f32 %v23401_v56, %v23415_v63 }
 0x385   :  { %12263 = vmatprep.subr.bf16.mxu0 %v23408_v9  ;;  %v4182_v24 = vsub.f32 %v23398_v5, %v23412_v54  ;;  %v23413_v4 = vld [vmem:[#allocation200_spill] sm:$0xff]  ;;  %v23416_v21 = vand.u32 4294901760, %v23402_v50  ;;  %v23417_v27 = vand.u32 4294901760, %v23405_v43  ;;  %v23418_v54 = vand.u32 4294901760, %v23406_v2 }
 0x386   :  { %11881 = vmatpush1.bf16.msra.mxu1 %v23413_v4  ;;  %v5454_v15 = vsub.f32 %v23400_v0, %v23414_v28  ;;  %12265 = vmatpush1.bf16.msra.mxu0 %v16667_v31  ;;  %v23419_v4 = vand.u32 4294901760, %v23407_v10  ;;  %v17179_v0 = vpack.c.bf16 %v5443_v36, %v5431_v52  ;;  %v23425_v5 = vld [vmem:[#allocation80_spill] sm:$0xff] }
 0x387   :  { %v4188_v1 = vsub.f32 %v23402_v50, %v23416_v21  ;;  %11883 = vmatprep.subr.bf16.mxu1 %v16676_v16  ;;  %v4200_v47 = vsub.f32 %v23405_v43, %v23417_v27  ;;  %v5472_v28 = vsub.f32 %v23406_v2, %v23418_v54  ;;  %12267 = vmatprep.subr.bf16.mxu0 %v16684_v39  ;;  %v23420_v21 = vand.u32 4294901760, %v23409_v35  ;;  %v23422_v50 = vld [vmem:[#allocation30_spill] sm:$0xff]  ;;  %v23423_v43 = vld [vmem:[#allocation77_spill] sm:$0xff] }
 0x388   :  { %v5484_v63 = vsub.f32 %v23407_v10, %v23419_v4  ;;  %v23421_v16 = vand.u32 4294901760, %v23410_v37  ;;  %v21433_v27 = vand.u32 4294901760, %v23422_v50  ;;  %v17181_v54 = vpack.c.bf16 %v4177_v23, %v4165_v55 }
 0x389   :  { %v4194_v31 = vsub.f32 %v23409_v35, %v23420_v21  ;;  %v4171_v2 = vand.u32 4294901760, %v4170_v29  ;;  %v4183_v4 = vand.u32 4294901760, %v4182_v24  ;;  %v17184_v39 = vpack.c.bf16 %v5461_v12, %v5449_v26  ;;  %v23427_v29 = vld [vmem:[#allocation81_spill] sm:$0xff]  ;;  %v23486_v35 = vld [vmem:[#allocation32_spill] sm:$0xff] }
 0x38a   :  { %v4206_v9 = vsub.f32 %v23410_v37, %v23421_v16  ;;  %11885 = vmatpush1.bf16.msra.mxu1 %v16688_v61  ;;  %v5455_v10 = vand.u32 4294901760, %v5454_v15  ;;  %v5467_v21 = vand.u32 4294901760, %v5466_v13  ;;  %12269 = vmatpush1.bf16.msra.mxu0 %v16695_v33  ;;  %v4189_v16 = vand.u32 4294901760, %v4188_v1  ;;  %v23428_v13 = vld [vmem:[#allocation85_spill] sm:$0xff]  ;;  %v23429_v1 = vld [vmem:[#allocation86_spill] sm:$0xff]  ;;  %v23437_v15 = vld [vmem:[#allocation15_spill] sm:$0xff] }
 0x38b   :  { %23424 = vst [vmem:[#allocation18_spill] sm:$0xff] %v17184_v39  ;;  %11887 = vmatprep.subr.bf16.mxu1 %v16705_v58  ;;  %v4201_v56 = vand.u32 4294901760, %v4200_v47  ;;  %v5473_v36 = vand.u32 4294901760, %v5472_v28  ;;  %v5485_v52 = vand.u32 4294901760, %v5484_v63  ;;  %12271 = vmatprep.subr.bf16.mxu0 %v16718_v3  ;;  %v4195_v23 = vand.u32 4294901760, %v4194_v31  ;;  %v23430_v28 = vld [vmem:[#allocation91_spill] sm:$0xff] }
 0x38c   :  { %v4207_v24 = vand.u32 4294901760, %v4206_v9  ;;  %v5478_v26 = vsub.f32 %v23422_v50, %v21433_v27  ;;  %v23426_v12 = vand.u32 4294901760, %v23423_v43  ;;  %v23431_v31 = vand.u32 4294901760, %v23425_v5  ;;  %v23432_v27 = vld [vmem:[#allocation93_spill] sm:$0xff]  ;;  %v23433_v58 = vld [vmem:[#allocation95_spill] sm:$0xff]  ;;  %v23498_v50 = vld [vmem:[#allocation76_spill] sm:$0xff] }
 0x38d   :  { %v17211_v47 = vpack.c.bf16 %v4183_v4, %v4171_v2  ;;  %v17213_v63 = vpack.c.bf16 %v5467_v21, %v5455_v10  ;;  %v17215_v38 = vpack.c.bf16 %v4201_v56, %v4189_v16  ;;  %v23440_v39 = vld [vmem:[#allocation253_spill] sm:$0xff]  ;;  %v23442_v10 = vand.u32 4294901760, %v23428_v13 }
 0x38e   :  { %v5490_v55 = vsub.f32 %v23423_v43, %v23426_v12  ;;  %11889 = vmatpush1.bf16.msra.mxu1 %v16736_v48  ;;  %v17204_v9 = vsub.f32 %v23425_v5, %v23431_v31  ;;  %v23434_v12 = vld [vmem:[#allocation98_spill] sm:$0xff]  ;;  %12273 = vmatpush1.bf16.msra.mxu0 %v16753_v7  ;;  %v21446_v48 = vand.u32 4294901760, %v23437_v15  ;;  %v17219_v31 = vpack.c.bf16 %v5485_v52, %v5473_v36  ;;  %v23453_v7 = vld [vmem:[#allocation27_spill] sm:$0xff]  ;;  %v23488_v37 = vld [vmem:[#allocation57_spill] sm:$0xff] }
 0x38f   :  { %11891 = vmatprep.subr.bf16.mxu1 %v16833_v20  ;;  %23435 = vst [vmem:[#allocation87_spill] sm:$0xff] %v17213_v63  ;;  %23436 = vst [vmem:[#allocation126_spill] sm:$0xff] %v17215_v38  ;;  %12275 = vmatprep.subr.bf16.mxu0 %v16844_v45  ;;  %v17221_v3 = vpack.c.bf16 %v4207_v24, %v4195_v23  ;;  %v5479_v33 = vand.u32 4294901760, %v5478_v26  ;;  %v23441_v20 = vand.u32 4294901760, %v23427_v29  ;;  %v23443_v45 = vand.u32 4294901760, %v23429_v1  ;;  %v23455_v38 = vld [vmem:[#allocation158_spill] sm:$0xff] }
 0x390   :  { %23438 = vst [vmem:[#allocation88_spill] sm:$0xff] %v17219_v31  ;;  %v5491_v61 = vand.u32 4294901760, %v5490_v55  ;;  %v17232_v56 = vsub.f32 %v23428_v13, %v23442_v10  ;;  %v23444_v21 = vand.u32 4294901760, %v23430_v28  ;;  %v23445_v52 = vand.u32 4294901760, %v23432_v27  ;;  %v23449_v10 = vld [vmem:[#allocation106_spill] sm:$0xff]  ;;  %v23492_v5 = vld [vmem:[#allocation31_spill] sm:$0xff] }
 0x391   :  { %23439 = vst [vmem:[#allocation21_spill] sm:$0xff] %v17221_v3  ;;  %3987 = vmatmul.mubr.f32.vlgmr.msra.gmra.mrb[2].mxu1 %v23440_v39  ;;  %v17227_v2 = vsub.f32 %v23427_v29, %v23441_v20  ;;  %v17237_v4 = vsub.f32 %v23429_v1, %v23443_v45  ;;  %5271 = vmatmul.mubr.f32.vlgmr.msra.gmra.mrb[4].mxu0 %v23440_v39  ;;  %v23446_v24 = vand.u32 4294901760, %v23433_v58  ;;  %v23447_v55 = vand.u32 4294901760, %v23434_v12  ;;  %v23448_v39 = vld [vmem:[#allocation247_spill] sm:$0xff]  ;;  %v23494_v13 = vld [vmem:[#allocation65_spill] sm:$0xff] }
 0x392   :  { %v17242_v16 = vsub.f32 %v23430_v28, %v23444_v21  ;;  %11893 = vmatpush1.bf16.msra.mxu1 %v16846_v57  ;;  %v17250_v23 = vsub.f32 %v23432_v27, %v23445_v52  ;;  %4378 = vmatprep.mubr.f32.mxu1 %v23448_v39  ;;  %v17267_v57 = vsub.f32 %v23437_v15, %v21446_v48  ;;  %v23450_v21 = vld [vmem:[#allocation141_spill] sm:$0xff]  ;;  %v21448_v3 = vand.u32 4294901760, %v23453_v7  ;;  %v23456_v45 = vld [vmem:[#allocation159_spill] sm:$0xff]  ;;  %v23463_v48 = vld [vmem:[#allocation164_spill] sm:$0xff] }
 0x393   :  { %v17255_v26 = vsub.f32 %v23433_v58, %v23446_v24  ;;  %v17260_v20 = vsub.f32 %v23434_v12, %v23447_v55  ;;  %12277 = vmatpush1.bf16.msra.mxu0 %v16848_v34  ;;  %v23451_v24 = vld [vmem:[#allocation154_spill] sm:$0xff]  ;;  %5662 = vmatprep.mubr.f32.mxu0 %v23448_v39  ;;  %v17274_v55 = vpack.c.bf16 %v5491_v61, %v5479_v33  ;;  %v23454_v34 = vld [vmem:[#allocation156_spill] sm:$0xff]  ;;  %v21450_v39 = vand.u32 4294901760, %v23456_v45  ;;  %v23462_v33 = vld [vmem:[#allocation33_spill] sm:$0xff] }
 0x394   :  { %11895 = vmatprep.subr.bf16.mxu1 %v16850_v51  ;;  %v21449_v31 = vand.u32 4294901760, %v23454_v34  ;;  %12279 = vmatprep.subr.bf16.mxu0 %v16853_v32  ;;  %v23457_v36 = vand.u32 4294901760, %v23449_v10  ;;  %v23459_v51 = vand.u32 4294901760, %v23451_v24  ;;  %v23461_v32 = vld [vmem:[#allocation161_spill] sm:$0xff]  ;;  %v23466_v58 = vld [vmem:[#allocation142_spill] sm:$0xff]  ;;  %v23473_v12 = vld [vmem:[#allocation179_spill] sm:$0xff] }
 0x395   :  { %23452 = vst [vmem:[#allocation92_spill] sm:$0xff] %v17274_v55  ;;  %v23467_v15 = vld [vmem:[#allocation170_spill] sm:$0xff]  ;;  %v23477_v28 = vld [vmem:[#allocation185_spill] sm:$0xff]  ;;  %v23478_v27 = vld [vmem:[#allocation187_spill] sm:$0xff]  ;;  %v23499_v29 = vand.u32 4294901760, %v23461_v32 }
 0x396   :  { %11897 = vmatpush1.bf16.msra.mxu1 %v16873_v14  ;;  %v17295_v52 = vsub.f32 %v23449_v10, %v23457_v36  ;;  %v23458_v14 = vand.u32 4294901760, %v23450_v21  ;;  %v17305_v63 = vsub.f32 %v23451_v24, %v23459_v51  ;;  %v23460_v36 = vand.u32 4294901760, %v23455_v38  ;;  %v23468_v10 = vld [vmem:[#allocation171_spill] sm:$0xff]  ;;  %v23470_v24 = vld [vmem:[#allocation174_spill] sm:$0xff]  ;;  %v23496_v43 = vld [vmem:[#allocation97_spill] sm:$0xff] }
 0x397   :  { %12281 = vmatpush1.bf16.msra.mxu0 %v16952_v19  ;;  %11899 = vmatprep.subr.bf16.mxu1 %v16972_v49  ;;  %v17311_v19 = vsub.f32 %v23453_v7, %v21448_v3  ;;  %v17316_v49 = vsub.f32 %v23454_v34, %v21449_v31  ;;  %v23465_v31 = vld [vmem:[#allocation166_spill] sm:$0xff]  ;;  %v23471_v7 = vld [vmem:[#allocation176_spill] sm:$0xff]  ;;  %v23493_v1 = vld [vmem:[#allocation63_spill] sm:$0xff]  ;;  %v4260_v51 = vsub.f32 %v23461_v32, %v23499_v29 }
 0x398   :  { %v17300_v61 = vsub.f32 %v23450_v21, %v23458_v14  ;;  %12283 = vmatprep.subr.bf16.mxu0 %v16974_v17  ;;  %v17321_v14 = vsub.f32 %v23455_v38, %v23460_v36  ;;  %v17327_v17 = vsub.f32 %v23456_v45, %v21450_v39  ;;  %v23469_v21 = vld [vmem:[#allocation172_spill] sm:$0xff]  ;;  %v23476_v45 = vld [vmem:[#allocation183_spill] sm:$0xff]  ;;  %v23489_v55 = vld [vmem:[#allocation66_spill] sm:$0xff]  ;;  %v23500_v38 = vand.u32 4294901760, %v23462_v33 }
 0x399   :  { %v23474_v3 = vld [vmem:[#allocation180_spill] sm:$0xff]  ;;  %v5533_v53 = vand.u32 4294901760, %v17305_v63 }
 0x39a   :  { %11901 = vmatpush1.bf16.msra.mxu1 %v16976_v41  ;;  %v23487_v36 = vld [vmem:[#allocation168_spill] sm:$0xff]  ;;  %v5521_v39 = vand.u32 4294901760, %v17300_v61  ;;  %v4272_v34 = vsub.f32 %v23462_v33, %v23500_v38  ;;  %v4243_v61 = vand.u32 4294901760, %v17311_v19  ;;  %v5539_v63 = vand.u32 4294901760, %v17327_v17 }
 0x39b   :  { %12285 = vmatpush1.bf16.msra.mxu0 %v16978_v60  ;;  %11903 = vmatprep.subr.bf16.mxu1 %v16981_v42  ;;  %v23464_v42 = vld [vmem:[#allocation34_spill] sm:$0xff]  ;;  %v23506_v38 = vand.u32 4294901760, %v17237_v4  ;;  %v23508_v19 = vand.u32 4294901760, %v17250_v23  ;;  %v23511_v4 = vand.u32 4294901760, %v23465_v31 }
 0x39c   :  { %12287 = vmatprep.subr.bf16.mxu0 %v16983_v59  ;;  %v23472_v59 = vld [vmem:[#allocation177_spill] sm:$0xff]  ;;  %v23475_v60 = vld [vmem:[#allocation182_spill] sm:$0xff]  ;;  %v23502_v29 = vand.u32 4294901760, %v23464_v42 }
 0x39e   :  { %11905 = vmatpush1.bf16.msra.mxu1 %v16985_v44  ;;  %v4249_v44 = vand.u32 4294901760, %v17295_v52  ;;  %v5556_v32 = vsub.f32 %v23464_v42, %v23502_v29  ;;  %v23503_v52 = vand.u32 4294901760, %v17204_v9  ;;  %v23505_v29 = vand.u32 4294901760, %v17232_v56 }
 0x39f   :  { %12289 = vmatpush1.bf16.msra.mxu0 %v16987_v46  ;;  %11907 = vmatprep.subr.bf16.mxu1 %v16998_v18  ;;  %v23490_v46 = vld [vmem:[#allocation59_spill] sm:$0xff]  ;;  %v23491_v18 = vld [vmem:[#allocation62_spill] sm:$0xff]  ;;  %v23510_v9 = vand.u32 4294901760, %v17260_v20  ;;  %v4273_v56 = vand.u32 4294901760, %v4272_v34  ;;  %v21482_v34 = vand.u32 4294901760, %v23468_v10 }
 0x3a0   :  { %12291 = vmatprep.subr.bf16.mxu0 %v23486_v35  ;;  %v23497_v35 = vld [vmem:[#allocation103_spill] sm:$0xff]  ;;  %v17436_v42 = vpack.c.bf16 %v23506_v38, %v23505_v29  ;;  %v23513_v38 = vld [vmem:[#allocation78_spill] sm:$0xff]  ;;  %v5557_v20 = vand.u32 4294901760, %v5556_v32  ;;  %v23515_v29 = vand.u32 4294901760, %v23467_v15  ;;  %v21479_v32 = vand.u32 4294901760, %v23469_v21 }
 0x3a2   :  { %11909 = vmatpush1.bf16.msra.mxu1 %v17089_v40  ;;  %v23501_v40 = vand.u32 4294901760, %v23463_v48 }
 0x3a3   :  { %12293 = vmatpush1.bf16.msra.mxu0 %v17091_v22  ;;  %11911 = vmatprep.subr.bf16.mxu1 %v17096_v30  ;;  %v4255_v22 = vand.u32 4294901760, %v17316_v49  ;;  %v5527_v30 = vand.u32 4294901760, %v17321_v14  ;;  %v23509_v14 = vand.u32 4294901760, %v17255_v26 }
 0x3a4   :  { %v5544_v41 = vsub.f32 %v23463_v48, %v23501_v40  ;;  %12295 = vmatprep.subr.bf16.mxu0 %v17098_v62  ;;  %v23504_v40 = vand.u32 4294901760, %v17227_v2  ;;  %v23507_v62 = vand.u32 4294901760, %v17242_v16  ;;  %v4261_v2 = vand.u32 4294901760, %v4260_v51  ;;  %v23516_v51 = vld [vmem:[#allocation82_spill] sm:$0xff] }
 0x3a5   :  { %v17448_v17 = vpack.c.bf16 %v23510_v9, %v23509_v14  ;;  %v23512_v16 = vand.u32 4294901760, %v23466_v58  ;;  %v17470_v14 = vpack.c.bf16 %v5533_v53, %v5521_v39  ;;  %v17472_v9 = vpack.c.bf16 %v4255_v22, %v4243_v61 }
 0x3a6   :  { %v17430_v48 = vpack.c.bf16 %v23504_v40, %v23503_v52  ;;  %v17442_v49 = vpack.c.bf16 %v23508_v19, %v23507_v62  ;;  %11913 = vmatpush1.bf16.msra.mxu1 %v17100_v11  ;;  %v4266_v52 = vsub.f32 %v23465_v31, %v23511_v4  ;;  %v23514_v40 = vld [vmem:[#allocation114_spill] sm:$0xff]  ;;  %v5545_v26 = vand.u32 4294901760, %v5544_v41 }
 0x3a7   :  { %v4278_v23 = vsub.f32 %v23466_v58, %v23512_v16  ;;  %12297 = vmatpush1.bf16.msra.mxu0 %v23513_v38  ;;  %11915 = vmatprep.subr.bf16.mxu1 %v23514_v40  ;;  %v17462_v11 = vsub.f32 %v23467_v15, %v23515_v29  ;;  %v23517_v62 = vand.u32 4294901760, %v17267_v57  ;;  %v17474_v4 = vpack.c.bf16 %v5539_v63, %v5527_v30  ;;  %v23518_v30 = vld [vmem:[#allocation18_spill] sm:$0xff] }
 0x3a8   :  { %12299 = vmatprep.subr.bf16.mxu0 %v23516_v51  ;;  %v21478_v41 = vand.u32 4294901760, %v23470_v24  ;;  %v21480_v16 = vand.u32 4294901760, %v23471_v7  ;;  %v21481_v38 = vand.u32 4294901760, %v23472_v59  ;;  %v17481_v40 = vpack.c.bf16 %v4273_v56, %v4261_v2  ;;  %v23527_v51 = vld [vmem:[#allocation21_spill] sm:$0xff] }
 0x3a9   :  { %v17468_v19 = vpack.c.bf16 %v4249_v44, %v23517_v62  ;;  %v4267_v57 = vand.u32 4294901760, %v4266_v52  ;;  %v4279_v44 = vand.u32 4294901760, %v4278_v23  ;;  %v21483_v53 = vand.u32 4294901760, %v23473_v12  ;;  %v23520_v62 = vld [vmem:[#allocation194_spill] sm:$0xff] }
 0x3aa   :  { %11917 = vmatpush1.bf16.msra.mxu1 %v17135_v8  ;;  %v17486_v39 = vpack.c.bf16 %v5557_v20, %v5545_v26  ;;  %v5551_v61 = vand.u32 4294901760, %v17462_v11  ;;  %v5562_v22 = vsub.f32 %v23468_v10, %v21482_v34  ;;  %v21484_v8 = vand.u32 4294901760, %v23474_v3  ;;  %v23519_v11 = vld [vmem:[#allocation191_spill] sm:$0xff] }
 0x3ab   :  { %12301 = vmatpush1.bf16.msra.mxu0 %v17179_v0  ;;  %11919 = vmatprep.subr.bf16.mxu1 %v17181_v54  ;;  %v21486_v63 = vand.u32 4294901760, %v23475_v60  ;;  %v21488_v2 = vand.u32 4294901760, %v23476_v45  ;;  %v21490_v0 = vand.u32 4294901760, %v23477_v28  ;;  %v4284_v56 = vsub.f32 %v23469_v21, %v21479_v32  ;;  %v23522_v32 = vld [vmem:[#allocation126_spill] sm:$0xff]  ;;  %v23525_v54 = vld [vmem:[#allocation88_spill] sm:$0xff] }
 0x3ac   :  { %12303 = vmatprep.subr.bf16.mxu0 %v23518_v30  ;;  %v4296_v52 = vsub.f32 %v23470_v24, %v21478_v41  ;;  %v5568_v23 = vsub.f32 %v23471_v7, %v21480_v16  ;;  %v5580_v26 = vsub.f32 %v23472_v59, %v21481_v38  ;;  %v17511_v20 = vpack.c.bf16 %v4279_v44, %v4267_v57  ;;  %v23521_v41 = vld [vmem:[#allocation87_spill] sm:$0xff] }
 0x3ad   :  { %v4290_v29 = vsub.f32 %v23473_v12, %v21483_v53  ;;  %v5563_v16 = vand.u32 4294901760, %v5562_v22  ;;  %v4302_v38 = vsub.f32 %v23474_v3, %v21484_v8  ;;  %v23524_v44 = vld [vmem:[#allocation203_spill] sm:$0xff]  ;;  %v5574_v53 = vsub.f32 %v23475_v60, %v21486_v63 }
 0x3ae   :  { %11921 = vmatpush1.bf16.msra.mxu1 %v17211_v47  ;;  %v23523_v47 = vld [vmem:[#allocation202_spill] sm:$0xff]  ;;  %v23526_v22 = vand.u32 4294901760, %v23478_v27  ;;  %v4285_v57 = vand.u32 4294901760, %v4284_v56  ;;  %v4297_v34 = vand.u32 4294901760, %v4296_v52  ;;  %v5569_v30 = vand.u32 4294901760, %v5568_v23 }
 0x3af   :  { %12305 = vmatpush1.bf16.msra.mxu0 %v23521_v41  ;;  %11923 = vmatprep.subr.bf16.mxu1 %v23522_v32  ;;  %v5586_v41 = vsub.f32 %v23476_v45, %v21488_v2  ;;  %v4308_v32 = vsub.f32 %v23477_v28, %v21490_v0  ;;  %v4291_v12 = vand.u32 4294901760, %v4290_v29  ;;  %v23528_v63 = vand.u32 4294901760, %v23519_v11  ;;  %v23530_v28 = vld [vmem:[#allocation92_spill] sm:$0xff] }
 0x3b0   :  { %12307 = vmatprep.subr.bf16.mxu0 %v23525_v54  ;;  %v4320_v8 = vsub.f32 %v23478_v27, %v23526_v22  ;;  %v5581_v54 = vand.u32 4294901760, %v5580_v26  ;;  %v23529_v2 = vand.u32 4294901760, %v23520_v62  ;;  %v4303_v56 = vand.u32 4294901760, %v4302_v38  ;;  %v23535_v27 = vld [vmem:[#allocation42_spill] sm:$0xff] }
 0x3b1   :  { %v5592_v60 = vsub.f32 %v23519_v11, %v23528_v63  ;;  %v23531_v52 = vand.u32 4294901760, %v23523_v47  ;;  %v23532_v26 = vand.u32 4294901760, %v23524_v44  ;;  %v23533_v63 = vld [vmem:[#allocation206_spill] sm:$0xff]  ;;  %v5587_v22 = vand.u32 4294901760, %v5586_v41 }
 0x3b2   :  { %11925 = vmatpush1.bf16.msra.mxu1 %v23527_v51  ;;  %v5604_v45 = vsub.f32 %v23520_v62, %v23529_v2  ;;  %v5575_v2 = vand.u32 4294901760, %v5574_v53  ;;  %v4309_v0 = vand.u32 4294901760, %v4308_v32  ;;  %v4321_v11 = vand.u32 4294901760, %v4320_v8 }
 0x3b3   :  { %12309 = vmatpush1.bf16.msra.mxu0 %v23530_v28  ;;  %11927 = vmatprep.subr.bf16.mxu1 %v17430_v48  ;;  %v4314_v23 = vsub.f32 %v23523_v47, %v23531_v52  ;;  %v4326_v29 = vsub.f32 %v23524_v44, %v23532_v26  ;;  %v12320_v28 = vpack.c.bf16 %v5563_v16, %v5551_v61  ;;  %v23534_v48 = vld [vmem:[#allocation35_spill] sm:$0xff]  ;;  %v21512_v3 = vand.u32 4294901760, %v23535_v27 }
 0x3b4   :  { %12311 = vmatprep.subr.bf16.mxu0 %v17436_v42  ;;  %v11938_v62 = vpack.c.bf16 %v4297_v34, %v4285_v57  ;;  %v21513_v38 = vand.u32 4294901760, %v23534_v48  ;;  %v12322_v52 = vpack.c.bf16 %v5581_v54, %v5569_v30  ;;  %v5593_v47 = vand.u32 4294901760, %v5592_v60  ;;  %v23539_v30 = vld [vmem:[#allocation167_spill] sm:$0xff] }
 0x3b5   :  { %v5605_v7 = vand.u32 4294901760, %v5604_v45  ;;  %v23536_v26 = vand.u32 4294901760, %v16671_v25  ;;  %v11940_v42 = vpack.c.bf16 %v4303_v56, %v4291_v12  ;;  %v4315_v16 = vand.u32 4294901760, %v4314_v23  ;;  %v23538_v45 = vld [vmem:[#allocation36_spill] sm:$0xff] }
 0x3b6   :  { %11929 = vmatpush1.bf16.msra.mxu1 %v17442_v49  ;;  %v4327_v34 = vand.u32 4294901760, %v4326_v29  ;;  %v23537_v53 = vand.u32 4294901760, %v23533_v63  ;;  %v12324_v49 = vpack.c.bf16 %v5587_v22, %v5575_v2  ;;  %v11942_v60 = vpack.c.bf16 %v4321_v11, %v4309_v0 }
 0x3b7   :  { %v5598_v51 = vsub.f32 %v16671_v25, %v23536_v26  ;;  %12313 = vmatpush1.bf16.msra.mxu0 %v17448_v17  ;;  %11931 = vmatprep.subr.bf16.mxu1 %v17468_v19  ;;  %v21511_v8 = vand.u32 4294901760, %v23538_v45  ;;  %v21504_v57 = vand.u32 4294901760, %v23539_v30  ;;  %v4332_v17 = vsub.f32 %v23534_v48, %v21513_v38 }
 0x3b8   :  { %v5610_v61 = vsub.f32 %v23533_v63, %v23537_v53  ;;  %12315 = vmatprep.subr.bf16.mxu0 %v17470_v14  ;;  %v4344_v12 = vsub.f32 %v23535_v27, %v21512_v3  ;;  %v21502_v19 = vand.u32 4294901760, %v23487_v36  ;;  %v21501_v41 = vand.u32 4294901760, %v23488_v37  ;;  %v23567_v3 = vld [vmem:[#allocation226_spill] sm:$0xff] }
 0x3b9   :  { %v12326_v14 = vpack.c.bf16 %v5605_v7, %v5593_v47  ;;  %v5599_v0 = vand.u32 4294901760, %v5598_v51  ;;  %v21500_v11 = vand.u32 4294901760, %v23489_v55  ;;  %v21498_v32 = vand.u32 4294901760, %v23490_v46 }
 0x3ba   :  { %11933 = vmatpush1.bf16.msra.mxu1 %v17472_v9  ;;  %v11944_v54 = vpack.c.bf16 %v4327_v34, %v4315_v16  ;;  %v5611_v56 = vand.u32 4294901760, %v5610_v61  ;;  %v21499_v23 = vand.u32 4294901760, %v23491_v18  ;;  %v21503_v29 = vand.u32 4294901760, %v23492_v5 }
 0x3bb   :  { %12317 = vmatpush1.bf16.msra.mxu0 %v17474_v4  ;;  %11935 = vmatprep.subr.bf16.mxu1 %v17481_v40  ;;  %v5616_v7 = vsub.f32 %v23538_v45, %v21511_v8  ;;  %v5628_v9 = vsub.f32 %v23539_v30, %v21504_v57  ;;  %v21505_v4 = vand.u32 4294901760, %v23493_v1  ;;  %v21510_v40 = vand.u32 4294901760, %v23494_v13  ;;  %v23566_v8 = vld [vmem:[#allocation225_spill] sm:$0xff] }
 0x3bc   :  { %12319 = vmatprep.subr.bf16.mxu0 %v17486_v39  ;;  %v4333_v47 = vand.u32 4294901760, %v4332_v17  ;;  %v4345_v51 = vand.u32 4294901760, %v4344_v12  ;;  %v4338_v2 = vsub.f32 %v23487_v36, %v21502_v19  ;;  %v4350_v39 = vsub.f32 %v23488_v37, %v21501_v41 }
 0x3bd   :  { %v5622_v22 = vsub.f32 %v23489_v55, %v21500_v11  ;;  %v5634_v26 = vsub.f32 %v23490_v46, %v21498_v32  ;;  %v21509_v16 = vand.u32 4294901760, %v23495_v6  ;;  %v21508_v34 = vand.u32 4294901760, %v23496_v43 }
 0x3be   :  { %11937 = vmatpush1.bf16.msra.mxu1 %v17511_v20  ;;  %v4356_v53 = vsub.f32 %v23491_v18, %v21499_v23  ;;  %v4368_v20 = vsub.f32 %v23492_v5, %v21503_v29  ;;  %v21506_v61 = vand.u32 4294901760, %v23497_v35  ;;  %v21507_v17 = vand.u32 4294901760, %v23498_v50 }
 0x3bf   :  { %12321 = vmatpush1.bf16.msra.mxu0 %v12320_v28  ;;  %11939 = vmatprep.subr.bf16.mxu1 %v11938_v62  ;;  %v5617_v12 = vand.u32 4294901760, %v5616_v7  ;;  %v5629_v32 = vand.u32 4294901760, %v5628_v9  ;;  %v5640_v28 = vsub.f32 %v23493_v1, %v21505_v4  ;;  %v5652_v62 = vsub.f32 %v23494_v13, %v21510_v40 }
 0x3c0   :  { %12323 = vmatprep.subr.bf16.mxu0 %v12322_v52  ;;  %v12328_v23 = vpack.c.bf16 %v5611_v56, %v5599_v0  ;;  %v11946_v11 = vpack.c.bf16 %v4345_v51, %v4333_v47  ;;  %v4339_v41 = vand.u32 4294901760, %v4338_v2  ;;  %v4351_v19 = vand.u32 4294901760, %v4350_v39 }
 0x3c1   :  { %v5623_v29 = vand.u32 4294901760, %v5622_v22  ;;  %v5635_v57 = vand.u32 4294901760, %v5634_v26  ;;  %v4362_v52 = vsub.f32 %v23495_v6, %v21509_v16  ;;  %v4374_v7 = vsub.f32 %v23496_v43, %v21508_v34  ;;  %v23565_v16 = vld [vmem:[#allocation25_spill] sm:$0xff] }
 0x3c2   :  { %11941 = vmatpush1.bf16.msra.mxu1 %v11940_v42  ;;  %v4357_v9 = vand.u32 4294901760, %v4356_v53  ;;  %v4369_v4 = vand.u32 4294901760, %v4368_v20  ;;  %v5646_v0 = vsub.f32 %v23497_v35, %v21506_v61  ;;  %v5658_v42 = vsub.f32 %v23498_v50, %v21507_v17  ;;  %v23563_v17 = vld [vmem:[#allocation144_spill] sm:$0xff] }
 0x3c3   :  { %12325 = vmatpush1.bf16.msra.mxu0 %v12324_v49  ;;  %11943 = vmatprep.subr.bf16.mxu1 %v11942_v60  ;;  %v12330_v56 = vpack.c.bf16 %v5629_v32, %v5617_v12  ;;  %v5641_v47 = vand.u32 4294901760, %v5640_v28  ;;  %v5653_v51 = vand.u32 4294901760, %v5652_v62  ;;  %v11948_v2 = vpack.c.bf16 %v4351_v19, %v4339_v41  ;;  %v23540_v32 = vld [vmem:[#allocation151_spill] sm:$0xff]  ;;  %v23541_v12 = vld [vmem:[#allocation153_spill] sm:$0xff]  ;;  %v23543_v41 = vld [vmem:[#allocation212_spill] sm:$0xff] }
 0x3c4   :  { %12327 = vmatprep.subr.bf16.mxu0 %v12326_v14  ;;  %v4363_v39 = vand.u32 4294901760, %v4362_v52  ;;  %v4375_v22 = vand.u32 4294901760, %v4374_v7  ;;  %v12332_v49 = vpack.c.bf16 %v5635_v57, %v5623_v29  ;;  %v11950_v60 = vpack.c.bf16 %v4369_v4, %v4357_v9  ;;  %v23542_v19 = vld [vmem:[#allocation211_spill] sm:$0xff]  ;;  %v23546_v29 = vld [vmem:[#allocation216_spill] sm:$0xff]  ;;  %v23547_v4 = vld [vmem:[#allocation217_spill] sm:$0xff] }
 0x3c5   :  { %v5647_v26 = vand.u32 4294901760, %v5646_v0  ;;  %v5659_v53 = vand.u32 4294901760, %v5658_v42  ;;  %v12334_v20 = vpack.c.bf16 %v5653_v51, %v5641_v47  ;;  %v11954_v28 = vpack.c.bf16 %v23541_v12, %v23540_v32  ;;  %v23545_v57 = vld [vmem:[#allocation215_spill] sm:$0xff]  ;;  %v23549_v7 = vld [vmem:[#allocation125_spill] sm:$0xff]  ;;  %v23550_v0 = vld [vmem:[#allocation246_spill] sm:$0xff] }
 0x3c6   :  { %11945 = vmatpush1.bf16.msra.mxu1 %v11944_v54  ;;  %v11952_v61 = vpack.c.bf16 %v4375_v22, %v4363_v39  ;;  %v12338_v54 = vpack.c.bf16 %v23543_v41, %v23542_v19  ;;  %v12340_v62 = vpack.c.bf16 %v23547_v4, %v23546_v29  ;;  %v23548_v52 = vld [vmem:[#allocation19_spill] sm:$0xff]  ;;  %v23551_v42 = vld [vmem:[#allocation218_spill] sm:$0xff]  ;;  %v23554_v51 = vld [vmem:[#allocation20_spill] sm:$0xff]  ;;  %v11966_v38 = vpack.c.bf16 %v23567_v3, %v23566_v8 }
 0x3c7   :  { %12329 = vmatpush1.bf16.msra.mxu0 %v12328_v23  ;;  %11947 = vmatprep.subr.bf16.mxu1 %v11946_v11  ;;  %v12336_v14 = vpack.c.bf16 %v5659_v53, %v5647_v26  ;;  %v23544_v11 = vld [vmem:[#allocation214_spill] sm:$0xff]  ;;  %v11958_v9 = vpack.c.bf16 %v23549_v7, %v23548_v52  ;;  %v23555_v39 = vld [vmem:[#allocation249_spill] sm:$0xff]  ;;  %v23558_v26 = vld [vmem:[#allocation223_spill] sm:$0xff] }
 0x3c8   :  { %12331 = vmatprep.subr.bf16.mxu0 %v12330_v56  ;;  %v11956_v23 = vpack.c.bf16 %v23545_v57, %v23544_v11  ;;  %v23552_v56 = vld [vmem:[#allocation220_spill] sm:$0xff]  ;;  %v23556_v22 = vld [vmem:[#allocation130_spill] sm:$0xff]  ;;  %v23559_v53 = vld [vmem:[#allocation133_spill] sm:$0xff] }
 0x3c9   :  { %v12342_v47 = vpack.c.bf16 %v23552_v56, %v23551_v42  ;;  %v23579_v8 = vld [vmem:[#allocation244_spill] sm:$0xff] }
 0x3ca   :  { %11949 = vmatpush1.bf16.msra.mxu1 %v11948_v2 }
 0x3cb   :  { %12333 = vmatpush1.bf16.msra.mxu0 %v12332_v49  ;;  %11951 = vmatprep.subr.bf16.mxu1 %v11950_v60  ;;  %v23557_v49 = vld [vmem:[#allocation132_spill] sm:$0xff] }
 0x3cc   :  { %12335 = vmatprep.subr.bf16.mxu0 %v12334_v20  ;;  %v12344_v60 = vpack.c.bf16 %v23557_v49, %v23556_v22  ;;  %v11962_v20 = vpack.c.bf16 %v23559_v53, %v23558_v26  ;;  %v23570_v53 = vld [vmem:[#allocation231_spill] sm:$0xff] }
 0x3ce   :  { %11953 = vmatpush1.bf16.msra.mxu1 %v11952_v61  ;;  %v23553_v61 = vld [vmem:[#allocation127_spill] sm:$0xff] }
 0x3cf   :  { %12337 = vmatpush1.bf16.msra.mxu0 %v12336_v14  ;;  %11955 = vmatprep.subr.bf16.mxu1 %v11954_v28  ;;  %v11960_v2 = vpack.c.bf16 %v23554_v51, %v23553_v61  ;;  %v23560_v14 = vld [vmem:[#allocation134_spill] sm:$0xff] }
 0x3d0   :  { %12339 = vmatprep.subr.bf16.mxu0 %v12338_v54  ;;  %v23561_v28 = vld [vmem:[#allocation138_spill] sm:$0xff] }
 0x3d1   :  { %4380 = vmatmul.mubr.f32.vlgmr.msra.gmra.mrb[2].mxu1 %v23550_v0  ;;  %v12346_v54 = vpack.c.bf16 %v23561_v28, %v23560_v14  ;;  %v23571_v28 = vld [vmem:[#allocation232_spill] sm:$0xff] }
 0x3d2   :  { %5664 = vmatmul.mubr.f32.vlgmr.msra.gmra.mrb[4].mxu0 %v23550_v0  ;;  %11957 = vmatpush1.bf16.msra.mxu1 %v11956_v23  ;;  %v23562_v23 = vld [vmem:[#allocation140_spill] sm:$0xff] }
 0x3d3   :  { %4580 = vmatprep.mubr.f32.mxu1 %v23555_v39  ;;  %12341 = vmatpush1.bf16.msra.mxu0 %v12340_v62  ;;  %v11964_v34 = vpack.c.bf16 %v23563_v17, %v23562_v23  ;;  %v23564_v62 = vld [vmem:[#allocation24_spill] sm:$0xff]  ;;  %v23573_v17 = vld [vmem:[#allocation235_spill] sm:$0xff]  ;;  %v23575_v23 = vld [vmem:[#allocation238_spill] sm:$0xff] }
 0x3d4   :  { %5864 = vmatprep.mubr.f32.mxu0 %v23555_v39  ;;  %11959 = vmatprep.subr.bf16.mxu1 %v11958_v9  ;;  %v12348_v40 = vpack.c.bf16 %v23565_v16, %v23564_v62  ;;  %v23568_v0 = vld [vmem:[#allocation228_spill] sm:$0xff]  ;;  %v23569_v39 = vld [vmem:[#allocation229_spill] sm:$0xff] }
 0x3d5   :  { %12343 = vmatprep.subr.bf16.mxu0 %v12342_v47  ;;  %v12350_v9 = vpack.c.bf16 %v23569_v39, %v23568_v0  ;;  %v11968_v47 = vpack.c.bf16 %v23571_v28, %v23570_v53  ;;  %v23576_v16 = vld [vmem:[#allocation240_spill] sm:$0xff]  ;;  %v23577_v62 = vld [vmem:[#allocation241_spill] sm:$0xff]  ;;  %v23581_v28 = vld [vmem:[#allocation39_spill] sm:$0xff] }
 0x3d6   :  { %11961 = vmatpush1.bf16.msra.mxu1 %v11960_v2  ;;  %v23572_v2 = vld [vmem:[#allocation234_spill] sm:$0xff]  ;;  %v12354_v3 = vpack.c.bf16 %v23577_v62, %v23576_v16  ;;  %v23583_v53 = vld [vmem:[#allocation209_spill] sm:$0xff] }
 0x3d7   :  { %12345 = vmatpush1.bf16.msra.mxu0 %v12344_v60  ;;  %11963 = vmatprep.subr.bf16.mxu1 %v11962_v20  ;;  %v12352_v60 = vpack.c.bf16 %v23573_v17, %v23572_v2  ;;  %v23574_v20 = vld [vmem:[#allocation237_spill] sm:$0xff]  ;;  %v23584_v17 = vld [vmem:[#allocation43_spill] sm:$0xff]  ;;  %v23585_v2 = vld [vmem:[#allocation44_spill] sm:$0xff] }
 0x3d8   :  { %12347 = vmatprep.subr.bf16.mxu0 %v12346_v54  ;;  %v11970_v14 = vpack.c.bf16 %v23575_v23, %v23574_v20  ;;  %v23578_v54 = vld [vmem:[#allocation243_spill] sm:$0xff]  ;;  %v12358_v23 = vpack.c.bf16 %v23585_v2, %v23584_v17 }
 0x3d9   :  { %v11972_v39 = vpack.c.bf16 %v23579_v8, %v23578_v54  ;;  %v23587_v20 = vld [vmem:[#allocation47_spill] sm:$0xff] }
 0x3da   :  { %11965 = vmatpush1.bf16.msra.mxu1 %v11964_v34  ;;  %v23580_v34 = vld [vmem:[#allocation38_spill] sm:$0xff]  ;;  %v23589_v8 = vld [vmem:[#allocation51_spill] sm:$0xff] }
 0x3db   :  { %12349 = vmatpush1.bf16.msra.mxu0 %v12348_v40  ;;  %11967 = vmatprep.subr.bf16.mxu1 %v11966_v38  ;;  %v12356_v40 = vpack.c.bf16 %v23581_v28, %v23580_v34  ;;  %v23582_v38 = vld [vmem:[#allocation41_spill] sm:$0xff]  ;;  %v23591_v54 = vld [vmem:[#allocation107_spill] sm:$0xff]  ;;  %v23592_v28 = vld [vmem:[#allocation108_spill] sm:$0xff] }
 0x3dc   :  { %12351 = vmatprep.subr.bf16.mxu0 %v12350_v9  ;;  %v11974_v0 = vpack.c.bf16 %v23583_v53, %v23582_v38  ;;  %v23586_v9 = vld [vmem:[#allocation45_spill] sm:$0xff]  ;;  %v23593_v34 = vld [vmem:[#allocation16_spill] sm:$0xff] }
 0x3dd   :  { %v11976_v62 = vpack.c.bf16 %v23587_v20, %v23586_v9  ;;  %v12362_v53 = vpack.c.bf16 %v23593_v34, %v23592_v28  ;;  %v23595_v38 = vld [vmem:[#allocation117_spill] sm:$0xff]  ;;  %v23597_v20 = vld [vmem:[#allocation148_spill] sm:$0xff] }
 0x3de   :  { %11969 = vmatpush1.bf16.msra.mxu1 %v11968_v47  ;;  %v23588_v47 = vld [vmem:[#allocation50_spill] sm:$0xff]  ;;  %v23599_v9 = vld [vmem:[#allocation193_spill] sm:$0xff] }
 0x3df   :  { %12353 = vmatpush1.bf16.msra.mxu0 %v12352_v60  ;;  %11971 = vmatprep.subr.bf16.mxu1 %v11970_v14  ;;  %v12360_v60 = vpack.c.bf16 %v23589_v8, %v23588_v47  ;;  %v23590_v14 = vld [vmem:[#allocation100_spill] sm:$0xff]  ;;  %v23600_v8 = vld [vmem:[#allocation197_spill] sm:$0xff]  ;;  %v23601_v47 = vld [vmem:[#allocation199_spill] sm:$0xff] }
 0x3e0   :  { %12355 = vmatprep.subr.bf16.mxu0 %v12354_v3  ;;  %v11978_v16 = vpack.c.bf16 %v23591_v54, %v23590_v14  ;;  %v23594_v3 = vld [vmem:[#allocation115_spill] sm:$0xff]  ;;  %v12366_v54 = vpack.c.bf16 %v23601_v47, %v23600_v8  ;;  %v23603_v14 = vld [vmem:[#allocation54_spill] sm:$0xff] }
 0x3e1   :  { %v11980_v2 = vpack.c.bf16 %v23595_v38, %v23594_v3  ;;  %v23605_v38 = vld [vmem:[#allocation58_spill] sm:$0xff]  ;;  %v23607_v3 = vld [vmem:[#allocation28_spill] sm:$0xff] }
 0x3e2   :  { %11973 = vmatpush1.bf16.msra.mxu1 %v11972_v39  ;;  %v23596_v39 = vld [vmem:[#allocation119_spill] sm:$0xff] }
 0x3e3   :  { %12357 = vmatpush1.bf16.msra.mxu0 %v12356_v40  ;;  %11975 = vmatprep.subr.bf16.mxu1 %v11974_v0  ;;  %v12364_v40 = vpack.c.bf16 %v23597_v20, %v23596_v39  ;;  %v23598_v0 = vld [vmem:[#allocation190_spill] sm:$0xff]  ;;  %v23608_v20 = vld [vmem:[#allocation67_spill] sm:$0xff]  ;;  %v23609_v39 = vld [vmem:[#allocation68_spill] sm:$0xff] }
 0x3e4   :  { %12359 = vmatprep.subr.bf16.mxu0 %v12358_v23  ;;  %v11982_v17 = vpack.c.bf16 %v23599_v9, %v23598_v0  ;;  %v23602_v23 = vld [vmem:[#allocation52_spill] sm:$0xff]  ;;  %v12370_v9 = vpack.c.bf16 %v23609_v39, %v23608_v20  ;;  %v23626_v39 = vld [vmem:[#allocation95_spill] sm:$0xff] }
 0x3e5   :  { %v11984_v34 = vpack.c.bf16 %v23603_v14, %v23602_v23 }
 0x3e6   :  { %11977 = vmatpush1.bf16.msra.mxu1 %v11976_v62  ;;  %v23604_v62 = vld [vmem:[#allocation56_spill] sm:$0xff] }
 0x3e7   :  { %12361 = vmatpush1.bf16.msra.mxu0 %v12360_v60  ;;  %11979 = vmatprep.subr.bf16.mxu1 %v11978_v16  ;;  %v12368_v60 = vpack.c.bf16 %v23605_v38, %v23604_v62  ;;  %v23606_v16 = vld [vmem:[#allocation60_spill] sm:$0xff]  ;;  %v23616_v38 = vld [vmem:[#allocation81_spill] sm:$0xff] }
 0x3e8   :  { %12363 = vmatprep.subr.bf16.mxu0 %v12362_v53  ;;  %v11986_v28 = vpack.c.bf16 %v23607_v3, %v23606_v16  ;;  %v23610_v53 = vld [vmem:[#allocation73_spill] sm:$0xff]  ;;  %v23617_v62 = vld [vmem:[#allocation80_spill] sm:$0xff] }
 0x3e9   :  { %v23618_v23 = vpack.c.bf16 %v23616_v38, %v23617_v62  ;;  %v23620_v3 = vld [vmem:[#allocation85_spill] sm:$0xff]  ;;  %v23635_v62 = vld [vmem:[#allocation27_spill] sm:$0xff] }
 0x3ea   :  { %11981 = vmatpush1.bf16.msra.mxu1 %v11980_v2  ;;  %v23611_v2 = vld [vmem:[#allocation70_spill] sm:$0xff] }
 0x3eb   :  { %12365 = vmatpush1.bf16.msra.mxu0 %v12364_v40  ;;  %11983 = vmatprep.subr.bf16.mxu1 %v11982_v17  ;;  %v23612_v47 = vpack.c.bf16 %v23610_v53, %v23611_v2  ;;  %v23613_v40 = vld [vmem:[#allocation77_spill] sm:$0xff]  ;;  %v23614_v17 = vld [vmem:[#allocation30_spill] sm:$0xff]  ;;  %v23629_v2 = vld [vmem:[#allocation15_spill] sm:$0xff] }
 0x3ec   :  { %12367 = vmatprep.subr.bf16.mxu0 %v12366_v54  ;;  %v23615_v14 = vpack.c.bf16 %v23613_v40, %v23614_v17  ;;  %v23619_v54 = vld [vmem:[#allocation86_spill] sm:$0xff]  ;;  %v23632_v17 = vld [vmem:[#allocation141_spill] sm:$0xff] }
 0x3ed   :  { %v23621_v16 = vpack.c.bf16 %v23619_v54, %v23620_v3  ;;  %v23638_v3 = vld [vmem:[#allocation158_spill] sm:$0xff] }
 0x3ee   :  { %11985 = vmatpush1.bf16.msra.mxu1 %v11984_v34  ;;  %v23622_v34 = vld [vmem:[#allocation93_spill] sm:$0xff] }
 0x3ef   :  { %12369 = vmatpush1.bf16.msra.mxu0 %v12368_v60  ;;  %11987 = vmatprep.subr.bf16.mxu1 %v11986_v28  ;;  %v23623_v60 = vld [vmem:[#allocation91_spill] sm:$0xff] }
 0x3f0   :  { %12371 = vmatprep.subr.bf16.mxu0 %v12370_v9  ;;  %v23624_v28 = vpack.c.bf16 %v23622_v34, %v23623_v60  ;;  %v23625_v9 = vld [vmem:[#allocation98_spill] sm:$0xff] }
 0x3f1   :  { %v23627_v53 = vpack.c.bf16 %v23625_v9, %v23626_v39  ;;  %v23643_v39 = vld [vmem:[#allocation164_spill] sm:$0xff] }
 0x3f2   :  { %11989 = vmatpush1.bf16.msra.mxu1 %v23612_v47  ;;  %v23628_v47 = vld [vmem:[#allocation106_spill] sm:$0xff] }
 0x3f3   :  { %12373 = vmatpush1.bf16.msra.mxu0 %v23615_v14  ;;  %11991 = vmatprep.subr.bf16.mxu1 %v23618_v23  ;;  %v23630_v40 = vpack.c.bf16 %v23628_v47, %v23629_v2  ;;  %v23631_v14 = vld [vmem:[#allocation154_spill] sm:$0xff]  ;;  %v23634_v23 = vld [vmem:[#allocation156_spill] sm:$0xff] }
 0x3f4   :  { %12375 = vmatprep.subr.bf16.mxu0 %v23621_v16  ;;  %v23633_v38 = vpack.c.bf16 %v23631_v14, %v23632_v17  ;;  %v23636_v54 = vpack.c.bf16 %v23634_v23, %v23635_v62  ;;  %v23637_v16 = vld [vmem:[#allocation159_spill] sm:$0xff] }
 0x3f5   :  { %v23639_v34 = vpack.c.bf16 %v23637_v16, %v23638_v3 }
 0x3f6   :  { %11993 = vmatpush1.bf16.msra.mxu1 %v23624_v28  ;;  %v23640_v28 = vld [vmem:[#allocation161_spill] sm:$0xff] }
 0x3f7   :  { %12377 = vmatpush1.bf16.msra.mxu0 %v23627_v53  ;;  %11995 = vmatprep.subr.bf16.mxu1 %v23630_v40  ;;  %v23641_v9 = vpack.c.bf16 %v23462_v33, %v23640_v28  ;;  %v23642_v53 = vld [vmem:[#allocation34_spill] sm:$0xff]  ;;  %v23645_v40 = vpack.c.bf16 %v23466_v58, %v23465_v31  ;;  %v23651_v28 = vld [vmem:[#allocation179_spill] sm:$0xff]  ;;  %v23657_v31 = vld [vmem:[#allocation185_spill] sm:$0xff] }
 0x3f8   :  { %12379 = vmatprep.subr.bf16.mxu0 %v23633_v38  ;;  %v23644_v47 = vpack.c.bf16 %v23642_v53, %v23643_v39  ;;  %v23646_v38 = vpack.c.bf16 %v23468_v10, %v23467_v15  ;;  %v23654_v39 = vld [vmem:[#allocation182_spill] sm:$0xff]  ;;  %v23660_v15 = vld [vmem:[#allocation191_spill] sm:$0xff] }
 0x3fa   :  { %11997 = vmatpush1.bf16.msra.mxu1 %v23636_v54  ;;  %v23647_v54 = vpack.c.bf16 %v23470_v24, %v23469_v21 }
 0x3fb   :  { %12381 = vmatpush1.bf16.msra.mxu0 %v23639_v34  ;;  %11999 = vmatprep.subr.bf16.mxu1 %v23641_v9  ;;  %v23648_v34 = vld [vmem:[#allocation176_spill] sm:$0xff] }
 0x3fc   :  { %12383 = vmatprep.subr.bf16.mxu0 %v23644_v47  ;;  %v23649_v33 = vpack.c.bf16 %v23472_v59, %v23648_v34  ;;  %v23650_v9 = vld [vmem:[#allocation180_spill] sm:$0xff]  ;;  %v23653_v47 = vld [vmem:[#allocation183_spill] sm:$0xff] }
 0x3fd   :  { %v23652_v53 = vpack.c.bf16 %v23650_v9, %v23651_v28  ;;  %v23655_v58 = vpack.c.bf16 %v23653_v47, %v23654_v39 }
 0x3fe   :  { %12001 = vmatpush1.bf16.msra.mxu1 %v23645_v40  ;;  %v23656_v40 = vld [vmem:[#allocation187_spill] sm:$0xff] }
 0x3ff   :  { %12385 = vmatpush1.bf16.msra.mxu0 %v23646_v38  ;;  %12003 = vmatprep.subr.bf16.mxu1 %v23647_v54  ;;  %v23658_v10 = vpack.c.bf16 %v23656_v40, %v23657_v31  ;;  %v23659_v38 = vld [vmem:[#allocation194_spill] sm:$0xff] }
 0x400   :  { %12387 = vmatprep.subr.bf16.mxu0 %v23649_v33  ;;  %v23661_v24 = vpack.c.bf16 %v23659_v38, %v23660_v15  ;;  %v23662_v54 = vld [vmem:[#allocation202_spill] sm:$0xff]  ;;  %v23664_v33 = vpack.c.bf16 %v23533_v63, %v16671_v25 }
 0x401   :  { %v23663_v59 = vpack.c.bf16 %v23524_v44, %v23662_v54 }
 0x402   :  { %12005 = vmatpush1.bf16.msra.mxu1 %v23652_v53  ;;  %v23665_v53 = vpack.c.bf16 %v23535_v27, %v23534_v48 }
 0x403   :  { %12389 = vmatpush1.bf16.msra.mxu0 %v23655_v58  ;;  %12007 = vmatprep.subr.bf16.mxu1 %v23658_v10  ;;  %v23666_v58 = vpack.c.bf16 %v23539_v30, %v23538_v45  ;;  %v23667_v10 = vpack.c.bf16 %v23488_v37, %v23487_v36 }
 0x404   :  { %12391 = vmatprep.subr.bf16.mxu0 %v23661_v24  ;;  %v23668_v24 = vpack.c.bf16 %v23490_v46, %v23489_v55  ;;  %v23674_v46 = vld [vmem:[#allocation210_spill] sm:$0xff] }
 0x406   :  { %12009 = vmatpush1.bf16.msra.mxu1 %v23663_v59  ;;  %v23669_v59 = vpack.c.bf16 %v23492_v5, %v23491_v18 }
 0x407   :  { %12393 = vmatpush1.bf16.msra.mxu0 %v23664_v33  ;;  %12011 = vmatprep.subr.bf16.mxu1 %v23665_v53  ;;  %v23670_v33 = vpack.c.bf16 %v23494_v13, %v23493_v1  ;;  %v23671_v53 = vpack.c.bf16 %v23496_v43, %v23495_v6  ;;  %v23677_v13 = vld [vmem:[#allocation251_spill] sm:$0xff]  ;;  %v23687_v43 = vld [vmem:[#allocation224_spill] sm:$0xff]  ;;  %v23745_v6 = vld [vmem:[#allocation69_spill] sm:$0xff] }
 0x408   :  { %12395 = vmatprep.subr.bf16.mxu0 %v23666_v58  ;;  %v23672_v58 = vpack.c.bf16 %v23498_v50, %v23497_v35  ;;  %v23680_v50 = vld [vmem:[#allocation219_spill] sm:$0xff]  ;;  %v23684_v35 = vld [vmem:[#allocation22_spill] sm:$0xff] }
 0x40a   :  { %12013 = vmatpush1.bf16.msra.mxu1 %v23667_v10  ;;  %v23673_v10 = vld [vmem:[#allocation149_spill] sm:$0xff] }
 0x40b   :  { %12397 = vmatpush1.bf16.msra.mxu0 %v23668_v24  ;;  %12015 = vmatprep.subr.bf16.mxu1 %v23669_v59  ;;  %v23675_v24 = vld [vmem:[#allocation248_spill] sm:$0xff]  ;;  %v23676_v59 = vld [vmem:[#allocation213_spill] sm:$0xff] }
 0x40c   :  { %12399 = vmatprep.subr.bf16.mxu0 %v23670_v33  ;;  %v23678_v33 = vld [vmem:[#allocation121_spill] sm:$0xff] }
 0x40e   :  { %12017 = vmatpush1.bf16.msra.mxu1 %v23671_v53  ;;  %v23679_v53 = vld [vmem:[#allocation122_spill] sm:$0xff] }
 0x40f   :  { %12401 = vmatpush1.bf16.msra.mxu0 %v23672_v58  ;;  %12019 = vmatprep.subr.bf16.mxu1 %v23673_v10  ;;  %v23681_v58 = vld [vmem:[#allocation221_spill] sm:$0xff] }
 0x410   :  { %12403 = vmatprep.subr.bf16.mxu0 %v23674_v46  ;;  %v23682_v10 = vld [vmem:[#allocation129_spill] sm:$0xff]  ;;  %v23683_v46 = vld [vmem:[#allocation222_spill] sm:$0xff] }
 0x411   :  { %4583 = vmatmul.mubr.f32.vlgmr.msra.gmra.mrb[2].mxu1 %v23675_v24 }
 0x412   :  { %5867 = vmatmul.mubr.f32.vlgmr.msra.gmra.mrb[4].mxu0 %v23675_v24  ;;  %12021 = vmatpush1.bf16.msra.mxu1 %v23676_v59  ;;  %v23685_v24 = vld [vmem:[#allocation23_spill] sm:$0xff]  ;;  %v23686_v59 = vld [vmem:[#allocation145_spill] sm:$0xff] }
 0x413   :  { %4720 = vmatprep.mubr.f32.mxu1 %v23677_v13  ;;  %12405 = vmatpush1.bf16.msra.mxu0 %v23678_v33  ;;  %v23688_v33 = vld [vmem:[#allocation227_spill] sm:$0xff] }
 0x414   :  { %6004 = vmatprep.mubr.f32.mxu0 %v23677_v13  ;;  %12023 = vmatprep.subr.bf16.mxu1 %v23679_v53  ;;  %v23689_v13 = vld [vmem:[#allocation230_spill] sm:$0xff]  ;;  %v23690_v53 = vld [vmem:[#allocation233_spill] sm:$0xff] }
 0x415   :  { %12407 = vmatprep.subr.bf16.mxu0 %v23680_v50  ;;  %v23691_v50 = vld [vmem:[#allocation236_spill] sm:$0xff] }
 0x416   :  { %12025 = vmatpush1.bf16.msra.mxu1 %v23681_v58  ;;  %v23692_v58 = vld [vmem:[#allocation239_spill] sm:$0xff] }
 0x417   :  { %12409 = vmatpush1.bf16.msra.mxu0 %v23682_v10  ;;  %12027 = vmatprep.subr.bf16.mxu1 %v23683_v46  ;;  %v23693_v10 = vld [vmem:[#allocation242_spill] sm:$0xff]  ;;  %v23694_v46 = vld [vmem:[#allocation208_spill] sm:$0xff] }
 0x418   :  { %12411 = vmatprep.subr.bf16.mxu0 %v23684_v35  ;;  %v23695_v35 = vld [vmem:[#allocation40_spill] sm:$0xff] }
 0x41a   :  { %12029 = vmatpush1.bf16.msra.mxu1 %v23685_v24 }
 0x41b   :  { %12413 = vmatpush1.bf16.msra.mxu0 %v23686_v59  ;;  %12031 = vmatprep.subr.bf16.mxu1 %v23687_v43  ;;  %v23697_v59 = vld [vmem:[#allocation245_spill] sm:$0xff] }
 0x41c   :  { %12415 = vmatprep.subr.bf16.mxu0 %v23688_v33 }
 0x41e   :  { %12033 = vmatpush1.bf16.msra.mxu1 %v23689_v13 }
 0x41f   :  { %12417 = vmatpush1.bf16.msra.mxu0 %v23690_v53  ;;  %12035 = vmatprep.subr.bf16.mxu1 %v23691_v50  ;;  %v23701_v53 = vld [vmem:[#allocation46_spill] sm:$0xff]  ;;  %v23702_v50 = vld [vmem:[#allocation49_spill] sm:$0xff] }
 0x420   :  { %12419 = vmatprep.subr.bf16.mxu0 %v23692_v58  ;;  %v23703_v58 = vld [vmem:[#allocation104_spill] sm:$0xff] }
 0x422   :  { %12037 = vmatpush1.bf16.msra.mxu1 %v23693_v10  ;;  %v23704_v10 = vld [vmem:[#allocation110_spill] sm:$0xff] }
 0x423   :  { %12421 = vmatpush1.bf16.msra.mxu0 %v23694_v46  ;;  %12039 = vmatprep.subr.bf16.mxu1 %v23695_v35  ;;  %v17822_v24 = vpop.f32.mrb[0].mxu1  ;;  %v23705_v46 = vld [vmem:[#allocation113_spill] sm:$0xff]  ;;  %v23706_v35 = vld [vmem:[#allocation118_spill] sm:$0xff] }
 0x424   :  { %23696 = vst [vmem:[#allocation137_spill] sm:$0xff] %v17822_v24  ;;  %12423 = vmatprep.subr.bf16.mxu0 %v23697_v59  ;;  %v17825_v43 = vpop.f32.mrb[2].mxu0  ;;  %v17827_v33 = vpop.f32.mrb[1].mxu1  ;;  %v23707_v24 = vld [vmem:[#allocation150_spill] sm:$0xff]  ;;  %v23708_v59 = vld [vmem:[#allocation195_spill] sm:$0xff] }
 0x425   :  { %23698 = vst [vmem:[#allocation96_spill] sm:$0xff] %v17825_v43  ;;  %23699 = vst [vmem:[#allocation143_spill] sm:$0xff] %v17827_v33  ;;  %v17829_v13 = vpop.f32.mrb[3].mxu0  ;;  %v23709_v43 = vld [vmem:[#allocation198_spill] sm:$0xff]  ;;  %v23710_v33 = vld [vmem:[#allocation55_spill] sm:$0xff] }
 0x426   :  { %23700 = vst [vmem:[#allocation101_spill] sm:$0xff] %v17829_v13  ;;  %12041 = vmatpush1.bf16.msra.mxu1 %v23701_v53  ;;  %v23711_v13 = vld [vmem:[#allocation61_spill] sm:$0xff]  ;;  %v23712_v53 = vld [vmem:[#allocation64_spill] sm:$0xff] }
 0x427   :  { %12425 = vmatpush1.bf16.msra.mxu0 %v23702_v50  ;;  %12043 = vmatprep.subr.bf16.mxu1 %v23703_v58  ;;  %v23713_v50 = vld [vmem:[#allocation72_spill] sm:$0xff]  ;;  %v23714_v58 = vld [vmem:[#allocation74_spill] sm:$0xff] }
 0x428   :  { %12427 = vmatprep.subr.bf16.mxu0 %v23704_v10  ;;  %v23715_v10 = vld [vmem:[#allocation79_spill] sm:$0xff] }
 0x42a   :  { %12045 = vmatpush1.bf16.msra.mxu1 %v23705_v46  ;;  %v23716_v46 = vld [vmem:[#allocation84_spill] sm:$0xff] }
 0x42b   :  { %12429 = vmatpush1.bf16.msra.mxu0 %v23706_v35  ;;  %12047 = vmatprep.subr.bf16.mxu1 %v23707_v24  ;;  %v23717_v35 = vld [vmem:[#allocation89_spill] sm:$0xff]  ;;  %v23718_v24 = vld [vmem:[#allocation94_spill] sm:$0xff] }
 0x42c   :  { %12431 = vmatprep.subr.bf16.mxu0 %v23708_v59  ;;  %v23719_v59 = vld [vmem:[#allocation99_spill] sm:$0xff] }
 0x42e   :  { %12049 = vmatpush1.bf16.msra.mxu1 %v23709_v43  ;;  %v23720_v43 = vld [vmem:[#allocation111_spill] sm:$0xff] }
 0x42f   :  { %12433 = vmatpush1.bf16.msra.mxu0 %v23710_v33  ;;  %12051 = vmatprep.subr.bf16.mxu1 %v23711_v13  ;;  %v23721_v33 = vld [vmem:[#allocation26_spill] sm:$0xff]  ;;  %v23722_v13 = vld [vmem:[#allocation157_spill] sm:$0xff] }
 0x430   :  { %12435 = vmatprep.subr.bf16.mxu0 %v23712_v53  ;;  %v23723_v53 = vld [vmem:[#allocation160_spill] sm:$0xff] }
 0x432   :  { %12053 = vmatpush1.bf16.msra.mxu1 %v23713_v50  ;;  %v23724_v50 = vld [vmem:[#allocation162_spill] sm:$0xff] }
 0x433   :  { %12437 = vmatpush1.bf16.msra.mxu0 %v23714_v58  ;;  %12055 = vmatprep.subr.bf16.mxu1 %v23715_v10  ;;  %v23725_v58 = vld [vmem:[#allocation165_spill] sm:$0xff]  ;;  %v23726_v10 = vld [vmem:[#allocation146_spill] sm:$0xff] }
 0x434   :  { %12439 = vmatprep.subr.bf16.mxu0 %v23716_v46  ;;  %v23727_v46 = vld [vmem:[#allocation173_spill] sm:$0xff] }
 0x436   :  { %12057 = vmatpush1.bf16.msra.mxu1 %v23717_v35  ;;  %v23728_v35 = vld [vmem:[#allocation175_spill] sm:$0xff] }
 0x437   :  { %12441 = vmatpush1.bf16.msra.mxu0 %v23718_v24  ;;  %12059 = vmatprep.subr.bf16.mxu1 %v23719_v59  ;;  %v23729_v24 = vld [vmem:[#allocation178_spill] sm:$0xff]  ;;  %v23730_v59 = vld [vmem:[#allocation181_spill] sm:$0xff] }
 0x438   :  { %12443 = vmatprep.subr.bf16.mxu0 %v23720_v43  ;;  %v23731_v43 = vld [vmem:[#allocation184_spill] sm:$0xff] }
 0x43a   :  { %12061 = vmatpush1.bf16.msra.mxu1 %v23721_v33  ;;  %v23732_v33 = vld [vmem:[#allocation188_spill] sm:$0xff] }
 0x43b   :  { %12445 = vmatpush1.bf16.msra.mxu0 %v23722_v13  ;;  %12063 = vmatprep.subr.bf16.mxu1 %v23723_v53  ;;  %v23733_v13 = vld [vmem:[#allocation200_spill] sm:$0xff]  ;;  %v23734_v53 = vld [vmem:[#allocation205_spill] sm:$0xff] }
 0x43c   :  { %12447 = vmatprep.subr.bf16.mxu0 %v23724_v50  ;;  %v23735_v50 = vld [vmem:[#allocation37_spill] sm:$0xff] }
 0x43e   :  { %12065 = vmatpush1.bf16.msra.mxu1 %v23725_v58  ;;  %v23736_v58 = vld [vmem:[#allocation48_spill] sm:$0xff] }
 0x43f   :  { %12449 = vmatpush1.bf16.msra.mxu0 %v23726_v10  ;;  %12067 = vmatprep.subr.bf16.mxu1 %v23727_v46  ;;  %v23737_v10 = vld [vmem:[#allocation53_spill] sm:$0xff] }
 0x440   :  { %12451 = vmatprep.subr.bf16.mxu0 %v23728_v35  ;;  %v23738_v46 = vld [vmem:[#allocation169_spill] sm:$0xff]  ;;  %v23739_v35 = vld [vmem:[#allocation71_spill] sm:$0xff] }
 0x442   :  { %12069 = vmatpush1.bf16.msra.mxu1 %v23729_v24 }
 0x443   :  { %12453 = vmatpush1.bf16.msra.mxu0 %v23730_v59  ;;  %12071 = vmatprep.subr.bf16.mxu1 %v23731_v43  ;;  %v23740_v59 = vand.u32 4294901760, %v23540_v32  ;;  %v23741_v43 = vand.u32 4294901760, %v23541_v12  ;;  %v23749_v32 = vand.u32 4294901760, %v23546_v29  ;;  %v23756_v29 = vand.u32 4294901760, %v23553_v61  ;;  %v23764_v61 = vld [vmem:[#allocation134_spill] sm:$0xff] }
 0x444   :  { %12455 = vmatprep.subr.bf16.mxu0 %v23732_v33  ;;  %v23742_v33 = vld [vmem:[#allocation83_spill] sm:$0xff] }
 0x445   :  { %v12082_v24 = vpack.c.bf16 %v23741_v43, %v23740_v59  ;;  %v23750_v43 = vand.u32 4294901760, %v23547_v4  ;;  %v23757_v4 = vand.u32 4294901760, %v23554_v51  ;;  %v23766_v51 = vld [vmem:[#allocation138_spill] sm:$0xff] }
 0x446   :  { %12073 = vmatpush1.bf16.msra.mxu1 %v23733_v13  ;;  %v23743_v13 = vand.u32 4294901760, %v23542_v19  ;;  %v23751_v19 = vand.u32 4294901760, %v23548_v52  ;;  %v23759_v52 = vand.u32 4294901760, %v23556_v22 }
 0x447   :  { %12457 = vmatpush1.bf16.msra.mxu0 %v23734_v53  ;;  %12075 = vmatprep.subr.bf16.mxu1 %v23735_v50  ;;  %v23744_v53 = vand.u32 4294901760, %v23543_v41  ;;  %v12468_v12 = vpack.c.bf16 %v23750_v43, %v23749_v32  ;;  %v23752_v41 = vand.u32 4294901760, %v23549_v7  ;;  %v23760_v7 = vand.u32 4294901760, %v23557_v49 }
 0x448   :  { %12459 = vmatprep.subr.bf16.mxu0 %v23736_v58  ;;  %v23767_v43 = vand.u32 4294901760, %v23766_v51  ;;  %v23784_v51 = vld [vmem:[#allocation231_spill] sm:$0xff] }
 0x449   :  { %v12466_v50 = vpack.c.bf16 %v23744_v53, %v23743_v13  ;;  %v12086_v59 = vpack.c.bf16 %v23752_v41, %v23751_v19  ;;  %v23753_v53 = vld [vmem:[#allocation250_spill] sm:$0xff]  ;;  %v23770_v41 = vld [vmem:[#allocation144_spill] sm:$0xff] }
 0x44a   :  { %12077 = vmatpush1.bf16.msra.mxu1 %v23737_v10  ;;  %v23746_v10 = vand.u32 4294901760, %v23544_v11  ;;  %v23754_v11 = vand.u32 4294901760, %v23551_v42  ;;  %v23761_v42 = vand.u32 4294901760, %v23558_v26  ;;  %v23771_v49 = vand.u32 4294901760, %v23770_v41  ;;  %v23772_v26 = vld [vmem:[#allocation24_spill] sm:$0xff] }
 0x44b   :  { %12461 = vmatpush1.bf16.msra.mxu0 %v23738_v46  ;;  %12079 = vmatprep.subr.bf16.mxu1 %v23739_v35  ;;  %v23747_v46 = vand.u32 4294901760, %v23545_v57  ;;  %v23748_v35 = vld [vmem:[#allocation75_spill] sm:$0xff] }
 0x44c   :  { %12463 = vmatprep.subr.bf16.mxu0 %v23742_v33 }
 0x44d   :  { %v12084_v58 = vpack.c.bf16 %v23747_v46, %v23746_v10  ;;  %v23755_v46 = vand.u32 4294901760, %v23552_v56  ;;  %v23758_v10 = vld [vmem:[#allocation247_spill] sm:$0xff]  ;;  %v23762_v56 = vld [vmem:[#allocation133_spill] sm:$0xff] }
 0x44e   :  { %12081 = vmatpush1.bf16.msra.mxu1 %v23745_v6  ;;  %v23763_v13 = vand.u32 4294901760, %v23762_v56 }
 0x44f   :  { %12465 = vmatpush1.bf16.msra.mxu0 %v23748_v35  ;;  %12083 = vmatprep.subr.bf16.mxu1 %v12082_v24  ;;  %v12470_v57 = vpack.c.bf16 %v23755_v46, %v23754_v11  ;;  %v12472_v24 = vpack.c.bf16 %v23760_v7, %v23759_v52  ;;  %v23773_v11 = vand.u32 4294901760, %v23772_v26  ;;  %v23774_v46 = vld [vmem:[#allocation25_spill] sm:$0xff]  ;;  %v23778_v7 = vld [vmem:[#allocation226_spill] sm:$0xff] }
 0x450   :  { %12467 = vmatprep.subr.bf16.mxu0 %v12466_v50  ;;  %v12088_v50 = vpack.c.bf16 %v23757_v4, %v23756_v29  ;;  %v12090_v32 = vpack.c.bf16 %v23763_v13, %v23761_v42  ;;  %v23775_v29 = vand.u32 4294901760, %v23774_v46  ;;  %v23779_v42 = vand.u32 4294901760, %v23778_v7  ;;  %v23782_v13 = vld [vmem:[#allocation229_spill] sm:$0xff]  ;;  %v23796_v7 = vld [vmem:[#allocation240_spill] sm:$0xff] }
 0x451   :  { %4724 = vmatmul.mubr.f32.vlgmr.msra.gmra.mrb[2].mxu1 %v23753_v53  ;;  %v23792_v46 = vld [vmem:[#allocation237_spill] sm:$0xff] }
 0x452   :  { %6008 = vmatmul.mubr.f32.vlgmr.msra.gmra.mrb[4].mxu0 %v23753_v53  ;;  %12085 = vmatpush1.bf16.msra.mxu1 %v12084_v58  ;;  %v23765_v58 = vand.u32 4294901760, %v23764_v61  ;;  %v12476_v4 = vpack.c.bf16 %v23775_v29, %v23773_v11  ;;  %v23783_v61 = vand.u32 4294901760, %v23782_v13  ;;  %v23794_v29 = vld [vmem:[#allocation238_spill] sm:$0xff]  ;;  %v23800_v13 = vld [vmem:[#allocation243_spill] sm:$0xff] }
 0x453   :  { %4987 = vmatprep.mubr.f32.mxu1 %v23758_v10  ;;  %12469 = vmatpush1.bf16.msra.mxu0 %v12468_v12  ;;  %v23768_v12 = vld [vmem:[#allocation140_spill] sm:$0xff] }
 0x454   :  { %6271 = vmatprep.mubr.f32.mxu0 %v23758_v10  ;;  %12087 = vmatprep.subr.bf16.mxu1 %v12086_v59  ;;  %v12474_v19 = vpack.c.bf16 %v23767_v43, %v23765_v58  ;;  %v23769_v22 = vand.u32 4294901760, %v23768_v12  ;;  %v23776_v59 = vld [vmem:[#allocation225_spill] sm:$0xff] }
 0x455   :  { %12471 = vmatprep.subr.bf16.mxu0 %v12470_v57  ;;  %v23777_v52 = vand.u32 4294901760, %v23776_v59  ;;  %v23780_v57 = vld [vmem:[#allocation228_spill] sm:$0xff]  ;;  %v23795_v59 = vand.u32 4294901760, %v23794_v29  ;;  %v23812_v29 = vld [vmem:[#allocation43_spill] sm:$0xff] }
 0x456   :  { %12089 = vmatpush1.bf16.msra.mxu1 %v12088_v50  ;;  %v12092_v53 = vpack.c.bf16 %v23771_v49, %v23769_v22  ;;  %v23781_v50 = vand.u32 4294901760, %v23780_v57  ;;  %v23788_v22 = vld [vmem:[#allocation234_spill] sm:$0xff]  ;;  %v23790_v49 = vld [vmem:[#allocation235_spill] sm:$0xff] }
 0x457   :  { %12473 = vmatpush1.bf16.msra.mxu0 %v12472_v24  ;;  %12091 = vmatprep.subr.bf16.mxu1 %v12090_v32  ;;  %v12094_v56 = vpack.c.bf16 %v23779_v42, %v23777_v52  ;;  %v23785_v24 = vand.u32 4294901760, %v23784_v51  ;;  %v23786_v32 = vld [vmem:[#allocation232_spill] sm:$0xff]  ;;  %v23789_v41 = vand.u32 4294901760, %v23788_v22  ;;  %v23791_v26 = vand.u32 4294901760, %v23790_v49  ;;  %v23798_v42 = vld [vmem:[#allocation241_spill] sm:$0xff] }
 0x458   :  { %12475 = vmatprep.subr.bf16.mxu0 %v12474_v19  ;;  %v12478_v58 = vpack.c.bf16 %v23783_v61, %v23781_v50  ;;  %v23787_v43 = vand.u32 4294901760, %v23786_v32  ;;  %v23793_v19 = vand.u32 4294901760, %v23792_v46  ;;  %v23799_v57 = vand.u32 4294901760, %v23798_v42  ;;  %v23808_v49 = vld [vmem:[#allocation41_spill] sm:$0xff] }
 0x459   :  { %v12480_v11 = vpack.c.bf16 %v23791_v26, %v23789_v41  ;;  %v23810_v26 = vld [vmem:[#allocation209_spill] sm:$0xff] }
 0x45a   :  { %12093 = vmatpush1.bf16.msra.mxu1 %v12092_v53  ;;  %v12096_v12 = vpack.c.bf16 %v23787_v43, %v23785_v24  ;;  %v12098_v52 = vpack.c.bf16 %v23795_v59, %v23793_v19  ;;  %v23797_v53 = vand.u32 4294901760, %v23796_v7  ;;  %v23804_v24 = vld [vmem:[#allocation38_spill] sm:$0xff]  ;;  %v23806_v43 = vld [vmem:[#allocation39_spill] sm:$0xff]  ;;  %v23811_v46 = vand.u32 4294901760, %v23810_v26  ;;  %v23814_v59 = vld [vmem:[#allocation44_spill] sm:$0xff] }
 0x45b   :  { %12477 = vmatpush1.bf16.msra.mxu0 %v12476_v4  ;;  %12095 = vmatprep.subr.bf16.mxu1 %v12094_v56  ;;  %v23801_v4 = vand.u32 4294901760, %v23800_v13  ;;  %v23802_v56 = vld [vmem:[#allocation244_spill] sm:$0xff]  ;;  %v23805_v32 = vand.u32 4294901760, %v23804_v24  ;;  %v23807_v22 = vand.u32 4294901760, %v23806_v43  ;;  %v23815_v7 = vand.u32 4294901760, %v23814_v59  ;;  %v23816_v42 = vld [vmem:[#allocation45_spill] sm:$0xff] }
 0x45c   :  { %12479 = vmatprep.subr.bf16.mxu0 %v12478_v58  ;;  %v12482_v50 = vpack.c.bf16 %v23799_v57, %v23797_v53  ;;  %v23803_v61 = vand.u32 4294901760, %v23802_v56  ;;  %v23809_v58 = vand.u32 4294901760, %v23808_v49  ;;  %v23824_v43 = vld [vmem:[#allocation100_spill] sm:$0xff]  ;;  %v23832_v59 = vld [vmem:[#allocation115_spill] sm:$0xff] }
 0x45d   :  { %v12484_v41 = vpack.c.bf16 %v23807_v22, %v23805_v32  ;;  %v23826_v22 = vld [vmem:[#allocation107_spill] sm:$0xff]  ;;  %v23828_v26 = vld [vmem:[#allocation108_spill] sm:$0xff] }
 0x45e   :  { %12097 = vmatpush1.bf16.msra.mxu1 %v12096_v12  ;;  %v12100_v51 = vpack.c.bf16 %v23803_v61, %v23801_v4  ;;  %v12102_v19 = vpack.c.bf16 %v23811_v46, %v23809_v58  ;;  %v23813_v12 = vand.u32 4294901760, %v23812_v29  ;;  %v23820_v4 = vld [vmem:[#allocation50_spill] sm:$0xff]  ;;  %v23822_v61 = vld [vmem:[#allocation51_spill] sm:$0xff]  ;;  %v23827_v49 = vand.u32 4294901760, %v23826_v22  ;;  %v23830_v46 = vld [vmem:[#allocation16_spill] sm:$0xff] }
 0x45f   :  { %12481 = vmatpush1.bf16.msra.mxu0 %v12480_v11  ;;  %12099 = vmatprep.subr.bf16.mxu1 %v12098_v52  ;;  %v23817_v11 = vand.u32 4294901760, %v23816_v42  ;;  %v23818_v52 = vld [vmem:[#allocation47_spill] sm:$0xff]  ;;  %v23821_v56 = vand.u32 4294901760, %v23820_v4  ;;  %v23823_v24 = vand.u32 4294901760, %v23822_v61  ;;  %v23831_v29 = vand.u32 4294901760, %v23830_v46  ;;  %v23841_v61 = vld [vmem:[#allocation193_spill] sm:$0xff] }
 0x460   :  { %12483 = vmatprep.subr.bf16.mxu0 %v12482_v50  ;;  %v12486_v53 = vpack.c.bf16 %v23815_v7, %v23813_v12  ;;  %v23819_v57 = vand.u32 4294901760, %v23818_v52  ;;  %v23825_v50 = vand.u32 4294901760, %v23824_v43 }
 0x461   :  { %v12488_v32 = vpack.c.bf16 %v23823_v24, %v23821_v56  ;;  %v23842_v24 = vand.u32 4294901760, %v23841_v61  ;;  %v23861_v61 = vld [vmem:[#allocation70_spill] sm:$0xff] }
 0x462   :  { %12101 = vmatpush1.bf16.msra.mxu1 %v12100_v51  ;;  %v12104_v13 = vpack.c.bf16 %v23819_v57, %v23817_v11  ;;  %v12106_v58 = vpack.c.bf16 %v23827_v49, %v23825_v50  ;;  %v23829_v51 = vand.u32 4294901760, %v23828_v26  ;;  %v23836_v11 = vld [vmem:[#allocation119_spill] sm:$0xff]  ;;  %v23838_v57 = vld [vmem:[#allocation148_spill] sm:$0xff] }
 0x463   :  { %12485 = vmatpush1.bf16.msra.mxu0 %v12484_v41  ;;  %12103 = vmatprep.subr.bf16.mxu1 %v12102_v19  ;;  %v23833_v41 = vand.u32 4294901760, %v23832_v59  ;;  %v23834_v19 = vld [vmem:[#allocation117_spill] sm:$0xff]  ;;  %v23837_v52 = vand.u32 4294901760, %v23836_v11  ;;  %v23839_v4 = vand.u32 4294901760, %v23838_v57  ;;  %v23844_v50 = vld [vmem:[#allocation199_spill] sm:$0xff]  ;;  %v23846_v26 = vld [vmem:[#allocation52_spill] sm:$0xff] }
 0x464   :  { %12487 = vmatprep.subr.bf16.mxu0 %v12486_v53  ;;  %v12490_v12 = vpack.c.bf16 %v23831_v29, %v23829_v51  ;;  %v23835_v7 = vand.u32 4294901760, %v23834_v19  ;;  %v23840_v53 = vand.u32 4294901760, %v23598_v0  ;;  %v23845_v22 = vand.u32 4294901760, %v23844_v50  ;;  %v23850_v29 = vld [vmem:[#allocation56_spill] sm:$0xff]  ;;  %v23852_v0 = vld [vmem:[#allocation58_spill] sm:$0xff] }
 0x465   :  { %v12492_v56 = vpack.c.bf16 %v23839_v4, %v23837_v52  ;;  %v23851_v59 = vand.u32 4294901760, %v23850_v29  ;;  %v23856_v11 = vld [vmem:[#allocation28_spill] sm:$0xff]  ;;  %v23865_v50 = vld [vmem:[#allocation30_spill] sm:$0xff]  ;;  %v23871_v29 = vld [vmem:[#allocation81_spill] sm:$0xff] }
 0x466   :  { %12105 = vmatpush1.bf16.msra.mxu1 %v12104_v13  ;;  %v12108_v42 = vpack.c.bf16 %v23835_v7, %v23833_v41  ;;  %v12110_v43 = vpack.c.bf16 %v23842_v24, %v23840_v53  ;;  %v23843_v13 = vand.u32 4294901760, %v23600_v8  ;;  %v23853_v41 = vand.u32 4294901760, %v23852_v0  ;;  %v23854_v7 = vld [vmem:[#allocation60_spill] sm:$0xff]  ;;  %v23863_v24 = vld [vmem:[#allocation73_spill] sm:$0xff] }
 0x467   :  { %12489 = vmatpush1.bf16.msra.mxu0 %v12488_v32  ;;  %12107 = vmatprep.subr.bf16.mxu1 %v12106_v58  ;;  %v23847_v32 = vand.u32 4294901760, %v23846_v26  ;;  %v23848_v58 = vld [vmem:[#allocation54_spill] sm:$0xff]  ;;  %v23857_v8 = vand.u32 4294901760, %v23856_v11  ;;  %v23859_v57 = vld [vmem:[#allocation68_spill] sm:$0xff]  ;;  %v23867_v26 = vld [vmem:[#allocation77_spill] sm:$0xff] }
 0x468   :  { %12491 = vmatprep.subr.bf16.mxu0 %v12490_v12  ;;  %v12494_v49 = vpack.c.bf16 %v23845_v22, %v23843_v13  ;;  %v23849_v51 = vand.u32 4294901760, %v23848_v58  ;;  %v12496_v19 = vpack.c.bf16 %v23853_v41, %v23851_v59  ;;  %v23855_v12 = vand.u32 4294901760, %v23854_v7  ;;  %v23873_v0 = vld [vmem:[#allocation85_spill] sm:$0xff]  ;;  %v23875_v41 = vld [vmem:[#allocation86_spill] sm:$0xff] }
 0x469   :  { %v23860_v4 = vand.u32 4294901760, %v23859_v57  ;;  %v23866_v22 = vand.u32 4294901760, %v23865_v50  ;;  %v23876_v7 = vand.u32 4294901760, %v23875_v41  ;;  %v23878_v11 = vld [vmem:[#allocation93_spill] sm:$0xff]  ;;  %v23899_v41 = vld [vmem:[#allocation34_spill] sm:$0xff] }
 0x46a   :  { %12109 = vmatpush1.bf16.msra.mxu1 %v12108_v42  ;;  %v12112_v46 = vpack.c.bf16 %v23849_v51, %v23847_v32  ;;  %v12114_v52 = vpack.c.bf16 %v23857_v8, %v23855_v12  ;;  %v23858_v42 = vand.u32 4294901760, %v23608_v20  ;;  %v23868_v32 = vand.u32 4294901760, %v23867_v26  ;;  %v23869_v51 = vld [vmem:[#allocation80_spill] sm:$0xff] }
 0x46b   :  { %12493 = vmatpush1.bf16.msra.mxu0 %v12492_v56  ;;  %12111 = vmatprep.subr.bf16.mxu1 %v12110_v43  ;;  %v23862_v56 = vand.u32 4294901760, %v23861_v61  ;;  %v23864_v43 = vand.u32 4294901760, %v23863_v24  ;;  %v23872_v20 = vand.u32 4294901760, %v23871_v29  ;;  %v23879_v8 = vand.u32 4294901760, %v23878_v11  ;;  %v23885_v24 = vld [vmem:[#allocation106_spill] sm:$0xff]  ;;  %v23893_v29 = vld [vmem:[#allocation161_spill] sm:$0xff] }
 0x46c   :  { %12495 = vmatprep.subr.bf16.mxu0 %v12494_v49  ;;  %v12498_v53 = vpack.c.bf16 %v23860_v4, %v23858_v42  ;;  %v12500_v58 = vpack.c.bf16 %v23868_v32, %v23866_v22  ;;  %v23870_v49 = vand.u32 4294901760, %v23869_v51  ;;  %v23880_v42 = vld [vmem:[#allocation95_spill] sm:$0xff]  ;;  %v23882_v4 = vld [vmem:[#allocation98_spill] sm:$0xff]  ;;  %v23889_v26 = vand.u32 4294901760, %v23635_v62 }
 0x46d   :  { %v12116_v13 = vpack.c.bf16 %v23864_v43, %v23862_v56  ;;  %v23881_v57 = vand.u32 4294901760, %v23880_v42  ;;  %v23883_v61 = vand.u32 4294901760, %v23882_v4  ;;  %v23886_v43 = vand.u32 4294901760, %v23885_v24 }
 0x46e   :  { %12113 = vmatpush1.bf16.msra.mxu1 %v12112_v46  ;;  %v12118_v59 = vpack.c.bf16 %v23872_v20, %v23870_v49  ;;  %v23874_v46 = vand.u32 4294901760, %v23873_v0  ;;  %v23890_v32 = vand.u32 4294901760, %v23634_v23  ;;  %v23891_v51 = vand.u32 4294901760, %v23638_v3  ;;  %v23901_v23 = vld [vmem:[#allocation166_spill] sm:$0xff] }
 0x46f   :  { %12497 = vmatpush1.bf16.msra.mxu0 %v12496_v19  ;;  %12115 = vmatprep.subr.bf16.mxu1 %v12114_v52  ;;  %v23877_v19 = vand.u32 4294901760, %v23623_v60  ;;  %v12504_v56 = vpack.c.bf16 %v23883_v61, %v23881_v57  ;;  %v23888_v60 = vand.u32 4294901760, %v23631_v14  ;;  %v23894_v20 = vand.u32 4294901760, %v23893_v29  ;;  %v23897_v14 = vld [vmem:[#allocation164_spill] sm:$0xff]  ;;  %v23910_v61 = vld [vmem:[#allocation174_spill] sm:$0xff] }
 0x470   :  { %12499 = vmatprep.subr.bf16.mxu0 %v12498_v53  ;;  %v12502_v12 = vpack.c.bf16 %v23876_v7, %v23874_v46  ;;  %v23884_v53 = vand.u32 4294901760, %v23629_v2  ;;  %v23892_v2 = vand.u32 4294901760, %v23637_v16  ;;  %v23898_v46 = vand.u32 4294901760, %v23897_v14  ;;  %v23905_v16 = vld [vmem:[#allocation170_spill] sm:$0xff] }
 0x471   :  { %v12120_v52 = vpack.c.bf16 %v23879_v8, %v23877_v19  ;;  %v23900_v62 = vand.u32 4294901760, %v23899_v41  ;;  %v23903_v19 = vld [vmem:[#allocation142_spill] sm:$0xff]  ;;  %v23906_v8 = vand.u32 4294901760, %v23905_v16  ;;  %v23909_v4 = vand.u32 4294901760, %v23469_v21 }
 0x472   :  { %12117 = vmatpush1.bf16.msra.mxu1 %v12116_v13  ;;  %v12122_v50 = vpack.c.bf16 %v23886_v43, %v23884_v53  ;;  %v23887_v13 = vand.u32 4294901760, %v23632_v17  ;;  %v12508_v49 = vpack.c.bf16 %v23892_v2, %v23891_v51  ;;  %v23904_v11 = vand.u32 4294901760, %v23903_v19  ;;  %v23913_v43 = vld [vmem:[#allocation177_spill] sm:$0xff] }
 0x473   :  { %12501 = vmatpush1.bf16.msra.mxu0 %v12500_v58  ;;  %12119 = vmatprep.subr.bf16.mxu1 %v12118_v59  ;;  %v12124_v58 = vpack.c.bf16 %v23890_v32, %v23889_v26  ;;  %v23895_v59 = vld [vmem:[#allocation33_spill] sm:$0xff]  ;;  %v12510_v7 = vpack.c.bf16 %v23900_v62, %v23898_v46  ;;  %v23912_v24 = vand.u32 4294901760, %v23648_v34  ;;  %v23917_v32 = vand.u32 4294901760, %v23654_v39 }
 0x474   :  { %12503 = vmatprep.subr.bf16.mxu0 %v12502_v12  ;;  %v12506_v22 = vpack.c.bf16 %v23888_v60, %v23887_v13  ;;  %v23896_v17 = vand.u32 4294901760, %v23895_v59  ;;  %v23902_v12 = vand.u32 4294901760, %v23901_v23  ;;  %v23915_v60 = vand.u32 4294901760, %v23651_v28  ;;  %v23943_v19 = vld [vmem:[#allocation97_spill] sm:$0xff] }
 0x475   :  { %v23918_v21 = vand.u32 4294901760, %v23653_v47  ;;  %v23919_v51 = vand.u32 4294901760, %v23657_v31  ;;  %v23920_v34 = vand.u32 4294901760, %v23656_v40  ;;  %v23922_v28 = vand.u32 4294901760, %v23659_v38 }
 0x476   :  { %12121 = vmatpush1.bf16.msra.mxu1 %v12120_v52  ;;  %v12126_v0 = vpack.c.bf16 %v23896_v17, %v23894_v20  ;;  %v12128_v3 = vpack.c.bf16 %v23904_v11, %v23902_v12  ;;  %v23907_v52 = vld [vmem:[#allocation171_spill] sm:$0xff]  ;;  %v23924_v20 = vand.u32 4294901760, %v23524_v44  ;;  %v23925_v47 = vand.u32 4294901760, %v16671_v25 }
 0x477   :  { %12505 = vmatpush1.bf16.msra.mxu0 %v12504_v56  ;;  %12123 = vmatprep.subr.bf16.mxu1 %v12122_v50  ;;  %v23908_v42 = vand.u32 4294901760, %v23907_v52  ;;  %v23911_v56 = vand.u32 4294901760, %v23910_v61  ;;  %v23914_v50 = vand.u32 4294901760, %v23913_v43  ;;  %v12134_v2 = vpack.c.bf16 %v23920_v34, %v23919_v51  ;;  %v23950_v52 = vld [vmem:[#allocation210_spill] sm:$0xff]  ;;  %v23967_v51 = vld [vmem:[#allocation239_spill] sm:$0xff] }
 0x478   :  { %12507 = vmatprep.subr.bf16.mxu0 %v12506_v22  ;;  %v23916_v22 = vand.u32 4294901760, %v23650_v9  ;;  %v23923_v9 = vand.u32 4294901760, %v23662_v54  ;;  %v23926_v31 = vand.u32 4294901760, %v23533_v63  ;;  %v23927_v59 = vand.u32 4294901760, %v23534_v48  ;;  %v23934_v48 = vld [vmem:[#allocation59_spill] sm:$0xff]  ;;  %v23954_v61 = vld [vmem:[#allocation122_spill] sm:$0xff] }
 0x479   :  { %v12512_v57 = vpack.c.bf16 %v23908_v42, %v23906_v8  ;;  %v12130_v53 = vpack.c.bf16 %v23911_v56, %v23909_v4  ;;  %v12514_v13 = vpack.c.bf16 %v23914_v50, %v23912_v24  ;;  %v23929_v38 = vand.u32 4294901760, %v23538_v45  ;;  %v23951_v42 = vld [vmem:[#allocation246_spill] sm:$0xff]  ;;  %v23953_v4 = vld [vmem:[#allocation121_spill] sm:$0xff]  ;;  %v23955_v56 = vld [vmem:[#allocation219_spill] sm:$0xff] }
 0x47a   :  { %12125 = vmatpush1.bf16.msra.mxu1 %v12124_v58  ;;  %v12132_v26 = vpack.c.bf16 %v23916_v22, %v23915_v60  ;;  %v12516_v58 = vpack.c.bf16 %v23918_v21, %v23917_v32  ;;  %v12136_v39 = vpack.c.bf16 %v23924_v20, %v23923_v9  ;;  %v12520_v40 = vpack.c.bf16 %v23926_v31, %v23925_v47  ;;  %v23957_v24 = vld [vmem:[#allocation129_spill] sm:$0xff]  ;;  %v23958_v43 = vld [vmem:[#allocation222_spill] sm:$0xff]  ;;  %v23962_v22 = vld [vmem:[#allocation224_spill] sm:$0xff] }
 0x47b   :  { %12509 = vmatpush1.bf16.msra.mxu0 %v12508_v49  ;;  %12127 = vmatprep.subr.bf16.mxu1 %v12126_v0  ;;  %v23921_v49 = vand.u32 4294901760, %v23660_v15  ;;  %v23928_v15 = vand.u32 4294901760, %v23535_v27  ;;  %v23930_v54 = vand.u32 4294901760, %v23539_v30  ;;  %v23931_v44 = vand.u32 4294901760, %v23487_v36  ;;  %v23959_v50 = vld [vmem:[#allocation22_spill] sm:$0xff]  ;;  %v23961_v60 = vld [vmem:[#allocation145_spill] sm:$0xff] }
 0x47c   :  { %12511 = vmatprep.subr.bf16.mxu0 %v12510_v7  ;;  %v23932_v14 = vand.u32 4294901760, %v23488_v37  ;;  %v23933_v63 = vand.u32 4294901760, %v23489_v55  ;;  %v23935_v46 = vand.u32 4294901760, %v23934_v48  ;;  %v23936_v41 = vand.u32 4294901760, %v23491_v18  ;;  %v23939_v7 = vld [vmem:[#allocation65_spill] sm:$0xff]  ;;  %v23941_v37 = vld [vmem:[#allocation90_spill] sm:$0xff] }
 0x47d   :  { %v12518_v29 = vpack.c.bf16 %v23922_v28, %v23921_v49  ;;  %v12138_v17 = vpack.c.bf16 %v23928_v15, %v23927_v59  ;;  %v12522_v0 = vpack.c.bf16 %v23930_v54, %v23929_v38  ;;  %v23937_v45 = vand.u32 4294901760, %v23492_v5  ;;  %v23947_v18 = vld [vmem:[#allocation76_spill] sm:$0xff]  ;;  %v1238_v32 = vld [vmem:[%s20586_s4] sm:$0xff]  ;;  %v23968_v34 = vld [vmem:[#allocation207_spill] sm:$0xff] }
 0x47e   :  { %12129 = vmatpush1.bf16.msra.mxu1 %v12128_v3  ;;  %v12140_v25 = vpack.c.bf16 %v23932_v14, %v23931_v44  ;;  %v12524_v27 = vpack.c.bf16 %v23935_v46, %v23933_v63  ;;  %v23938_v30 = vand.u32 4294901760, %v23493_v1  ;;  %v23940_v36 = vand.u32 4294901760, %v23939_v7  ;;  %v23945_v3 = vld [vmem:[#allocation103_spill] sm:$0xff]  ;;  %v23949_v1 = vld [vmem:[#allocation149_spill] sm:$0xff]  ;;  %v23970_v9 = vld [vmem:[#allocation242_spill] sm:$0xff] }
 0x47f   :  { %12513 = vmatpush1.bf16.msra.mxu0 %v12512_v57  ;;  %12131 = vmatprep.subr.bf16.mxu1 %v12130_v53  ;;  %v12142_v62 = vpack.c.bf16 %v23937_v45, %v23936_v41  ;;  %v23942_v12 = vand.u32 4294901760, %v23941_v37  ;;  %v23944_v11 = vand.u32 4294901760, %v23943_v19  ;;  %v23946_v16 = vand.u32 4294901760, %v23945_v3  ;;  %v23952_v57 = vld [vmem:[#allocation213_spill] sm:$0xff]  ;;  %v23972_v47 = vld [vmem:[#allocation208_spill] sm:$0xff]  ;;  %v23976_v54 = vld [vmem:[#allocation46_spill] sm:$0xff] }
 0x480   :  { %12515 = vmatprep.subr.bf16.mxu0 %v12514_v13  ;;  %v12526_v23 = vpack.c.bf16 %v23940_v36, %v23938_v30  ;;  %v23948_v8 = vand.u32 4294901760, %v23947_v18  ;;  %v23956_v53 = vld [vmem:[#allocation221_spill] sm:$0xff]  ;;  %v23960_v13 = vld [vmem:[#allocation23_spill] sm:$0xff]  ;;  %v23969_v49 = vsub.s32 0, %v23968_v34  ;;  %v23971_v20 = vsub.s32 1, %v23968_v34  ;;  %v23973_v31 = vld [vmem:[#allocation40_spill] sm:$0xff] }
 0x481   :  { %v12144_v55 = vpack.c.bf16 %v23944_v11, %v23942_v12  ;;  %v23965_v21 = vld [vmem:[#allocation233_spill] sm:$0xff]  ;;  %v23980_v63 = vld [vmem:[#allocation110_spill] sm:$0xff]  ;;  %v23981_v48 = vld [vmem:[#allocation96_spill] sm:$0xff] }
 0x482   :  { %12133 = vmatpush1.bf16.msra.mxu1 %v12132_v26  ;;  %v12528_v5 = vpack.c.bf16 %v23948_v8, %v23946_v16  ;;  %v23963_v26 = vld [vmem:[#allocation227_spill] sm:$0xff]  ;;  %v1243_v28 = vrot.slane %v1238_v32, %v23969_v49  ;;  %v23975_v15 = vld [vmem:[#allocation137_spill] sm:$0xff]  ;;  %v23984_v7 = vld [vmem:[#allocation118_spill] sm:$0xff] }
 0x483   :  { %12517 = vmatpush1.bf16.msra.mxu0 %v12516_v58  ;;  %12135 = vmatprep.subr.bf16.mxu1 %v12134_v2  ;;  %v23966_v58 = vld [vmem:[#allocation236_spill] sm:$0xff]  ;;  %v1250_v2 = vsub.s32 2, %v23968_v34  ;;  %v23978_v14 = vld [vmem:[#allocation49_spill] sm:$0xff]  ;;  %v23985_v36 = vld [vmem:[#allocation150_spill] sm:$0xff] }
 0x484   :  { %12519 = vmatprep.subr.bf16.mxu0 %v12518_v29  ;;  %v1254_v29 = vsub.s32 3, %v23968_v34  ;;  %v23982_v41 = vld [vmem:[#allocation101_spill] sm:$0xff]  ;;  %v23988_v11 = vld [vmem:[#allocation198_spill] sm:$0xff]  ;;  %v23990_v3 = vld [vmem:[#allocation55_spill] sm:$0xff] }
 0x485   :  { %v1251_v59 = vrot.slane %v1238_v32, %v1250_v2  ;;  %v23991_v16 = vld [vmem:[#allocation61_spill] sm:$0xff]  ;;  %v23992_v18 = vld [vmem:[#allocation64_spill] sm:$0xff]  ;;  %v24008_v49 = vld [vmem:[#allocation26_spill] sm:$0xff] }
 0x486   :  { %12137 = vmatpush1.bf16.msra.mxu1 %v12136_v39  ;;  %v1247_v39 = vrot.slane %v1238_v32, %v23971_v20  ;;  %v1255_v38 = vrot.slane %v1238_v32, %v1254_v29  ;;  %v6441_v32 = vld [vmem:[#allocation8 + $0x88] sm:$0xff]  ;;  %v24009_v29 = vld [vmem:[#allocation157_spill] sm:$0xff] }
 0x487   :  { %12521 = vmatpush1.bf16.msra.mxu0 %v12520_v40  ;;  %12139 = vmatprep.subr.bf16.mxu1 %v12138_v17  ;;  %v23974_v40 = vld [vmem:[#allocation245_spill] sm:$0xff]  ;;  %v13364_v17 = vadd.f32 %v23975_v15, %v1243_v28  ;;  %v13366_v46 = vadd.f32 %v23981_v48, %v1251_v59  ;;  %v24011_v59 = vld [vmem:[#allocation162_spill] sm:$0xff] }
 0x488   :  { %12523 = vmatprep.subr.bf16.mxu0 %v12522_v0  ;;  %v23977_v0 = vld [vmem:[#allocation143_spill] sm:$0xff]  ;;  %v13367_v45 = vadd.f32 %v23982_v41, %v1255_v38  ;;  %v6456_v38 = vld [vmem:[#allocation8 + $0x100] sm:$0xff]  ;;  %v6475_v41 = vld [vmem:[#allocation8 + $0x198] sm:$0xff] }
 0x489   :  { %v13365_v44 = vadd.f32 %v23977_v0, %v1247_v39  ;;  %v6418_v37 = vmax.f32 %v13366_v46, 0.0  ;;  %v6611_v39 = vand.u32 4294901760, %v6441_v32  ;;  %v6443_v46 = vld [vmem:[#allocation8 + $0x98] sm:$0xff] }
 0x48a   :  { %12141 = vmatpush1.bf16.msra.mxu1 %v12140_v25  ;;  %v23979_v25 = vld [vmem:[#allocation104_spill] sm:$0xff]  ;;  %v6419_v19 = vmax.f32 %v13367_v45, 0.0 }
 0x48b   :  { %12525 = vmatpush1.bf16.msra.mxu0 %v12524_v27  ;;  %12143 = vmatprep.subr.bf16.mxu1 %v12142_v62  ;;  %v6416_v27 = vmax.f32 %v13364_v17, 0.0  ;;  %v23983_v62 = vld [vmem:[#allocation113_spill] sm:$0xff]  ;;  %v6417_v30 = vmax.f32 %v13365_v44, 0.0  ;;  %v18188_v8 = vand.u32 4294901760, %v6418_v37  ;;  %v6442_v44 = vld [vmem:[#allocation8 + $0x90] sm:$0xff] }
 0x48c   :  { %12527 = vmatprep.subr.bf16.mxu0 %v12526_v23  ;;  %v23986_v23 = vld [vmem:[#allocation195_spill] sm:$0xff] }
 0x48d   :  { %v18180_v12 = vand.u32 4294901760, %v6416_v27  ;;  %23993 = vst [vmem:[#allocation152_spill] sm:$0xff] %v18188_v8 }
 0x48e   :  { %12145 = vmatpush1.bf16.msra.mxu1 %v12144_v55  ;;  %v18183_v55 = vand.u32 4294901760, %v6417_v30 }
 0x48f   :  { %12529 = vmatpush1.bf16.msra.mxu0 %v12528_v5  ;;  %12147 = vmatprep.subr.bf16.mxu1 %v23949_v1  ;;  %23987 = vst [vmem:[#allocation147_spill] sm:$0xff] %v18180_v12  ;;  %v18191_v5 = vsub.f32 %v6416_v27, %v18180_v12  ;;  %v18193_v1 = vand.u32 4294901760, %v6419_v19  ;;  %v6474_v27 = vld [vmem:[#allocation8 + $0x190] sm:$0xff] }
 0x490   :  { %12531 = vmatprep.subr.bf16.mxu0 %v23950_v52  ;;  %23989 = vst [vmem:[#allocation102_spill] sm:$0xff] %v18183_v55  ;;  %v23996_v52 = vld [vmem:[#allocation72_spill] sm:$0xff] }
 0x491   :  { %4989 = vmatmul.mubr.f32.vlgmr.msra.gmra.mrb[2].mxu1 %v23951_v42  ;;  %23994 = vst [vmem:[#allocation105_spill] sm:$0xff] %v18191_v5  ;;  %23995 = vst [vmem:[#allocation155_spill] sm:$0xff] %v18193_v1 }
 0x492   :  { %6273 = vmatmul.mubr.f32.vlgmr.msra.gmra.mrb[4].mxu0 %v23951_v42  ;;  %12149 = vmatpush1.bf16.msra.mxu1 %v23952_v57  ;;  %v18197_v57 = vsub.f32 %v6417_v30, %v18183_v55  ;;  %v24014_v30 = vld [vmem:[#allocation173_spill] sm:$0xff]  ;;  %v24053_v55 = vld [vmem:[#allocation71_spill] sm:$0xff] }
 0x493   :  { %5124 = vmatprep.mubr.f32.mxu1 %v23758_v10  ;;  %12533 = vmatpush1.bf16.msra.mxu0 %v23953_v4  ;;  %v23998_v4 = vld [vmem:[#allocation74_spill] sm:$0xff] }
 0x494   :  { %6408 = vmatprep.mubr.f32.mxu0 %v23758_v10  ;;  %12151 = vmatprep.subr.bf16.mxu1 %v23954_v61  ;;  %v23964_v10 = vld [vmem:[#allocation230_spill] sm:$0xff]  ;;  %23997 = vst [vmem:[#allocation109_spill] sm:$0xff] %v18197_v57  ;;  %v23999_v61 = vld [vmem:[#allocation79_spill] sm:$0xff] }
 0x495   :  { %12535 = vmatprep.subr.bf16.mxu0 %v23955_v56  ;;  %v24000_v56 = vld [vmem:[#allocation84_spill] sm:$0xff] }
 0x496   :  { %12153 = vmatpush1.bf16.msra.mxu1 %v23956_v53  ;;  %v18203_v53 = vsub.f32 %v6418_v37, %v18188_v8 }
 0x497   :  { %12537 = vmatpush1.bf16.msra.mxu0 %v23957_v24  ;;  %12155 = vmatprep.subr.bf16.mxu1 %v23958_v43  ;;  %v21530_v24 = vand.u32 4294901760, %v18191_v5  ;;  %v18207_v43 = vsub.f32 %v6419_v19, %v18193_v1  ;;  %v24016_v19 = vld [vmem:[#allocation175_spill] sm:$0xff] }
 0x498   :  { %12539 = vmatprep.subr.bf16.mxu0 %v23959_v50  ;;  %24001 = vst [vmem:[#allocation29_spill] sm:$0xff] %v18203_v53  ;;  %v24003_v50 = vld [vmem:[#allocation89_spill] sm:$0xff] }
 0x499   :  { %24002 = vst [vmem:[#allocation17_spill] sm:$0xff] %v18207_v43  ;;  %v18218_v2 = vsub.f32 %v18191_v5, %v21530_v24  ;;  %v21529_v28 = vand.u32 4294901760, %v18207_v43  ;;  %v6460_v24 = vld [vmem:[#allocation8 + $0x120] sm:$0xff]  ;;  %v6478_v5 = vld [vmem:[#allocation8 + $0x1b0] sm:$0xff] }
 0x49a   :  { %12157 = vmatpush1.bf16.msra.mxu1 %v23960_v13  ;;  %v24004_v13 = vld [vmem:[#allocation94_spill] sm:$0xff] }
 0x49b   :  { %12541 = vmatpush1.bf16.msra.mxu0 %v23961_v60  ;;  %12159 = vmatprep.subr.bf16.mxu1 %v23962_v22  ;;  %v24005_v60 = vld [vmem:[#allocation99_spill] sm:$0xff]  ;;  %v21531_v22 = vand.u32 4294901760, %v18197_v57  ;;  %24007 = vst [vmem:[#allocation163_spill] sm:$0xff] %v18218_v2  ;;  %v18239_v48 = vsub.f32 %v18207_v43, %v21529_v28  ;;  %v24037_v28 = vld [vmem:[#allocation200_spill] sm:$0xff]  ;;  %v24052_v43 = vld [vmem:[#allocation169_spill] sm:$0xff] }
 0x49c   :  { %12543 = vmatprep.subr.bf16.mxu0 %v23963_v26  ;;  %v24006_v26 = vld [vmem:[#allocation111_spill] sm:$0xff] }
 0x49e   :  { %12161 = vmatpush1.bf16.msra.mxu1 %v23964_v10  ;;  %v6440_v10 = vld [vmem:[#allocation8 + $0x80] sm:$0xff] }
 0x49f   :  { %12545 = vmatpush1.bf16.msra.mxu0 %v23965_v21  ;;  %12163 = vmatprep.subr.bf16.mxu1 %v23966_v58  ;;  %v21528_v21 = vand.u32 4294901760, %v18203_v53  ;;  %v6472_v58 = vld [vmem:[#allocation8 + $0x180] sm:$0xff]  ;;  %v6608_v20 = vand.u32 4294901760, %v6440_v10 }
 0x4a0   :  { %12547 = vmatprep.subr.bf16.mxu0 %v23967_v51  ;;  %v6473_v51 = vld [vmem:[#allocation8 + $0x188] sm:$0xff]  ;;  %v7470_v15 = vand.u32 4294901760, %v6472_v58 }
 0x4a1   :  { %v7473_v17 = vand.u32 4294901760, %v6473_v51  ;;  %v18233_v0 = vsub.f32 %v18203_v53, %v21528_v21  ;;  %v6429_v21 = vld [vmem:[#allocation8 + $0x28] sm:$0xff] }
 0x4a2   :  { %12165 = vmatpush1.bf16.msra.mxu1 %v23970_v9  ;;  %v24010_v9 = vld [vmem:[#allocation160_spill] sm:$0xff]  ;;  %v6575_v8 = vand.u32 4294901760, %v6429_v21 }
 0x4a3   :  { %12549 = vmatpush1.bf16.msra.mxu0 %v23972_v47  ;;  %12167 = vmatprep.subr.bf16.mxu1 %v23973_v31  ;;  %v6424_v47 = vld [vmem:[#allocation8] sm:$0xff]  ;;  %v6425_v31 = vld [vmem:[#allocation8 + $0x8] sm:$0xff] }
 0x4a4   :  { %12551 = vmatprep.subr.bf16.mxu0 %v23974_v40  ;;  %v18227_v40 = vsub.f32 %v18197_v57, %v21531_v22  ;;  %v6461_v22 = vld [vmem:[#allocation8 + $0x128] sm:$0xff] }
 0x4a6   :  { %12169 = vmatpush1.bf16.msra.mxu1 %v23976_v54  ;;  %v6457_v54 = vld [vmem:[#allocation8 + $0x108] sm:$0xff] }
 0x4a7   :  { %12553 = vmatpush1.bf16.msra.mxu0 %v23978_v14  ;;  %12171 = vmatprep.subr.bf16.mxu1 %v23979_v25  ;;  %v24012_v14 = vld [vmem:[#allocation165_spill] sm:$0xff]  ;;  %v6560_v25 = vand.u32 4294901760, %v6424_v47  ;;  %v7425_v37 = vand.u32 4294901760, %v6457_v54 }
 0x4a8   :  { %12555 = vmatprep.subr.bf16.mxu0 %v23980_v63  ;;  %v6563_v63 = vand.u32 4294901760, %v6425_v31 }
 0x4aa   :  { %12173 = vmatpush1.bf16.msra.mxu1 %v23983_v62  ;;  %v24013_v62 = vld [vmem:[#allocation146_spill] sm:$0xff] }
 0x4ab   :  { %12557 = vmatpush1.bf16.msra.mxu0 %v23984_v7  ;;  %12175 = vmatprep.subr.bf16.mxu1 %v23985_v36  ;;  %v18244_v7 = vpack.c.bf16 %v6611_v39, %v6608_v20  ;;  %v6446_v36 = vld [vmem:[#allocation8 + $0xb0] sm:$0xff] }
 0x4ac   :  { %12559 = vmatprep.subr.bf16.mxu0 %v23986_v23  ;;  %v7422_v23 = vand.u32 4294901760, %v6456_v38 }
 0x4ad   :  { %24015 = vst [vmem:[#allocation112_spill] sm:$0xff] %v18244_v7 }
 0x4ae   :  { %12177 = vmatpush1.bf16.msra.mxu1 %v23988_v11  ;;  %v18248_v11 = vsub.f32 %v6440_v10, %v6608_v20  ;;  %v18259_v10 = vpack.c.bf16 %v6563_v63, %v6560_v25  ;;  %v24027_v20 = vld [vmem:[#allocation184_spill] sm:$0xff] }
 0x4af   :  { %12561 = vmatpush1.bf16.msra.mxu0 %v23990_v3  ;;  %12179 = vmatprep.subr.bf16.mxu1 %v23991_v16  ;;  %v18250_v3 = vsub.f32 %v6441_v32, %v6611_v39  ;;  %v18252_v16 = vpack.c.bf16 %v7473_v17, %v7470_v15  ;;  %v18261_v32 = vsub.f32 %v6424_v47, %v6560_v25 }
 0x4b0   :  { %12563 = vmatprep.subr.bf16.mxu0 %v23992_v18  ;;  %24017 = vst [vmem:[#allocation116_spill] sm:$0xff] %v18248_v11  ;;  %v18254_v18 = vsub.f32 %v6472_v58, %v7470_v15  ;;  %24023 = vst [vmem:[#allocation131_spill] sm:$0xff] %v18259_v10  ;;  %v24026_v58 = vld [vmem:[#allocation181_spill] sm:$0xff]  ;;  %v18267_v39 = vpack.c.bf16 %v7425_v37, %v7422_v23 }
 0x4b1   :  { %24018 = vst [vmem:[#allocation120_spill] sm:$0xff] %v18250_v3  ;;  %24019 = vst [vmem:[#allocation123_spill] sm:$0xff] %v18252_v16 }
 0x4b2   :  { %12181 = vmatpush1.bf16.msra.mxu1 %v23996_v52  ;;  %24020 = vst [vmem:[#allocation124_spill] sm:$0xff] %v18254_v18  ;;  %v6426_v52 = vld [vmem:[#allocation8 + $0x10] sm:$0xff]  ;;  %24024 = vst [vmem:[#allocation135_spill] sm:$0xff] %v18261_v32 }
 0x4b3   :  { %12565 = vmatpush1.bf16.msra.mxu0 %v23998_v4  ;;  %12183 = vmatprep.subr.bf16.mxu1 %v23999_v61  ;;  %v6427_v4 = vld [vmem:[#allocation8 + $0x18] sm:$0xff]  ;;  %v6614_v61 = vand.u32 4294901760, %v6442_v44  ;;  %24028 = vst [vmem:[#allocation139_spill] sm:$0xff] %v18267_v39  ;;  %v6566_v15 = vand.u32 4294901760, %v6426_v52 }
 0x4b4   :  { %12567 = vmatprep.subr.bf16.mxu0 %v24000_v56  ;;  %v6617_v56 = vand.u32 4294901760, %v6443_v46 }
 0x4b5   :  { %v18274_v47 = vsub.f32 %v6442_v44, %v6614_v61  ;;  %v18287_v44 = vsub.f32 %v6426_v52, %v6566_v15 }
 0x4b6   :  { %12185 = vmatpush1.bf16.msra.mxu1 %v24003_v50  ;;  %v7476_v50 = vand.u32 4294901760, %v6474_v27 }
 0x4b7   :  { %12569 = vmatpush1.bf16.msra.mxu0 %v24004_v13  ;;  %12187 = vmatprep.subr.bf16.mxu1 %v24005_v60  ;;  %v7479_v13 = vand.u32 4294901760, %v6475_v41  ;;  %v6458_v60 = vld [vmem:[#allocation8 + $0x110] sm:$0xff]  ;;  %24032 = vst [vmem:[#allocation192_spill] sm:$0xff] %v18274_v47  ;;  %24039 = vst [vmem:[#allocation172_spill] sm:$0xff] %v18287_v44 }
 0x4b8   :  { %12571 = vmatprep.subr.bf16.mxu0 %v24006_v26  ;;  %v6459_v26 = vld [vmem:[#allocation8 + $0x118] sm:$0xff] }
 0x4b9   :  { %v7431_v25 = vand.u32 4294901760, %v6459_v26 }
 0x4ba   :  { %12189 = vmatpush1.bf16.msra.mxu1 %v24008_v49  ;;  %v24021_v49 = vld [vmem:[#allocation178_spill] sm:$0xff] }
 0x4bb   :  { %12573 = vmatpush1.bf16.msra.mxu0 %v24009_v29  ;;  %12191 = vmatprep.subr.bf16.mxu1 %v24010_v9  ;;  %v18257_v29 = vsub.f32 %v6473_v51, %v7473_v17  ;;  %v18263_v9 = vsub.f32 %v6425_v31, %v6563_v63  ;;  %v24030_v51 = vld [vmem:[#allocation188_spill] sm:$0xff]  ;;  %v18272_v17 = vsub.f32 %v6457_v54, %v7425_v37  ;;  %v7428_v31 = vand.u32 4294901760, %v6458_v60  ;;  %v6476_v63 = vld [vmem:[#allocation8 + $0x1a0] sm:$0xff] }
 0x4bc   :  { %12575 = vmatprep.subr.bf16.mxu0 %v24011_v59  ;;  %v18269_v59 = vsub.f32 %v6456_v38, %v7422_v23  ;;  %v18280_v38 = vpack.c.bf16 %v7479_v13, %v7476_v50  ;;  %v18282_v23 = vsub.f32 %v6474_v27, %v7476_v50  ;;  %v18285_v54 = vsub.f32 %v6475_v41, %v7479_v13  ;;  %v24044_v41 = vld [vmem:[#allocation48_spill] sm:$0xff] }
 0x4bd   :  { %24022 = vst [vmem:[#allocation128_spill] sm:$0xff] %v18257_v29  ;;  %24025 = vst [vmem:[#allocation136_spill] sm:$0xff] %v18263_v9  ;;  %v7482_v50 = vand.u32 4294901760, %v6476_v63  ;;  %v18296_v52 = vpack.c.bf16 %v7431_v25, %v7428_v31  ;;  %v18298_v13 = vsub.f32 %v6458_v60, %v7428_v31  ;;  %v18300_v1 = vsub.f32 %v6459_v26, %v7431_v25  ;;  %v6430_v60 = vld [vmem:[#allocation8 + $0x30] sm:$0xff]  ;;  %v6431_v31 = vld [vmem:[#allocation8 + $0x38] sm:$0xff] }
 0x4be   :  { %12193 = vmatpush1.bf16.msra.mxu1 %v24012_v14  ;;  %24029 = vst [vmem:[#allocation186_spill] sm:$0xff] %v18269_v59  ;;  %v6569_v14 = vand.u32 4294901760, %v6427_v4  ;;  %24031 = vst [vmem:[#allocation189_spill] sm:$0xff] %v18272_v17  ;;  %v7488_v25 = vand.u32 4294901760, %v6478_v5 }
 0x4bf   :  { %12577 = vmatpush1.bf16.msra.mxu0 %v24013_v62  ;;  %12195 = vmatprep.subr.bf16.mxu1 %v24014_v30  ;;  %v6444_v62 = vld [vmem:[#allocation8 + $0xa0] sm:$0xff]  ;;  %v6445_v30 = vld [vmem:[#allocation8 + $0xa8] sm:$0xff]  ;;  %24035 = vst [vmem:[#allocation204_spill] sm:$0xff] %v18280_v38  ;;  %24036 = vst [vmem:[#allocation252_spill] sm:$0xff] %v18282_v23 }
 0x4c0   :  { %12579 = vmatprep.subr.bf16.mxu0 %v24016_v19  ;;  %v6477_v19 = vld [vmem:[#allocation8 + $0x1a8] sm:$0xff]  ;;  %24038 = vst [vmem:[#allocation253_spill] sm:$0xff] %v18285_v54  ;;  %v6620_v37 = vand.u32 4294901760, %v6444_v62  ;;  %v18293_v27 = vsub.f32 %v6427_v4, %v6569_v14  ;;  %24045 = vst [vmem:[#allocation57_spill] sm:$0xff] %v18296_v52  ;;  %v7434_v4 = vand.u32 4294901760, %v6460_v24 }
 0x4c1   :  { %v7485_v45 = vand.u32 4294901760, %v6477_v19  ;;  %24046 = vst [vmem:[#allocation66_spill] sm:$0xff] %v18298_v13  ;;  %24047 = vst [vmem:[#allocation62_spill] sm:$0xff] %v18300_v1  ;;  %v6462_v1 = vld [vmem:[#allocation8 + $0x130] sm:$0xff]  ;;  %v18322_v13 = vsub.f32 %v6429_v21, %v6575_v8  ;;  %v6449_v54 = vld [vmem:[#allocation8 + $0xc8] sm:$0xff] }
 0x4c2   :  { %12197 = vmatpush1.bf16.msra.mxu1 %v24021_v49  ;;  %v18276_v49 = vpack.c.bf16 %v6617_v56, %v6614_v61  ;;  %v24040_v61 = vld [vmem:[#allocation205_spill] sm:$0xff]  ;;  %24043 = vst [vmem:[#allocation168_spill] sm:$0xff] %v18293_v27 }
 0x4c3   :  { %12581 = vmatpush1.bf16.msra.mxu0 %v24026_v58  ;;  %12199 = vmatprep.subr.bf16.mxu1 %v24027_v20  ;;  %v18278_v58 = vsub.f32 %v6443_v46, %v6617_v56  ;;  %v6428_v20 = vld [vmem:[#allocation8 + $0x20] sm:$0xff]  ;;  %v24041_v46 = vld [vmem:[#allocation37_spill] sm:$0xff]  ;;  %v18291_v56 = vpack.c.bf16 %v6569_v14, %v6566_v15  ;;  %v18302_v15 = vsub.f32 %v6444_v62, %v6620_v37  ;;  %v7437_v14 = vand.u32 4294901760, %v6461_v22 }
 0x4c4   :  { %12583 = vmatprep.subr.bf16.mxu0 %v24030_v51  ;;  %24033 = vst [vmem:[#allocation196_spill] sm:$0xff] %v18276_v49  ;;  %v6623_v51 = vand.u32 4294901760, %v6445_v30  ;;  %v6572_v34 = vand.u32 4294901760, %v6428_v20  ;;  %v18311_v26 = vpack.c.bf16 %v7485_v45, %v7482_v50  ;;  %v18313_v62 = vsub.f32 %v6476_v63, %v7482_v50  ;;  %24059 = vst [vmem:[#allocation203_spill] sm:$0xff] %v18322_v13 }
 0x4c5   :  { %24034 = vst [vmem:[#allocation201_spill] sm:$0xff] %v18278_v58  ;;  %24042 = vst [vmem:[#allocation32_spill] sm:$0xff] %v18291_v56  ;;  %v6578_v63 = vand.u32 4294901760, %v6430_v60  ;;  %v6581_v50 = vand.u32 4294901760, %v6431_v31  ;;  %v18329_v23 = vsub.f32 %v6461_v22, %v7437_v14  ;;  %v6433_v22 = vld [vmem:[#allocation8 + $0x48] sm:$0xff] }
 0x4c6   :  { %12201 = vmatpush1.bf16.msra.mxu1 %v24037_v28  ;;  %v6447_v28 = vld [vmem:[#allocation8 + $0xb8] sm:$0xff]  ;;  %24048 = vst [vmem:[#allocation31_spill] sm:$0xff] %v18302_v15  ;;  %v18305_v57 = vpack.c.bf16 %v6623_v51, %v6620_v37  ;;  %v18307_v53 = vsub.f32 %v6445_v30, %v6623_v51  ;;  %24054 = vst [vmem:[#allocation114_spill] sm:$0xff] %v18311_v26  ;;  %v18316_v30 = vsub.f32 %v6477_v19, %v7485_v45 }
 0x4c7   :  { %12585 = vmatpush1.bf16.msra.mxu0 %v24040_v61  ;;  %12203 = vmatprep.subr.bf16.mxu1 %v24041_v46  ;;  %v6479_v61 = vld [vmem:[#allocation8 + $0x1b8] sm:$0xff]  ;;  %v6629_v12 = vand.u32 4294901760, %v6447_v28  ;;  %24055 = vst [vmem:[#allocation82_spill] sm:$0xff] %v18313_v62  ;;  %v18318_v37 = vpack.c.bf16 %v6575_v8, %v6572_v34  ;;  %v18320_v51 = vsub.f32 %v6428_v20, %v6572_v34  ;;  %v6448_v62 = vld [vmem:[#allocation8 + $0xc0] sm:$0xff]  ;;  %24062 = vst [vmem:[#allocation92_spill] sm:$0xff] %v18329_v23 }
 0x4c8   :  { %12587 = vmatprep.subr.bf16.mxu0 %v24044_v41  ;;  %v24049_v46 = vld [vmem:[#allocation53_spill] sm:$0xff]  ;;  %24050 = vst [vmem:[#allocation63_spill] sm:$0xff] %v18305_v57  ;;  %24051 = vst [vmem:[#allocation78_spill] sm:$0xff] %v18307_v53  ;;  %v6626_v41 = vand.u32 4294901760, %v6446_v36  ;;  %v7491_v2 = vand.u32 4294901760, %v6479_v61  ;;  %v7440_v45 = vand.u32 4294901760, %v6462_v1 }
 0x4c9   :  { %24056 = vst [vmem:[#allocation18_spill] sm:$0xff] %v18316_v30  ;;  %24057 = vst [vmem:[#allocation87_spill] sm:$0xff] %v18318_v37  ;;  %v6480_v34 = vld [vmem:[#allocation8 + $0x1c0] sm:$0xff]  ;;  %v6481_v20 = vld [vmem:[#allocation8 + $0x1c8] sm:$0xff]  ;;  %v7521_v8 = vand.u32 4294901760, %v18239_v48  ;;  %v18338_v21 = vsub.f32 %v6447_v28, %v6629_v12  ;;  %v18348_v48 = vpack.c.bf16 %v6581_v50, %v6578_v63 }
 0x4ca   :  { %12205 = vmatpush1.bf16.msra.mxu1 %v24049_v46  ;;  %v6463_v46 = vld [vmem:[#allocation8 + $0x138] sm:$0xff]  ;;  %24058 = vst [vmem:[#allocation126_spill] sm:$0xff] %v18320_v51  ;;  %v18345_v23 = vsub.f32 %v6479_v61, %v7491_v2  ;;  %v6464_v30 = vld [vmem:[#allocation8 + $0x140] sm:$0xff]  ;;  %v7497_v28 = vand.u32 4294901760, %v6481_v20 }
 0x4cb   :  { %12589 = vmatpush1.bf16.msra.mxu0 %v24052_v43  ;;  %12207 = vmatprep.subr.bf16.mxu1 %v24053_v55  ;;  %v18324_v43 = vpack.c.bf16 %v7437_v14, %v7434_v4  ;;  %v18326_v55 = vsub.f32 %v6460_v24, %v7434_v4  ;;  %v7443_v19 = vand.u32 4294901760, %v6463_v46  ;;  %v18336_v24 = vsub.f32 %v6446_v36, %v6626_v41 }
 0x4cc   :  { %12591 = vmatprep.subr.bf16.mxu0 %v23742_v33  ;;  %v18331_v33 = vpack.c.bf16 %v6629_v12, %v6626_v41  ;;  %24065 = vst [vmem:[#allocation42_spill] sm:$0xff] %v18338_v21  ;;  %v18340_v4 = vpack.c.bf16 %v7491_v2, %v7488_v25  ;;  %v18343_v14 = vsub.f32 %v6478_v5, %v7488_v25  ;;  %24068 = vst [vmem:[#allocation151_spill] sm:$0xff] %v18345_v23  ;;  %v6450_v41 = vld [vmem:[#allocation8 + $0xd0] sm:$0xff]  ;;  %v6451_v21 = vld [vmem:[#allocation8 + $0xd8] sm:$0xff] }
 0x4cd   :  { %24060 = vst [vmem:[#allocation88_spill] sm:$0xff] %v18324_v43  ;;  %24061 = vst [vmem:[#allocation21_spill] sm:$0xff] %v18326_v55  ;;  %v6632_v55 = vand.u32 4294901760, %v6448_v62  ;;  %v18350_v12 = vsub.f32 %v6430_v60, %v6578_v63  ;;  %v7494_v36 = vand.u32 4294901760, %v6480_v34  ;;  %v18354_v5 = vsub.f32 %v6431_v31, %v6581_v50 }
 0x4ce   :  { %12209 = vmatpush1.bf16.msra.mxu1 %v23745_v6  ;;  %24063 = vst [vmem:[#allocation206_spill] sm:$0xff] %v18331_v33  ;;  %24064 = vst [vmem:[#allocation35_spill] sm:$0xff] %v18336_v24  ;;  %v6432_v6 = vld [vmem:[#allocation8 + $0x40] sm:$0xff]  ;;  %v18356_v2 = vpack.c.bf16 %v7443_v19, %v7440_v45  ;;  %v6587_v25 = vand.u32 4294901760, %v6433_v22  ;;  %v18361_v60 = vsub.f32 %v6462_v1, %v7440_v45  ;;  %v7446_v23 = vand.u32 4294901760, %v6464_v30 }
 0x4cf   :  { %12593 = vmatpush1.bf16.msra.mxu0 %v23748_v35  ;;  %12595 = vmatprep.subr.bf16.mxu1 %v18244_v7  ;;  %24066 = vst [vmem:[#allocation36_spill] sm:$0xff] %v18340_v4  ;;  %24067 = vst [vmem:[#allocation167_spill] sm:$0xff] %v18343_v14  ;;  %v6635_v35 = vand.u32 4294901760, %v6449_v54  ;;  %v6465_v7 = vld [vmem:[#allocation8 + $0x148] sm:$0xff]  ;;  %v6584_v61 = vand.u32 4294901760, %v6432_v6  ;;  %v18363_v63 = vsub.f32 %v6463_v46, %v7443_v19  ;;  %v6434_v19 = vld [vmem:[#allocation8 + $0x50] sm:$0xff] }
 0x4d0   :  { %12787 = vmatprep.subr.bf16.mxu0 %v18252_v16  ;;  %24069 = vst [vmem:[#allocation153_spill] sm:$0xff] %v18348_v48  ;;  %24070 = vst [vmem:[#allocation211_spill] sm:$0xff] %v18350_v12  ;;  %v24073_v16 = vand.u32 4294901760, %v18227_v40  ;;  %v7449_v14 = vand.u32 4294901760, %v6465_v7  ;;  %v6483_v12 = vld [vmem:[#allocation8 + $0x1d8] sm:$0xff]  ;;  %v18368_v50 = vsub.f32 %v6448_v62, %v6632_v55  ;;  %v6641_v40 = vand.u32 4294901760, %v6451_v21 }
 0x4d1   :  { %5126 = vmatmul.mubr.f32.vlgmr.msra.gmra.mrb[2].mxu1 %v23951_v42  ;;  %24071 = vst [vmem:[#allocation212_spill] sm:$0xff] %v18354_v5  ;;  %24072 = vst [vmem:[#allocation214_spill] sm:$0xff] %v18356_v2  ;;  %v18366_v31 = vpack.c.bf16 %v6635_v35, %v6632_v55  ;;  %v18373_v1 = vpack.c.bf16 %v7497_v28, %v7494_v36  ;;  %v18375_v46 = vsub.f32 %v6480_v34, %v7494_v36  ;;  %v6452_v36 = vld [vmem:[#allocation8 + $0xe0] sm:$0xff] }
 0x4d2   :  { %6410 = vmatmul.mubr.f32.vlgmr.msra.gmra.mrb[4].mxu0 %v23951_v42  ;;  %12597 = vmatpush3.bf16.msra.mxu1 %v18259_v10  ;;  %24074 = vst [vmem:[#allocation215_spill] sm:$0xff] %v18361_v60  ;;  %24075 = vst [vmem:[#allocation216_spill] sm:$0xff] %v18363_v63  ;;  %v6482_v42 = vld [vmem:[#allocation8 + $0x1d0] sm:$0xff]  ;;  %v6638_v10 = vand.u32 4294901760, %v6450_v41  ;;  %v18377_v45 = vsub.f32 %v6481_v20, %v7497_v28  ;;  %v18382_v62 = vsub.f32 %v6432_v6, %v6584_v61  ;;  %v6453_v28 = vld [vmem:[#allocation8 + $0xe8] sm:$0xff] }
 0x4d3   :  { %6660 = vmatprep.mubr.f32.mxu1 %v24073_v16  ;;  %12789 = vmatpush3.bf16.msra.mxu0 %v18267_v39  ;;  %24076 = vst [vmem:[#allocation217_spill] sm:$0xff] %v18366_v31  ;;  %24077 = vst [vmem:[#allocation19_spill] sm:$0xff] %v18368_v50  ;;  %v18371_v16 = vsub.f32 %v6449_v54, %v6635_v35  ;;  %v18380_v39 = vpack.c.bf16 %v6587_v25, %v6584_v61  ;;  %v7500_v55 = vand.u32 4294901760, %v6482_v42  ;;  %v18384_v63 = vld [vmem:[#allocation8 + $0x150] sm:$0xff]  ;;  %v18386_v54 = vld [vmem:[#allocation8 + $0x158] sm:$0xff] }
 0x4d4   :  { %7522 = vmatprep.mubr.f32.mxu0 %v7521_v8  ;;  %12599 = vmatprep.subr.bf16.mxu1 %v18276_v49  ;;  %24079 = vst [vmem:[#allocation218_spill] sm:$0xff] %v18373_v1  ;;  %24080 = vst [vmem:[#allocation220_spill] sm:$0xff] %v18375_v46  ;;  %v6435_v8 = vld [vmem:[#allocation8 + $0x58] sm:$0xff]  ;;  %v7503_v49 = vand.u32 4294901760, %v6483_v12  ;;  %v18390_v34 = vsub.f32 %v6433_v22, %v6587_v25  ;;  %v18392_v20 = vpack.c.bf16 %v7449_v14, %v7446_v23  ;;  %v18396_v6 = vld [vmem:[#allocation8 + $0x1e0] sm:$0xff] }
 0x4d5   :  { %12791 = vmatprep.subr.bf16.mxu0 %v18280_v38  ;;  %24078 = vst [vmem:[#allocation125_spill] sm:$0xff] %v18371_v16  ;;  %24081 = vst [vmem:[#allocation127_spill] sm:$0xff] %v18377_v45  ;;  %v18394_v35 = vsub.f32 %v6464_v30, %v7446_v23  ;;  %v18400_v38 = vsub.f32 %v6465_v7, %v7449_v14  ;;  %v18404_v22 = vld [vmem:[#allocation8 + $0x1e8] sm:$0xff]  ;;  %v6436_v25 = vld [vmem:[#allocation8 + $0x60] sm:$0xff]  ;;  %v18406_v23 = vsub.f32 %v6450_v41, %v6638_v10 }
 0x4d6   :  { %12601 = vmatpush3.bf16.msra.mxu1 %v18291_v56  ;;  %24082 = vst [vmem:[#allocation20_spill] sm:$0xff] %v18380_v39  ;;  %24083 = vst [vmem:[#allocation249_spill] sm:$0xff] %v18382_v62  ;;  %v18402_v56 = vpack.c.bf16 %v6641_v40, %v6638_v10  ;;  %v6437_v45 = vld [vmem:[#allocation8 + $0x68] sm:$0xff]  ;;  %v18408_v30 = vsub.f32 %v6451_v21, %v6641_v40  ;;  %v18413_v7 = vpack.c.bf16 %v7503_v49, %v7500_v55  ;;  %v18417_v46 = vld [vmem:[#allocation8 + $0x160] sm:$0xff] }
 0x4d7   :  { %24084 = vst [vmem:[#allocation130_spill] sm:$0xff] %v18386_v54  ;;  %12793 = vmatpush3.bf16.msra.mxu0 %v18296_v52  ;;  %12603 = vmatprep.subr.bf16.mxu1 %v18305_v57  ;;  %24085 = vst [vmem:[#allocation132_spill] sm:$0xff] %v18390_v34  ;;  %v6590_v52 = vand.u32 4294901760, %v6434_v19  ;;  %v6593_v57 = vand.u32 4294901760, %v6435_v8  ;;  %v18415_v14 = vsub.f32 %v6482_v42, %v7500_v55  ;;  %v18419_v60 = vld [vmem:[#allocation8 + $0x168] sm:$0xff]  ;;  %v6596_v41 = vand.u32 4294901760, %v6436_v25 }
 0x4d8   :  { %24086 = vst [vmem:[#allocation223_spill] sm:$0xff] %v18392_v20  ;;  %24087 = vst [vmem:[#allocation190_spill] sm:$0xff] %v18394_v35  ;;  %12795 = vmatprep.subr.bf16.mxu0 %v18311_v26  ;;  %v6644_v26 = vand.u32 4294901760, %v6452_v36  ;;  %v6599_v40 = vand.u32 4294901760, %v6437_v45  ;;  %v18426_v42 = vsub.f32 %v6483_v12, %v7503_v49  ;;  %v24101_v10 = vand.u32 4294901760, %v18386_v54  ;;  %v18444_v12 = vld [vmem:[#allocation8 + $0x1f0] sm:$0xff] }
 0x4d9   :  { %24088 = vst [vmem:[#allocation197_spill] sm:$0xff] %v18396_v6  ;;  %24089 = vst [vmem:[#allocation67_spill] sm:$0xff] %v18400_v38  ;;  %v6647_v38 = vand.u32 4294901760, %v6453_v28  ;;  %v18428_v55 = vpack.c.bf16 %v6593_v57, %v6590_v52  ;;  %v18430_v61 = vsub.f32 %v6434_v19, %v6590_v52  ;;  %v18432_v35 = vsub.f32 %v6435_v8, %v6593_v57  ;;  %v18446_v52 = vld [vmem:[#allocation8 + $0x1f8] sm:$0xff]  ;;  %v6438_v8 = vld [vmem:[#allocation8 + $0x70] sm:$0xff] }
 0x4da   :  { %24090 = vst [vmem:[#allocation91_spill] sm:$0xff] %v18402_v56  ;;  %24091 = vst [vmem:[#allocation15_spill] sm:$0xff] %v18404_v22  ;;  %12605 = vmatpush3.bf16.msra.mxu1 %v18318_v37  ;;  %v6454_v37 = vld [vmem:[#allocation8 + $0xf0] sm:$0xff]  ;;  %v18440_v21 = vsub.f32 %v6452_v36, %v6644_v26  ;;  %v24107_v49 = vand.u32 4294901760, %v18404_v22  ;;  %v6602_v22 = vand.u32 4294901760, %v6438_v8  ;;  %v18480_v54 = vld [vmem:[#allocation8 + $0x178] sm:$0xff] }
 0x4db   :  { %24092 = vst [vmem:[#allocation154_spill] sm:$0xff] %v18406_v23  ;;  %24093 = vst [vmem:[#allocation141_spill] sm:$0xff] %v18408_v30  ;;  %12797 = vmatpush3.bf16.msra.mxu0 %v18324_v43  ;;  %12607 = vmatprep.subr.bf16.mxu1 %v18331_v33  ;;  %v6455_v43 = vld [vmem:[#allocation8 + $0xf8] sm:$0xff]  ;;  %v24100_v33 = vand.u32 4294901760, %v18384_v63  ;;  %v18449_v57 = vpack.c.bf16 %v6647_v38, %v6644_v26  ;;  %v18451_v19 = vsub.f32 %v6453_v28, %v6647_v38 }
 0x4dc   :  { %24094 = vst [vmem:[#allocation156_spill] sm:$0xff] %v18413_v7  ;;  %24095 = vst [vmem:[#allocation27_spill] sm:$0xff] %v18415_v14  ;;  %12799 = vmatprep.subr.bf16.mxu0 %v18340_v4  ;;  %v6650_v26 = vand.u32 4294901760, %v6454_v37  ;;  %v6653_v38 = vand.u32 4294901760, %v6455_v43  ;;  %v18466_v28 = vsub.f32 %v6436_v25, %v6596_v41  ;;  %v18508_v36 = vsub.f32 %v6438_v8, %v6602_v22 }
 0x4dd   :  { %24096 = vst [vmem:[#allocation159_spill] sm:$0xff] %v18426_v42  ;;  %24097 = vst [vmem:[#allocation158_spill] sm:$0xff] %v18428_v55  ;;  %v18438_v14 = vpack.c.bf16 %v24101_v10, %v24100_v33  ;;  %v24106_v10 = vand.u32 4294901760, %v18396_v6  ;;  %v18468_v33 = vsub.f32 %v6437_v45, %v6599_v40  ;;  %v24112_v42 = vand.u32 4294901760, %v18417_v46  ;;  %v18478_v6 = vld [vmem:[#allocation8 + $0x170] sm:$0xff] }
 0x4de   :  { %24098 = vst [vmem:[#allocation176_spill] sm:$0xff] %v18430_v61  ;;  %24099 = vst [vmem:[#allocation180_spill] sm:$0xff] %v18432_v35  ;;  %12609 = vmatpush3.bf16.msra.mxu1 %v18348_v48  ;;  %v18463_v48 = vpack.c.bf16 %v6599_v40, %v6596_v41  ;;  %v24115_v41 = vand.u32 4294901760, %v18248_v11  ;;  %v18495_v25 = vpack.c.bf16 %v6653_v38, %v6650_v26 }
 0x4df   :  { %24102 = vst [vmem:[#allocation179_spill] sm:$0xff] %v18438_v14  ;;  %24103 = vst [vmem:[#allocation183_spill] sm:$0xff] %v18440_v21  ;;  %12801 = vmatpush3.bf16.msra.mxu0 %v18356_v2  ;;  %12611 = vmatprep.subr.bf16.mxu1 %v18366_v31  ;;  %v18461_v4 = vpack.c.bf16 %v24107_v49, %v24106_v10  ;;  %v6439_v31 = vld [vmem:[#allocation8 + $0x78] sm:$0xff]  ;;  %v24113_v49 = vand.u32 4294901760, %v18419_v60  ;;  %v24116_v2 = vand.u32 4294901760, %v18250_v3 }
 0x4e0   :  { %24104 = vst [vmem:[#allocation182_spill] sm:$0xff] %v18449_v57  ;;  %24105 = vst [vmem:[#allocation187_spill] sm:$0xff] %v18451_v19  ;;  %12803 = vmatprep.subr.bf16.mxu0 %v18373_v1  ;;  %v6787_v40 = vsub.f32 %v18248_v11, %v24115_v41  ;;  %v18497_v45 = vsub.f32 %v6454_v37, %v6650_v26  ;;  %v18499_v1 = vsub.f32 %v6455_v43, %v6653_v38 }
 0x4e1   :  { %24108 = vst [vmem:[#allocation185_spill] sm:$0xff] %v18461_v4  ;;  %24109 = vst [vmem:[#allocation194_spill] sm:$0xff] %v18463_v48  ;;  %v18476_v10 = vpack.c.bf16 %v24113_v49, %v24112_v42  ;;  %v6794_v42 = vsub.f32 %v18250_v3, %v24116_v2  ;;  %v24120_v41 = vand.u32 4294901760, %v18444_v12  ;;  %v24121_v2 = vand.u32 4294901760, %v18446_v52 }
 0x4e2   :  { %24110 = vst [vmem:[#allocation191_spill] sm:$0xff] %v18466_v28  ;;  %24111 = vst [vmem:[#allocation202_spill] sm:$0xff] %v18468_v33  ;;  %12613 = vmatpush3.bf16.msra.mxu1 %v18380_v39  ;;  %v6605_v39 = vand.u32 4294901760, %v6439_v31  ;;  %v24124_v37 = vand.u32 4294901760, %v18261_v32  ;;  %v24125_v26 = vand.u32 4294901760, %v18263_v9  ;;  %v6788_v8 = vand.u32 4294901760, %v6787_v40 }
 0x4e3   :  { %24114 = vst [vmem:[#allocation248_spill] sm:$0xff] %v18476_v10  ;;  %12805 = vmatpush3.bf16.msra.mxu0 %v18392_v20  ;;  %12615 = vmatprep.subr.bf16.mxu1 %v18402_v56  ;;  %24117 = vst [vmem:[#allocation251_spill] sm:$0xff] %v18495_v25  ;;  %v18506_v49 = vpack.c.bf16 %v24121_v2, %v24120_v41  ;;  %v6795_v41 = vand.u32 4294901760, %v6794_v42  ;;  %v24126_v2 = vand.u32 4294901760, %v18274_v47  ;;  %v24127_v20 = vand.u32 4294901760, %v18278_v58 }
 0x4e4   :  { %24118 = vst [vmem:[#allocation83_spill] sm:$0xff] %v18497_v45  ;;  %24119 = vst [vmem:[#allocation69_spill] sm:$0xff] %v18499_v1  ;;  %12807 = vmatprep.subr.bf16.mxu0 %v18413_v7  ;;  %v6675_v43 = vsub.f32 %v18261_v32, %v24124_v37  ;;  %v6682_v38 = vsub.f32 %v18263_v9, %v24125_v26  ;;  %v18529_v26 = vpack.c.bf16 %v6605_v39, %v6602_v22 }
 0x4e5   :  { %24122 = vst [vmem:[#allocation75_spill] sm:$0xff] %v18506_v49  ;;  %24123 = vst [vmem:[#allocation250_spill] sm:$0xff] %v18508_v36  ;;  %v6801_v56 = vsub.f32 %v18274_v47, %v24126_v2  ;;  %v6808_v37 = vsub.f32 %v18278_v58, %v24127_v20  ;;  %v18531_v7 = vsub.f32 %v6439_v31, %v6605_v39  ;;  %v24130_v42 = vand.u32 4294901760, %v18478_v6 }
 0x4e6   :  { %12617 = vmatpush3.bf16.msra.mxu1 %v18428_v55  ;;  %24128 = vst [vmem:[#allocation247_spill] sm:$0xff] %v18529_v26  ;;  %v24131_v2 = vand.u32 4294901760, %v18480_v54  ;;  %v12850_v20 = vpack.c.bf16 %v18257_v29, %v18254_v18  ;;  %v6676_v31 = vand.u32 4294901760, %v6675_v43  ;;  %v24133_v3 = vand.u32 4294901760, %v18287_v44 }
 0x4e7   :  { %12809 = vmatpush3.bf16.msra.mxu0 %v18438_v14  ;;  %12619 = vmatprep.subr.bf16.mxu1 %v18449_v57  ;;  %24129 = vst [vmem:[#allocation133_spill] sm:$0xff] %v18531_v7  ;;  %v6683_v14 = vand.u32 4294901760, %v6682_v38  ;;  %v6802_v58 = vand.u32 4294901760, %v6801_v56  ;;  %v6809_v22 = vand.u32 4294901760, %v6808_v37  ;;  %v24135_v43 = vand.u32 4294901760, %v18302_v15  ;;  %v24138_v56 = vld [vmem:[#allocation252_spill] sm:$0xff] }
 0x4e8   :  { %12811 = vmatprep.subr.bf16.mxu0 %v18461_v4  ;;  %v18540_v55 = vpack.c.bf16 %v24131_v2, %v24130_v42  ;;  %v6689_v40 = vsub.f32 %v18287_v44, %v24133_v3  ;;  %v24134_v4 = vand.u32 4294901760, %v18293_v27  ;;  %v12626_v42 = vpack.c.bf16 %v6795_v41, %v6788_v8  ;;  %v24137_v8 = vld [vmem:[#allocation42_spill] sm:$0xff]  ;;  %v24139_v37 = vld [vmem:[#allocation253_spill] sm:$0xff]  ;;  %v24144_v41 = vld [vmem:[#allocation211_spill] sm:$0xff] }
 0x4e9   :  { %v12852_v2 = vpack.c.bf16 %v18272_v17, %v18269_v59  ;;  %v6815_v3 = vsub.f32 %v18302_v15, %v24135_v43  ;;  %v24136_v38 = vand.u32 4294901760, %v18307_v53  ;;  %v24142_v44 = vand.u32 4294901760, %v18320_v51 }
 0x4ea   :  { %24132 = vst [vmem:[#allocation134_spill] sm:$0xff] %v18540_v55  ;;  %v6696_v57 = vsub.f32 %v18293_v27, %v24134_v4  ;;  %12621 = vmatpush3.bf16.msra.mxu1 %v18463_v48  ;;  %v12854_v48 = vpack.c.bf16 %v24139_v37, %v24138_v56  ;;  %v24141_v27 = vld [vmem:[#allocation62_spill] sm:$0xff]  ;;  %v24143_v15 = vand.u32 4294901760, %v18322_v13  ;;  %v6690_v39 = vand.u32 4294901760, %v6689_v40 }
 0x4eb   :  { %12813 = vmatpush3.bf16.msra.mxu0 %v18476_v10  ;;  %12623 = vmatprep.subr.bf16.mxu1 %v18495_v25  ;;  %v6822_v4 = vsub.f32 %v18307_v53, %v24136_v38  ;;  %v24140_v10 = vld [vmem:[#allocation66_spill] sm:$0xff]  ;;  %v6703_v43 = vsub.f32 %v18320_v51, %v24142_v44  ;;  %v12628_v53 = vpack.c.bf16 %v6683_v14, %v6676_v31  ;;  %v21656_v9 = vand.u32 4294901760, %v24144_v41 }
 0x4ec   :  { %12815 = vmatprep.subr.bf16.mxu0 %v18506_v49  ;;  %v12856_v25 = vpack.c.bf16 %v24141_v27, %v24140_v10  ;;  %v6710_v38 = vsub.f32 %v18322_v13, %v24143_v15  ;;  %v6697_v47 = vand.u32 4294901760, %v6696_v57  ;;  %v12630_v49 = vpack.c.bf16 %v6809_v22, %v6802_v58  ;;  %v24147_v27 = vld [vmem:[#allocation163_spill] sm:$0xff]  ;;  %v24156_v10 = vld [vmem:[#allocation17_spill] sm:$0xff] }
 0x4ed   :  { %v6816_v44 = vand.u32 4294901760, %v6815_v3  ;;  %v6823_v51 = vand.u32 4294901760, %v6822_v4  ;;  %v24145_v15 = vand.u32 4294901760, %v18336_v24  ;;  %v24146_v57 = vand.u32 4294901760, %v24137_v8 }
 0x4ee   :  { %12625 = vmatpush3.bf16.msra.mxu1 %v18529_v26  ;;  %v6704_v58 = vand.u32 4294901760, %v6703_v43  ;;  %v6711_v22 = vand.u32 4294901760, %v6710_v38  ;;  %v21659_v31 = vand.u32 4294901760, %v18382_v62  ;;  %v24148_v32 = vand.u32 4294901760, %v24147_v27 }
 0x4ef   :  { %12817 = vmatpush3.bf16.msra.mxu0 %v18540_v55  ;;  %12627 = vmatprep.subr.bf16.mxu1 %v12626_v42  ;;  %v6829_v14 = vsub.f32 %v18336_v24, %v24145_v15  ;;  %v6836_v40 = vsub.f32 %v24137_v8, %v24146_v57  ;;  %v12632_v42 = vpack.c.bf16 %v6697_v47, %v6690_v39  ;;  %v24150_v43 = vand.u32 4294901760, %v18354_v5  ;;  %v24153_v57 = vld [vmem:[#allocation102_spill] sm:$0xff] }
 0x4f0   :  { %12851 = vmatprep.subr.bf16.mxu0 %v12850_v20  ;;  %v6717_v3 = vsub.f32 %v24144_v41, %v21656_v9  ;;  %v24149_v20 = vand.u32 4294901760, %v18233_v0  ;;  %v24151_v27 = vand.u32 4294901760, %v18368_v50  ;;  %v24152_v47 = vand.u32 4294901760, %v18371_v16  ;;  %v24154_v15 = vld [vmem:[#allocation82_spill] sm:$0xff] }
 0x4f1   :  { %6666 = vmatmul.mubr.f32.vlgmr.msra.gmra.mrb[4].mxu1 %v24148_v32  ;;  %v6724_v38 = vsub.f32 %v18354_v5, %v24150_v43  ;;  %v12634_v9 = vpack.c.bf16 %v6823_v51, %v6816_v44  ;;  %v24155_v0 = vld [vmem:[#allocation18_spill] sm:$0xff]  ;;  %v6837_v4 = vand.u32 4294901760, %v6836_v40  ;;  %v12636_v43 = vpack.c.bf16 %v6711_v22, %v6704_v58  ;;  %v24164_v40 = vld [vmem:[#allocation215_spill] sm:$0xff] }
 0x4f2   :  { %7528 = vmatmul.mubr.f32.vlgmr.msra.gmra.mrb[6].mxu0 %v24149_v20  ;;  %12629 = vmatpush3.bf16.msra.mxu1 %v12628_v53  ;;  %v6843_v32 = vsub.f32 %v18368_v50, %v24151_v27  ;;  %v6850_v39 = vsub.f32 %v18371_v16, %v24152_v47  ;;  %v12858_v20 = vpack.c.bf16 %v24155_v0, %v24154_v15  ;;  %v6830_v53 = vand.u32 4294901760, %v6829_v14 }
 0x4f3   :  { %6896 = vmatprep.mubr.f32.mxu1 %v24153_v57  ;;  %12853 = vmatpush3.bf16.msra.mxu0 %v12852_v2  ;;  %v6731_v27 = vsub.f32 %v18382_v62, %v21659_v31  ;;  %v24157_v55 = vand.u32 4294901760, %v18390_v34  ;;  %v24158_v51 = vand.u32 4294901760, %v18406_v23  ;;  %v24159_v44 = vand.u32 4294901760, %v18408_v30  ;;  %v24177_v62 = vld [vmem:[#allocation190_spill] sm:$0xff] }
 0x4f4   :  { %7895 = vmatprep.mubr.f32.mxu0 %v24156_v10  ;;  %12631 = vmatprep.subr.bf16.mxu1 %v12630_v49  ;;  %v6718_v58 = vand.u32 4294901760, %v6717_v3  ;;  %v6725_v22 = vand.u32 4294901760, %v6724_v38  ;;  %v6844_v31 = vand.u32 4294901760, %v6843_v32  ;;  %v6851_v10 = vand.u32 4294901760, %v6850_v39  ;;  %v24163_v49 = vld [vmem:[#allocation151_spill] sm:$0xff] }
 0x4f5   :  { %v6738_v47 = vsub.f32 %v18390_v34, %v24157_v55  ;;  %12855 = vmatprep.subr.bf16.mxu0 %v12854_v48  ;;  %v6857_v2 = vsub.f32 %v18406_v23, %v24158_v51  ;;  %v6864_v14 = vsub.f32 %v18408_v30, %v24159_v44  ;;  %v24160_v48 = vld [vmem:[#allocation21_spill] sm:$0xff]  ;;  %v24161_v55 = vld [vmem:[#allocation92_spill] sm:$0xff]  ;;  %v12638_v26 = vpack.c.bf16 %v6837_v4, %v6830_v53  ;;  %v24162_v44 = vld [vmem:[#allocation167_spill] sm:$0xff] }
 0x4f6   :  { %12633 = vmatpush3.bf16.msra.mxu1 %v12632_v42  ;;  %v12860_v57 = vpack.c.bf16 %v24161_v55, %v24160_v48  ;;  %v12862_v30 = vpack.c.bf16 %v24163_v49, %v24162_v44  ;;  %v24165_v42 = vld [vmem:[#allocation216_spill] sm:$0xff]  ;;  %v6732_v38 = vand.u32 4294901760, %v6731_v27  ;;  %v24167_v4 = vand.u32 4294901760, %v18432_v35 }
 0x4f7   :  { %12857 = vmatpush3.bf16.msra.mxu0 %v12856_v25  ;;  %12635 = vmatprep.subr.bf16.mxu1 %v12634_v9  ;;  %v12864_v3 = vpack.c.bf16 %v24165_v42, %v24164_v40  ;;  %v6739_v32 = vand.u32 4294901760, %v6738_v47  ;;  %v6858_v39 = vand.u32 4294901760, %v6857_v2  ;;  %v6865_v25 = vand.u32 4294901760, %v6864_v14 }
 0x4f8   :  { %12859 = vmatprep.subr.bf16.mxu0 %v12858_v20  ;;  %v24166_v9 = vand.u32 4294901760, %v18430_v61  ;;  %v6752_v53 = vsub.f32 %v18432_v35, %v24167_v4  ;;  %v12640_v20 = vpack.c.bf16 %v6725_v22, %v6718_v58  ;;  %v12642_v23 = vpack.c.bf16 %v6851_v10, %v6844_v31  ;;  %v24172_v58 = vld [vmem:[#allocation130_spill] sm:$0xff]  ;;  %v24175_v22 = vld [vmem:[#allocation220_spill] sm:$0xff]  ;;  %v24176_v4 = vld [vmem:[#allocation127_spill] sm:$0xff] }
 0x4f9   :  { %v24168_v27 = vand.u32 4294901760, %v18440_v21  ;;  %v24169_v2 = vand.u32 4294901760, %v18451_v19  ;;  %v24170_v10 = vand.u32 4294901760, %v18384_v63  ;;  %v24180_v35 = vand.u32 4294901760, %v18468_v33 }
 0x4fa   :  { %v6745_v34 = vsub.f32 %v18430_v61, %v24166_v9  ;;  %12637 = vmatpush3.bf16.msra.mxu1 %v12636_v43  ;;  %v12644_v9 = vpack.c.bf16 %v6739_v32, %v6732_v38 }
 0x4fb   :  { %12861 = vmatpush3.bf16.msra.mxu0 %v12860_v57  ;;  %12639 = vmatprep.subr.bf16.mxu1 %v12638_v26  ;;  %v6871_v47 = vsub.f32 %v18440_v21, %v24168_v27  ;;  %v6878_v14 = vsub.f32 %v18451_v19, %v24169_v2  ;;  %v18653_v31 = vsub.f32 %v18384_v63, %v24170_v10  ;;  %v24173_v57 = vand.u32 4294901760, %v24172_v58  ;;  %v24178_v2 = vld [vmem:[#allocation67_spill] sm:$0xff] }
 0x4fc   :  { %12863 = vmatprep.subr.bf16.mxu0 %v12862_v30  ;;  %v12866_v27 = vpack.c.bf16 %v24176_v4, %v24175_v22  ;;  %v12868_v51 = vpack.c.bf16 %v24178_v2, %v24177_v62  ;;  %v12646_v19 = vpack.c.bf16 %v6865_v25, %v6858_v39  ;;  %v6746_v43 = vand.u32 4294901760, %v6745_v34 }
 0x4fd   :  { %24171 = vst [vmem:[#allocation138_spill] sm:$0xff] %v18653_v31  ;;  %v18658_v26 = vsub.f32 %v24172_v58, %v24173_v57  ;;  %v6753_v21 = vand.u32 4294901760, %v6752_v53  ;;  %v24179_v63 = vand.u32 4294901760, %v18466_v28  ;;  %v6766_v58 = vsub.f32 %v18468_v33, %v24180_v35  ;;  %v24183_v53 = vld [vmem:[#allocation197_spill] sm:$0xff] }
 0x4fe   :  { %12641 = vmatpush3.bf16.msra.mxu1 %v12640_v20  ;;  %v6872_v61 = vand.u32 4294901760, %v6871_v47  ;;  %v6879_v38 = vand.u32 4294901760, %v6878_v14  ;;  %v24181_v34 = vand.u32 4294901760, %v18497_v45  ;;  %v24182_v39 = vand.u32 4294901760, %v18499_v1  ;;  %v24190_v47 = vld [vmem:[#allocation159_spill] sm:$0xff] }
 0x4ff   :  { %24174 = vst [vmem:[#allocation140_spill] sm:$0xff] %v18658_v26  ;;  %v6759_v10 = vsub.f32 %v18466_v28, %v24179_v63  ;;  %12865 = vmatpush3.bf16.msra.mxu0 %v12864_v3  ;;  %12643 = vmatprep.subr.bf16.mxu1 %v12642_v23  ;;  %v24184_v20 = vand.u32 4294901760, %v24183_v53  ;;  %v24186_v63 = vld [vmem:[#allocation15_spill] sm:$0xff] }
 0x500   :  { %v6885_v32 = vsub.f32 %v18497_v45, %v24181_v34  ;;  %v6892_v25 = vsub.f32 %v18499_v1, %v24182_v39  ;;  %v24187_v30 = vand.u32 4294901760, %v24186_v63  ;;  %12867 = vmatprep.subr.bf16.mxu0 %v12866_v27  ;;  %v24189_v23 = vld [vmem:[#allocation27_spill] sm:$0xff]  ;;  %v24191_v34 = vand.u32 4294901760, %v18417_v46 }
 0x501   :  { %v18681_v35 = vsub.f32 %v24183_v53, %v24184_v20  ;;  %v12870_v14 = vpack.c.bf16 %v24190_v47, %v24189_v23  ;;  %v24193_v39 = vand.u32 4294901760, %v18419_v60  ;;  %v12648_v53 = vpack.c.bf16 %v6753_v21, %v6746_v43 }
 0x502   :  { %v18686_v3 = vsub.f32 %v24186_v63, %v24187_v30  ;;  %v18693_v57 = vsub.f32 %v18417_v46, %v24191_v34  ;;  %12645 = vmatpush3.bf16.msra.mxu1 %v12644_v9  ;;  %v6760_v20 = vand.u32 4294901760, %v6759_v10  ;;  %v6767_v45 = vand.u32 4294901760, %v6766_v58 }
 0x503   :  { %24185 = vst [vmem:[#allocation144_spill] sm:$0xff] %v18681_v35  ;;  %v18698_v1 = vsub.f32 %v18419_v60, %v24193_v39  ;;  %v24195_v30 = vand.u32 4294901760, %v18508_v36  ;;  %v24196_v63 = vand.u32 4294901760, %v18531_v7  ;;  %12869 = vmatpush3.bf16.msra.mxu0 %v12868_v51  ;;  %12647 = vmatprep.subr.bf16.mxu1 %v12646_v19  ;;  %v12872_v46 = vpack.c.bf16 %v18658_v26, %v18653_v31 }
 0x504   :  { %24188 = vst [vmem:[#allocation24_spill] sm:$0xff] %v18686_v3  ;;  %24192 = vst [vmem:[#allocation25_spill] sm:$0xff] %v18693_v57  ;;  %v12650_v34 = vpack.c.bf16 %v6879_v38, %v6872_v61  ;;  %v6886_v60 = vand.u32 4294901760, %v6885_v32  ;;  %v6893_v39 = vand.u32 4294901760, %v6892_v25  ;;  %v24197_v21 = vand.u32 4294901760, %v18444_v12  ;;  %12871 = vmatprep.subr.bf16.mxu0 %v12870_v14 }
 0x505   :  { %24194 = vst [vmem:[#allocation225_spill] sm:$0xff] %v18698_v1  ;;  %v6773_v27 = vsub.f32 %v18508_v36, %v24195_v30  ;;  %v6780_v33 = vsub.f32 %v18531_v7, %v24196_v63  ;;  %v24199_v43 = vand.u32 4294901760, %v18446_v52  ;;  %v12874_v19 = vpack.c.bf16 %v18686_v3, %v18681_v35 }
 0x506   :  { %v18711_v9 = vsub.f32 %v18444_v12, %v24197_v21  ;;  %v24201_v51 = vand.u32 4294901760, %v18478_v6  ;;  %12649 = vmatpush3.bf16.msra.mxu1 %v12648_v53  ;;  %v12652_v58 = vpack.c.bf16 %v6767_v45, %v6760_v20  ;;  %v24203_v12 = vand.u32 4294901760, %v18480_v54  ;;  %v24205_v20 = vld [vmem:[#allocation120_spill] sm:$0xff] }
 0x507   :  { %v18716_v10 = vsub.f32 %v18446_v52, %v24199_v43  ;;  %v6774_v38 = vand.u32 4294901760, %v6773_v27  ;;  %v6781_v32 = vand.u32 4294901760, %v6780_v33  ;;  %12873 = vmatpush3.bf16.msra.mxu0 %v12872_v46  ;;  %12651 = vmatprep.subr.bf16.mxu1 %v12650_v34  ;;  %v12876_v52 = vpack.c.bf16 %v18698_v1, %v18693_v57  ;;  %v24207_v21 = vld [vmem:[#allocation136_spill] sm:$0xff] }
 0x508   :  { %24198 = vst [vmem:[#allocation226_spill] sm:$0xff] %v18711_v9  ;;  %v18723_v61 = vsub.f32 %v18478_v6, %v24201_v51  ;;  %v18728_v25 = vsub.f32 %v18480_v54, %v24203_v12  ;;  %v12654_v14 = vpack.c.bf16 %v6893_v39, %v6886_v60  ;;  %12875 = vmatprep.subr.bf16.mxu0 %v12874_v19  ;;  %v21685_v53 = vand.u32 4294901760, %v18254_v18  ;;  %v24206_v39 = vld [vmem:[#allocation135_spill] sm:$0xff]  ;;  %v24208_v19 = vld [vmem:[#allocation66_spill] sm:$0xff]  ;;  %v24210_v12 = vld [vmem:[#allocation192_spill] sm:$0xff] }
 0x509   :  { %24200 = vst [vmem:[#allocation228_spill] sm:$0xff] %v18716_v10  ;;  %v12878_v6 = vpack.c.bf16 %v18716_v10, %v18711_v9  ;;  %v21684_v45 = vand.u32 4294901760, %v18257_v29  ;;  %v12656_v33 = vpack.c.bf16 %v6781_v32, %v6774_v38  ;;  %v12658_v30 = vpack.c.bf16 %v24205_v20, %v18248_v11  ;;  %v24215_v51 = vld [vmem:[#allocation29_spill] sm:$0xff]  ;;  %v24224_v29 = vld [vmem:[#allocation126_spill] sm:$0xff]  ;;  %v24287_v11 = vld [vmem:[#allocation63_spill] sm:$0xff] }
 0x50a   :  { %24202 = vst [vmem:[#allocation229_spill] sm:$0xff] %v18723_v61  ;;  %24204 = vst [vmem:[#allocation231_spill] sm:$0xff] %v18728_v25  ;;  %12653 = vmatpush3.bf16.msra.mxu1 %v12652_v58  ;;  %v12880_v54 = vpack.c.bf16 %v18728_v25, %v18723_v61  ;;  %v21687_v27 = vand.u32 4294901760, %v18269_v59  ;;  %v21686_v63 = vand.u32 4294901760, %v18272_v17  ;;  %v21695_v34 = vand.u32 4294901760, %v24138_v56  ;;  %v24209_v58 = vld [vmem:[#allocation62_spill] sm:$0xff] }
 0x50b   :  { %12877 = vmatpush3.bf16.msra.mxu0 %v12876_v52  ;;  %12655 = vmatprep.subr.bf16.mxu1 %v12654_v14  ;;  %v12914_v46 = vpack.c.bf16 %v21684_v45, %v21685_v53  ;;  %v21694_v60 = vand.u32 4294901760, %v24139_v37  ;;  %v12660_v43 = vpack.c.bf16 %v24207_v21, %v24206_v39  ;;  %v24211_v52 = vld [vmem:[#allocation201_spill] sm:$0xff]  ;;  %v24212_v45 = vld [vmem:[#allocation147_spill] sm:$0xff]  ;;  %v24214_v53 = vld [vmem:[#allocation168_spill] sm:$0xff]  ;;  %v24222_v56 = vand.u32 4294901760, %v24154_v15 }
 0x50c   :  { %12879 = vmatprep.subr.bf16.mxu0 %v12878_v6  ;;  %v12916_v32 = vpack.c.bf16 %v21686_v63, %v21687_v27  ;;  %v12662_v14 = vpack.c.bf16 %v24211_v52, %v24210_v12  ;;  %v24217_v63 = vand.u32 4294901760, %v24209_v58  ;;  %v24218_v6 = vld [vmem:[#allocation31_spill] sm:$0xff]  ;;  %v18776_v37 = vld [vmem:[#allocation8 + $0x200] sm:$0xff]  ;;  %v24223_v59 = vand.u32 4294901760, %v24155_v0  ;;  %v19108_v39 = vld [vmem:[#allocation8 + $0x270] sm:$0xff] }
 0x50d   :  { %v24221_v58 = vld [vmem:[#allocation155_spill] sm:$0xff] }
 0x50e   :  { %12657 = vmatpush3.bf16.msra.mxu1 %v12656_v33  ;;  %v24219_v33 = vld [vmem:[#allocation78_spill] sm:$0xff]  ;;  %v18845_v15 = vld [vmem:[#allocation8 + $0x2a8] sm:$0xff] }
 0x50f   :  { %12881 = vmatpush3.bf16.msra.mxu0 %v12880_v54  ;;  %12659 = vmatprep.subr.bf16.mxu1 %v12658_v30  ;;  %v12918_v54 = vpack.c.bf16 %v21694_v60, %v21695_v34  ;;  %v24213_v30 = vld [vmem:[#allocation172_spill] sm:$0xff]  ;;  %v12666_v17 = vpack.c.bf16 %v24219_v33, %v24218_v6  ;;  %v18778_v60 = vld [vmem:[#allocation8 + $0x208] sm:$0xff]  ;;  %v24220_v34 = vld [vmem:[#allocation109_spill] sm:$0xff] }
 0x510   :  { %12915 = vmatprep.subr.bf16.mxu0 %v12914_v46  ;;  %v12664_v38 = vpack.c.bf16 %v24214_v53, %v24213_v30  ;;  %v24216_v46 = vand.u32 4294901760, %v24208_v19  ;;  %v12922_v19 = vpack.c.bf16 %v24223_v59, %v24222_v56  ;;  %v18806_v59 = vld [vmem:[#allocation8 + $0x298] sm:$0xff]  ;;  %v24225_v56 = vand.u32 4294901760, %v24160_v48 }
 0x511   :  { %6898 = vmatmul.mubr.f32.vlgmr.msra.gmra.mrb[6].mxu1 %v24212_v45  ;;  %v18815_v45 = vld [vmem:[#allocation8 + $0x210] sm:$0xff] }
 0x512   :  { %7898 = vmatmul.mubr.f32.vlgmr.msra.gmra.mrb[8].mxu0 %v24215_v51  ;;  %12661 = vmatpush3.bf16.msra.mxu1 %v12660_v43  ;;  %v12920_v27 = vpack.c.bf16 %v24217_v63, %v24216_v46  ;;  %v21702_v63 = vand.u32 4294901760, %v18776_v37  ;;  %v21705_v46 = vand.u32 4294901760, %v18778_v60  ;;  %v12670_v43 = vpack.c.bf16 %v24137_v8, %v18336_v24 }
 0x513   :  { %7033 = vmatprep.mubr.f32.mxu1 %v24220_v34  ;;  %12917 = vmatpush3.bf16.msra.mxu0 %v12916_v32  ;;  %v12668_v32 = vpack.c.bf16 %v18322_v13, %v24224_v29  ;;  %v24227_v8 = vand.u32 4294901760, %v24162_v44  ;;  %v24231_v44 = vand.u32 4294901760, %v24165_v42  ;;  %v24239_v13 = vld [vmem:[#allocation154_spill] sm:$0xff]  ;;  %v24242_v29 = vand.u32 4294901760, %v24189_v23  ;;  %v24244_v23 = vld [vmem:[#allocation176_spill] sm:$0xff] }
 0x514   :  { %8172 = vmatprep.mubr.f32.mxu0 %v24221_v58  ;;  %12663 = vmatprep.subr.bf16.mxu1 %v12662_v14  ;;  %v18797_v51 = vsub.f32 %v18776_v37, %v21702_v63  ;;  %v18802_v14 = vsub.f32 %v18778_v60, %v21705_v46  ;;  %v18804_v58 = vld [vmem:[#allocation8 + $0x290] sm:$0xff]  ;;  %v18817_v46 = vld [vmem:[#allocation8 + $0x218] sm:$0xff] }
 0x515   :  { %12919 = vmatprep.subr.bf16.mxu0 %v12918_v54  ;;  %v24226_v54 = vand.u32 4294901760, %v24161_v55  ;;  %v21709_v63 = vand.u32 4294901760, %v18804_v58  ;;  %v24281_v12 = vand.u32 4294901760, %v18817_v46 }
 0x516   :  { %12665 = vmatpush3.bf16.msra.mxu1 %v12664_v38  ;;  %v24228_v38 = vand.u32 4294901760, %v24163_v49  ;;  %v18859_v49 = vld [vmem:[#allocation8 + $0x228] sm:$0xff] }
 0x517   :  { %v12924_v0 = vpack.c.bf16 %v24226_v54, %v24225_v56  ;;  %12921 = vmatpush3.bf16.msra.mxu0 %v12920_v27  ;;  %12667 = vmatprep.subr.bf16.mxu1 %v12666_v17  ;;  %v21710_v54 = vand.u32 4294901760, %v18815_v45  ;;  %v18830_v18 = vsub.f32 %v18804_v58, %v21709_v63  ;;  %v24229_v17 = vand.u32 4294901760, %v18806_v59 }
 0x518   :  { %v12926_v48 = vpack.c.bf16 %v24228_v38, %v24227_v8  ;;  %12923 = vmatprep.subr.bf16.mxu0 %v12922_v19  ;;  %v21716_v8 = vand.u32 4294901760, %v18817_v46  ;;  %v18843_v19 = vld [vmem:[#allocation8 + $0x2a0] sm:$0xff]  ;;  %v12672_v63 = vpack.c.bf16 %v18354_v5, %v24144_v41  ;;  %v12674_v56 = vpack.c.bf16 %v18371_v16, %v18368_v50  ;;  %v18886_v16 = vld [vmem:[#allocation8 + $0x2b0] sm:$0xff] }
 0x519   :  { %v18835_v27 = vsub.f32 %v18806_v59, %v24229_v17  ;;  %v18841_v38 = vsub.f32 %v18815_v45, %v21710_v54  ;;  %v18857_v54 = vld [vmem:[#allocation8 + $0x220] sm:$0xff]  ;;  %v21720_v17 = vand.u32 4294901760, %v18843_v19  ;;  %v21723_v50 = vand.u32 4294901760, %v18845_v15 }
 0x51a   :  { %12669 = vmatpush3.bf16.msra.mxu1 %v12668_v32  ;;  %v18855_v55 = vsub.f32 %v18817_v46, %v21716_v8  ;;  %v24230_v32 = vand.u32 4294901760, %v24164_v40  ;;  %v24232_v8 = vand.u32 4294901760, %v24175_v22  ;;  %v24233_v41 = vand.u32 4294901760, %v24176_v4 }
 0x51b   :  { %12925 = vmatpush3.bf16.msra.mxu0 %v12924_v0  ;;  %12671 = vmatprep.subr.bf16.mxu1 %v12670_v43  ;;  %v24235_v43 = vld [vmem:[#allocation132_spill] sm:$0xff]  ;;  %v24236_v4 = vand.u32 4294901760, %v18857_v54  ;;  %v24241_v40 = vand.u32 4294901760, %v18859_v49 }
 0x51c   :  { %v12928_v5 = vpack.c.bf16 %v24231_v44, %v24230_v32  ;;  %12927 = vmatprep.subr.bf16.mxu0 %v12926_v48  ;;  %v12930_v24 = vpack.c.bf16 %v24233_v41, %v24232_v8  ;;  %v18878_v44 = vsub.f32 %v18843_v19, %v21720_v17  ;;  %v18883_v48 = vsub.f32 %v18845_v15, %v21723_v50  ;;  %v18888_v41 = vld [vmem:[#allocation8 + $0x2b8] sm:$0xff]  ;;  %v18899_v50 = vld [vmem:[#allocation8 + $0x230] sm:$0xff] }
 0x51d   :  { %v24234_v8 = vld [vmem:[#allocation249_spill] sm:$0xff]  ;;  %v18897_v22 = vsub.f32 %v18857_v54, %v24236_v4  ;;  %v24237_v32 = vand.u32 4294901760, %v24177_v62  ;;  %v18910_v17 = vsub.f32 %v18859_v49, %v24241_v40  ;;  %v21730_v4 = vand.u32 4294901760, %v18886_v16  ;;  %v24248_v62 = vld [vmem:[#allocation183_spill] sm:$0xff] }
 0x51e   :  { %12673 = vmatpush3.bf16.msra.mxu1 %v12672_v63  ;;  %v12676_v0 = vpack.c.bf16 %v24235_v43, %v24234_v8  ;;  %v24238_v63 = vand.u32 4294901760, %v24178_v2  ;;  %v24240_v43 = vld [vmem:[#allocation141_spill] sm:$0xff]  ;;  %v24250_v33 = vand.u32 4294901760, %v18888_v41 }
 0x51f   :  { %12929 = vmatpush3.bf16.msra.mxu0 %v12928_v5  ;;  %12675 = vmatprep.subr.bf16.mxu1 %v12674_v56  ;;  %v12678_v8 = vpack.c.bf16 %v24240_v43, %v24239_v13  ;;  %v24243_v5 = vand.u32 4294901760, %v24190_v47  ;;  %v18920_v2 = vld [vmem:[#allocation8 + $0x238] sm:$0xff]  ;;  %v18925_v40 = vsub.f32 %v18886_v16, %v21730_v4  ;;  %v24245_v43 = vld [vmem:[#allocation180_spill] sm:$0xff]  ;;  %v18957_v4 = vld [vmem:[#allocation8 + $0x288] sm:$0xff] }
 0x520   :  { %v12932_v42 = vpack.c.bf16 %v24238_v63, %v24237_v32  ;;  %12931 = vmatprep.subr.bf16.mxu0 %v12930_v24  ;;  %v12680_v47 = vpack.c.bf16 %v24245_v43, %v24244_v23  ;;  %v24249_v63 = vld [vmem:[#allocation187_spill] sm:$0xff]  ;;  %v18939_v6 = vsub.f32 %v18888_v41, %v24250_v33  ;;  %v21739_v24 = vand.u32 4294901760, %v18920_v2  ;;  %v24274_v23 = vld [vmem:[#allocation152_spill] sm:$0xff] }
 0x521   :  { %v12934_v56 = vpack.c.bf16 %v24243_v5, %v24242_v29  ;;  %v24246_v29 = vand.u32 4294901760, %v18653_v31  ;;  %v24247_v5 = vand.u32 4294901760, %v18658_v26  ;;  %v12682_v13 = vpack.c.bf16 %v24249_v63, %v24248_v62  ;;  %v18986_v62 = vld [vmem:[#allocation8 + $0x240] sm:$0xff] }
 0x522   :  { %12677 = vmatpush3.bf16.msra.mxu1 %v12676_v0  ;;  %v24251_v31 = vand.u32 4294901760, %v18899_v50  ;;  %v24253_v26 = vand.u32 4294901760, %v18686_v3  ;;  %v18955_v0 = vld [vmem:[#allocation8 + $0x280] sm:$0xff]  ;;  %v18962_v63 = vsub.f32 %v18920_v2, %v21739_v24  ;;  %v24258_v3 = vld [vmem:[#allocation69_spill] sm:$0xff]  ;;  %v21750_v43 = vand.u32 4294901760, %v18728_v25 }
 0x523   :  { %v12936_v32 = vpack.c.bf16 %v24247_v5, %v24246_v29  ;;  %12933 = vmatpush3.bf16.msra.mxu0 %v12932_v42  ;;  %12679 = vmatprep.subr.bf16.mxu1 %v12678_v8  ;;  %v24252_v5 = vand.u32 4294901760, %v18681_v35  ;;  %v24257_v42 = vld [vmem:[#allocation83_spill] sm:$0xff]  ;;  %v24260_v24 = vand.u32 4294901760, %v18716_v10  ;;  %v24262_v10 = vand.u32 4294901760, %v18955_v0 }
 0x524   :  { %v18947_v29 = vsub.f32 %v18899_v50, %v24251_v31  ;;  %12935 = vmatprep.subr.bf16.mxu0 %v12934_v56  ;;  %v24254_v31 = vld [vmem:[#allocation202_spill] sm:$0xff]  ;;  %v12686_v35 = vpack.c.bf16 %v24258_v3, %v24257_v42  ;;  %v21757_v3 = vand.u32 4294901760, %v18986_v62 }
 0x525   :  { %v12938_v33 = vpack.c.bf16 %v24253_v26, %v24252_v5  ;;  %v12684_v56 = vpack.c.bf16 %v24254_v31, %v18466_v28  ;;  %v24255_v26 = vand.u32 4294901760, %v18693_v57  ;;  %v24256_v5 = vand.u32 4294901760, %v18698_v1  ;;  %v18980_v57 = vld [vmem:[#allocation8 + $0x2c0] sm:$0xff]  ;;  %v19081_v28 = vld [vmem:[#allocation8 + $0x2f0] sm:$0xff] }
 0x526   :  { %12681 = vmatpush3.bf16.msra.mxu1 %v12680_v47  ;;  %v24259_v47 = vand.u32 4294901760, %v18711_v9  ;;  %v24263_v9 = vand.u32 4294901760, %v18957_v4 }
 0x527   :  { %12937 = vmatpush3.bf16.msra.mxu0 %v12936_v32  ;;  %12683 = vmatprep.subr.bf16.mxu1 %v12682_v13  ;;  %v12940_v8 = vpack.c.bf16 %v24256_v5, %v24255_v26  ;;  %v12688_v26 = vpack.c.bf16 %v18531_v7, %v18508_v36  ;;  %v18984_v5 = vld [vmem:[#allocation8 + $0x2c8] sm:$0xff]  ;;  %v18994_v32 = vld [vmem:[#allocation8 + $0x2d0] sm:$0xff]  ;;  %v18996_v13 = vld [vmem:[#allocation8 + $0x2d8] sm:$0xff]  ;;  %v24269_v7 = vand.u32 4294901760, %v18806_v59 }
 0x528   :  { %12939 = vmatprep.subr.bf16.mxu0 %v12938_v33  ;;  %v12942_v31 = vpack.c.bf16 %v24260_v24, %v24259_v47  ;;  %v18988_v33 = vld [vmem:[#allocation8 + $0x248] sm:$0xff]  ;;  %v24261_v24 = vand.u32 4294901760, %v18723_v61  ;;  %v19004_v1 = vpack.c.bf16 %v24263_v9, %v24262_v10  ;;  %v21755_v9 = vand.u32 4294901760, %v18980_v57  ;;  %v19056_v59 = vld [vmem:[#allocation8 + $0x260] sm:$0xff] }
 0x529   :  { %v19010_v61 = vld [vmem:[#allocation8 + $0x2e8] sm:$0xff]  ;;  %v21756_v10 = vand.u32 4294901760, %v18984_v5  ;;  %v21758_v42 = vand.u32 4294901760, %v18988_v33  ;;  %v8320_v52 = vand.u32 4294901760, %v19056_v59 }
 0x52a   :  { %12685 = vmatpush3.bf16.msra.mxu1 %v12684_v56  ;;  %v12944_v47 = vpack.c.bf16 %v21750_v43, %v24261_v24  ;;  %v18998_v56 = vld [vmem:[#allocation8 + $0x250] sm:$0xff]  ;;  %24264 = vst [vmem:[#allocation232_spill] sm:$0xff] %v19004_v1  ;;  %v24265_v24 = vand.u32 4294901760, %v18776_v37  ;;  %v24266_v43 = vand.u32 4294901760, %v18778_v60  ;;  %v21762_v37 = vand.u32 4294901760, %v18994_v32 }
 0x52b   :  { %12941 = vmatpush3.bf16.msra.mxu0 %v12940_v8  ;;  %12687 = vmatprep.subr.bf16.mxu1 %v12686_v35  ;;  %v19006_v8 = vld [vmem:[#allocation8 + $0x258] sm:$0xff]  ;;  %v19008_v35 = vld [vmem:[#allocation8 + $0x2e0] sm:$0xff]  ;;  %v21763_v60 = vand.u32 4294901760, %v18996_v13  ;;  %v24277_v30 = vand.u32 4294901760, %v19010_v61 }
 0x52c   :  { %12943 = vmatprep.subr.bf16.mxu0 %v12942_v31  ;;  %v19016_v25 = vpack.c.bf16 %v24266_v43, %v24265_v24  ;;  %v24268_v31 = vand.u32 4294901760, %v18804_v58  ;;  %v24271_v43 = vld [vmem:[#allocation112_spill] sm:$0xff]  ;;  %v21764_v58 = vand.u32 4294901760, %v18998_v56  ;;  %v19054_v24 = vsub.f32 %v18988_v33, %v21758_v42 }
 0x52d   :  { %v24276_v53 = vand.u32 4294901760, %v19008_v35 }
 0x52e   :  { %24267 = vst [vmem:[#allocation234_spill] sm:$0xff] %v19016_v25  ;;  %v19022_v36 = vpack.c.bf16 %v24269_v7, %v24268_v31  ;;  %12689 = vmatpush3.bf16.msra.mxu1 %v12688_v26  ;;  %v19039_v26 = vsub.f32 %v18980_v57, %v21755_v9  ;;  %v19049_v31 = vsub.f32 %v18986_v62, %v21757_v3  ;;  %v19058_v7 = vld [vmem:[#allocation8 + $0x268] sm:$0xff]  ;;  %v24272_v9 = vld [vmem:[#allocation105_spill] sm:$0xff] }
 0x52f   :  { %12945 = vmatpush3.bf16.msra.mxu0 %v12944_v47  ;;  %12691 = vmatprep.subr.bf16.mxu1 %v24271_v43  ;;  %v19044_v47 = vsub.f32 %v18984_v5, %v21756_v10  ;;  %v19064_v10 = vsub.f32 %v18994_v32, %v21762_v37  ;;  %v19069_v3 = vsub.f32 %v18996_v13, %v21763_v60  ;;  %v24275_v37 = vld [vmem:[#allocation131_spill] sm:$0xff] }
 0x530   :  { %24270 = vst [vmem:[#allocation235_spill] sm:$0xff] %v19022_v36  ;;  %12979 = vmatprep.subr.bf16.mxu0 %v19004_v1  ;;  %v19074_v42 = vsub.f32 %v18998_v56, %v21764_v58  ;;  %v24273_v1 = vand.u32 4294901760, %v19006_v8  ;;  %v19088_v60 = vsub.f32 %v19008_v35, %v24276_v53  ;;  %v19093_v58 = vsub.f32 %v19010_v61, %v24277_v30 }
 0x531   :  { %7036 = vmatmul.mubr.f32.vlgmr.msra.gmra.mrb[8].mxu1 %v24272_v9  ;;  %v24278_v9 = vand.u32 4294901760, %v24220_v34  ;;  %v24280_v53 = vand.u32 4294901760, %v18815_v45  ;;  %v8374_v30 = vand.u32 4294901760, %v19081_v28  ;;  %v6503_v34 = vld [vmem:[#allocation8 + $0x278] sm:$0xff] }
 0x532   :  { %v19079_v43 = vsub.f32 %v19006_v8, %v24273_v1  ;;  %8174 = vmatmul.mubr.f32.vlgmr.msra.gmra.mrb[10].mxu0 %v24274_v23  ;;  %12693 = vmatpush3.bf16.msra.mxu1 %v24275_v37  ;;  %v24279_v1 = vld [vmem:[#allocation196_spill] sm:$0xff]  ;;  %v8323_v23 = vand.u32 4294901760, %v19058_v7  ;;  %v6519_v37 = vld [vmem:[#allocation8 + $0x2f8] sm:$0xff] }
 0x533   :  { %7140 = vmatprep.mubr.f32.mxu1 %v24278_v9  ;;  %12695 = vmatprep.subr.bf16.mxu1 %v24279_v1  ;;  %v19105_v21 = vpack.c.bf16 %v24281_v12, %v24280_v53  ;;  %v24283_v9 = vand.u32 4294901760, %v18843_v19  ;;  %v24284_v1 = vand.u32 4294901760, %v18845_v15  ;;  %v24286_v12 = vld [vmem:[#allocation32_spill] sm:$0xff]  ;;  %v8377_v46 = vand.u32 4294901760, %v6519_v37 }
 0x534   :  { %12981 = vmatpush3.bf16.msra.mxu0 %v19016_v25  ;;  %v19118_v25 = vsub.f32 %v19056_v59, %v8320_v52  ;;  %v19121_v45 = vsub.f32 %v19058_v7, %v8323_v23  ;;  %v19125_v53 = vsub.f32 %v19081_v28, %v8374_v30  ;;  %v8326_v19 = vand.u32 4294901760, %v19108_v39 }
 0x535   :  { %24282 = vst [vmem:[#allocation237_spill] sm:$0xff] %v19105_v21  ;;  %12983 = vmatprep.subr.bf16.mxu0 %v19022_v36  ;;  %v19115_v20 = vpack.c.bf16 %v24284_v1, %v24283_v9  ;;  %v8329_v36 = vand.u32 4294901760, %v6503_v34  ;;  %v24288_v15 = vand.u32 4294901760, %v18857_v54  ;;  %v24289_v59 = vand.u32 4294901760, %v18859_v49  ;;  %v24302_v49 = vld [vmem:[#allocation153_spill] sm:$0xff] }
 0x536   :  { %12697 = vmatpush3.bf16.msra.mxu1 %v24286_v12  ;;  %v19136_v7 = vsub.f32 %v6519_v37, %v8377_v46  ;;  %v24291_v28 = vand.u32 4294901760, %v18886_v16  ;;  %v24294_v37 = vld [vmem:[#allocation87_spill] sm:$0xff]  ;;  %v24303_v9 = vld [vmem:[#allocation217_spill] sm:$0xff] }
 0x537   :  { %24285 = vst [vmem:[#allocation238_spill] sm:$0xff] %v19115_v20  ;;  %12699 = vmatprep.subr.bf16.mxu1 %v24287_v11  ;;  %v19134_v1 = vpack.c.bf16 %v24289_v59, %v24288_v15  ;;  %v24292_v11 = vand.u32 4294901760, %v18888_v41  ;;  %v19150_v54 = vsub.f32 %v6503_v34, %v8329_v36  ;;  %v24295_v59 = vld [vmem:[#allocation206_spill] sm:$0xff]  ;;  %v24297_v41 = vand.u32 4294901760, %v18920_v2 }
 0x538   :  { %12985 = vmatpush3.bf16.msra.mxu0 %v19105_v21  ;;  %v19148_v21 = vsub.f32 %v19108_v39, %v8326_v19  ;;  %v24296_v39 = vand.u32 4294901760, %v18899_v50  ;;  %v24300_v15 = vand.u32 4294901760, %v18984_v5  ;;  %v24304_v2 = vand.u32 4294901760, %v18986_v62  ;;  %v24318_v50 = vld [vmem:[#allocation158_spill] sm:$0xff] }
 0x539   :  { %24290 = vst [vmem:[#allocation240_spill] sm:$0xff] %v19134_v1  ;;  %12987 = vmatprep.subr.bf16.mxu0 %v19115_v20  ;;  %v19145_v12 = vpack.c.bf16 %v24292_v11, %v24291_v28  ;;  %v24299_v28 = vand.u32 4294901760, %v18980_v57  ;;  %v24305_v57 = vand.u32 4294901760, %v18988_v33  ;;  %v24307_v5 = vand.u32 4294901760, %v18994_v32  ;;  %v24311_v11 = vld [vmem:[#allocation91_spill] sm:$0xff] }
 0x53a   :  { %12701 = vmatpush3.bf16.msra.mxu1 %v24294_v37  ;;  %v19167_v34 = vpack.c.bf16 %v24297_v41, %v24296_v39  ;;  %v24312_v62 = vand.u32 4294901760, %v18998_v56  ;;  %v24313_v33 = vand.u32 4294901760, %v19006_v8  ;;  %v24316_v32 = vand.u32 4294901760, %v19010_v61  ;;  %v24319_v56 = vld [vmem:[#allocation182_spill] sm:$0xff] }
 0x53b   :  { %24293 = vst [vmem:[#allocation241_spill] sm:$0xff] %v19145_v12  ;;  %12703 = vmatprep.subr.bf16.mxu1 %v24295_v59  ;;  %v19174_v16 = vpack.c.bf16 %v24300_v15, %v24299_v28  ;;  %v19187_v39 = vpack.c.bf16 %v24305_v57, %v24304_v2  ;;  %v24308_v15 = vand.u32 4294901760, %v18996_v13  ;;  %v24310_v28 = vld [vmem:[#allocation20_spill] sm:$0xff]  ;;  %v24315_v13 = vand.u32 4294901760, %v19008_v35  ;;  %v24325_v35 = vld [vmem:[#allocation251_spill] sm:$0xff] }
 0x53c   :  { %12989 = vmatpush3.bf16.msra.mxu0 %v19134_v1  ;;  %24298 = vst [vmem:[#allocation243_spill] sm:$0xff] %v19167_v34  ;;  %v19203_v2 = vpack.c.bf16 %v24313_v33, %v24312_v62  ;;  %v19219_v8 = vpack.c.bf16 %v8323_v23, %v8320_v52  ;;  %v24321_v61 = vand.u32 4294901760, %v18955_v0  ;;  %v19236_v23 = vpack.c.bf16 %v8377_v46, %v8374_v30  ;;  %v24324_v52 = vld [vmem:[#allocation194_spill] sm:$0xff]  ;;  %v24331_v46 = vld [vmem:[#allocation247_spill] sm:$0xff] }
 0x53d   :  { %12991 = vmatprep.subr.bf16.mxu0 %v19145_v12  ;;  %24301 = vst [vmem:[#allocation244_spill] sm:$0xff] %v19174_v16  ;;  %24306 = vst [vmem:[#allocation38_spill] sm:$0xff] %v19187_v39  ;;  %v19194_v41 = vpack.c.bf16 %v24308_v15, %v24307_v5  ;;  %v19212_v5 = vpack.c.bf16 %v24316_v32, %v24315_v13  ;;  %v24322_v13 = vand.u32 4294901760, %v18957_v4  ;;  %v24326_v15 = vld [vmem:[#allocation116_spill] sm:$0xff]  ;;  %v24332_v62 = vld [vmem:[#allocation135_spill] sm:$0xff]  ;;  %v21805_v1 = vand.u32 4294901760, %v18841_v38 }
 0x53e   :  { %12705 = vmatpush3.bf16.msra.mxu1 %v24302_v49  ;;  %24314 = vst [vmem:[#allocation41_spill] sm:$0xff] %v19203_v2  ;;  %24320 = vst [vmem:[#allocation43_spill] sm:$0xff] %v19219_v8  ;;  %v19228_v33 = vsub.f32 %v18955_v0, %v24321_v61  ;;  %v24327_v57 = vand.u32 4294901760, %v24326_v15  ;;  %v24328_v0 = vld [vmem:[#allocation120_spill] sm:$0xff] }
 0x53f   :  { %12707 = vmatprep.subr.bf16.mxu1 %v24303_v9  ;;  %24309 = vst [vmem:[#allocation39_spill] sm:$0xff] %v19194_v41  ;;  %24317 = vst [vmem:[#allocation209_spill] sm:$0xff] %v19212_v5  ;;  %v19233_v32 = vsub.f32 %v18957_v4, %v24322_v13  ;;  %v24329_v61 = vand.u32 4294901760, %v24328_v0  ;;  %v19249_v13 = vpack.c.bf16 %v8329_v36, %v8326_v19  ;;  %v24334_v15 = vld [vmem:[#allocation136_spill] sm:$0xff]  ;;  %v24338_v36 = vld [vmem:[#allocation201_spill] sm:$0xff] }
 0x540   :  { %12993 = vmatpush3.bf16.msra.mxu0 %v19167_v34  ;;  %24323 = vst [vmem:[#allocation44_spill] sm:$0xff] %v19236_v23  ;;  %v24339_v19 = vand.u32 4294901760, %v24338_v36  ;;  %v21789_v36 = vand.u32 4294901760, %v19228_v33 }
 0x541   :  { %12995 = vmatprep.subr.bf16.mxu0 %v19174_v16  ;;  %24330 = vst [vmem:[#allocation45_spill] sm:$0xff] %v19249_v13  ;;  %v13042_v30 = vpack.c.bf16 %v19233_v32, %v19228_v33  ;;  %v24356_v16 = vld [vmem:[#allocation35_spill] sm:$0xff] }
 0x542   :  { %12709 = vmatpush3.bf16.msra.mxu1 %v24310_v28 }
 0x543   :  { %12711 = vmatprep.subr.bf16.mxu1 %v24311_v11 }
 0x544   :  { %12997 = vmatpush3.bf16.msra.mxu0 %v19187_v39 }
 0x545   :  { %12999 = vmatprep.subr.bf16.mxu0 %v19194_v41  ;;  %v24335_v41 = vand.u32 4294901760, %v24334_v15 }
 0x546   :  { %12713 = vmatpush3.bf16.msra.mxu1 %v24318_v50 }
 0x547   :  { %12715 = vmatprep.subr.bf16.mxu1 %v24319_v56 }
 0x548   :  { %13001 = vmatpush3.bf16.msra.mxu0 %v19203_v2  ;;  %v12722_v2 = vpack.c.bf16 %v24329_v61, %v24327_v57  ;;  %v24336_v61 = vld [vmem:[#allocation192_spill] sm:$0xff] }
 0x549   :  { %13003 = vmatprep.subr.bf16.mxu0 %v19212_v5  ;;  %v24333_v5 = vand.u32 4294901760, %v24332_v62  ;;  %v24337_v4 = vand.u32 4294901760, %v24336_v61  ;;  %v21799_v62 = vand.u32 4294901760, %v18797_v51 }
 0x54a   :  { %12717 = vmatpush3.bf16.msra.mxu1 %v24324_v52 }
 0x54b   :  { %12719 = vmatprep.subr.bf16.mxu1 %v24325_v35  ;;  %v12724_v0 = vpack.c.bf16 %v24335_v41, %v24333_v5  ;;  %v24342_v41 = vld [vmem:[#allocation102_spill] sm:$0xff]  ;;  %v24343_v5 = vld [vmem:[#allocation172_spill] sm:$0xff] }
 0x54c   :  { %13005 = vmatpush3.bf16.msra.mxu0 %v19219_v8  ;;  %v12726_v8 = vpack.c.bf16 %v24339_v19, %v24337_v4  ;;  %v24344_v15 = vand.u32 4294901760, %v24343_v5  ;;  %v21788_v4 = vand.u32 4294901760, %v19233_v32  ;;  %v24347_v19 = vld [vmem:[#allocation31_spill] sm:$0xff] }
 0x54d   :  { %13007 = vmatprep.subr.bf16.mxu0 %v19236_v23  ;;  %v24340_v23 = vld [vmem:[#allocation105_spill] sm:$0xff] }
 0x54e   :  { %12721 = vmatpush3.bf16.msra.mxu1 %v24331_v46  ;;  %v24341_v39 = vand.u32 4294901760, %v24340_v23  ;;  %v24348_v23 = vand.u32 4294901760, %v24347_v19  ;;  %v19287_v5 = vpack.c.bf16 %v21788_v4, %v21789_v36  ;;  %v24357_v4 = vand.u32 4294901760, %v24356_v16  ;;  %v24358_v36 = vld [vmem:[#allocation42_spill] sm:$0xff]  ;;  %v24362_v16 = vld [vmem:[#allocation211_spill] sm:$0xff] }
 0x54f   :  { %12723 = vmatprep.subr.bf16.mxu1 %v12722_v2  ;;  %v24345_v2 = vld [vmem:[#allocation168_spill] sm:$0xff]  ;;  %v24359_v34 = vand.u32 4294901760, %v24358_v36  ;;  %v24363_v36 = vand.u32 4294901760, %v24362_v16  ;;  %v24372_v16 = vld [vmem:[#allocation249_spill] sm:$0xff] }
 0x550   :  { %13009 = vmatpush3.bf16.msra.mxu0 %v19249_v13  ;;  %v24346_v57 = vand.u32 4294901760, %v24345_v2  ;;  %v24354_v2 = vld [vmem:[#allocation203_spill] sm:$0xff] }
 0x551   :  { %7144 = vmatmul.mubr.f32.vlgmr.msra.gmra.mrb[10].mxu1 %v24341_v39  ;;  %13043 = vmatprep.subr.bf16.mxu0 %v13042_v30  ;;  %v24349_v39 = vld [vmem:[#allocation78_spill] sm:$0xff]  ;;  %v24355_v19 = vand.u32 4294901760, %v24354_v2  ;;  %v12734_v12 = vpack.c.bf16 %v24359_v34, %v24357_v4  ;;  %v24364_v34 = vld [vmem:[#allocation212_spill] sm:$0xff]  ;;  %v21803_v2 = vand.u32 4294901760, %v18883_v48 }
 0x552   :  { %12725 = vmatpush3.bf16.msra.mxu1 %v12724_v0  ;;  %7310 = vmatprep.mubr.f32.mxu1 %v24342_v41  ;;  %v12728_v61 = vpack.c.bf16 %v24346_v57, %v24344_v15  ;;  %v24350_v30 = vand.u32 4294901760, %v24349_v39  ;;  %v21796_v0 = vand.u32 4294901760, %v18802_v14  ;;  %v24352_v57 = vld [vmem:[#allocation126_spill] sm:$0xff]  ;;  %v21798_v39 = vand.u32 4294901760, %v18830_v18 }
 0x553   :  { %12727 = vmatprep.subr.bf16.mxu1 %v12726_v8  ;;  %v24353_v15 = vand.u32 4294901760, %v24352_v57  ;;  %v24365_v4 = vand.u32 4294901760, %v24364_v34  ;;  %v21808_v34 = vand.u32 4294901760, %v18925_v40 }
 0x554   :  { %v12730_v13 = vpack.c.bf16 %v24350_v30, %v24348_v23  ;;  %v19293_v8 = vpack.c.bf16 %v21796_v0, %v21799_v62  ;;  %v21797_v30 = vand.u32 4294901760, %v18835_v27  ;;  %v21802_v0 = vand.u32 4294901760, %v18855_v55 }
 0x555   :  { %v12732_v23 = vpack.c.bf16 %v24355_v19, %v24353_v15  ;;  %v12736_v57 = vpack.c.bf16 %v24365_v4, %v24363_v36  ;;  %v21804_v15 = vand.u32 4294901760, %v18878_v44  ;;  %v24366_v19 = vld [vmem:[#allocation19_spill] sm:$0xff]  ;;  %v21807_v4 = vand.u32 4294901760, %v18939_v6 }
 0x556   :  { %24351 = vst [vmem:[#allocation47_spill] sm:$0xff] %v19293_v8  ;;  %12729 = vmatpush3.bf16.msra.mxu1 %v12728_v61  ;;  %v19311_v61 = vpack.c.bf16 %v21797_v30, %v21798_v39  ;;  %v24367_v30 = vand.u32 4294901760, %v24366_v19  ;;  %v24368_v39 = vld [vmem:[#allocation125_spill] sm:$0xff]  ;;  %v24376_v19 = vld [vmem:[#allocation154_spill] sm:$0xff] }
 0x557   :  { %12731 = vmatprep.subr.bf16.mxu1 %v12730_v13  ;;  %v19317_v13 = vpack.c.bf16 %v21802_v0, %v21805_v1  ;;  %v24369_v62 = vand.u32 4294901760, %v24368_v39  ;;  %v21806_v0 = vand.u32 4294901760, %v18910_v17  ;;  %v24373_v39 = vand.u32 4294901760, %v24372_v16  ;;  %v24382_v16 = vld [vmem:[#allocation176_spill] sm:$0xff] }
 0x558   :  { %24360 = vst [vmem:[#allocation50_spill] sm:$0xff] %v19311_v61  ;;  %v21809_v61 = vand.u32 4294901760, %v18897_v22 }
 0x559   :  { %24361 = vst [vmem:[#allocation51_spill] sm:$0xff] %v19317_v13  ;;  %v12738_v20 = vpack.c.bf16 %v24369_v62, %v24367_v30  ;;  %v24374_v62 = vld [vmem:[#allocation132_spill] sm:$0xff]  ;;  %v21813_v13 = vand.u32 4294901760, %v18947_v29 }
 0x55a   :  { %12733 = vmatpush3.bf16.msra.mxu1 %v12732_v23  ;;  %v19335_v23 = vpack.c.bf16 %v21803_v2, %v21804_v15  ;;  %v24375_v30 = vand.u32 4294901760, %v24374_v62  ;;  %v24377_v2 = vand.u32 4294901760, %v24376_v19  ;;  %v24378_v15 = vld [vmem:[#allocation141_spill] sm:$0xff]  ;;  %v21812_v62 = vand.u32 4294901760, %v19039_v26  ;;  %v24386_v19 = vld [vmem:[#allocation183_spill] sm:$0xff] }
 0x55b   :  { %12735 = vmatprep.subr.bf16.mxu1 %v12734_v12  ;;  %v19341_v12 = vpack.c.bf16 %v21806_v0, %v21809_v61  ;;  %v24379_v1 = vand.u32 4294901760, %v24378_v15  ;;  %v21810_v0 = vand.u32 4294901760, %v18962_v63  ;;  %v24383_v15 = vand.u32 4294901760, %v24382_v16  ;;  %v24392_v16 = vld [vmem:[#allocation191_spill] sm:$0xff] }
 0x55c   :  { %24370 = vst [vmem:[#allocation100_spill] sm:$0xff] %v19335_v23  ;;  %v12740_v36 = vpack.c.bf16 %v24375_v30, %v24373_v39  ;;  %v21811_v30 = vand.u32 4294901760, %v19044_v47 }
 0x55d   :  { %24371 = vst [vmem:[#allocation107_spill] sm:$0xff] %v19341_v12  ;;  %v12742_v23 = vpack.c.bf16 %v24379_v1, %v24377_v2  ;;  %v24384_v1 = vld [vmem:[#allocation180_spill] sm:$0xff]  ;;  %v21823_v12 = vand.u32 4294901760, %v19049_v31 }
 0x55e   :  { %12737 = vmatpush3.bf16.msra.mxu1 %v12736_v57  ;;  %v19359_v57 = vpack.c.bf16 %v21807_v4, %v21808_v34  ;;  %v24385_v2 = vand.u32 4294901760, %v24384_v1  ;;  %v24387_v4 = vand.u32 4294901760, %v24386_v19  ;;  %v24388_v34 = vld [vmem:[#allocation187_spill] sm:$0xff]  ;;  %v21822_v1 = vand.u32 4294901760, %v19064_v10 }
 0x55f   :  { %12739 = vmatprep.subr.bf16.mxu1 %v12738_v20  ;;  %v19365_v20 = vpack.c.bf16 %v21810_v0, %v21813_v13  ;;  %v24389_v61 = vand.u32 4294901760, %v24388_v34  ;;  %v21814_v0 = vand.u32 4294901760, %v19054_v24  ;;  %v24393_v34 = vand.u32 4294901760, %v24392_v16  ;;  %v24396_v19 = vld [vmem:[#allocation83_spill] sm:$0xff]  ;;  %v24402_v16 = vld [vmem:[#allocation250_spill] sm:$0xff] }
 0x560   :  { %24380 = vst [vmem:[#allocation108_spill] sm:$0xff] %v19359_v57  ;;  %v12744_v39 = vpack.c.bf16 %v24385_v2, %v24383_v15  ;;  %v21815_v2 = vand.u32 4294901760, %v19069_v3 }
 0x561   :  { %24381 = vst [vmem:[#allocation16_spill] sm:$0xff] %v19365_v20  ;;  %v12746_v57 = vpack.c.bf16 %v24389_v61, %v24387_v4  ;;  %v24394_v61 = vld [vmem:[#allocation202_spill] sm:$0xff]  ;;  %v21819_v20 = vand.u32 4294901760, %v19074_v42 }
 0x562   :  { %12741 = vmatpush3.bf16.msra.mxu1 %v12740_v36  ;;  %v19383_v36 = vpack.c.bf16 %v21811_v30, %v21812_v62  ;;  %v24395_v4 = vand.u32 4294901760, %v24394_v61  ;;  %v24397_v30 = vand.u32 4294901760, %v24396_v19  ;;  %v24398_v62 = vld [vmem:[#allocation69_spill] sm:$0xff]  ;;  %v21818_v61 = vand.u32 4294901760, %v19088_v60 }
 0x563   :  { %12743 = vmatprep.subr.bf16.mxu1 %v12742_v23  ;;  %v19389_v23 = vpack.c.bf16 %v21814_v0, %v21823_v12  ;;  %v24399_v13 = vand.u32 4294901760, %v24398_v62  ;;  %v21816_v0 = vand.u32 4294901760, %v19079_v43  ;;  %v24403_v62 = vand.u32 4294901760, %v24402_v16 }
 0x564   :  { %24390 = vst [vmem:[#allocation115_spill] sm:$0xff] %v19383_v36  ;;  %v12748_v15 = vpack.c.bf16 %v24395_v4, %v24393_v34  ;;  %v21817_v4 = vand.u32 4294901760, %v19093_v58  ;;  %v21821_v19 = vand.u32 4294901760, %v19118_v25  ;;  %v24408_v16 = vand.u32 4294901760, %v19228_v33 }
 0x565   :  { %24391 = vst [vmem:[#allocation117_spill] sm:$0xff] %v19389_v23  ;;  %v12750_v36 = vpack.c.bf16 %v24399_v13, %v24397_v30  ;;  %v24404_v13 = vld [vmem:[#allocation133_spill] sm:$0xff]  ;;  %v21826_v12 = vand.u32 4294901760, %v19148_v21 }
 0x566   :  { %12745 = vmatpush3.bf16.msra.mxu1 %v12744_v39  ;;  %v19407_v39 = vpack.c.bf16 %v21815_v2, %v21822_v1  ;;  %v24405_v30 = vand.u32 4294901760, %v24404_v13  ;;  %v21820_v2 = vand.u32 4294901760, %v19121_v45  ;;  %v24412_v1 = vld [vmem:[#allocation112_spill] sm:$0xff] }
 0x567   :  { %12747 = vmatprep.subr.bf16.mxu1 %v12746_v57  ;;  %v19413_v57 = vpack.c.bf16 %v21816_v0, %v21819_v20  ;;  %v19427_v0 = vpack.c.bf16 %v21817_v4, %v21818_v61  ;;  %v21824_v4 = vand.u32 4294901760, %v19136_v7  ;;  %v24410_v61 = vand.u32 4294901760, %v18797_v51 }
 0x568   :  { %24400 = vst [vmem:[#allocation119_spill] sm:$0xff] %v19407_v39  ;;  %v12752_v34 = vpack.c.bf16 %v24405_v30, %v24403_v62  ;;  %v24409_v62 = vand.u32 4294901760, %v19233_v32  ;;  %v21827_v30 = vand.u32 4294901760, %v19125_v53 }
 0x569   :  { %24401 = vst [vmem:[#allocation148_spill] sm:$0xff] %v19413_v57  ;;  %24406 = vst [vmem:[#allocation193_spill] sm:$0xff] %v19427_v0  ;;  %v8399_v20 = vsub.f32 %v18797_v51, %v24410_v61  ;;  %v24466_v57 = vand.u32 4294901760, %v19069_v3 }
 0x56a   :  { %12749 = vmatpush3.bf16.msra.mxu1 %v12748_v15  ;;  %v19433_v15 = vpack.c.bf16 %v21820_v2, %v21821_v19  ;;  %v8518_v13 = vsub.f32 %v19233_v32, %v24409_v62  ;;  %v24411_v2 = vand.u32 4294901760, %v18802_v14  ;;  %v21825_v32 = vand.u32 4294901760, %v19150_v54 }
 0x56b   :  { %12751 = vmatprep.subr.bf16.mxu1 %v12750_v36  ;;  %v8511_v36 = vsub.f32 %v19228_v33, %v24408_v16  ;;  %v8400_v62 = vand.u32 4294901760, %v8399_v20  ;;  %v24419_v20 = vld [vmem:[#allocation131_spill] sm:$0xff] }
 0x56c   :  { %24407 = vst [vmem:[#allocation199_spill] sm:$0xff] %v19433_v15  ;;  %v8406_v19 = vsub.f32 %v18802_v14, %v24411_v2  ;;  %v8519_v16 = vand.u32 4294901760, %v8518_v13  ;;  %v24414_v15 = vld [vmem:[#allocation147_spill] sm:$0xff]  ;;  %v24417_v2 = vand.u32 4294901760, %v18830_v18  ;;  %v24418_v13 = vand.u32 4294901760, %v18835_v27 }
 0x56d   :  { %v8512_v33 = vand.u32 4294901760, %v8511_v36 }
 0x56e   :  { %12753 = vmatpush3.bf16.msra.mxu1 %v12752_v34  ;;  %v19456_v34 = vpack.c.bf16 %v21824_v4, %v21827_v30  ;;  %v8407_v61 = vand.u32 4294901760, %v8406_v19  ;;  %v8525_v36 = vsub.f32 %v18830_v18, %v24417_v2  ;;  %v8532_v4 = vsub.f32 %v18835_v27, %v24418_v13 }
 0x56f   :  { %12755 = vmatprep.subr.bf16.mxu1 %v24412_v1  ;;  %v19459_v0 = vpack.c.bf16 %v8519_v16, %v8512_v33  ;;  %v19465_v1 = vpack.c.bf16 %v21825_v32, %v21826_v12  ;;  %v24421_v33 = vand.u32 4294901760, %v18841_v38  ;;  %v24422_v32 = vld [vmem:[#allocation196_spill] sm:$0xff]  ;;  %v24423_v2 = vand.u32 4294901760, %v18855_v55 }
 0x570   :  { %24413 = vst [vmem:[#allocation52_spill] sm:$0xff] %v19456_v34  ;;  %v19475_v19 = vpack.c.bf16 %v8407_v61, %v8400_v62  ;;  %v8526_v12 = vand.u32 4294901760, %v8525_v36  ;;  %v8533_v30 = vand.u32 4294901760, %v8532_v4  ;;  %v24426_v62 = vld [vmem:[#allocation63_spill] sm:$0xff]  ;;  %v24427_v61 = vand.u32 4294901760, %v18878_v44 }
 0x571   :  { %7312 = vmatmul.mubr.f32.vlgmr.msra.gmra.mrb[12].mxu1 %v24414_v15  ;;  %24415 = vst [vmem:[#allocation54_spill] sm:$0xff] %v19459_v0  ;;  %24416 = vst [vmem:[#allocation56_spill] sm:$0xff] %v19465_v1  ;;  %v8413_v16 = vsub.f32 %v18841_v38, %v24421_v33  ;;  %v8420_v0 = vsub.f32 %v18855_v55, %v24423_v2 }
 0x572   :  { %12757 = vmatpush3.bf16.msra.mxu1 %v24419_v20  ;;  %7414 = vmatprep.mubr.f32.mxu1 %v24342_v41  ;;  %24420 = vst [vmem:[#allocation58_spill] sm:$0xff] %v19475_v19  ;;  %v19484_v13 = vpack.c.bf16 %v8533_v30, %v8526_v12  ;;  %v24425_v20 = vld [vmem:[#allocation32_spill] sm:$0xff]  ;;  %v8539_v33 = vsub.f32 %v18878_v44, %v24427_v61  ;;  %v24454_v19 = vld [vmem:[#allocation253_spill] sm:$0xff] }
 0x573   :  { %12759 = vmatprep.subr.bf16.mxu1 %v24422_v32  ;;  %v8414_v1 = vand.u32 4294901760, %v8413_v16  ;;  %v8421_v41 = vand.u32 4294901760, %v8420_v0  ;;  %v24428_v32 = vand.u32 4294901760, %v18883_v48  ;;  %v24430_v16 = vand.u32 4294901760, %v18897_v22 }
 0x574   :  { %24424 = vst [vmem:[#allocation60_spill] sm:$0xff] %v19484_v13  ;;  %v8540_v30 = vand.u32 4294901760, %v8539_v33  ;;  %v24455_v34 = vand.u32 4294901760, %v24454_v19 }
 0x575   :  { %v8546_v4 = vsub.f32 %v18883_v48, %v24428_v32  ;;  %v19494_v36 = vpack.c.bf16 %v8421_v41, %v8414_v1  ;;  %v8427_v12 = vsub.f32 %v18897_v22, %v24430_v16  ;;  %v24433_v1 = vand.u32 4294901760, %v18925_v40  ;;  %v24435_v16 = vld [vmem:[#allocation124_spill] sm:$0xff] }
 0x576   :  { %12761 = vmatpush3.bf16.msra.mxu1 %v24425_v20  ;;  %v24434_v32 = vand.u32 4294901760, %v18939_v6 }
 0x577   :  { %12763 = vmatprep.subr.bf16.mxu1 %v24426_v62  ;;  %24429 = vst [vmem:[#allocation28_spill] sm:$0xff] %v19494_v36  ;;  %v8547_v2 = vand.u32 4294901760, %v8546_v4  ;;  %v8428_v20 = vand.u32 4294901760, %v8427_v12  ;;  %v24432_v62 = vand.u32 4294901760, %v18910_v17  ;;  %v8553_v41 = vsub.f32 %v18925_v40, %v24433_v1 }
 0x578   :  { %v8560_v33 = vsub.f32 %v18939_v6, %v24434_v32  ;;  %v24436_v12 = vand.u32 4294901760, %v24435_v16  ;;  %v24440_v32 = vld [vmem:[#allocation128_spill] sm:$0xff] }
 0x579   :  { %v19501_v0 = vpack.c.bf16 %v8547_v2, %v8540_v30  ;;  %v8434_v61 = vsub.f32 %v18910_v17, %v24432_v62  ;;  %v24438_v62 = vand.u32 4294901760, %v18947_v29 }
 0x57a   :  { %12765 = vmatpush3.bf16.msra.mxu1 %v24294_v37  ;;  %v8554_v37 = vand.u32 4294901760, %v8553_v41  ;;  %v7649_v30 = vsub.f32 %v24435_v16, %v24436_v12 }
 0x57b   :  { %12767 = vmatprep.subr.bf16.mxu1 %v24295_v59  ;;  %24431 = vst [vmem:[#allocation68_spill] sm:$0xff] %v19501_v0  ;;  %v8435_v4 = vand.u32 4294901760, %v8434_v61  ;;  %v8561_v59 = vand.u32 4294901760, %v8560_v33  ;;  %v8441_v1 = vsub.f32 %v18947_v29, %v24438_v62  ;;  %v24439_v0 = vand.u32 4294901760, %v18962_v63  ;;  %v24442_v33 = vld [vmem:[#allocation186_spill] sm:$0xff] }
 0x57c   :  { %v24446_v62 = vand.u32 4294901760, %v19044_v47 }
 0x57d   :  { %v19517_v2 = vpack.c.bf16 %v8435_v4, %v8428_v20  ;;  %v8448_v61 = vsub.f32 %v18962_v63, %v24439_v0  ;;  %v19531_v13 = vpack.c.bf16 %v8561_v59, %v8554_v37  ;;  %v24445_v20 = vand.u32 4294901760, %v19039_v26 }
 0x57e   :  { %12769 = vmatpush3.bf16.msra.mxu1 %v24302_v49  ;;  %v24441_v49 = vand.u32 4294901760, %v24440_v32  ;;  %v8442_v16 = vand.u32 4294901760, %v8441_v1  ;;  %v8574_v0 = vsub.f32 %v19044_v47, %v24446_v62  ;;  %v24451_v62 = vand.u32 4294901760, %v19054_v24 }
 0x57f   :  { %12771 = vmatprep.subr.bf16.mxu1 %v24303_v9  ;;  %24437 = vst [vmem:[#allocation70_spill] sm:$0xff] %v19517_v2  ;;  %v24443_v9 = vand.u32 4294901760, %v24442_v33  ;;  %24444 = vst [vmem:[#allocation73_spill] sm:$0xff] %v19531_v13  ;;  %v8567_v4 = vsub.f32 %v19039_v26, %v24445_v20  ;;  %v8449_v12 = vand.u32 4294901760, %v8448_v61  ;;  %v24450_v61 = vand.u32 4294901760, %v19049_v31 }
 0x580   :  { %v7656_v41 = vsub.f32 %v24440_v32, %v24441_v49  ;;  %v7650_v32 = vand.u32 4294901760, %v7649_v30  ;;  %v24447_v49 = vld [vmem:[#allocation189_spill] sm:$0xff] }
 0x581   :  { %v7537_v36 = vsub.f32 %v24442_v33, %v24443_v9  ;;  %v8568_v2 = vand.u32 4294901760, %v8567_v4  ;;  %v24448_v33 = vand.u32 4294901760, %v24447_v49  ;;  %v19544_v59 = vpack.c.bf16 %v8449_v12, %v8442_v16  ;;  %v24452_v4 = vld [vmem:[#allocation252_spill] sm:$0xff] }
 0x582   :  { %12773 = vmatpush3.bf16.msra.mxu1 %v24310_v28  ;;  %v8575_v9 = vand.u32 4294901760, %v8574_v0  ;;  %v7657_v20 = vand.u32 4294901760, %v7656_v41  ;;  %v8455_v13 = vsub.f32 %v19049_v31, %v24450_v61  ;;  %v8462_v28 = vsub.f32 %v19054_v24, %v24451_v62  ;;  %v24458_v0 = vld [vmem:[#allocation66_spill] sm:$0xff] }
 0x583   :  { %12775 = vmatprep.subr.bf16.mxu1 %v24311_v11  ;;  %v7544_v37 = vsub.f32 %v24447_v49, %v24448_v33  ;;  %24449 = vst [vmem:[#allocation30_spill] sm:$0xff] %v19544_v59  ;;  %v7538_v1 = vand.u32 4294901760, %v7537_v36  ;;  %v24453_v11 = vand.u32 4294901760, %v24452_v4  ;;  %v7670_v16 = vsub.f32 %v24454_v19, %v24455_v34  ;;  %v24460_v61 = vld [vmem:[#allocation62_spill] sm:$0xff] }
 0x584   :  { %v19558_v12 = vpack.c.bf16 %v8575_v9, %v8568_v2  ;;  %v24457_v36 = vand.u32 4294901760, %v19064_v10  ;;  %v24459_v49 = vand.u32 4294901760, %v24458_v0  ;;  %v24461_v62 = vand.u32 4294901760, %v24460_v61  ;;  %v24462_v34 = vld [vmem:[#allocation82_spill] sm:$0xff] }
 0x585   :  { %v7663_v30 = vsub.f32 %v24452_v4, %v24453_v11  ;;  %v8456_v11 = vand.u32 4294901760, %v8455_v13  ;;  %v8463_v59 = vand.u32 4294901760, %v8462_v28  ;;  %v24463_v19 = vand.u32 4294901760, %v24462_v34  ;;  %v24464_v9 = vld [vmem:[#allocation18_spill] sm:$0xff] }
 0x586   :  { %24456 = vst [vmem:[#allocation77_spill] sm:$0xff] %v19558_v12  ;;  %v8581_v41 = vsub.f32 %v19064_v10, %v24457_v36  ;;  %12777 = vmatpush3.bf16.msra.mxu1 %v24318_v50  ;;  %v7551_v33 = vsub.f32 %v24458_v0, %v24459_v49  ;;  %v7558_v4 = vsub.f32 %v24460_v61, %v24461_v62  ;;  %v24465_v36 = vand.u32 4294901760, %v24464_v9 }
 0x587   :  { %12779 = vmatprep.subr.bf16.mxu1 %v24319_v56  ;;  %v7677_v2 = vsub.f32 %v24462_v34, %v24463_v19  ;;  %v8588_v0 = vsub.f32 %v19069_v3, %v24466_v57  ;;  %v7545_v49 = vand.u32 4294901760, %v7544_v37  ;;  %v19580_v39 = vpack.c.bf16 %v8463_v59, %v8456_v11 }
 0x588   :  { %v7684_v50 = vsub.f32 %v24464_v9, %v24465_v36  ;;  %v8582_v12 = vand.u32 4294901760, %v8581_v41  ;;  %v24468_v13 = vand.u32 4294901760, %v19074_v42  ;;  %v24469_v28 = vand.u32 4294901760, %v19079_v43  ;;  %v24470_v36 = vld [vmem:[#allocation21_spill] sm:$0xff] }
 0x589   :  { %24467 = vst [vmem:[#allocation80_spill] sm:$0xff] %v19580_v39  ;;  %v12818_v62 = vpack.c.bf16 %v7657_v20, %v7650_v32  ;;  %v7664_v34 = vand.u32 4294901760, %v7663_v30  ;;  %v7671_v19 = vand.u32 4294901760, %v7670_v16  ;;  %v8589_v9 = vand.u32 4294901760, %v8588_v0  ;;  %v24472_v32 = vld [vmem:[#allocation92_spill] sm:$0xff] }
 0x58a   :  { %v8469_v56 = vsub.f32 %v19074_v42, %v24468_v13  ;;  %v8476_v61 = vsub.f32 %v19079_v43, %v24469_v28  ;;  %12781 = vmatpush3.bf16.msra.mxu1 %v24324_v52  ;;  %v7552_v41 = vand.u32 4294901760, %v7551_v33  ;;  %v24471_v57 = vand.u32 4294901760, %v24470_v36 }
 0x58b   :  { %12783 = vmatprep.subr.bf16.mxu1 %v24325_v35  ;;  %v7559_v13 = vand.u32 4294901760, %v7558_v4  ;;  %v7678_v39 = vand.u32 4294901760, %v7677_v2  ;;  %v7685_v23 = vand.u32 4294901760, %v7684_v50  ;;  %v19593_v8 = vpack.c.bf16 %v8589_v9, %v8582_v12 }
 0x58c   :  { %v7565_v37 = vsub.f32 %v24470_v36, %v24471_v57  ;;  %v8470_v59 = vand.u32 4294901760, %v8469_v56  ;;  %v8477_v11 = vand.u32 4294901760, %v8476_v61  ;;  %v24473_v20 = vand.u32 4294901760, %v24472_v32  ;;  %v24479_v61 = vld [vmem:[#allocation167_spill] sm:$0xff] }
 0x58d   :  { %v24475_v52 = vand.u32 4294901760, %v19088_v60  ;;  %v24476_v0 = vand.u32 4294901760, %v19093_v58  ;;  %v12820_v35 = vpack.c.bf16 %v7545_v49, %v7538_v1  ;;  %v12822_v4 = vpack.c.bf16 %v7671_v19, %v7664_v34  ;;  %v24481_v57 = vld [vmem:[#allocation151_spill] sm:$0xff] }
 0x58e   :  { %v7572_v30 = vsub.f32 %v24472_v32, %v24473_v20  ;;  %v19598_v16 = vpack.c.bf16 %v8477_v11, %v8470_v59  ;;  %v24477_v2 = vand.u32 4294901760, %v19118_v25  ;;  %v24478_v50 = vand.u32 4294901760, %v19121_v45  ;;  %12785 = vmatpush3.bf16.msra.mxu1 %v24331_v46 }
 0x58f   :  { %v8595_v33 = vsub.f32 %v19088_v60, %v24475_v52  ;;  %v8602_v56 = vsub.f32 %v19093_v58, %v24476_v0  ;;  %v24480_v9 = vand.u32 4294901760, %v24479_v61  ;;  %v24482_v59 = vand.u32 4294901760, %v24481_v57  ;;  %12819 = vmatprep.subr.bf16.mxu1 %v12818_v62 }
 0x590   :  { %24474 = vst [vmem:[#allocation81_spill] sm:$0xff] %v19598_v16  ;;  %v8483_v12 = vsub.f32 %v19118_v25, %v24477_v2  ;;  %v8490_v28 = vsub.f32 %v19121_v45, %v24478_v50  ;;  %v12824_v34 = vpack.c.bf16 %v7559_v13, %v7552_v41  ;;  %v7566_v19 = vand.u32 4294901760, %v7565_v37  ;;  %v24483_v2 = vld [vmem:[#allocation215_spill] sm:$0xff] }
 0x591   :  { %v7691_v36 = vsub.f32 %v24479_v61, %v24480_v9  ;;  %v7698_v11 = vsub.f32 %v24481_v57, %v24482_v59  ;;  %v8596_v1 = vand.u32 4294901760, %v8595_v33  ;;  %v8603_v49 = vand.u32 4294901760, %v8602_v56  ;;  %7416 = vmatmul.mubr.f32.vlgmr.msra.gmra.mrb[14].mxu1 %v24414_v15  ;;  %v24486_v61 = vld [vmem:[#allocation216_spill] sm:$0xff]  ;;  %v24491_v37 = vld [vmem:[#allocation155_spill] sm:$0xff] }
 0x592   :  { %v8484_v32 = vand.u32 4294901760, %v8483_v12  ;;  %v8491_v20 = vand.u32 4294901760, %v8490_v28  ;;  %v12826_v52 = vpack.c.bf16 %v7685_v23, %v7678_v39  ;;  %v7573_v0 = vand.u32 4294901760, %v7572_v30  ;;  %12821 = vmatpush3.bf16.msra.mxu1 %v12820_v35  ;;  %7758 = vmatprep.mubr.f32.mxu1 %v24491_v37  ;;  %v24494_v59 = vld [vmem:[#allocation220_spill] sm:$0xff] }
 0x593   :  { %v24484_v50 = vand.u32 4294901760, %v24483_v2  ;;  %v19622_v16 = vpack.c.bf16 %v8603_v49, %v8596_v1  ;;  %v24487_v9 = vand.u32 4294901760, %v24486_v61  ;;  %v24489_v62 = vand.u32 4294901760, %v19125_v53  ;;  %12823 = vmatprep.subr.bf16.mxu1 %v12822_v4 }
 0x594   :  { %v19628_v56 = vpack.c.bf16 %v8491_v20, %v8484_v32  ;;  %v24490_v23 = vand.u32 4294901760, %v19136_v7  ;;  %v7692_v13 = vand.u32 4294901760, %v7691_v36  ;;  %v7699_v30 = vand.u32 4294901760, %v7698_v11  ;;  %v24496_v32 = vld [vmem:[#allocation127_spill] sm:$0xff] }
 0x595   :  { %v7579_v46 = vsub.f32 %v24483_v2, %v24484_v50  ;;  %24485 = vst [vmem:[#allocation85_spill] sm:$0xff] %v19622_v16  ;;  %v7586_v33 = vsub.f32 %v24486_v61, %v24487_v9  ;;  %v8609_v41 = vsub.f32 %v19125_v53, %v24489_v62  ;;  %v24492_v15 = vand.u32 4294901760, %v19148_v21  ;;  %v24502_v16 = vld [vmem:[#allocation27_spill] sm:$0xff] }
 0x596   :  { %24488 = vst [vmem:[#allocation86_spill] sm:$0xff] %v19628_v56  ;;  %v8616_v39 = vsub.f32 %v19136_v7, %v24490_v23  ;;  %v24493_v28 = vand.u32 4294901760, %v19150_v54  ;;  %v24495_v1 = vand.u32 4294901760, %v24494_v59  ;;  %v24497_v20 = vand.u32 4294901760, %v24496_v32  ;;  %v24498_v23 = vld [vmem:[#allocation190_spill] sm:$0xff]  ;;  %12825 = vmatpush3.bf16.msra.mxu1 %v12824_v34  ;;  %v24500_v56 = vld [vmem:[#allocation67_spill] sm:$0xff] }
 0x597   :  { %v8497_v12 = vsub.f32 %v19148_v21, %v24492_v15  ;;  %v8610_v2 = vand.u32 4294901760, %v8609_v41  ;;  %v12828_v11 = vpack.c.bf16 %v7573_v0, %v7566_v19  ;;  %v7580_v9 = vand.u32 4294901760, %v7579_v46  ;;  %v24504_v19 = vld [vmem:[#allocation159_spill] sm:$0xff]  ;;  %12827 = vmatprep.subr.bf16.mxu1 %v12826_v52  ;;  %v24507_v34 = vld [vmem:[#allocation138_spill] sm:$0xff]  ;;  %v24511_v52 = vld [vmem:[#allocation144_spill] sm:$0xff] }
 0x598   :  { %v8504_v57 = vsub.f32 %v19150_v54, %v24493_v28  ;;  %v7705_v49 = vsub.f32 %v24494_v59, %v24495_v1  ;;  %v7712_v35 = vsub.f32 %v24496_v32, %v24497_v20  ;;  %v8617_v36 = vand.u32 4294901760, %v8616_v39 }
 0x599   :  { %v8498_v50 = vand.u32 4294901760, %v8497_v12  ;;  %v7587_v62 = vand.u32 4294901760, %v7586_v33  ;;  %v24499_v15 = vand.u32 4294901760, %v24498_v23  ;;  %v24501_v59 = vand.u32 4294901760, %v24500_v56 }
 0x59a   :  { %v8505_v61 = vand.u32 4294901760, %v8504_v57  ;;  %v19652_v4 = vpack.c.bf16 %v8617_v36, %v8610_v2  ;;  %v24503_v32 = vand.u32 4294901760, %v24502_v16  ;;  %v24505_v0 = vand.u32 4294901760, %v24504_v19  ;;  %12829 = vmatpush3.bf16.msra.mxu1 %v12828_v11 }
 0x59b   :  { %v7593_v28 = vsub.f32 %v24498_v23, %v24499_v15  ;;  %v7600_v1 = vsub.f32 %v24500_v56, %v24501_v59  ;;  %v12830_v39 = vpack.c.bf16 %v7699_v30, %v7692_v13  ;;  %v7706_v12 = vand.u32 4294901760, %v7705_v49  ;;  %v24509_v56 = vld [vmem:[#allocation140_spill] sm:$0xff] }
 0x59c   :  { %v7719_v41 = vsub.f32 %v24502_v16, %v24503_v32  ;;  %v7726_v46 = vsub.f32 %v24504_v19, %v24505_v0  ;;  %v19663_v33 = vpack.c.bf16 %v8505_v61, %v8498_v50  ;;  %v7713_v57 = vand.u32 4294901760, %v7712_v35  ;;  %v24513_v49 = vld [vmem:[#allocation24_spill] sm:$0xff] }
 0x59d   :  { %v12832_v20 = vpack.c.bf16 %v7587_v62, %v7580_v9  ;;  %v24508_v2 = vand.u32 4294901760, %v24507_v34  ;;  %v24510_v23 = vand.u32 4294901760, %v24509_v56  ;;  %v7594_v16 = vand.u32 4294901760, %v7593_v28  ;;  %12831 = vmatprep.subr.bf16.mxu1 %v12830_v39  ;;  %v24515_v9 = vld [vmem:[#allocation207_spill] sm:$0xff] }
 0x59e   :  { %24506 = vst [vmem:[#allocation93_spill] sm:$0xff] %v19663_v33  ;;  %v7601_v59 = vand.u32 4294901760, %v7600_v1  ;;  %v7720_v32 = vand.u32 4294901760, %v7719_v41  ;;  %v7727_v19 = vand.u32 4294901760, %v7726_v46  ;;  %v12834_v50 = vpack.c.bf16 %v7713_v57, %v7706_v12  ;;  %v24516_v41 = vld [vmem:[#allocation25_spill] sm:$0xff] }
 0x59f   :  { %v7607_v36 = vsub.f32 %v24507_v34, %v24508_v2  ;;  %v7614_v15 = vsub.f32 %v24509_v56, %v24510_v23  ;;  %v24512_v13 = vand.u32 4294901760, %v24511_v52  ;;  %v24514_v35 = vand.u32 4294901760, %v24513_v49  ;;  %12833 = vmatpush3.bf16.msra.mxu1 %v12832_v20  ;;  %v24518_v12 = vld [vmem:[#allocation225_spill] sm:$0xff] }
 0x5a0   :  { %v1258_v62 = vsub.s32 4, %v24515_v9  ;;  %v1262_v0 = vsub.s32 5, %v24515_v9  ;;  %v12836_v28 = vpack.c.bf16 %v7601_v59, %v7594_v16  ;;  %v12838_v1 = vpack.c.bf16 %v7727_v19, %v7720_v32  ;;  %12835 = vmatprep.subr.bf16.mxu1 %v12834_v50  ;;  %v19694_v16 = vld [vmem:[%s20586_s4] sm:$0xff] }
 0x5a1   :  { %v7733_v30 = vsub.f32 %v24511_v52, %v24512_v13  ;;  %v7740_v61 = vsub.f32 %v24513_v49, %v24514_v35  ;;  %v7608_v34 = vand.u32 4294901760, %v7607_v36  ;;  %v7615_v11 = vand.u32 4294901760, %v7614_v15  ;;  %v24520_v52 = vld [vmem:[#allocation226_spill] sm:$0xff]  ;;  %v24522_v36 = vld [vmem:[#allocation228_spill] sm:$0xff]  ;;  %v24524_v35 = vld [vmem:[#allocation229_spill] sm:$0xff] }
 0x5a2   :  { %v24517_v46 = vand.u32 4294901760, %v24516_v41  ;;  %v24519_v57 = vand.u32 4294901760, %v24518_v12  ;;  %v24521_v13 = vand.u32 4294901760, %v24520_v52  ;;  %v24523_v15 = vand.u32 4294901760, %v24522_v36 }
 0x5a3   :  { %v7734_v56 = vand.u32 4294901760, %v7733_v30  ;;  %v7741_v23 = vand.u32 4294901760, %v7740_v61  ;;  %v1259_v59 = vrot.slane %v19694_v16, %v1258_v62  ;;  %v1263_v32 = vrot.slane %v19694_v16, %v1262_v0  ;;  %12837 = vmatpush3.bf16.msra.mxu1 %v12836_v28 }
 0x5a4   :  { %v7621_v39 = vsub.f32 %v24516_v41, %v24517_v46  ;;  %v7628_v2 = vsub.f32 %v24518_v12, %v24519_v57  ;;  %v7747_v49 = vsub.f32 %v24520_v52, %v24521_v13  ;;  %v7754_v20 = vsub.f32 %v24522_v36, %v24523_v15  ;;  %v24526_v46 = vld [vmem:[#allocation231_spill] sm:$0xff]  ;;  %12839 = vmatprep.subr.bf16.mxu1 %v12838_v1  ;;  %v5127_v15 = vpop.f32.mrb[2].mxu1 }
 0x5a5   :  { %v12840_v19 = vpack.c.bf16 %v7615_v11, %v7608_v34  ;;  %v24525_v61 = vand.u32 4294901760, %v24524_v35  ;;  %v24527_v12 = vand.u32 4294901760, %v24526_v46  ;;  %v12842_v52 = vpack.c.bf16 %v7741_v23, %v7734_v56  ;;  %v19704_v33 = vpop.f32.mrb[4].mxu0  ;;  %v5129_v0 = vpop.f32.mrb[3].mxu1 }
 0x5a6   :  { %v7622_v50 = vand.u32 4294901760, %v7621_v39  ;;  %v7629_v30 = vand.u32 4294901760, %v7628_v2  ;;  %v7748_v13 = vand.u32 4294901760, %v7747_v49  ;;  %v7755_v36 = vand.u32 4294901760, %v7754_v20  ;;  %v19706_v11 = vpop.f32.mrb[5].mxu0 }
 0x5a7   :  { %v7635_v41 = vsub.f32 %v24524_v35, %v24525_v61  ;;  %v7642_v57 = vsub.f32 %v24526_v46, %v24527_v12  ;;  %v13368_v62 = vadd.f32 %v5127_v15, %v1259_v59  ;;  %v13369_v34 = vadd.f32 %v5129_v0, %v1263_v32  ;;  %12841 = vmatpush3.bf16.msra.mxu1 %v12840_v19  ;;  %v24530_v12 = vld [vmem:[#allocation139_spill] sm:$0xff]  ;;  %v24535_v0 = vld [vmem:[#allocation57_spill] sm:$0xff] }
 0x5a8   :  { %v12844_v28 = vpack.c.bf16 %v7629_v30, %v7622_v50  ;;  %12843 = vmatprep.subr.bf16.mxu1 %v12842_v52  ;;  %v12846_v61 = vpack.c.bf16 %v7755_v36, %v7748_v13  ;;  %v24528_v50 = vld [vmem:[#allocation123_spill] sm:$0xff]  ;;  %v24533_v36 = vld [vmem:[#allocation204_spill] sm:$0xff] }
 0x5a9   :  { %v7636_v39 = vand.u32 4294901760, %v7635_v41  ;;  %v7643_v2 = vand.u32 4294901760, %v7642_v57  ;;  %v6420_v35 = vmax.f32 %v13368_v62, 0.0  ;;  %v6421_v46 = vmax.f32 %v13369_v34, 0.0  ;;  %v24529_v41 = vld [vmem:[#allocation152_spill] sm:$0xff]  ;;  %v24531_v57 = vld [vmem:[#allocation17_spill] sm:$0xff] }
 0x5aa   :  { %v24532_v52 = vand.u32 4294901760, %v24531_v57  ;;  %v24534_v62 = vpack.c.bf16 %v18802_v14, %v18797_v51  ;;  %v24536_v34 = vpack.c.bf16 %v18835_v27, %v18830_v18  ;;  %v24540_v51 = vpack.c.bf16 %v18883_v48, %v18878_v44  ;;  %v24541_v14 = vld [vmem:[#allocation36_spill] sm:$0xff]  ;;  %v24543_v18 = vld [vmem:[#allocation214_spill] sm:$0xff]  ;;  %v24547_v44 = vld [vmem:[#allocation223_spill] sm:$0xff] }
 0x5ab   :  { %v19708_v1 = vand.u32 4294901760, %v6420_v35  ;;  %v19710_v56 = vand.u32 4294901760, %v6421_v46  ;;  %12845 = vmatpush3.bf16.msra.mxu1 %v12844_v28  ;;  %v12848_v23 = vpack.c.bf16 %v7643_v2, %v7636_v39  ;;  %v24537_v28 = vld [vmem:[#allocation114_spill] sm:$0xff]  ;;  %v24538_v39 = vpack.c.bf16 %v18855_v55, %v18841_v38  ;;  %v24539_v2 = vld [vmem:[#allocation88_spill] sm:$0xff] }
 0x5ac   :  { %12847 = vmatprep.subr.bf16.mxu1 %v12846_v61  ;;  %v24544_v27 = vpack.c.bf16 %v18939_v6, %v18925_v40  ;;  %v24545_v55 = vld [vmem:[#allocation218_spill] sm:$0xff]  ;;  %v24546_v38 = vpack.c.bf16 %v18962_v63, %v18947_v29  ;;  %v24548_v48 = vpack.c.bf16 %v19044_v47, %v19039_v26  ;;  %v24550_v40 = vpack.c.bf16 %v19054_v24, %v19049_v31  ;;  %v24554_v26 = vld [vmem:[#allocation185_spill] sm:$0xff]  ;;  %v24558_v31 = vld [vmem:[#allocation75_spill] sm:$0xff] }
 0x5ad   :  { %v19713_v49 = vsub.f32 %v6420_v35, %v19708_v1  ;;  %v19716_v20 = vsub.f32 %v6421_v46, %v19710_v56  ;;  %v24542_v35 = vpack.c.bf16 %v18910_v17, %v18897_v22  ;;  %v24549_v22 = vld [vmem:[#allocation156_spill] sm:$0xff]  ;;  %v24553_v29 = vpack.c.bf16 %v19069_v3, %v19064_v10  ;;  %v24560_v3 = vld [vmem:[#allocation134_spill] sm:$0xff] }
 0x5ae   :  { %v24555_v47 = vpack.c.bf16 %v19079_v43, %v19074_v42  ;;  %v24557_v24 = vpack.c.bf16 %v19093_v58, %v19088_v60  ;;  %v24559_v57 = vpack.c.bf16 %v19121_v45, %v19118_v25  ;;  %v24561_v10 = vpack.c.bf16 %v19136_v7, %v19125_v53  ;;  %v24562_v42 = vld [vmem:[#allocation29_spill] sm:$0xff]  ;;  %v24565_v58 = vld [vmem:[#allocation47_spill] sm:$0xff]  ;;  %v24568_v7 = vld [vmem:[#allocation100_spill] sm:$0xff] }
 0x5af   :  { %v21829_v59 = vand.u32 4294901760, %v19713_v49  ;;  %12849 = vmatpush3.bf16.msra.mxu1 %v12848_v23  ;;  %v21836_v32 = vand.u32 4294901760, %v19716_v20  ;;  %v24563_v43 = vand.u32 4294901760, %v24562_v42  ;;  %v24564_v60 = vpack.c.bf16 %v19150_v54, %v19148_v21  ;;  %v24566_v21 = vld [vmem:[#allocation50_spill] sm:$0xff]  ;;  %v24567_v53 = vld [vmem:[#allocation51_spill] sm:$0xff] }
 0x5b0   :  { %12883 = vmatprep.subr.bf16.mxu1 %v24528_v50  ;;  %v1270_v25 = vsub.s32 7, %v24515_v9  ;;  %v19879_v42 = vld [vmem:[#allocation8 + $0x3a8] sm:$0xff] }
 0x5b1   :  { %v8388_v19 = vsub.f32 %v19713_v49, %v21829_v59  ;;  %v8382_v30 = vsub.f32 %v19716_v20, %v21836_v32  ;;  %v19994_v32 = vld [vmem:[#allocation8 + $0x3e0] sm:$0xff] }
 0x5b2   :  { %7760 = vmatmul.mubr.f32.vlgmr.msra.gmra.mrb[16].mxu1 %v24529_v41  ;;  %v1271_v45 = vrot.slane %v19694_v16, %v1270_v25 }
 0x5b3   :  { %12885 = vmatpush3.bf16.msra.mxu1 %v24530_v12  ;;  %8002 = vmatprep.mubr.f32.mxu1 %v24532_v52  ;;  %v8383_v13 = vand.u32 4294901760, %v8382_v30  ;;  %v8389_v15 = vand.u32 4294901760, %v8388_v19  ;;  %v24551_v19 = vld [vmem:[#allocation179_spill] sm:$0xff]  ;;  %v24556_v30 = vld [vmem:[#allocation248_spill] sm:$0xff]  ;;  %v10025_v52 = vld [vmem:[%s20588_s6] ss:$0 sm:$0xff] }
 0x5b4   :  { %12887 = vmatprep.subr.bf16.mxu1 %v24533_v36  ;;  %v13371_v54 = vadd.f32 %v19706_v11, %v1271_v45  ;;  %v24572_v11 = vld [vmem:[#allocation115_spill] sm:$0xff]  ;;  %v24585_v45 = vld [vmem:[#allocation58_spill] sm:$0xff]  ;;  %s13564_s6 = smov [#allocation10]  }
 0x5b5   :  { %8384 = vmatprep.mubr.f32.mxu0 %v8383_v13  ;;  %s10014_s10 = sshll.u32 %s13564_s6, 4  ;;  %s10015_s10 = int_to_ptr.vmem [resolvable:$true] %s10014_s10 }
 0x5b6   :  { %8390 = vmatmul.mubr.f32.vlgmr.msra.gmra.mrb[12].mxu0 %v8389_v15  ;;  %s13523_s11 = scalar_lea.vmem %s10015_s10, 128  ;;  %p13528_p5 = scmp.lt.s32.totalorder %s10015_s10, %s10015_s10 }
 0x5b7   :  { %13045 = vmatpush3.bf16.msra.mxu0 %v24534_v62  ;;  %12889 = vmatpush3.bf16.msra.mxu1 %v24535_v0  ;;  %p13524_p4 = scmp.ne.s32.totalorder %s10015_s10, %s13523_s11  ;;  %p13529_p6 = scmp.lt.s32.totalorder %s13523_s11, %s13523_s11 }
 0x5b8   :  { %8757 = vmatprep.mubr.f32.mxu0 %v19716_v20  ;;  %13047 = vmatprep.subr.bf16.mxu0 %v24536_v34 }
 0x5b9   :  { %12891 = vmatprep.subr.bf16.mxu1 %v24537_v28  ;;  %p13530_p7 = por %p13529_p6, %p13528_p5 }
 0x5bb   :  { %13049 = vmatpush3.bf16.msra.mxu0 %v24538_v39  ;;  %12893 = vmatpush3.bf16.msra.mxu1 %v24539_v2  ;;  %v24573_v39 = vld [vmem:[#allocation117_spill] sm:$0xff]  ;;  %p13531_p8 = pnand %p13530_p7, %p13524_p4 }
 0x5bc   :  { %13051 = vmatprep.subr.bf16.mxu0 %v24540_v51  ;;  %12895 = vmatprep.subr.bf16.mxu1 %v24541_v14  ;;  %v24575_v51 = vld [vmem:[#allocation119_spill] sm:$0xff] }
 0x5bf   :  { %13053 = vmatpush3.bf16.msra.mxu0 %v24542_v35  ;;  %12897 = vmatpush3.bf16.msra.mxu1 %v24543_v18 }
 0x5c0   :  { %13055 = vmatprep.subr.bf16.mxu0 %v24544_v27  ;;  %12899 = vmatprep.subr.bf16.mxu1 %v24545_v55  ;;  %v19839_v27 = vld [vmem:[#allocation8 + $0x388] sm:$0xff] }
 0x5c3   :  { %13057 = vmatpush3.bf16.msra.mxu0 %v24546_v38  ;;  %12901 = vmatpush3.bf16.msra.mxu1 %v24547_v44  ;;  %v24578_v38 = vld [vmem:[#allocation193_spill] sm:$0xff] }
 0x5c4   :  { %13059 = vmatprep.subr.bf16.mxu0 %v24548_v48  ;;  %12903 = vmatprep.subr.bf16.mxu1 %v24549_v22  ;;  %v10058_v17 = vpop.f32.mrb[4].mxu1  ;;  %v19846_v48 = vld [vmem:[#allocation8 + $0x308] sm:$0xff] }
 0x5c5   :  { %v10268_v61 = vpop.f32.mrb[6].mxu0  ;;  %v10059_v46 = vpop.f32.mrb[5].mxu1 }
 0x5c6   :  { %v10060_v23 = vadd.f32 %v10059_v46, %v10058_v17  ;;  %v10269_v6 = vpop.f32.mrb[7].mxu0  ;;  %v21849_v17 = vand.u32 4294901760, %v19839_v27  ;;  %v19852_v46 = vld [vmem:[#allocation8 + $0x390] sm:$0xff] }
 0x5c7   :  { %13061 = vmatpush3.bf16.msra.mxu0 %v24550_v40  ;;  %12905 = vmatpush3.bf16.msra.mxu1 %v24551_v19  ;;  %v19769_v63 = vadd.f32 %v10269_v6, %v10268_v61  ;;  %v24579_v6 = vld [vmem:[#allocation199_spill] sm:$0xff] }
 0x5c8   :  { %13063 = vmatprep.subr.bf16.mxu0 %v24553_v29  ;;  %12907 = vmatprep.subr.bf16.mxu1 %v24554_v26  ;;  %v24580_v29 = vld [vmem:[#allocation52_spill] sm:$0xff] }
 0x5c9   :  { %24552 = vst [vmem:[#allocation95_spill] sm:$0xff] %v19769_v63 }
 0x5cb   :  { %13065 = vmatpush3.bf16.msra.mxu0 %v24555_v47  ;;  %12909 = vmatpush3.bf16.msra.mxu1 %v24556_v30 }
 0x5cc   :  { %13067 = vmatprep.subr.bf16.mxu0 %v24557_v24  ;;  %12911 = vmatprep.subr.bf16.mxu1 %v24558_v31  ;;  %v19865_v24 = vld [vmem:[#allocation8 + $0x318] sm:$0xff] }
 0x5cf   :  { %13069 = vmatpush3.bf16.msra.mxu0 %v24559_v57  ;;  %12913 = vmatpush3.bf16.msra.mxu1 %v24560_v3 }
 0x5d0   :  { %13071 = vmatprep.subr.bf16.mxu0 %v24561_v10  ;;  %12947 = vmatprep.subr.bf16.mxu1 %v24528_v50  ;;  %v6423_v50 = vmax.f32 %v13371_v54, 0.0  ;;  %v19877_v10 = vld [vmem:[#allocation8 + $0x3a0] sm:$0xff] }
 0x5d1   :  { %v19902_v54 = vld [vmem:[#allocation8 + $0x320] sm:$0xff] }
 0x5d2   :  { %8006 = vmatmul.mubr.f32.vlgmr.msra.gmra.mrb[18].mxu1 %v24563_v43  ;;  %v19823_v13 = vand.u32 4294901760, %v6423_v50  ;;  %v24583_v43 = vld [vmem:[#allocation56_spill] sm:$0xff] }
 0x5d3   :  { %13073 = vmatpush3.bf16.msra.mxu0 %v24564_v60  ;;  %12949 = vmatpush3.bf16.msra.mxu1 %v24530_v12  ;;  %v24571_v12 = vld [vmem:[#allocation16_spill] sm:$0xff] }
 0x5d4   :  { %8276 = vmatprep.mubr.f32.mxu1 %v24491_v37  ;;  %13107 = vmatprep.subr.bf16.mxu0 %v19287_v5  ;;  %v24569_v5 = vld [vmem:[#allocation107_spill] sm:$0xff]  ;;  %v24570_v37 = vld [vmem:[#allocation108_spill] sm:$0xff] }
 0x5d5   :  { %12951 = vmatprep.subr.bf16.mxu1 %v24533_v36 }
 0x5d6   :  { %8760 = vmatmul.mubr.f32.vlgmr.msra.gmra.mrb[14].mxu0 %v19713_v49 }
 0x5d7   :  { %13109 = vmatpush3.bf16.msra.mxu0 %v24565_v58  ;;  %9034 = vmatprep.mubr.f32.mxu0 %v19710_v56  ;;  %v21841_v58 = vand.u32 4294901760, %v19865_v24 }
 0x5d8   :  { %12953 = vmatpush3.bf16.msra.mxu1 %v24535_v0  ;;  %13111 = vmatprep.subr.bf16.mxu0 %v24566_v21  ;;  %v6668_v0 = vadd.f32 %v10060_v23, %v10025_v52  ;;  %v19854_v23 = vld [vmem:[#allocation8 + $0x398] sm:$0xff]  ;;  %v1266_v21 = vsub.s32 6, %v24515_v9  ;;  %v24587_v9 = vld [vmem:[#allocation60_spill] sm:$0xff] }
 0x5d9   :  { %12955 = vmatprep.subr.bf16.mxu1 %v24537_v28  ;;  %v21843_v47 = vand.u32 4294901760, %v19854_v23 }
 0x5db   :  { %13113 = vmatpush3.bf16.msra.mxu0 %v24567_v53  ;;  %v21838_v53 = vand.u32 4294901760, %v19877_v10 }
 0x5dc   :  { %12957 = vmatpush3.bf16.msra.mxu1 %v24539_v2  ;;  %13115 = vmatprep.subr.bf16.mxu0 %v24568_v7  ;;  %v21837_v7 = vand.u32 4294901760, %v19879_v42 }
 0x5dd   :  { %12959 = vmatprep.subr.bf16.mxu1 %v24541_v14  ;;  %v19832_v14 = vsub.f32 %v6423_v50, %v19823_v13  ;;  %v19908_v50 = vld [vmem:[#allocation8 + $0x3b0] sm:$0xff] }
 0x5df   :  { %13117 = vmatpush3.bf16.msra.mxu0 %v24569_v5  ;;  %24576 = vst [vmem:[#allocation106_spill] sm:$0xff] %v19832_v14  ;;  %v21828_v61 = vand.u32 4294901760, %v19832_v14  ;;  %v19904_v5 = vld [vmem:[#allocation8 + $0x328] sm:$0xff] }
 0x5e0   :  { %12961 = vmatpush3.bf16.msra.mxu1 %v24543_v18  ;;  %13119 = vmatprep.subr.bf16.mxu0 %v24570_v37  ;;  %v19837_v18 = vld [vmem:[#allocation8 + $0x380] sm:$0xff] }
 0x5e1   :  { %12963 = vmatprep.subr.bf16.mxu1 %v24545_v55  ;;  %v24577_v55 = vld [vmem:[#allocation148_spill] sm:$0xff] }
 0x5e3   :  { %13121 = vmatpush3.bf16.msra.mxu0 %v24571_v12  ;;  %v19910_v12 = vld [vmem:[#allocation8 + $0x3b8] sm:$0xff] }
 0x5e4   :  { %12965 = vmatpush3.bf16.msra.mxu1 %v24547_v44  ;;  %13123 = vmatprep.subr.bf16.mxu0 %v24572_v11  ;;  %v10093_v36 = vpop.f32.mrb[6].mxu1  ;;  %v19844_v44 = vld [vmem:[#allocation8 + $0x300] sm:$0xff]  ;;  %v21833_v11 = vand.u32 4294901760, %v19902_v54 }
 0x5e5   :  { %12967 = vmatprep.subr.bf16.mxu1 %v24549_v22  ;;  %v10338_v15 = vpop.f32.mrb[8].mxu0  ;;  %v10094_v62 = vpop.f32.mrb[7].mxu1  ;;  %v21850_v22 = vand.u32 4294901760, %v19837_v18  ;;  %v21848_v40 = vand.u32 4294901760, %v19844_v44 }
 0x5e6   :  { %v10095_v34 = vadd.f32 %v10094_v62, %v10093_v36  ;;  %v10339_v28 = vpop.f32.mrb[9].mxu0  ;;  %v21832_v36 = vand.u32 4294901760, %v19904_v5  ;;  %v24589_v62 = vld [vmem:[#allocation28_spill] sm:$0xff] }
 0x5e7   :  { %13125 = vmatpush3.bf16.msra.mxu0 %v24573_v39  ;;  %v19827_v2 = vadd.f32 %v10339_v28, %v10338_v15  ;;  %v19872_v57 = vpack.c.bf16 %v21849_v17, %v21850_v22  ;;  %v1267_v15 = vrot.slane %v19694_v16, %v1266_v21  ;;  %v21830_v28 = vand.u32 4294901760, %v19910_v12  ;;  %v19933_v39 = vld [vmem:[#allocation8 + $0x330] sm:$0xff]  ;;  %v19938_v16 = vld [vmem:[#allocation8 + $0x3c0] sm:$0xff] }
 0x5e8   :  { %12969 = vmatpush3.bf16.msra.mxu1 %v24551_v19  ;;  %13127 = vmatprep.subr.bf16.mxu0 %v24575_v51  ;;  %v19834_v35 = vadd.f32 %v10095_v34, %v6668_v0  ;;  %v21847_v19 = vand.u32 4294901760, %v19846_v48  ;;  %v19929_v0 = vpack.c.bf16 %v21837_v7, %v21838_v53  ;;  %v21831_v34 = vand.u32 4294901760, %v19908_v50  ;;  %v19935_v51 = vld [vmem:[#allocation8 + $0x338] sm:$0xff]  ;;  %v19996_v7 = vld [vmem:[#allocation8 + $0x3e8] sm:$0xff] }
 0x5e9   :  { %24574 = vst [vmem:[#allocation98_spill] sm:$0xff] %v19827_v2  ;;  %12971 = vmatprep.subr.bf16.mxu1 %v24554_v26  ;;  %v21844_v26 = vand.u32 4294901760, %v19852_v46  ;;  %24582 = vst [vmem:[#allocation161_spill] sm:$0xff] %v19872_v57  ;;  %v24599_v53 = vld [vmem:[#allocation77_spill] sm:$0xff] }
 0x5ea   :  { %v19887_v60 = vpack.c.bf16 %v21847_v19, %v21848_v40  ;;  %24590 = vst [vmem:[#allocation166_spill] sm:$0xff] %v19929_v0  ;;  %v19958_v21 = vpack.c.bf16 %v21830_v28, %v21831_v34  ;;  %v19980_v28 = vld [vmem:[#allocation8 + $0x350] sm:$0xff]  ;;  %v19982_v34 = vld [vmem:[#allocation8 + $0x358] sm:$0xff] }
 0x5eb   :  { %13129 = vmatpush3.bf16.msra.mxu0 %v24577_v55  ;;  %v24591_v55 = vld [vmem:[#allocation68_spill] sm:$0xff]  ;;  %v20027_v40 = vld [vmem:[#allocation8 + $0x3f8] sm:$0xff] }
 0x5ec   :  { %12973 = vmatpush3.bf16.msra.mxu1 %v24556_v30  ;;  %13131 = vmatprep.subr.bf16.mxu0 %v24578_v38  ;;  %v19863_v30 = vld [vmem:[#allocation8 + $0x310] sm:$0xff]  ;;  %24584 = vst [vmem:[#allocation33_spill] sm:$0xff] %v19887_v60  ;;  %v19940_v38 = vld [vmem:[#allocation8 + $0x3c8] sm:$0xff]  ;;  %24594 = vst [vmem:[#allocation170_spill] sm:$0xff] %v19958_v21 }
 0x5ed   :  { %12975 = vmatprep.subr.bf16.mxu1 %v24558_v31  ;;  %v24581_v31 = vld [vmem:[#allocation54_spill] sm:$0xff]  ;;  %v21842_v25 = vand.u32 4294901760, %v19863_v30  ;;  %v20025_v19 = vld [vmem:[#allocation8 + $0x3f0] sm:$0xff] }
 0x5ef   :  { %13133 = vmatpush3.bf16.msra.mxu0 %v24579_v6  ;;  %v19918_v52 = vpack.c.bf16 %v21841_v58, %v21842_v25  ;;  %v19947_v6 = vpack.c.bf16 %v21832_v36, %v21833_v11  ;;  %v24597_v36 = vld [vmem:[#allocation30_spill] sm:$0xff]  ;;  %v21861_v58 = vand.u32 4294901760, %v19996_v7 }
 0x5f0   :  { %12977 = vmatpush3.bf16.msra.mxu1 %v24560_v3  ;;  %13135 = vmatprep.subr.bf16.mxu0 %v24580_v29  ;;  %v9244_v3 = vsub.f32 %v19832_v14, %v21828_v61  ;;  %v21835_v29 = vand.u32 4294901760, %v19933_v39 }
 0x5f1   :  { %13011 = vmatprep.subr.bf16.mxu1 %v24581_v31  ;;  %24588 = vst [vmem:[#allocation34_spill] sm:$0xff] %v19918_v52  ;;  %24592 = vst [vmem:[#allocation142_spill] sm:$0xff] %v19947_v6  ;;  %v21834_v31 = vand.u32 4294901760, %v19935_v51 }
 0x5f2   :  { %v9245_v37 = vand.u32 4294901760, %v9244_v3  ;;  %v13370_v3 = vadd.f32 %v19704_v33, %v1267_v15  ;;  %v19967_v33 = vld [vmem:[#allocation8 + $0x3d0] sm:$0xff]  ;;  %v19969_v15 = vld [vmem:[#allocation8 + $0x3d8] sm:$0xff] }
 0x5f3   :  { %8278 = vmatmul.mubr.f32.vlgmr.msra.gmra.mrb[20].mxu1 %v24529_v41  ;;  %13137 = vmatpush3.bf16.msra.mxu0 %v24583_v43  ;;  %v19898_v41 = vpack.c.bf16 %v21843_v47, %v21844_v26  ;;  %v24593_v43 = vld [vmem:[#allocation70_spill] sm:$0xff]  ;;  %v24602_v47 = vld [vmem:[#allocation80_spill] sm:$0xff] }
 0x5f4   :  { %13013 = vmatpush3.bf16.msra.mxu1 %v24585_v45  ;;  %8620 = vmatprep.mubr.f32.mxu1 %v19710_v56  ;;  %v21840_v45 = vand.u32 4294901760, %v19938_v16  ;;  %v20020_v26 = vld [vmem:[#allocation8 + $0x360] sm:$0xff] }
 0x5f5   :  { %24586 = vst [vmem:[#allocation164_spill] sm:$0xff] %v19898_v41  ;;  %13171 = vmatprep.subr.bf16.mxu0 %v19872_v57  ;;  %13015 = vmatprep.subr.bf16.mxu1 %v24587_v9  ;;  %v21839_v9 = vand.u32 4294901760, %v19940_v38  ;;  %v21863_v2 = vand.u32 4294901760, %v20020_v26  ;;  %v24660_v57 = vand.u32 4294901760, %v20027_v40 }
 0x5f6   :  { %9036 = vmatmul.mubr.f32.vlgmr.msra.gmra.mrb[16].mxu0 %v19708_v1 }
 0x5f7   :  { %13173 = vmatpush3.bf16.msra.mxu0 %v19887_v60  ;;  %9246 = vmatprep.mubr.f32.mxu0 %v9245_v37  ;;  %v19962_v37 = vld [vmem:[#allocation8 + $0x340] sm:$0xff]  ;;  %v19990_v11 = vpack.c.bf16 %v21839_v9, %v21840_v45  ;;  %v21862_v45 = vand.u32 4294901760, %v19994_v32 }
 0x5f8   :  { %13017 = vmatpush3.bf16.msra.mxu1 %v24589_v62  ;;  %13175 = vmatprep.subr.bf16.mxu0 %v19898_v41  ;;  %v19964_v62 = vld [vmem:[#allocation8 + $0x348] sm:$0xff]  ;;  %v21846_v61 = vand.u32 4294901760, %v19962_v37  ;;  %v24657_v41 = vand.u32 4294901760, %v20020_v26 }
 0x5f9   :  { %13019 = vmatprep.subr.bf16.mxu1 %v24591_v55  ;;  %v24595_v55 = vld [vmem:[#allocation73_spill] sm:$0xff]  ;;  %v21845_v59 = vand.u32 4294901760, %v19964_v62  ;;  %24598 = vst [vmem:[#allocation174_spill] sm:$0xff] %v19990_v11 }
 0x5fb   :  { %13177 = vmatpush3.bf16.msra.mxu0 %v19918_v52  ;;  %v20006_v9 = vpack.c.bf16 %v21845_v59, %v21846_v61  ;;  %v20022_v59 = vld [vmem:[#allocation8 + $0x368] sm:$0xff] }
 0x5fc   :  { %13021 = vmatpush3.bf16.msra.mxu1 %v24593_v43  ;;  %13179 = vmatprep.subr.bf16.mxu0 %v19929_v0  ;;  %v19976_v43 = vpack.c.bf16 %v21834_v31, %v21835_v29  ;;  %v21852_v31 = vand.u32 4294901760, %v19967_v33  ;;  %v21851_v29 = vand.u32 4294901760, %v19969_v15  ;;  %v24654_v0 = vand.u32 4294901760, %v19996_v7 }
 0x5fd   :  { %13023 = vmatprep.subr.bf16.mxu1 %v24595_v55  ;;  %v6422_v55 = vmax.f32 %v13370_v3, 0.0  ;;  %v21859_v3 = vand.u32 4294901760, %v19982_v34  ;;  %24600 = vst [vmem:[#allocation177_spill] sm:$0xff] %v20006_v9 }
 0x5fe   :  { %24596 = vst [vmem:[#allocation171_spill] sm:$0xff] %v19976_v43  ;;  %v20254_v52 = vsub.f32 %v19996_v7, %v24654_v0 }
 0x5ff   :  { %13181 = vmatpush3.bf16.msra.mxu0 %v19947_v6  ;;  %v20010_v25 = vand.u32 4294901760, %v6422_v55 }
 0x600   :  { %13025 = vmatpush3.bf16.msra.mxu1 %v24597_v36  ;;  %13183 = vmatprep.subr.bf16.mxu0 %v19958_v21  ;;  %v21860_v36 = vand.u32 4294901760, %v19980_v28 }
 0x601   :  { %13027 = vmatprep.subr.bf16.mxu1 %v24599_v53  ;;  %24601 = vst [vmem:[#allocation59_spill] sm:$0xff] %v20010_v25  ;;  %v20018_v53 = vpack.c.bf16 %v21851_v29, %v21852_v31 }
 0x602   :  { %v20033_v22 = vpack.c.bf16 %v21859_v3, %v21860_v36  ;;  %v24607_v3 = vld [vmem:[#allocation81_spill] sm:$0xff]  ;;  %v20053_v36 = vld [vmem:[#allocation8 + $0x370] sm:$0xff] }
 0x603   :  { %13185 = vmatpush3.bf16.msra.mxu0 %v19976_v43  ;;  %24603 = vst [vmem:[#allocation65_spill] sm:$0xff] %v20018_v53  ;;  %v20045_v43 = vsub.f32 %v6422_v55, %v20010_v25  ;;  %v24668_v25 = vand.u32 4294901760, %v19713_v49 }
 0x604   :  { %13029 = vmatpush3.bf16.msra.mxu1 %v24602_v47  ;;  %13187 = vmatprep.subr.bf16.mxu0 %v19990_v11  ;;  %v10128_v61 = vpop.f32.mrb[8].mxu1  ;;  %24604 = vst [vmem:[#allocation90_spill] sm:$0xff] %v20033_v22  ;;  %v24608_v11 = vld [vmem:[#allocation85_spill] sm:$0xff] }
 0x605   :  { %13031 = vmatprep.subr.bf16.mxu1 %v19593_v8  ;;  %v10408_v47 = vpop.f32.mrb[10].mxu0  ;;  %v10129_v17 = vpop.f32.mrb[9].mxu1  ;;  %v20040_v8 = vpack.c.bf16 %v21861_v58, %v21862_v45  ;;  %v20055_v58 = vld [vmem:[#allocation8 + $0x378] sm:$0xff] }
 0x606   :  { %v10130_v29 = vadd.f32 %v10129_v17, %v10128_v61  ;;  %v10409_v31 = vpop.f32.mrb[11].mxu0  ;;  %v24611_v17 = vld [vmem:[#allocation86_spill] sm:$0xff] }
 0x607   :  { %13189 = vmatpush3.bf16.msra.mxu0 %v20006_v9  ;;  %24605 = vst [vmem:[#allocation97_spill] sm:$0xff] %v20040_v8  ;;  %v20047_v21 = vadd.f32 %v10409_v31, %v10408_v47  ;;  %v24609_v31 = vand.u32 4294901760, %v20022_v59  ;;  %v24648_v9 = vand.u32 4294901760, %v19969_v15 }
 0x608   :  { %13033 = vmatpush3.bf16.msra.mxu1 %v24607_v3  ;;  %13191 = vmatprep.subr.bf16.mxu0 %v20018_v53  ;;  %v20058_v45 = vadd.f32 %v10130_v29, %v19834_v35  ;;  %v21864_v3 = vand.u32 4294901760, %v20053_v36  ;;  %v24612_v35 = vand.u32 4294901760, %v20025_v19 }
 0x609   :  { %24606 = vst [vmem:[#allocation103_spill] sm:$0xff] %v20047_v21  ;;  %13035 = vmatprep.subr.bf16.mxu1 %v24608_v11  ;;  %v20066_v55 = vpack.c.bf16 %v24609_v31, %v21863_v2  ;;  %v24613_v11 = vand.u32 4294901760, %v20027_v40  ;;  %v24615_v21 = vand.u32 4294901760, %v19837_v18  ;;  %v24616_v2 = vand.u32 4294901760, %v19839_v27 }
 0x60a   :  { %v20228_v6 = vsub.f32 %v19969_v15, %v24648_v9  ;;  %v24653_v15 = vand.u32 4294901760, %v19994_v32 }
 0x60b   :  { %13193 = vmatpush3.bf16.msra.mxu0 %v20033_v22  ;;  %24610 = vst [vmem:[#allocation76_spill] sm:$0xff] %v20066_v55  ;;  %v20077_v29 = vpack.c.bf16 %v24613_v11, %v24612_v35  ;;  %v20082_v31 = vsub.f32 %v19837_v18, %v24615_v21  ;;  %v20087_v47 = vsub.f32 %v19839_v27, %v24616_v2  ;;  %v24618_v35 = vand.u32 4294901760, %v19846_v48 }
 0x60c   :  { %13037 = vmatpush3.bf16.msra.mxu1 %v24611_v17  ;;  %13195 = vmatprep.subr.bf16.mxu0 %v20040_v8  ;;  %v24617_v17 = vand.u32 4294901760, %v19844_v44  ;;  %v24619_v18 = vand.u32 4294901760, %v20055_v58  ;;  %v24632_v8 = vld [vmem:[#allocation235_spill] sm:$0xff]  ;;  %v24642_v22 = vand.u32 4294901760, %v19940_v38 }
 0x60d   :  { %24614 = vst [vmem:[#allocation149_spill] sm:$0xff] %v20077_v29  ;;  %13039 = vmatprep.subr.bf16.mxu1 %v19652_v4  ;;  %v20098_v11 = vsub.f32 %v19846_v48, %v24618_v35  ;;  %v24621_v4 = vand.u32 4294901760, %v20045_v43  ;;  %v24623_v48 = vand.u32 4294901760, %v19854_v23  ;;  %v24624_v35 = vld [vmem:[#allocation93_spill] sm:$0xff] }
 0x60e   :  { %v20093_v61 = vsub.f32 %v19844_v44, %v24617_v17  ;;  %v20105_v2 = vpack.c.bf16 %v24619_v18, %v21864_v3  ;;  %v24622_v44 = vand.u32 4294901760, %v19852_v46  ;;  %v24625_v18 = vld [vmem:[#allocation232_spill] sm:$0xff]  ;;  %v13234_v3 = vpack.c.bf16 %v20087_v47, %v20082_v31 }
 0x60f   :  { %13197 = vmatpush3.bf16.msra.mxu0 %v20066_v55  ;;  %v9250_v27 = vsub.f32 %v20045_v43, %v24621_v4  ;;  %v20118_v17 = vsub.f32 %v19854_v23, %v24623_v48  ;;  %v24626_v4 = vand.u32 4294901760, %v19863_v30  ;;  %v24628_v48 = vand.u32 4294901760, %v19877_v10 }
 0x610   :  { %24620 = vst [vmem:[#allocation210_spill] sm:$0xff] %v20105_v2  ;;  %v20113_v21 = vsub.f32 %v19852_v46, %v24622_v44  ;;  %13041 = vmatpush3.bf16.msra.mxu1 %v24624_v35  ;;  %13199 = vmatprep.subr.bf16.mxu0 %v20077_v29  ;;  %v24627_v46 = vand.u32 4294901760, %v19865_v24  ;;  %v13236_v23 = vpack.c.bf16 %v20098_v11, %v20093_v61  ;;  %v24630_v29 = vld [vmem:[#allocation234_spill] sm:$0xff] }
 0x611   :  { %13075 = vmatprep.subr.bf16.mxu1 %v24625_v18  ;;  %v20128_v55 = vsub.f32 %v19863_v30, %v24626_v4  ;;  %v20142_v35 = vsub.f32 %v19877_v10, %v24628_v48  ;;  %v24629_v30 = vand.u32 4294901760, %v19879_v42  ;;  %v24633_v10 = vand.u32 4294901760, %v19902_v54 }
 0x612   :  { %v20133_v44 = vsub.f32 %v19865_v24, %v24627_v46  ;;  %v24631_v24 = vand.u32 4294901760, %v19716_v20  ;;  %v9251_v46 = vand.u32 4294901760, %v9250_v27  ;;  %v20202_v53 = vsub.f32 %v19940_v38, %v24642_v22 }
 0x613   :  { %8622 = vmatmul.mubr.f32.vlgmr.msra.gmra.mrb[22].mxu1 %v19708_v1  ;;  %13201 = vmatpush3.bf16.msra.mxu0 %v20105_v2  ;;  %v20147_v4 = vsub.f32 %v19879_v42, %v24629_v30  ;;  %v13238_v2 = vpack.c.bf16 %v20118_v17, %v20113_v21  ;;  %v20158_v48 = vsub.f32 %v19902_v54, %v24633_v10  ;;  %v24634_v42 = vand.u32 4294901760, %v19904_v5 }
 0x614   :  { %13077 = vmatpush3.bf16.msra.mxu1 %v24630_v29  ;;  %8864 = vmatprep.mubr.f32.mxu1 %v24631_v24  ;;  %v13240_v20 = vpack.c.bf16 %v20133_v44, %v20128_v55  ;;  %v24636_v24 = vand.u32 4294901760, %v19910_v12  ;;  %v24639_v10 = vand.u32 4294901760, %v19933_v39  ;;  %v24647_v38 = vand.u32 4294901760, %v19967_v33 }
 0x615   :  { %13235 = vmatprep.subr.bf16.mxu0 %v13234_v3  ;;  %13079 = vmatprep.subr.bf16.mxu1 %v24632_v8  ;;  %v20163_v30 = vsub.f32 %v19904_v5, %v24634_v42  ;;  %v24635_v3 = vand.u32 4294901760, %v19908_v50  ;;  %v13242_v5 = vpack.c.bf16 %v20147_v4, %v20142_v35  ;;  %v9281_v63 = vand.u32 4294901760, %v20133_v44 }
 0x616   :  { %9252 = vmatmul.mubr.f32.vlgmr.msra.gmra.mrb[18].mxu0 %v9251_v46  ;;  %v20176_v54 = vsub.f32 %v19910_v12, %v24636_v24  ;;  %v24637_v46 = vld [vmem:[#allocation237_spill] sm:$0xff]  ;;  %v20185_v42 = vsub.f32 %v19933_v39, %v24639_v10  ;;  %v24643_v39 = vld [vmem:[#allocation240_spill] sm:$0xff]  ;;  %v24645_v10 = vand.u32 4294901760, %v19962_v37 }
 0x617   :  { %13237 = vmatpush3.bf16.msra.mxu0 %v13236_v23  ;;  %9619 = vmatprep.mubr.f32.mxu0 %v19832_v14  ;;  %v20171_v27 = vsub.f32 %v19908_v50, %v24635_v3  ;;  %v24638_v23 = vld [vmem:[#allocation238_spill] sm:$0xff]  ;;  %v24640_v50 = vand.u32 4294901760, %v19935_v51  ;;  %v13244_v12 = vpack.c.bf16 %v20163_v30, %v20158_v48  ;;  %v24659_v14 = vand.u32 4294901760, %v20025_v19 }
 0x618   :  { %13081 = vmatpush3.bf16.msra.mxu1 %v24637_v46  ;;  %13239 = vmatprep.subr.bf16.mxu0 %v13238_v2  ;;  %v24641_v2 = vand.u32 4294901760, %v19938_v16 }
 0x619   :  { %13083 = vmatprep.subr.bf16.mxu1 %v24638_v23  ;;  %v20190_v3 = vsub.f32 %v19935_v51, %v24640_v50  ;;  %v13246_v51 = vpack.c.bf16 %v20176_v54, %v20171_v27  ;;  %v20211_v50 = vsub.f32 %v19962_v37, %v24645_v10  ;;  %v24649_v37 = vld [vmem:[#allocation243_spill] sm:$0xff]  ;;  %v24651_v10 = vand.u32 4294901760, %v19980_v28 }
 0x61a   :  { %v20197_v24 = vsub.f32 %v19938_v16, %v24641_v2  ;;  %v24646_v16 = vand.u32 4294901760, %v19964_v62  ;;  %v20275_v60 = vsub.f32 %v20025_v19, %v24659_v14  ;;  %v24664_v19 = vand.u32 4294901760, %v20055_v58 }
 0x61b   :  { %13241 = vmatpush3.bf16.msra.mxu0 %v13240_v20  ;;  %v24644_v20 = vld [vmem:[#allocation241_spill] sm:$0xff]  ;;  %v13248_v22 = vpack.c.bf16 %v20190_v3, %v20185_v42 }
 0x61c   :  { %13085 = vmatpush3.bf16.msra.mxu1 %v24643_v39  ;;  %13243 = vmatprep.subr.bf16.mxu0 %v13242_v5  ;;  %v20216_v2 = vsub.f32 %v19964_v62, %v24646_v16  ;;  %v20223_v5 = vsub.f32 %v19967_v33, %v24647_v38  ;;  %v13250_v62 = vpack.c.bf16 %v20202_v53, %v20197_v24  ;;  %v24652_v33 = vand.u32 4294901760, %v19982_v34 }
 0x61d   :  { %13087 = vmatprep.subr.bf16.mxu1 %v24644_v20  ;;  %v20237_v16 = vsub.f32 %v19980_v28, %v24651_v10  ;;  %v24655_v28 = vld [vmem:[#allocation38_spill] sm:$0xff]  ;;  %v24656_v10 = vld [vmem:[#allocation39_spill] sm:$0xff] }
 0x61e   :  { %v20242_v38 = vsub.f32 %v19982_v34, %v24652_v33  ;;  %v13252_v9 = vpack.c.bf16 %v20216_v2, %v20211_v50  ;;  %v13254_v34 = vpack.c.bf16 %v20228_v6, %v20223_v5 }
 0x61f   :  { %13245 = vmatpush3.bf16.msra.mxu0 %v13244_v12  ;;  %v24650_v12 = vld [vmem:[#allocation244_spill] sm:$0xff] }
 0x620   :  { %13089 = vmatpush3.bf16.msra.mxu1 %v24649_v37  ;;  %13247 = vmatprep.subr.bf16.mxu0 %v13246_v51  ;;  %v20249_v51 = vsub.f32 %v19994_v32, %v24653_v15  ;;  %v20263_v32 = vsub.f32 %v20020_v26, %v24657_v41  ;;  %v24658_v15 = vand.u32 4294901760, %v20022_v59  ;;  %v20280_v26 = vsub.f32 %v20027_v40, %v24660_v57  ;;  %v24661_v41 = vld [vmem:[#allocation41_spill] sm:$0xff] }
 0x621   :  { %13091 = vmatprep.subr.bf16.mxu1 %v24650_v12  ;;  %v20297_v40 = vsub.f32 %v20055_v58, %v24664_v19  ;;  %v24667_v19 = vld [vmem:[#allocation45_spill] sm:$0xff] }
 0x622   :  { %v20268_v7 = vsub.f32 %v20022_v59, %v24658_v15  ;;  %v13258_v59 = vpack.c.bf16 %v20254_v52, %v20249_v51  ;;  %v24666_v15 = vld [vmem:[#allocation44_spill] sm:$0xff] }
 0x623   :  { %13249 = vmatpush3.bf16.msra.mxu0 %v13248_v22 }
 0x624   :  { %13093 = vmatpush3.bf16.msra.mxu1 %v24655_v28  ;;  %13251 = vmatprep.subr.bf16.mxu0 %v13250_v62  ;;  %v10163_v22 = vpop.f32.mrb[10].mxu1  ;;  %v13256_v62 = vpack.c.bf16 %v20242_v38, %v20237_v16  ;;  %v13260_v57 = vpack.c.bf16 %v20268_v7, %v20263_v32 }
 0x625   :  { %13095 = vmatprep.subr.bf16.mxu1 %v24656_v10  ;;  %v10164_v33 = vpop.f32.mrb[11].mxu1 }
 0x626   :  { %v10165_v0 = vadd.f32 %v10164_v33, %v10163_v22  ;;  %v24662_v22 = vld [vmem:[#allocation209_spill] sm:$0xff]  ;;  %v24663_v33 = vand.u32 4294901760, %v20053_v36 }
 0x627   :  { %13253 = vmatpush3.bf16.msra.mxu0 %v13252_v9 }
 0x628   :  { %13097 = vmatpush3.bf16.msra.mxu1 %v24661_v41  ;;  %13255 = vmatprep.subr.bf16.mxu0 %v13254_v34  ;;  %v20286_v9 = vadd.f32 %v10165_v0, %v20058_v45  ;;  %v20292_v14 = vsub.f32 %v20053_v36, %v24663_v33  ;;  %v24665_v34 = vld [vmem:[#allocation43_spill] sm:$0xff]  ;;  %v13262_v45 = vpack.c.bf16 %v20280_v26, %v20275_v60  ;;  %v9372_v36 = vand.u32 4294901760, %v20082_v31 }
 0x629   :  { %13099 = vmatprep.subr.bf16.mxu1 %v24662_v22  ;;  %v21894_v0 = vand.u32 4294901760, %v20087_v47  ;;  %v9267_v33 = vand.u32 4294901760, %v20098_v11 }
 0x62a   :  { %v13264_v58 = vpack.c.bf16 %v20297_v40, %v20292_v14 }
 0x62b   :  { %13257 = vmatpush3.bf16.msra.mxu0 %v13256_v62  ;;  %v9260_v62 = vand.u32 4294901760, %v20093_v61 }
 0x62c   :  { %13101 = vmatpush3.bf16.msra.mxu1 %v24665_v34  ;;  %13259 = vmatprep.subr.bf16.mxu0 %v13258_v59  ;;  %v9274_v59 = vand.u32 4294901760, %v20128_v55 }
 0x62d   :  { %13103 = vmatprep.subr.bf16.mxu1 %v24666_v15 }
 0x62f   :  { %13261 = vmatpush3.bf16.msra.mxu0 %v13260_v57  ;;  %v13298_v57 = vpack.c.bf16 %v21894_v0, %v9372_v36  ;;  %v24670_v0 = vand.u32 4294901760, %v20118_v17 }
 0x630   :  { %13105 = vmatpush3.bf16.msra.mxu1 %v24667_v19  ;;  %13263 = vmatprep.subr.bf16.mxu0 %v13262_v45  ;;  %v13300_v45 = vpack.c.bf16 %v9267_v33, %v9260_v62 }
 0x631   :  { %13139 = vmatprep.subr.bf16.mxu1 %v24625_v18  ;;  %v24669_v18 = vand.u32 4294901760, %v20113_v21 }
 0x633   :  { %8868 = vmatmul.mubr.f32.vlgmr.msra.gmra.mrb[24].mxu1 %v24668_v25  ;;  %13265 = vmatpush3.bf16.msra.mxu0 %v13264_v58  ;;  %v13302_v49 = vpack.c.bf16 %v24670_v0, %v24669_v18  ;;  %v9400_v25 = vand.u32 4294901760, %v20142_v35  ;;  %v21895_v58 = vand.u32 4294901760, %v20147_v4  ;;  %v21896_v0 = vand.u32 4294901760, %v20163_v30 }
 0x634   :  { %13141 = vmatpush3.bf16.msra.mxu1 %v24630_v29  ;;  %9138 = vmatprep.mubr.f32.mxu1 %v19710_v56  ;;  %v13304_v56 = vpack.c.bf16 %v9281_v63, %v9274_v59  ;;  %v9288_v29 = vand.u32 4294901760, %v20158_v48 }
 0x635   :  { %13299 = vmatprep.subr.bf16.mxu0 %v13298_v57  ;;  %13143 = vmatprep.subr.bf16.mxu1 %v24632_v8  ;;  %v13306_v8 = vpack.c.bf16 %v21895_v58, %v9400_v25  ;;  %v21906_v57 = vand.u32 4294901760, %v20171_v27 }
 0x636   :  { %9622 = vmatmul.mubr.f32.vlgmr.msra.gmra.mrb[20].mxu0 %v20045_v43  ;;  %v13308_v18 = vpack.c.bf16 %v21896_v0, %v9288_v29 }
 0x637   :  { %13301 = vmatpush3.bf16.msra.mxu0 %v13300_v45  ;;  %9896 = vmatprep.mubr.f32.mxu0 %v19823_v13  ;;  %v21897_v45 = vand.u32 4294901760, %v20176_v54 }
 0x638   :  { %13145 = vmatpush3.bf16.msra.mxu1 %v24637_v46  ;;  %13303 = vmatprep.subr.bf16.mxu0 %v13302_v49  ;;  %v21899_v46 = vand.u32 4294901760, %v20185_v42  ;;  %v21898_v49 = vand.u32 4294901760, %v20190_v3 }
 0x639   :  { %13147 = vmatprep.subr.bf16.mxu1 %v24638_v23  ;;  %v13310_v58 = vpack.c.bf16 %v21897_v45, %v21906_v57  ;;  %v21901_v23 = vand.u32 4294901760, %v20197_v24  ;;  %v9470_v57 = vand.u32 4294901760, %v20275_v60 }
 0x63a   :  { %v13312_v0 = vpack.c.bf16 %v21898_v49, %v21899_v46  ;;  %v9330_v49 = vand.u32 4294901760, %v20237_v16  ;;  %v9337_v46 = vand.u32 4294901760, %v20242_v38 }
 0x63b   :  { %13305 = vmatpush3.bf16.msra.mxu0 %v13304_v56  ;;  %v21900_v56 = vand.u32 4294901760, %v20202_v53 }
 0x63c   :  { %13149 = vmatpush3.bf16.msra.mxu1 %v24643_v39  ;;  %13307 = vmatprep.subr.bf16.mxu0 %v13306_v8  ;;  %v21905_v39 = vand.u32 4294901760, %v20211_v50  ;;  %v21902_v8 = vand.u32 4294901760, %v20216_v2 }
 0x63d   :  { %13151 = vmatprep.subr.bf16.mxu1 %v24644_v20  ;;  %v13314_v45 = vpack.c.bf16 %v21900_v56, %v21901_v23  ;;  %v21904_v20 = vand.u32 4294901760, %v20223_v5  ;;  %v9463_v56 = vand.u32 4294901760, %v20254_v52 }
 0x63f   :  { %13309 = vmatpush3.bf16.msra.mxu0 %v13308_v18  ;;  %v21903_v18 = vand.u32 4294901760, %v20228_v6 }
 0x640   :  { %13153 = vmatpush3.bf16.msra.mxu1 %v24649_v37  ;;  %13311 = vmatprep.subr.bf16.mxu0 %v13310_v58  ;;  %v13316_v37 = vpack.c.bf16 %v21902_v8, %v21905_v39  ;;  %v24671_v8 = vand.u32 4294901760, %v20087_v47  ;;  %v9351_v39 = vand.u32 4294901760, %v20268_v7 }
 0x641   :  { %13155 = vmatprep.subr.bf16.mxu1 %v24650_v12  ;;  %v13318_v58 = vpack.c.bf16 %v21903_v18, %v21904_v20  ;;  %v9456_v12 = vand.u32 4294901760, %v20249_v51  ;;  %v13320_v18 = vpack.c.bf16 %v9337_v46, %v9330_v49  ;;  %v9344_v20 = vand.u32 4294901760, %v20263_v32 }
 0x643   :  { %13313 = vmatpush3.bf16.msra.mxu0 %v13312_v0  ;;  %v9373_v0 = vsub.f32 %v20082_v31, %v9372_v36  ;;  %v9268_v36 = vsub.f32 %v20098_v11, %v9267_v33  ;;  %v24673_v11 = vand.u32 4294901760, %v20118_v17  ;;  %v13324_v33 = vpack.c.bf16 %v9351_v39, %v9344_v20 }
 0x644   :  { %13157 = vmatpush3.bf16.msra.mxu1 %v24655_v28  ;;  %13315 = vmatprep.subr.bf16.mxu0 %v13314_v45  ;;  %v10198_v23 = vpop.f32.mrb[12].mxu1  ;;  %v9380_v28 = vsub.f32 %v20087_v47, %v24671_v8  ;;  %v9261_v47 = vsub.f32 %v20093_v61, %v9260_v62  ;;  %v13322_v8 = vpack.c.bf16 %v9463_v56, %v9456_v12  ;;  %v24672_v61 = vand.u32 4294901760, %v20113_v21 }
 0x645   :  { %13159 = vmatprep.subr.bf16.mxu1 %v24656_v10  ;;  %v10199_v45 = vpop.f32.mrb[13].mxu1  ;;  %v9477_v10 = vand.u32 4294901760, %v20280_v26 }
 0x646   :  { %v10200_v31 = vadd.f32 %v10199_v45, %v10198_v23  ;;  %v9374_v23 = vand.u32 4294901760, %v9373_v0  ;;  %v9381_v45 = vand.u32 4294901760, %v9380_v28  ;;  %v9387_v62 = vsub.f32 %v20113_v21, %v24672_v61 }
 0x647   :  { %13317 = vmatpush3.bf16.msra.mxu0 %v13316_v37  ;;  %v9262_v21 = vand.u32 4294901760, %v9261_v47  ;;  %v9269_v0 = vand.u32 4294901760, %v9268_v36  ;;  %v9282_v28 = vsub.f32 %v20133_v44, %v9281_v63  ;;  %v9289_v44 = vsub.f32 %v20158_v48, %v9288_v29 }
 0x648   :  { %13161 = vmatpush3.bf16.msra.mxu1 %v24661_v41  ;;  %13319 = vmatprep.subr.bf16.mxu0 %v13318_v58  ;;  %v20420_v37 = vadd.f32 %v10200_v31, %v20286_v9  ;;  %v9394_v41 = vsub.f32 %v20118_v17, %v24673_v11  ;;  %v9358_v58 = vand.u32 4294901760, %v20292_v14  ;;  %v9365_v9 = vand.u32 4294901760, %v20297_v40 }
 0x649   :  { %13163 = vmatprep.subr.bf16.mxu1 %v24662_v22  ;;  %v13326_v22 = vpack.c.bf16 %v9477_v10, %v9470_v57  ;;  %v9275_v17 = vsub.f32 %v20128_v55, %v9274_v59  ;;  %v24674_v31 = vand.u32 4294901760, %v20147_v4  ;;  %v13202_v36 = vpack.c.bf16 %v9381_v45, %v9374_v23 }
 0x64a   :  { %v9388_v61 = vand.u32 4294901760, %v9387_v62  ;;  %v9395_v55 = vand.u32 4294901760, %v9394_v41  ;;  %v13204_v63 = vpack.c.bf16 %v9269_v0, %v9262_v21  ;;  %v9283_v59 = vand.u32 4294901760, %v9282_v28 }
 0x64b   :  { %13321 = vmatpush3.bf16.msra.mxu0 %v13320_v18  ;;  %v9401_v18 = vsub.f32 %v20142_v35, %v9400_v25  ;;  %v9408_v47 = vsub.f32 %v20147_v4, %v24674_v31  ;;  %v24675_v35 = vand.u32 4294901760, %v20163_v30  ;;  %v24676_v45 = vand.u32 4294901760, %v20171_v27 }
 0x64c   :  { %13165 = vmatpush3.bf16.msra.mxu1 %v24665_v34  ;;  %13323 = vmatprep.subr.bf16.mxu0 %v13322_v8  ;;  %v13328_v34 = vpack.c.bf16 %v9365_v9, %v9358_v58  ;;  %v13206_v23 = vpack.c.bf16 %v9395_v55, %v9388_v61  ;;  %v24677_v11 = vand.u32 4294901760, %v20176_v54  ;;  %v24678_v29 = vand.u32 4294901760, %v20185_v42 }
 0x64d   :  { %13167 = vmatprep.subr.bf16.mxu1 %v24666_v15  ;;  %v9296_v4 = vsub.f32 %v20163_v30, %v24675_v35  ;;  %v9276_v15 = vand.u32 4294901760, %v9275_v17  ;;  %v9402_v25 = vand.u32 4294901760, %v9401_v18  ;;  %v9409_v8 = vand.u32 4294901760, %v9408_v47  ;;  %v24682_v18 = vld [vmem:[#allocation59_spill] sm:$0xff] }
 0x64e   :  { %v9415_v62 = vsub.f32 %v20171_v27, %v24676_v45  ;;  %v9422_v48 = vsub.f32 %v20176_v54, %v24677_v11  ;;  %v9290_v30 = vand.u32 4294901760, %v9289_v44  ;;  %v9303_v41 = vsub.f32 %v20185_v42, %v24678_v29 }
 0x64f   :  { %13325 = vmatpush3.bf16.msra.mxu0 %v13324_v33  ;;  %v24679_v33 = vand.u32 4294901760, %v20190_v3  ;;  %v13208_v27 = vpack.c.bf16 %v9283_v59, %v9276_v15  ;;  %v13210_v21 = vpack.c.bf16 %v9409_v8, %v9402_v25  ;;  %v24681_v28 = vand.u32 4294901760, %v20202_v53 }
 0x650   :  { %13169 = vmatpush3.bf16.msra.mxu1 %v24667_v19  ;;  %13327 = vmatprep.subr.bf16.mxu0 %v13326_v22  ;;  %v9297_v19 = vand.u32 4294901760, %v9296_v4  ;;  %v9416_v54 = vand.u32 4294901760, %v9415_v62  ;;  %v9423_v0 = vand.u32 4294901760, %v9422_v48  ;;  %v24684_v55 = vand.u32 4294901760, %v20216_v2 }
 0x651   :  { %13203 = vmatprep.subr.bf16.mxu1 %v13202_v36  ;;  %v9310_v22 = vsub.f32 %v20190_v3, %v24679_v33  ;;  %v9436_v42 = vsub.f32 %v20202_v53, %v24681_v28  ;;  %v9304_v3 = vand.u32 4294901760, %v9303_v41  ;;  %v24683_v36 = vand.u32 4294901760, %v20211_v50  ;;  %v24694_v28 = vld [vmem:[#allocation166_spill] sm:$0xff] }
 0x652   :  { %v13212_v31 = vpack.c.bf16 %v9297_v19, %v9290_v30  ;;  %v24686_v53 = vand.u32 4294901760, %v20228_v6  ;;  %v13214_v35 = vpack.c.bf16 %v9423_v0, %v9416_v54  ;;  %v9457_v45 = vsub.f32 %v20249_v51, %v9456_v12  ;;  %v24690_v0 = vld [vmem:[#allocation106_spill] sm:$0xff] }
 0x653   :  { %9140 = vmatmul.mubr.f32.vlgmr.msra.gmra.mrb[26].mxu1 %v19708_v1  ;;  %13329 = vmatpush3.bf16.msra.mxu0 %v13328_v34  ;;  %v24680_v1 = vand.u32 4294901760, %v20197_v24  ;;  %v9311_v47 = vand.u32 4294901760, %v9310_v22  ;;  %v9317_v61 = vsub.f32 %v20211_v50, %v24683_v36  ;;  %v9324_v34 = vsub.f32 %v20216_v2, %v24684_v55  ;;  %v24699_v36 = vld [vmem:[#allocation177_spill] sm:$0xff] }
 0x654   :  { %13205 = vmatpush3.bf16.msra.mxu1 %v13204_v63  ;;  %9482 = vmatprep.mubr.f32.mxu1 %v19823_v13  ;;  %v9450_v44 = vsub.f32 %v20228_v6, %v24686_v53  ;;  %v9437_v15 = vand.u32 4294901760, %v9436_v42  ;;  %v9331_v50 = vsub.f32 %v20237_v16, %v9330_v49  ;;  %v9338_v2 = vsub.f32 %v20242_v38, %v9337_v46  ;;  %v24695_v42 = vld [vmem:[#allocation142_spill] sm:$0xff]  ;;  %v24700_v55 = vld [vmem:[#allocation65_spill] sm:$0xff] }
 0x655   :  { %13207 = vmatprep.subr.bf16.mxu1 %v13206_v23  ;;  %v9429_v17 = vsub.f32 %v20197_v24, %v24680_v1  ;;  %v24685_v24 = vand.u32 4294901760, %v20223_v5  ;;  %v13216_v59 = vpack.c.bf16 %v9311_v47, %v9304_v3  ;;  %v9318_v25 = vand.u32 4294901760, %v9317_v61  ;;  %v24697_v3 = vld [vmem:[#allocation171_spill] sm:$0xff]  ;;  %v24698_v47 = vld [vmem:[#allocation174_spill] sm:$0xff] }
 0x656   :  { %9898 = vmatmul.mubr.f32.vlgmr.msra.gmra.mrb[22].mxu0 %v24682_v18  ;;  %v9451_v23 = vand.u32 4294901760, %v9450_v44  ;;  %v9464_v62 = vsub.f32 %v20254_v52, %v9463_v56  ;;  %v9332_v16 = vand.u32 4294901760, %v9331_v50  ;;  %v9339_v49 = vand.u32 4294901760, %v9338_v2  ;;  %v24704_v2 = vld [vmem:[#allocation76_spill] sm:$0xff] }
 0x657   :  { %v9443_v63 = vsub.f32 %v20223_v5, %v24685_v24  ;;  %v9430_v4 = vand.u32 4294901760, %v9429_v17  ;;  %v9325_v5 = vand.u32 4294901760, %v9324_v34  ;;  %v9345_v46 = vsub.f32 %v20263_v32, %v9344_v20  ;;  %v24692_v17 = vld [vmem:[#allocation164_spill] sm:$0xff] }
 0x658   :  { %13209 = vmatpush3.bf16.msra.mxu1 %v13208_v27  ;;  %v9352_v48 = vsub.f32 %v20268_v7, %v9351_v39  ;;  %v9458_v30 = vand.u32 4294901760, %v9457_v45  ;;  %v9465_v51 = vand.u32 4294901760, %v9464_v62  ;;  %v9471_v52 = vsub.f32 %v20275_v60, %v9470_v57 }
 0x659   :  { %13211 = vmatprep.subr.bf16.mxu1 %v13210_v21  ;;  %v9444_v8 = vand.u32 4294901760, %v9443_v63  ;;  %v13218_v6 = vpack.c.bf16 %v9437_v15, %v9430_v4  ;;  %v13220_v11 = vpack.c.bf16 %v9325_v5, %v9318_v25  ;;  %v9478_v56 = vsub.f32 %v20280_v26, %v9477_v10  ;;  %v24701_v63 = vld [vmem:[#allocation90_spill] sm:$0xff]  ;;  %v24705_v25 = vld [vmem:[#allocation149_spill] sm:$0xff] }
 0x65a   :  { %v13224_v12 = vpack.c.bf16 %v9339_v49, %v9332_v16  ;;  %v9346_v19 = vand.u32 4294901760, %v9345_v46  ;;  %v9353_v29 = vand.u32 4294901760, %v9352_v48  ;;  %v9359_v32 = vsub.f32 %v20292_v14, %v9358_v58  ;;  %v24687_v14 = vld [vmem:[#allocation95_spill] sm:$0xff]  ;;  %v24706_v5 = vld [vmem:[#allocation210_spill] sm:$0xff] }
 0x65b   :  { %v13222_v38 = vpack.c.bf16 %v9451_v23, %v9444_v8  ;;  %v9366_v7 = vsub.f32 %v20297_v40, %v9365_v9  ;;  %v13226_v20 = vpack.c.bf16 %v9465_v51, %v9458_v30  ;;  %v9472_v60 = vand.u32 4294901760, %v9471_v52  ;;  %v24688_v40 = vld [vmem:[#allocation161_spill] sm:$0xff]  ;;  %v24708_v49 = vld [vmem:[#allocation103_spill] sm:$0xff] }
 0x65c   :  { %13213 = vmatpush3.bf16.msra.mxu1 %v13212_v31  ;;  %v9479_v57 = vand.u32 4294901760, %v9478_v56  ;;  %v13228_v26 = vpack.c.bf16 %v9353_v29, %v9346_v19  ;;  %v9360_v10 = vand.u32 4294901760, %v9359_v32  ;;  %v24689_v9 = vld [vmem:[#allocation33_spill] sm:$0xff]  ;;  %v24691_v1 = vand.u32 4294901760, %v24690_v0  ;;  %v24696_v31 = vld [vmem:[#allocation170_spill] sm:$0xff] }
 0x65d   :  { %13215 = vmatprep.subr.bf16.mxu1 %v13214_v35  ;;  %v9367_v22 = vand.u32 4294901760, %v9366_v7  ;;  %v24702_v35 = vld [vmem:[#allocation97_spill] sm:$0xff]  ;;  %v24707_v8 = vand.u32 4294901760, %v20045_v43 }
 0x65e   :  { %v13230_v21 = vpack.c.bf16 %v9479_v57, %v9472_v60 }
 0x65f   :  { %v13232_v54 = vpack.c.bf16 %v9367_v22, %v9360_v10 }
 0x660   :  { %13217 = vmatpush3.bf16.msra.mxu1 %v13216_v59  ;;  %v24703_v59 = vld [vmem:[#allocation98_spill] sm:$0xff] }
 0x661   :  { %13219 = vmatprep.subr.bf16.mxu1 %v13218_v6 }
 0x664   :  { %13221 = vmatpush3.bf16.msra.mxu1 %v13220_v11  ;;  %v10233_v39 = vpop.f32.mrb[14].mxu1 }
 0x665   :  { %13223 = vmatprep.subr.bf16.mxu1 %v13222_v38  ;;  %v10234_v41 = vpop.f32.mrb[15].mxu1 }
 0x666   :  { %v10235_v33 = vadd.f32 %v10234_v41, %v10233_v39 }
 0x668   :  { %13225 = vmatpush3.bf16.msra.mxu1 %v13224_v12  ;;  %v7418_v27 = vadd.f32 %v10235_v33, %v20420_v37  ;;  %v24693_v37 = vld [vmem:[#allocation34_spill] sm:$0xff] }
 0x669   :  { %13227 = vmatprep.subr.bf16.mxu1 %v13226_v20 }
 0x66a   :  { %v7530_v58 = vadd.f32 %v24687_v14, %v7418_v27 }
 0x66c   :  { %13229 = vmatpush3.bf16.msra.mxu1 %v13228_v26 }
 0x66d   :  { %13231 = vmatprep.subr.bf16.mxu1 %v13230_v21 }
 0x670   :  { %13233 = vmatpush3.bf16.msra.mxu1 %v13232_v54 }
 0x671   :  { %13267 = vmatprep.subr.bf16.mxu1 %v24688_v40 }
 0x673   :  { %9484 = vmatmul.mubr.f32.vlgmr.msra.gmra.mrb[28].mxu1 %v24682_v18 }
 0x674   :  { %13269 = vmatpush3.bf16.msra.mxu1 %v24689_v9  ;;  %9726 = vmatprep.mubr.f32.mxu1 %v24691_v1 }
 0x675   :  { %13271 = vmatprep.subr.bf16.mxu1 %v24692_v17 }
 0x678   :  { %13273 = vmatpush3.bf16.msra.mxu1 %v24693_v37 }
 0x679   :  { %13275 = vmatprep.subr.bf16.mxu1 %v24694_v28 }
 0x67c   :  { %13277 = vmatpush3.bf16.msra.mxu1 %v24695_v42 }
 0x67d   :  { %13279 = vmatprep.subr.bf16.mxu1 %v24696_v31 }
 0x680   :  { %13281 = vmatpush3.bf16.msra.mxu1 %v24697_v3 }
 0x681   :  { %13283 = vmatprep.subr.bf16.mxu1 %v24698_v47 }
 0x684   :  { %13285 = vmatpush3.bf16.msra.mxu1 %v24699_v36 }
 0x685   :  { %v10303_v61 = vpop.f32.mrb[16].mxu1  ;;  %13287 = vmatprep.subr.bf16.mxu1 %v24700_v55 }
 0x686   :  { %v10304_v34 = vpop.f32.mrb[17].mxu1 }
 0x687   :  { %v10305_v24 = vadd.f32 %v10304_v34, %v10303_v61 }
 0x688   :  { %13289 = vmatpush3.bf16.msra.mxu1 %v24701_v63 }
 0x689   :  { %v7762_v53 = vadd.f32 %v10305_v24, %v7530_v58  ;;  %v10478_v44 = vpop.f32.mrb[12].mxu0  ;;  %13291 = vmatprep.subr.bf16.mxu1 %v24702_v35 }
 0x68a   :  { %v10479_v4 = vpop.f32.mrb[13].mxu0 }
 0x68b   :  { %v10480_v15 = vadd.f32 %v10479_v4, %v10478_v44  ;;  %v7900_v50 = vadd.f32 %v24703_v59, %v7762_v53 }
 0x68c   :  { %13293 = vmatpush3.bf16.msra.mxu1 %v24704_v2 }
 0x68d   :  { %13295 = vmatprep.subr.bf16.mxu1 %v24705_v25 }
 0x690   :  { %13297 = vmatpush3.bf16.msra.mxu1 %v24706_v5 }
 0x691   :  { %13331 = vmatprep.subr.bf16.mxu1 %v24688_v40 }
 0x693   :  { %9730 = vmatmul.mubr.f32.vlgmr.msra.gmra.mrb[30].mxu1 %v24707_v8 }
 0x694   :  { %13333 = vmatpush3.bf16.msra.mxu1 %v24689_v9  ;;  %10000 = vmatprep.mubr.f32.mxu1 %v19823_v13 }
 0x695   :  { %13335 = vmatprep.subr.bf16.mxu1 %v24692_v17 }
 0x698   :  { %13337 = vmatpush3.bf16.msra.mxu1 %v24693_v37 }
 0x699   :  { %13339 = vmatprep.subr.bf16.mxu1 %v24694_v28 }
 0x69c   :  { %13341 = vmatpush3.bf16.msra.mxu1 %v24695_v42 }
 0x69d   :  { %13343 = vmatprep.subr.bf16.mxu1 %v24696_v31 }
 0x6a0   :  { %13345 = vmatpush3.bf16.msra.mxu1 %v24697_v3 }
 0x6a1   :  { %13347 = vmatprep.subr.bf16.mxu1 %v24698_v47 }
 0x6a4   :  { %13349 = vmatpush3.bf16.msra.mxu1 %v24699_v36 }
 0x6a5   :  { %v10373_v43 = vpop.f32.mrb[18].mxu1  ;;  %13351 = vmatprep.subr.bf16.mxu1 %v24700_v55 }
 0x6a6   :  { %v10374_v13 = vpop.f32.mrb[19].mxu1 }
 0x6a7   :  { %v10375_v23 = vadd.f32 %v10374_v13, %v10373_v43 }
 0x6a8   :  { %13353 = vmatpush3.bf16.msra.mxu1 %v24701_v63 }
 0x6a9   :  { %v8008_v6 = vadd.f32 %v10375_v23, %v7900_v50  ;;  %v10548_v45 = vpop.f32.mrb[14].mxu0  ;;  %13355 = vmatprep.subr.bf16.mxu1 %v24702_v35 }
 0x6aa   :  { %v10549_v62 = vpop.f32.mrb[15].mxu0 }
 0x6ab   :  { %v10550_v16 = vadd.f32 %v10549_v62, %v10548_v45  ;;  %v8176_v11 = vadd.f32 %v24708_v49, %v8008_v6 }
 0x6ac   :  { %13357 = vmatpush3.bf16.msra.mxu1 %v24704_v2 }
 0x6ad   :  { %13359 = vmatprep.subr.bf16.mxu1 %v24705_v25 }
 0x6b0   :  { %13361 = vmatpush3.bf16.msra.mxu1 %v24706_v5 }
 0x6b3   :  { %10002 = vmatmul.mubr.f32.vlgmr.msra.gmra.mrb[32].mxu1 %v24682_v18 }
 0x6c6   :  { %v10443_v38 = vpop.f32.mrb[20].mxu1 }
 0x6c7   :  { %v10444_v46 = vpop.f32.mrb[21].mxu1 }
 0x6c8   :  { %v10445_v48 = vadd.f32 %v10444_v46, %v10443_v38 }
 0x6c9   :  { %v10618_v30 = vpop.f32.mrb[16].mxu0 }
 0x6ca   :  { %v8280_v51 = vadd.f32 %v10445_v48, %v8176_v11  ;;  %v10619_v52 = vpop.f32.mrb[17].mxu0 }
 0x6cb   :  { %v10620_v56 = vadd.f32 %v10619_v52, %v10618_v30 }
 0x6cc   :  { %v8392_v12 = vadd.f32 %v10480_v15, %v8280_v51 }
 0x6e6   :  { %v10513_v19 = vpop.f32.mrb[22].mxu1 }
 0x6e7   :  { %v10514_v29 = vpop.f32.mrb[23].mxu1 }
 0x6e8   :  { %v10515_v32 = vadd.f32 %v10514_v29, %v10513_v19 }
 0x6e9   :  { %v10688_v7 = vpop.f32.mrb[18].mxu0 }
 0x6ea   :  { %v8624_v39 = vadd.f32 %v10515_v32, %v8392_v12  ;;  %v10689_v20 = vpop.f32.mrb[19].mxu0 }
 0x6eb   :  { %v10690_v60 = vadd.f32 %v10689_v20, %v10688_v7 }
 0x6ec   :  { %v8762_v57 = vadd.f32 %v10550_v16, %v8624_v39 }
 0x706   :  { %v10583_v41 = vpop.f32.mrb[24].mxu1 }
 0x707   :  { %v10584_v33 = vpop.f32.mrb[25].mxu1 }
 0x708   :  { %v10585_v26 = vadd.f32 %v10584_v33, %v10583_v41 }
 0x709   :  { %v10758_v18 = vpop.f32.mrb[20].mxu0 }
 0x70a   :  { %v8870_v10 = vadd.f32 %v10585_v26, %v8762_v57  ;;  %v10759_v22 = vpop.f32.mrb[21].mxu0 }
 0x70b   :  { %v10760_v27 = vadd.f32 %v10759_v22, %v10758_v18 }
 0x70c   :  { %v9038_v21 = vadd.f32 %v10620_v56, %v8870_v10 }
 0x726   :  { %v10653_v14 = vpop.f32.mrb[26].mxu1 }
 0x727   :  { %v10654_v58 = vpop.f32.mrb[27].mxu1 }
 0x728   :  { %v10655_v54 = vadd.f32 %v10654_v58, %v10653_v14 }
 0x729   :  { %v10828_v40 = vpop.f32.mrb[22].mxu0 }
 0x72a   :  { %v9142_v9 = vadd.f32 %v10655_v54, %v9038_v21  ;;  %v10829_v0 = vpop.f32.mrb[23].mxu0 }
 0x72b   :  { %v10830_v1 = vadd.f32 %v10829_v0, %v10828_v40 }
 0x72c   :  { %v9254_v17 = vadd.f32 %v10690_v60, %v9142_v9 }
 0x746   :  { %v10723_v37 = vpop.f32.mrb[28].mxu1 }
 0x747   :  { %v10724_v28 = vpop.f32.mrb[29].mxu1 }
 0x748   :  { %v10725_v42 = vadd.f32 %v10724_v28, %v10723_v37 }
 0x74a   :  { %v9486_v31 = vadd.f32 %v10725_v42, %v9254_v17 }
 0x74c   :  { %v9624_v3 = vadd.f32 %v10760_v27, %v9486_v31 }
 0x766   :  { %v10793_v47 = vpop.f32.mrb[30].mxu1 }
 0x767   :  { %v10794_v36 = vpop.f32.mrb[31].mxu1 }
 0x768   :  { %v10795_v61 = vadd.f32 %v10794_v36, %v10793_v47 }
 0x76a   :  { %v9732_v55 = vadd.f32 %v10795_v61, %v9624_v3 }
 0x76c   :  { %v9900_v34 = vadd.f32 %v10830_v1, %v9732_v55 }
 0x786   :  { %v10863_v24 = vpop.f32.mrb[32].mxu1 }
 0x787   :  { %v10864_v63 = vpop.f32.mrb[33].mxu1 }
 0x788   :  { %v10865_v53 = vadd.f32 %v10864_v63, %v10863_v24 }
 0x78a   :  { %v10004_v44 = vadd.f32 %v10865_v53, %v9900_v34 }
 0x78c   :  { %10007 = vst [vmem:[#allocation10] sm:$0xff] %v10004_v44 }
 0x78d   :  { %13534 = shalt.err (!%p13531_p8)
}
 0x78e   :  { %s13535_s13 = scalar_lea.hbm %s20589_s7, 128 }
 0x78f   :  { %p13536_p9 = scmp.ne.s32.totalorder %s20589_s7, %s13535_s13  ;;  %p13539_p10 = scmp.lt.u32.totalorder %s13535_s13, %s20589_s7 }
 0x791   :  { %p13541_p11 = pnand %p13539_p10, %p13536_p9 }
 0x793   :  { %13544 = shalt.err (!%p13541_p11)
}
 0x794   :  { %10017 = dma.vmem_to_hbm [thread:$0]  %s10015_s10, 128, %s20589_s7, [#allocation4]  }
 0x795   :  { %13551 = dma.done.wait [#allocation4], 128  }
 0x796   :  { %13552 = vsyncadd [#allocation4], 4294967168 }
 0x797   :  { %10021 = vsyncpa [#allocation3], 1 }
 0x798   :  { %10022 = vsyncpa [#allocation6], 1 }
 0x799   :  { %10023 = vsyncpa [#allocation9], 1 }
 0x79a   :  { %10024 = vsyncpa [#allocation4], 1 }

</bundles_post_ra>
